<compile_context>
chip_gen: v6e
topology: v6e:2x2x1
jax: 0.10.0
libtpu: 0.0.40
codegen_flags: <defaults>
</compile_context>

<pallas_src>
import math
import numpy as np
import jax
import jax.numpy as jnp
from jax.experimental import pallas as pl
from jax.experimental.pallas import tpu as pltpu

_EPS = 1e-5
_SQRT2_INV = 0.7071067811865476


def _gelu(x):
    # Exact (erf-based) GELU == torch.nn.GELU() default.
    # TODO(synk): jax.nn.gelu(approximate=True) would move this onto the EUP (own VLIW slot),
    # but deviates slightly from torch's exact GELU, so fidelity wins here.
    return 0.5 * x * (1.0 + jax.lax.erf(x * _SQRT2_INV))


# ---------------------------------------------------------------------------
# In-kernel building blocks.  Activations are batch-stacked row-major pixel rows:
# shape (R, C) with R = BT * Hc * Wc and channels on lanes.
# ---------------------------------------------------------------------------
def _conv3x3(x, w_ref, Wc, HWc):
    """3x3 'same' conv on batch-stacked (R, Cin) activations.

    The 9 shifted+masked taps are lane-concatenated into one (R, 9*Cin) im2col block and
    contracted against w_ref ((9*Cin, Cout), (tap, cin)-major rows) with a SINGLE matmul.
    Sample boundaries / image borders are handled by masking on the within-sample pixel
    index, so the wrap-around rows of pltpu.roll never contribute."""
    R, cin = x.shape
    pix = jax.lax.broadcasted_iota(jnp.int32, (R, 1), 0)
    p_in = pix % HWc                      # within-sample pixel index (hoisted)
    col = pix % Wc                        # pixel column                (hoisted)
    ok_l = col >= 1                       # dx == -1 stays on this row
    ok_r = col < (Wc - 1)                 # dx == +1 stays on this row
    pieces = []
    for dy in (-1, 0, 1):
        for dx in (-1, 0, 1):
            s = dy * Wc + dx
            if s == 0:
                pieces.append(x)
                continue
            xs = pltpu.roll(x, shift=(-s) % R, axis=0)     # xs[r] = x[(r + s) mod R]
            valid = (p_in + s >= 0) & (p_in + s < HWc)     # stays inside this sample
            if dx == 1:
                valid = valid & ok_r
            elif dx == -1:
                valid = valid & ok_l
            pieces.append(jnp.where(valid, xs, 0.0))
    im2col = jnp.concatenate(pieces, axis=1)               # (R, 9*cin), tap-major lanes
    return jnp.dot(im2col, w_ref[...], preferred_element_type=jnp.float32)


def _maxpool2x2(y, Wc, sel_ref):
    """2x2 / stride-2 max-pool of batch-stacked (R, C) maps.  The 4 window members are
    aligned with sublane rolls; an exact 0/1 block-diagonal selection matrix gathers the
    stride-2 rows of every sample with one matmul (even H, W assumed)."""
    R = y.shape[0]
    hv = jnp.maximum(jnp.maximum(y, pltpu.roll(y, shift=R - 1, axis=0)),           # y[r+1]
                     jnp.maximum(pltpu.roll(y, shift=R - Wc, axis=0),               # y[r+Wc]
                                 pltpu.roll(y, shift=R - Wc - 1, axis=0)))          # y[r+Wc+1]
    return jnp.dot(sel_ref[...], hv, preferred_element_type=jnp.float32)


# ---------------------------------------------------------------------------
# The fused kernel: conv stack + CBAM + radiomics MLP + classifier, BT samples per grid step
# ---------------------------------------------------------------------------
def _make_kernel(H, W, BT):
    HW = H * W
    HW1, W1 = HW // 4, W // 2
    HW2, W2 = HW // 16, W // 4
    HWF = HW // 64

    def kernel(p_ref, rad_ref,
               w1_ref, s1_ref, b1_ref, sel1_ref,
               w2_ref, s2_ref, b2_ref, sel2_ref,
               w3_ref, s3_ref, b3_ref, sel3_ref,
               caw1_ref, caw2_ref, sa_ref, sab_ref,
               rw1_ref, rb1_ref, rw2_ref, rb2_ref, lnw_ref, lnb_ref,
               c1a_ref, c1b_ref, c1bias_ref, c2w_ref, c2b_ref,
               o_ref):
        # ---- conv1 (+folded BN + GELU) on host-built (BT*HW, 9*Cin) patches, 2x2 pool ----
        y = jnp.dot(p_ref[...], w1_ref[...], preferred_element_type=jnp.float32)
        y = _gelu(y * s1_ref[...] + b1_ref[...])
        x = _maxpool2x2(y, W, sel1_ref)                          # (BT*HW1, 32)

        # ---- conv2: in-kernel im2col (rolls + lane concat) -> one matmul ----
        y = _conv3x3(x, w2_ref, W1, HW1)
        y = _gelu(y * s2_ref[...] + b2_ref[...])
        x = _maxpool2x2(y, W1, sel2_ref)                         # (BT*HW2, 64)

        # ---- conv3 ----
        y = _conv3x3(x, w3_ref, W2, HW2)
        y = _gelu(y * s3_ref[...] + b3_ref[...])
        x = _maxpool2x2(y, W2, sel3_ref)                         # (BT*HWF, 128)

        # ---- CBAM channel attention: sigmoid(fc(avg)) + sigmoid(fc(max)) (as in the spec) ----
        avg = jnp.concatenate(
            [jnp.mean(x[b * HWF:(b + 1) * HWF, :], axis=0, keepdims=True) for b in range(BT)],
            axis=0)                                              # (BT, 128)
        mx = jnp.concatenate(
            [jnp.max(x[b * HWF:(b + 1) * HWF, :], axis=0, keepdims=True) for b in range(BT)],
            axis=0)                                              # (BT, 128)
        stacked = jnp.concatenate([avg, mx], axis=0)             # (2*BT, 128): one MLP pass
        hca = jnp.maximum(
            jnp.dot(stacked, caw1_ref[...], preferred_element_type=jnp.float32), 0.0)
        sca = jax.nn.sigmoid(
            jnp.dot(hca, caw2_ref[...], preferred_element_type=jnp.float32))
        att = sca[:BT, :] + sca[BT:, :]                          # (BT, 128)
        xc = jnp.concatenate(
            [x[b * HWF:(b + 1) * HWF, :] * att[b:b + 1, :] for b in range(BT)], axis=0)

        # ---- CBAM spatial attention: 7x7 conv on [mean_c, max_c] as one block-diag matmul ----
        # TODO(synk): dense (R, 2R) mixing matrices only make sense at toy resolutions; a
        # direct 7x7 conv is required for realistic image sizes.
        mean_c = jnp.mean(xc, axis=1, keepdims=True)             # (BT*HWF, 1)
        max_c = jnp.max(xc, axis=1, keepdims=True)
        mm = jnp.concatenate([mean_c, max_c], axis=0)            # (2*BT*HWF, 1)
        sp = jnp.dot(sa_ref[...], mm, preferred_element_type=jnp.float32) + sab_ref[...]
        feat = xc * jax.nn.sigmoid(sp)                           # (BT*HWF, 128)

        # ---- radiomics_fc: Linear+BN1d(folded)+GELU, Linear+LayerNorm+GELU ----
        r = rad_ref[0]                                           # (BT, RD)
        h = _gelu(jnp.dot(r, rw1_ref[...], preferred_element_type=jnp.float32) + rb1_ref[...])
        h = jnp.dot(h, rw2_ref[...], preferred_element_type=jnp.float32) + rb2_ref[...]
        mu = jnp.mean(h, axis=1, keepdims=True)
        var = jnp.mean((h - mu) ** 2, axis=1, keepdims=True)
        h = (h - mu) * jax.lax.rsqrt(var + _EPS) * lnw_ref[...] + lnb_ref[...]
        h = _gelu(h)                                             # (BT, 64)

        # ---- classifier on concat([conv_flat, radiomics_64]): one big matmul ----
        # c1a rows were block-permuted at init to (spatial p, channel c) order, matching this
        # per-sample lane flatten, so no runtime transpose and no per-pixel matmul loop.
        flat = jnp.concatenate(
            [jnp.concatenate(
                [feat[b * HWF + p:b * HWF + p + 1, :] for p in range(HWF)], axis=1)
             for b in range(BT)], axis=0)                        # (BT, HWF*128)
        z = (jnp.dot(flat, c1a_ref[...], preferred_element_type=jnp.float32)
             + jnp.dot(h, c1b_ref[...], preferred_element_type=jnp.float32)
             + c1bias_ref[...])
        z = _gelu(z)
        logit = jnp.dot(z, c2w_ref[...], preferred_element_type=jnp.float32) + c2b_ref[...]
        o_ref[0] = jax.nn.sigmoid(logit).astype(o_ref.dtype)     # (BT, 1)

    return kernel


# ---------------------------------------------------------------------------
# Host-side glue and parameter construction
# ---------------------------------------------------------------------------
def _batch_tiling(B, max_bt=8):
    """BT samples per grid step; >=2 steps whenever B>=2 so v7x's two TCs both get work."""
    if B <= 1:
        return 1, 1
    bt = min(max_bt, (B + 1) // 2)
    steps = -(-B // bt)
    return bt, steps


def _im2col3x3(x):
    """(B, H, W, C) -> (B, H*W, 9*C); rows are row-major pixels, columns (tap, cin).
    Only used for the raw network input (layer 1, Cin=1)."""
    B, H, W, C = x.shape
    xp = jnp.pad(x, ((0, 0), (1, 1), (1, 1), (0, 0)))
    cols = [xp[:, dy:dy + H, dx:dx + W, :] for dy in range(3) for dx in range(3)]
    return jnp.stack(cols, axis=3).reshape(B, H * W, 9 * C)


def _pool_select_matrix(H, W):
    """0/1 matrix selecting rows p = 2i*W + 2j (exact stride-2 gather as a matmul)."""
    Ho, Wo = H // 2, W // 2
    m = np.zeros((Ho * Wo, H * W), np.float32)
    k = np.arange(Ho * Wo)
    m[k, 2 * (k // Wo) * W + 2 * (k % Wo)] = 1.0
    return m


def _build_sa_matrix(w77, hs, ws):
    """Exact (HW, HW) mixing matrix for the zero-padded 7x7 spatial-attention conv."""
    w77 = np.asarray(w77)
    hp = np.repeat(np.arange(hs), ws)
    wp = np.tile(np.arange(ws), hs)
    dy = hp[None, :] - hp[:, None] + 3
    dx = wp[None, :] - wp[:, None] + 3
    valid = (dy >= 0) & (dy < 7) & (dx >= 0) & (dx < 7)
    m = np.where(valid, w77[np.clip(dy, 0, 6), np.clip(dx, 0, 6)], 0.0)
    return jnp.asarray(m, dtype=jnp.float32)


def _kaiming_conv(key, shape):   # torch kaiming_normal_(mode='fan_out', nonlinearity='relu')
    fan_out = shape[0] * shape[2] * shape[3]
    return (jax.random.normal(key, shape) * math.sqrt(2.0 / fan_out)).astype(jnp.float32)


def _xavier_relu(key, shape):    # torch xavier_normal_(gain=calculate_gain('relu')); (out, in)
    fan_out, fan_in = shape
    std = math.sqrt(2.0) * math.sqrt(2.0 / (fan_in + fan_out))
    return (jax.random.normal(key, shape) * std).astype(jnp.float32)


def init_params(key, input_channels=1, H=16, W=16, radiomics_dim=12):
    ks = jax.random.split(key, 10)
    params = {}

    # conv blocks; BatchNorm2d (eval) folded: scale = gamma/sqrt(var+eps),
    # shift = beta + (conv_bias - mean)*scale.  Fresh init: gamma=1, beta=0, mean=0, var=1.
    cins, couts = [input_channels, 32, 64], [32, 64, 128]
    conv = []
    for i in range(3):
        w = _kaiming_conv(ks[i], (couts[i], cins[i], 3, 3))
        bias = jnp.zeros((couts[i],), jnp.float32)
        gamma = jnp.ones((couts[i],), jnp.float32)
        beta = jnp.zeros((couts[i],), jnp.float32)
        rmean = jnp.zeros((couts[i],), jnp.float32)
        rvar = jnp.ones((couts[i],), jnp.float32)
        scale = gamma / jnp.sqrt(rvar + _EPS)
        shift = beta + (bias - rmean) * scale
        wmat = jnp.transpose(w, (2, 3, 1, 0)).reshape(9 * cins[i], couts[i])  # (tap,cin)-major
        conv.append((wmat, scale.reshape(1, -1), shift.reshape(1, -1)))
    params["conv"] = conv

    # CBAM
    C, red = 128, 128 // 16
    params["caw1"] = jnp.transpose(_xavier_relu(ks[3], (red, C)))   # (C, red), bias-free
    params["caw2"] = jnp.transpose(_xavier_relu(ks[4], (C, red)))   # (red, C), bias-free
    sa_w = _kaiming_conv(ks[5], (1, 2, 7, 7))
    hs, ws = H // 8, W // 8
    params["sama"] = _build_sa_matrix(sa_w[0, 0], hs, ws)           # avg-channel taps
    params["samm"] = _build_sa_matrix(sa_w[0, 1], hs, ws)           # max-channel taps
    params["sab"] = jnp.zeros((1, 1), jnp.float32)                  # conv bias (init 0)

    # radiomics_fc (BatchNorm1d folded column-wise into the first Linear)
    bn_s = jnp.ones((128,), jnp.float32) / jnp.sqrt(jnp.ones((128,), jnp.float32) + _EPS)
    rw1 = jnp.transpose(_xavier_relu(ks[6], (128, radiomics_dim))) * bn_s[None, :]
    rb1 = jnp.zeros((1, 128), jnp.float32)
    rw2 = jnp.transpose(_xavier_relu(ks[7], (64, 128)))
    rb2 = jnp.zeros((1, 64), jnp.float32)
    lnw = jnp.ones((1, 64), jnp.float32)
    lnb = jnp.zeros((1, 64), jnp.float32)

    # classifier (BatchNorm1d folded).
    # TODO(synk): the reference sizes conv_out_features with a 224x224 dummy (=100352), which
    # is inconsistent with forwarding other resolutions; here it is derived from the runtime
    # (H, W) so the small configuration is self-consistent.
    F = 128 * hs * ws
    bnc_s = jnp.ones((128,), jnp.float32) / jnp.sqrt(jnp.ones((128,), jnp.float32) + _EPS)
    c1wt = jnp.transpose(_xavier_relu(ks[8], (128, F + 64))) * bnc_s[None, :]
    c1a = c1wt[:F]                                          # rows in torch flatten order c*HW+p
    # fold the NCHW-flatten transpose into the weight: block-permute rows to (p, c) order
    c1a = c1a.reshape(128, hs * ws, 128).transpose(1, 0, 2).reshape(F, 128)
    c1b = c1wt[F:]
    c1bias = jnp.zeros((1, 128), jnp.float32)
    c2w = jnp.transpose(_xavier_relu(ks[9], (1, 128)))
    c2b = jnp.zeros((1, 1), jnp.float32)
    params["head"] = (rw1, rb1, rw2, rb2, lnw, lnb, c1a, c1b, c1bias, c2w, c2b)
    return params


def forward(params, x_nchw, radiomics):
    B, Cin, H, W = x_nchw.shape
    BT, steps = _batch_tiling(B)
    Bp = BT * steps
    if Bp != B:
        x_nchw = jnp.pad(x_nchw, ((0, Bp - B), (0, 0), (0, 0), (0, 0)))
        radiomics = jnp.pad(radiomics, ((0, Bp - B), (0, 0)))
    HW = H * W

    x = jnp.transpose(x_nchw, (0, 2, 3, 1)).astype(jnp.float32)    # NCHW -> NHWC
    patches = _im2col3x3(x).reshape(Bp * HW, 9 * Cin)              # layer-1 only, batch-stacked
    rad = radiomics.astype(jnp.float32).reshape(steps, BT, -1)

    (w1, s1, b1), (w2, s2, b2), (w3, s3, b3) = params["conv"]

    # Structure matrices for the batch block (0/1 block-diagonals; see scaling TODOs).
    eye = np.eye(BT, dtype=np.float32)
    sel1 = jnp.asarray(np.kron(eye, _pool_select_matrix(H, W)))
    sel2 = jnp.asarray(np.kron(eye, _pool_select_matrix(H // 2, W // 2)))
    sel3 = jnp.asarray(np.kron(eye, _pool_select_matrix(H // 4, W // 4)))
    eye_j = jnp.asarray(eye)
    sa_comb = jnp.concatenate([jnp.kron(eye_j, params["sama"]),
                               jnp.kron(eye_j, params["samm"])], axis=1)

    args = (patches, rad,
            w1, s1, b1, sel1, w2, s2, b2, sel2, w3, s3, b3, sel3,
            params["caw1"], params["caw2"], sa_comb, params["sab"],
            *params["head"])

    def const_spec(a):
        # Weights / structure matrices: same block every grid step -> fetched once, VMEM-resident.
        # TODO(synk): pipeline_mode=pl.Buffered(1) would drop their double-buffer copy; left at
        # the default to stay conservative (footprint is tiny at this resolution).
        return pl.BlockSpec(a.shape, lambda b, n=a.ndim: (0,) * n)

    in_specs = [pl.BlockSpec((BT * HW, 9 * Cin), lambda b: (b, 0)),
                pl.BlockSpec((1, BT, rad.shape[-1]), lambda b: (b, 0, 0))]
    in_specs += [const_spec(a) for a in args[2:]]

    out = pl.pallas_call(
        _make_kernel(H, W, BT),
        out_shape=jax.ShapeDtypeStruct((steps, BT, 1), jnp.float32),
        grid_spec=pltpu.PrefetchScalarGridSpec(
            num_scalar_prefetch=0, grid=(steps,),
            in_specs=in_specs,
            out_specs=pl.BlockSpec((1, BT, 1), lambda b: (b, 0, 0))),
        compiler_params=pltpu.CompilerParams(
            dimension_semantics=("parallel",)),       # v7x: split the batch across both TCs
    )(*args)
    return out.reshape(Bp, 1)[:B]


if __name__ == "__main__":
    B, Cin, H, W, RD = 4, 1, 16, 16, 12
    key = jax.random.PRNGKey(0)
    kx, kr, kp = jax.random.split(key, 3)
    x = jax.random.normal(kx, (B, Cin, H, W), jnp.float32)
    radiomics = jax.random.normal(kr, (B, RD), jnp.float32)
    params = init_params(kp, input_channels=Cin, H=H, W=W, radiomics_dim=RD)

    fwd = jax.jit(forward)
    out = jax.block_until_ready(fwd(params, x, radiomics))
    assert out.shape == (B, 1)
    assert bool(jnp.all(jnp.isfinite(out)))
    assert bool(jnp.all((out >= 0.0) & (out <= 1.0)))
    print("KERNEL_OK")
</pallas_src>

<mosaic_0001>
module attributes {stable_mosaic.version = 11 : i64} {
  func.func @kernel(%arg0: i32, %arg1: memref<512x9xf32, #tpu.memory_space<vmem>>, %arg2: memref<1x2x12xf32, #tpu.memory_space<vmem>>, %arg3: memref<9x32xf32, #tpu.memory_space<vmem>>, %arg4: memref<1x32xf32, #tpu.memory_space<vmem>>, %arg5: memref<1x32xf32, #tpu.memory_space<vmem>>, %arg6: memref<128x512xf32, #tpu.memory_space<vmem>>, %arg7: memref<288x64xf32, #tpu.memory_space<vmem>>, %arg8: memref<1x64xf32, #tpu.memory_space<vmem>>, %arg9: memref<1x64xf32, #tpu.memory_space<vmem>>, %arg10: memref<32x128xf32, #tpu.memory_space<vmem>>, %arg11: memref<576x128xf32, #tpu.memory_space<vmem>>, %arg12: memref<1x128xf32, #tpu.memory_space<vmem>>, %arg13: memref<1x128xf32, #tpu.memory_space<vmem>>, %arg14: memref<8x32xf32, #tpu.memory_space<vmem>>, %arg15: memref<128x8xf32, #tpu.memory_space<vmem>>, %arg16: memref<8x128xf32, #tpu.memory_space<vmem>>, %arg17: memref<8x16xf32, #tpu.memory_space<vmem>>, %arg18: memref<1x1xf32, #tpu.memory_space<vmem>>, %arg19: memref<12x128xf32, #tpu.memory_space<vmem>>, %arg20: memref<1x128xf32, #tpu.memory_space<vmem>>, %arg21: memref<128x64xf32, #tpu.memory_space<vmem>>, %arg22: memref<1x64xf32, #tpu.memory_space<vmem>>, %arg23: memref<1x64xf32, #tpu.memory_space<vmem>>, %arg24: memref<1x64xf32, #tpu.memory_space<vmem>>, %arg25: memref<512x128xf32, #tpu.memory_space<vmem>>, %arg26: memref<64x128xf32, #tpu.memory_space<vmem>>, %arg27: memref<1x128xf32, #tpu.memory_space<vmem>>, %arg28: memref<128x1xf32, #tpu.memory_space<vmem>>, %arg29: memref<1x1xf32, #tpu.memory_space<vmem>>, %arg30: memref<1x2x1xf32, #tpu.memory_space<vmem>>) attributes {dimension_semantics = [#tpu.dimension_semantics<parallel>], iteration_bounds = array<i64: 2>, scalar_prefetch = 0 : i64, scratch_operands = 0 : i64, tpu.core_type = #tpu.core_type<tc>, window_params = [{transform_indices = @transform_0, window_bounds = array<i64: 512, 9>}, {transform_indices = @transform_1, window_bounds = array<i64: 1, 2, 12>}, {pipeline_mode = #tpu.pipeline_mode<synchronous>, transform_indices = @transform_2, window_bounds = array<i64: 9, 32>}, {pipeline_mode = #tpu.pipeline_mode<synchronous>, transform_indices = @transform_3, window_bounds = array<i64: 1, 32>}, {pipeline_mode = #tpu.pipeline_mode<synchronous>, transform_indices = @transform_4, window_bounds = array<i64: 1, 32>}, {pipeline_mode = #tpu.pipeline_mode<synchronous>, transform_indices = @transform_5, window_bounds = array<i64: 128, 512>}, {pipeline_mode = #tpu.pipeline_mode<synchronous>, transform_indices = @transform_6, window_bounds = array<i64: 288, 64>}, {pipeline_mode = #tpu.pipeline_mode<synchronous>, transform_indices = @transform_7, window_bounds = array<i64: 1, 64>}, {pipeline_mode = #tpu.pipeline_mode<synchronous>, transform_indices = @transform_8, window_bounds = array<i64: 1, 64>}, {pipeline_mode = #tpu.pipeline_mode<synchronous>, transform_indices = @transform_9, window_bounds = array<i64: 32, 128>}, {pipeline_mode = #tpu.pipeline_mode<synchronous>, transform_indices = @transform_10, window_bounds = array<i64: 576, 128>}, {pipeline_mode = #tpu.pipeline_mode<synchronous>, transform_indices = @transform_11, window_bounds = array<i64: 1, 128>}, {pipeline_mode = #tpu.pipeline_mode<synchronous>, transform_indices = @transform_12, window_bounds = array<i64: 1, 128>}, {pipeline_mode = #tpu.pipeline_mode<synchronous>, transform_indices = @transform_13, window_bounds = array<i64: 8, 32>}, {pipeline_mode = #tpu.pipeline_mode<synchronous>, transform_indices = @transform_14, window_bounds = array<i64: 128, 8>}, {pipeline_mode = #tpu.pipeline_mode<synchronous>, transform_indices = @transform_15, window_bounds = array<i64: 8, 128>}, {pipeline_mode = #tpu.pipeline_mode<synchronous>, transform_indices = @transform_16, window_bounds = array<i64: 8, 16>}, {pipeline_mode = #tpu.pipeline_mode<synchronous>, transform_indices = @transform_17, window_bounds = array<i64: 1, 1>}, {pipeline_mode = #tpu.pipeline_mode<synchronous>, transform_indices = @transform_18, window_bounds = array<i64: 12, 128>}, {pipeline_mode = #tpu.pipeline_mode<synchronous>, transform_indices = @transform_19, window_bounds = array<i64: 1, 128>}, {pipeline_mode = #tpu.pipeline_mode<synchronous>, transform_indices = @transform_20, window_bounds = array<i64: 128, 64>}, {pipeline_mode = #tpu.pipeline_mode<synchronous>, transform_indices = @transform_21, window_bounds = array<i64: 1, 64>}, {pipeline_mode = #tpu.pipeline_mode<synchronous>, transform_indices = @transform_22, window_bounds = array<i64: 1, 64>}, {pipeline_mode = #tpu.pipeline_mode<synchronous>, transform_indices = @transform_23, window_bounds = array<i64: 1, 64>}, {pipeline_mode = #tpu.pipeline_mode<synchronous>, transform_indices = @transform_24, window_bounds = array<i64: 512, 128>}, {pipeline_mode = #tpu.pipeline_mode<synchronous>, transform_indices = @transform_25, window_bounds = array<i64: 64, 128>}, {pipeline_mode = #tpu.pipeline_mode<synchronous>, transform_indices = @transform_26, window_bounds = array<i64: 1, 128>}, {pipeline_mode = #tpu.pipeline_mode<synchronous>, transform_indices = @transform_27, window_bounds = array<i64: 128, 1>}, {pipeline_mode = #tpu.pipeline_mode<synchronous>, transform_indices = @transform_28, window_bounds = array<i64: 1, 1>}, {transform_indices = @transform_29, window_bounds = array<i64: 1, 2, 1>}]} {
    %c0 = arith.constant 0 : index
    %c0_0 = arith.constant 0 : index
    %0 = vector.load %arg1[%c0, %c0_0] : memref<512x9xf32, #tpu.memory_space<vmem>>, vector<512x9xf32>
    %c0_1 = arith.constant 0 : index
    %c0_2 = arith.constant 0 : index
    %1 = vector.load %arg3[%c0_1, %c0_2] : memref<9x32xf32, #tpu.memory_space<vmem>>, vector<9x32xf32>
    %cst = arith.constant dense<0.000000e+00> : vector<512x32xf32>
    %2 = tpu.matmul %0, %1, %cst {dimension_numbers = #tpu.dot_dimension_numbers<[1], [0], [0], [1], [0, 0, 1, 1], [], []>} : vector<512x9xf32>, vector<9x32xf32>, vector<512x32xf32> -> vector<512x32xf32>
    %c0_3 = arith.constant 0 : index
    %c0_4 = arith.constant 0 : index
    %3 = vector.load %arg4[%c0_3, %c0_4] : memref<1x32xf32, #tpu.memory_space<vmem>>, vector<1x32xf32>
    %4 = vector.broadcast %3 : vector<1x32xf32> to vector<512x32xf32>
    %5 = arith.mulf %2, %4 : vector<512x32xf32>
    %c0_5 = arith.constant 0 : index
    %c0_6 = arith.constant 0 : index
    %6 = vector.load %arg5[%c0_5, %c0_6] : memref<1x32xf32, #tpu.memory_space<vmem>>, vector<1x32xf32>
    %7 = vector.broadcast %6 : vector<1x32xf32> to vector<512x32xf32>
    %8 = arith.addf %5, %7 : vector<512x32xf32>
    %cst_7 = arith.constant 5.000000e-01 : f32
    %9 = vector.broadcast %cst_7 : f32 to vector<512x32xf32>
    %10 = arith.mulf %9, %8 : vector<512x32xf32>
    %cst_8 = arith.constant 0.707106769 : f32
    %11 = vector.broadcast %cst_8 : f32 to vector<512x32xf32>
    %12 = arith.mulf %8, %11 : vector<512x32xf32>
    %13 = math.erf %12 : vector<512x32xf32>
    %cst_9 = arith.constant 1.000000e+00 : f32
    %14 = vector.broadcast %cst_9 : f32 to vector<512x32xf32>
    %15 = arith.addf %14, %13 : vector<512x32xf32>
    %16 = arith.mulf %10, %15 : vector<512x32xf32>
    %c511_i32 = arith.constant 511 : i32
    %17 = tpu.dynamic_rotate %16 by %c511_i32 dim 0 : vector<512x32xf32>, i32 -> vector<512x32xf32>
    %18 = arith.maximumf %16, %17 : vector<512x32xf32>
    %c496_i32 = arith.constant 496 : i32
    %19 = tpu.dynamic_rotate %16 by %c496_i32 dim 0 : vector<512x32xf32>, i32 -> vector<512x32xf32>
    %c495_i32 = arith.constant 495 : i32
    %20 = tpu.dynamic_rotate %16 by %c495_i32 dim 0 : vector<512x32xf32>, i32 -> vector<512x32xf32>
    %21 = arith.maximumf %19, %20 : vector<512x32xf32>
    %22 = arith.maximumf %18, %21 : vector<512x32xf32>
    %c0_10 = arith.constant 0 : index
    %c0_11 = arith.constant 0 : index
    %23 = vector.load %arg6[%c0_10, %c0_11] : memref<128x512xf32, #tpu.memory_space<vmem>>, vector<128x512xf32>
    %cst_12 = arith.constant dense<0.000000e+00> : vector<128x32xf32>
    %24 = tpu.matmul %23, %22, %cst_12 {dimension_numbers = #tpu.dot_dimension_numbers<[1], [0], [0], [1], [0, 0, 1, 1], [], []>} : vector<128x512xf32>, vector<512x32xf32>, vector<128x32xf32> -> vector<128x32xf32>
    %25 = tpu.iota {dimensions = array<i32: 0>} : vector<128x1xi32>
    %c64_i32 = arith.constant 64 : i32
    %c0_i32 = arith.constant 0 : i32
    %26 = arith.cmpi eq, %c64_i32, %c0_i32 : i32
    %c1_i32 = arith.constant 1 : i32
    %27 = arith.select %26, %c1_i32, %c64_i32 : i32
    %28 = vector.broadcast %27 : i32 to vector<128x1xi32>
    %29 = arith.remsi %25, %28 : vector<128x1xi32>
    %c0_i32_13 = arith.constant 0 : i32
    %30 = vector.broadcast %c0_i32_13 : i32 to vector<128x1xi32>
    %31 = arith.cmpi ne, %29, %30 : vector<128x1xi32>
    %c0_i32_14 = arith.constant 0 : i32
    %32 = vector.broadcast %c0_i32_14 : i32 to vector<128x1xi32>
    %33 = arith.cmpi slt, %29, %32 : vector<128x1xi32>
    %c0_i32_15 = arith.constant 0 : i32
    %34 = arith.cmpi slt, %27, %c0_i32_15 : i32
    %35 = vector.broadcast %34 : i1 to vector<128x1xi1>
    %36 = vector.broadcast %35 : vector<128x1xi1> to vector<128x1xi1>
    %37 = arith.xori %33, %36 : vector<128x1xi1>
    %38 = arith.andi %37, %31 : vector<128x1xi1>
    %39 = vector.broadcast %27 : i32 to vector<128x1xi32>
    %40 = arith.addi %29, %39 : vector<128x1xi32>
    %41 = arith.select %38, %40, %29 : vector<128x1xi1>, vector<128x1xi32>
    %c8_i32 = arith.constant 8 : i32
    %c0_i32_16 = arith.constant 0 : i32
    %42 = arith.cmpi eq, %c8_i32, %c0_i32_16 : i32
    %c1_i32_17 = arith.constant 1 : i32
    %43 = arith.select %42, %c1_i32_17, %c8_i32 : i32
    %44 = vector.broadcast %43 : i32 to vector<128x1xi32>
    %45 = arith.remsi %25, %44 : vector<128x1xi32>
    %c0_i32_18 = arith.constant 0 : i32
    %46 = vector.broadcast %c0_i32_18 : i32 to vector<128x1xi32>
    %47 = arith.cmpi ne, %45, %46 : vector<128x1xi32>
    %c0_i32_19 = arith.constant 0 : i32
    %48 = vector.broadcast %c0_i32_19 : i32 to vector<128x1xi32>
    %49 = arith.cmpi slt, %45, %48 : vector<128x1xi32>
    %c0_i32_20 = arith.constant 0 : i32
    %50 = arith.cmpi slt, %43, %c0_i32_20 : i32
    %51 = vector.broadcast %50 : i1 to vector<128x1xi1>
    %52 = vector.broadcast %51 : vector<128x1xi1> to vector<128x1xi1>
    %53 = arith.xori %49, %52 : vector<128x1xi1>
    %54 = arith.andi %53, %47 : vector<128x1xi1>
    %55 = vector.broadcast %43 : i32 to vector<128x1xi32>
    %56 = arith.addi %45, %55 : vector<128x1xi32>
    %57 = arith.select %54, %56, %45 : vector<128x1xi1>, vector<128x1xi32>
    %c1_i32_21 = arith.constant 1 : i32
    %58 = vector.broadcast %c1_i32_21 : i32 to vector<128x1xi32>
    %59 = arith.cmpi sge, %57, %58 : vector<128x1xi32>
    %c7_i32 = arith.constant 7 : i32
    %60 = vector.broadcast %c7_i32 : i32 to vector<128x1xi32>
    %61 = arith.cmpi slt, %57, %60 : vector<128x1xi32>
    %c9_i32 = arith.constant 9 : i32
    %62 = tpu.dynamic_rotate %24 by %c9_i32 dim 0 : vector<128x32xf32>, i32 -> vector<128x32xf32>
    %c-9_i32 = arith.constant -9 : i32
    %63 = vector.broadcast %c-9_i32 : i32 to vector<128x1xi32>
    %64 = arith.addi %41, %63 : vector<128x1xi32>
    %c0_i32_22 = arith.constant 0 : i32
    %65 = vector.broadcast %c0_i32_22 : i32 to vector<128x1xi32>
    %66 = arith.cmpi sge, %64, %65 : vector<128x1xi32>
    %c-9_i32_23 = arith.constant -9 : i32
    %67 = vector.broadcast %c-9_i32_23 : i32 to vector<128x1xi32>
    %68 = arith.addi %41, %67 : vector<128x1xi32>
    %c64_i32_24 = arith.constant 64 : i32
    %69 = vector.broadcast %c64_i32_24 : i32 to vector<128x1xi32>
    %70 = arith.cmpi slt, %68, %69 : vector<128x1xi32>
    %71 = arith.andi %66, %70 : vector<128x1xi1>
    %72 = arith.andi %71, %59 : vector<128x1xi1>
    %cst_25 = arith.constant 0.000000e+00 : f32
    %73 = vector.shape_cast %72 : vector<128x1xi1> to vector<128x1xi1>
    %74 = vector.broadcast %73 : vector<128x1xi1> to vector<128x32xi1>
    %75 = vector.broadcast %cst_25 : f32 to vector<128x32xf32>
    %76 = arith.select %74, %62, %75 : vector<128x32xi1>, vector<128x32xf32>
    %c8_i32_26 = arith.constant 8 : i32
    %77 = tpu.dynamic_rotate %24 by %c8_i32_26 dim 0 : vector<128x32xf32>, i32 -> vector<128x32xf32>
    %c-8_i32 = arith.constant -8 : i32
    %78 = vector.broadcast %c-8_i32 : i32 to vector<128x1xi32>
    %79 = arith.addi %41, %78 : vector<128x1xi32>
    %c0_i32_27 = arith.constant 0 : i32
    %80 = vector.broadcast %c0_i32_27 : i32 to vector<128x1xi32>
    %81 = arith.cmpi sge, %79, %80 : vector<128x1xi32>
    %c-8_i32_28 = arith.constant -8 : i32
    %82 = vector.broadcast %c-8_i32_28 : i32 to vector<128x1xi32>
    %83 = arith.addi %41, %82 : vector<128x1xi32>
    %c64_i32_29 = arith.constant 64 : i32
    %84 = vector.broadcast %c64_i32_29 : i32 to vector<128x1xi32>
    %85 = arith.cmpi slt, %83, %84 : vector<128x1xi32>
    %86 = arith.andi %81, %85 : vector<128x1xi1>
    %cst_30 = arith.constant 0.000000e+00 : f32
    %87 = vector.shape_cast %86 : vector<128x1xi1> to vector<128x1xi1>
    %88 = vector.broadcast %87 : vector<128x1xi1> to vector<128x32xi1>
    %89 = vector.broadcast %cst_30 : f32 to vector<128x32xf32>
    %90 = arith.select %88, %77, %89 : vector<128x32xi1>, vector<128x32xf32>
    %c7_i32_31 = arith.constant 7 : i32
    %91 = tpu.dynamic_rotate %24 by %c7_i32_31 dim 0 : vector<128x32xf32>, i32 -> vector<128x32xf32>
    %c-7_i32 = arith.constant -7 : i32
    %92 = vector.broadcast %c-7_i32 : i32 to vector<128x1xi32>
    %93 = arith.addi %41, %92 : vector<128x1xi32>
    %c0_i32_32 = arith.constant 0 : i32
    %94 = vector.broadcast %c0_i32_32 : i32 to vector<128x1xi32>
    %95 = arith.cmpi sge, %93, %94 : vector<128x1xi32>
    %c-7_i32_33 = arith.constant -7 : i32
    %96 = vector.broadcast %c-7_i32_33 : i32 to vector<128x1xi32>
    %97 = arith.addi %41, %96 : vector<128x1xi32>
    %c64_i32_34 = arith.constant 64 : i32
    %98 = vector.broadcast %c64_i32_34 : i32 to vector<128x1xi32>
    %99 = arith.cmpi slt, %97, %98 : vector<128x1xi32>
    %100 = arith.andi %95, %99 : vector<128x1xi1>
    %101 = arith.andi %100, %61 : vector<128x1xi1>
    %cst_35 = arith.constant 0.000000e+00 : f32
    %102 = vector.shape_cast %101 : vector<128x1xi1> to vector<128x1xi1>
    %103 = vector.broadcast %102 : vector<128x1xi1> to vector<128x32xi1>
    %104 = vector.broadcast %cst_35 : f32 to vector<128x32xf32>
    %105 = arith.select %103, %91, %104 : vector<128x32xi1>, vector<128x32xf32>
    %c1_i32_36 = arith.constant 1 : i32
    %106 = tpu.dynamic_rotate %24 by %c1_i32_36 dim 0 : vector<128x32xf32>, i32 -> vector<128x32xf32>
    %c-1_i32 = arith.constant -1 : i32
    %107 = vector.broadcast %c-1_i32 : i32 to vector<128x1xi32>
    %108 = arith.addi %41, %107 : vector<128x1xi32>
    %c0_i32_37 = arith.constant 0 : i32
    %109 = vector.broadcast %c0_i32_37 : i32 to vector<128x1xi32>
    %110 = arith.cmpi sge, %108, %109 : vector<128x1xi32>
    %c-1_i32_38 = arith.constant -1 : i32
    %111 = vector.broadcast %c-1_i32_38 : i32 to vector<128x1xi32>
    %112 = arith.addi %41, %111 : vector<128x1xi32>
    %c64_i32_39 = arith.constant 64 : i32
    %113 = vector.broadcast %c64_i32_39 : i32 to vector<128x1xi32>
    %114 = arith.cmpi slt, %112, %113 : vector<128x1xi32>
    %115 = arith.andi %110, %114 : vector<128x1xi1>
    %116 = arith.andi %115, %59 : vector<128x1xi1>
    %cst_40 = arith.constant 0.000000e+00 : f32
    %117 = vector.shape_cast %116 : vector<128x1xi1> to vector<128x1xi1>
    %118 = vector.broadcast %117 : vector<128x1xi1> to vector<128x32xi1>
    %119 = vector.broadcast %cst_40 : f32 to vector<128x32xf32>
    %120 = arith.select %118, %106, %119 : vector<128x32xi1>, vector<128x32xf32>
    %c127_i32 = arith.constant 127 : i32
    %121 = tpu.dynamic_rotate %24 by %c127_i32 dim 0 : vector<128x32xf32>, i32 -> vector<128x32xf32>
    %c1_i32_41 = arith.constant 1 : i32
    %122 = vector.broadcast %c1_i32_41 : i32 to vector<128x1xi32>
    %123 = arith.addi %41, %122 : vector<128x1xi32>
    %c0_i32_42 = arith.constant 0 : i32
    %124 = vector.broadcast %c0_i32_42 : i32 to vector<128x1xi32>
    %125 = arith.cmpi sge, %123, %124 : vector<128x1xi32>
    %c1_i32_43 = arith.constant 1 : i32
    %126 = vector.broadcast %c1_i32_43 : i32 to vector<128x1xi32>
    %127 = arith.addi %41, %126 : vector<128x1xi32>
    %c64_i32_44 = arith.constant 64 : i32
    %128 = vector.broadcast %c64_i32_44 : i32 to vector<128x1xi32>
    %129 = arith.cmpi slt, %127, %128 : vector<128x1xi32>
    %130 = arith.andi %125, %129 : vector<128x1xi1>
    %131 = arith.andi %130, %61 : vector<128x1xi1>
    %cst_45 = arith.constant 0.000000e+00 : f32
    %132 = vector.shape_cast %131 : vector<128x1xi1> to vector<128x1xi1>
    %133 = vector.broadcast %132 : vector<128x1xi1> to vector<128x32xi1>
    %134 = vector.broadcast %cst_45 : f32 to vector<128x32xf32>
    %135 = arith.select %133, %121, %134 : vector<128x32xi1>, vector<128x32xf32>
    %c121_i32 = arith.constant 121 : i32
    %136 = tpu.dynamic_rotate %24 by %c121_i32 dim 0 : vector<128x32xf32>, i32 -> vector<128x32xf32>
    %c7_i32_46 = arith.constant 7 : i32
    %137 = vector.broadcast %c7_i32_46 : i32 to vector<128x1xi32>
    %138 = arith.addi %41, %137 : vector<128x1xi32>
    %c0_i32_47 = arith.constant 0 : i32
    %139 = vector.broadcast %c0_i32_47 : i32 to vector<128x1xi32>
    %140 = arith.cmpi sge, %138, %139 : vector<128x1xi32>
    %c7_i32_48 = arith.constant 7 : i32
    %141 = vector.broadcast %c7_i32_48 : i32 to vector<128x1xi32>
    %142 = arith.addi %41, %141 : vector<128x1xi32>
    %c64_i32_49 = arith.constant 64 : i32
    %143 = vector.broadcast %c64_i32_49 : i32 to vector<128x1xi32>
    %144 = arith.cmpi slt, %142, %143 : vector<128x1xi32>
    %145 = arith.andi %140, %144 : vector<128x1xi1>
    %146 = arith.andi %145, %59 : vector<128x1xi1>
    %cst_50 = arith.constant 0.000000e+00 : f32
    %147 = vector.shape_cast %146 : vector<128x1xi1> to vector<128x1xi1>
    %148 = vector.broadcast %147 : vector<128x1xi1> to vector<128x32xi1>
    %149 = vector.broadcast %cst_50 : f32 to vector<128x32xf32>
    %150 = arith.select %148, %136, %149 : vector<128x32xi1>, vector<128x32xf32>
    %c120_i32 = arith.constant 120 : i32
    %151 = tpu.dynamic_rotate %24 by %c120_i32 dim 0 : vector<128x32xf32>, i32 -> vector<128x32xf32>
    %c8_i32_51 = arith.constant 8 : i32
    %152 = vector.broadcast %c8_i32_51 : i32 to vector<128x1xi32>
    %153 = arith.addi %41, %152 : vector<128x1xi32>
    %c0_i32_52 = arith.constant 0 : i32
    %154 = vector.broadcast %c0_i32_52 : i32 to vector<128x1xi32>
    %155 = arith.cmpi sge, %153, %154 : vector<128x1xi32>
    %c8_i32_53 = arith.constant 8 : i32
    %156 = vector.broadcast %c8_i32_53 : i32 to vector<128x1xi32>
    %157 = arith.addi %41, %156 : vector<128x1xi32>
    %c64_i32_54 = arith.constant 64 : i32
    %158 = vector.broadcast %c64_i32_54 : i32 to vector<128x1xi32>
    %159 = arith.cmpi slt, %157, %158 : vector<128x1xi32>
    %160 = arith.andi %155, %159 : vector<128x1xi1>
    %cst_55 = arith.constant 0.000000e+00 : f32
    %161 = vector.shape_cast %160 : vector<128x1xi1> to vector<128x1xi1>
    %162 = vector.broadcast %161 : vector<128x1xi1> to vector<128x32xi1>
    %163 = vector.broadcast %cst_55 : f32 to vector<128x32xf32>
    %164 = arith.select %162, %151, %163 : vector<128x32xi1>, vector<128x32xf32>
    %c119_i32 = arith.constant 119 : i32
    %165 = tpu.dynamic_rotate %24 by %c119_i32 dim 0 : vector<128x32xf32>, i32 -> vector<128x32xf32>
    %c9_i32_56 = arith.constant 9 : i32
    %166 = vector.broadcast %c9_i32_56 : i32 to vector<128x1xi32>
    %167 = arith.addi %41, %166 : vector<128x1xi32>
    %c0_i32_57 = arith.constant 0 : i32
    %168 = vector.broadcast %c0_i32_57 : i32 to vector<128x1xi32>
    %169 = arith.cmpi sge, %167, %168 : vector<128x1xi32>
    %c9_i32_58 = arith.constant 9 : i32
    %170 = vector.broadcast %c9_i32_58 : i32 to vector<128x1xi32>
    %171 = arith.addi %41, %170 : vector<128x1xi32>
    %c64_i32_59 = arith.constant 64 : i32
    %172 = vector.broadcast %c64_i32_59 : i32 to vector<128x1xi32>
    %173 = arith.cmpi slt, %171, %172 : vector<128x1xi32>
    %174 = arith.andi %169, %173 : vector<128x1xi1>
    %175 = arith.andi %174, %61 : vector<128x1xi1>
    %cst_60 = arith.constant 0.000000e+00 : f32
    %176 = vector.shape_cast %175 : vector<128x1xi1> to vector<128x1xi1>
    %177 = vector.broadcast %176 : vector<128x1xi1> to vector<128x32xi1>
    %178 = vector.broadcast %cst_60 : f32 to vector<128x32xf32>
    %179 = arith.select %177, %165, %178 : vector<128x32xi1>, vector<128x32xf32>
    %180 = tpu.concatenate %76, %90, %105, %120, %24, %135, %150, %164, %179 in 1 : vector<128x32xf32>, vector<128x32xf32>, vector<128x32xf32>, vector<128x32xf32>, vector<128x32xf32>, vector<128x32xf32>, vector<128x32xf32>, vector<128x32xf32>, vector<128x32xf32> -> vector<128x288xf32>
    %c0_61 = arith.constant 0 : index
    %c0_62 = arith.constant 0 : index
    %181 = vector.load %arg7[%c0_61, %c0_62] : memref<288x64xf32, #tpu.memory_space<vmem>>, vector<288x64xf32>
    %cst_63 = arith.constant dense<0.000000e+00> : vector<128x64xf32>
    %182 = tpu.matmul %180, %181, %cst_63 {dimension_numbers = #tpu.dot_dimension_numbers<[1], [0], [0], [1], [0, 0, 1, 1], [], []>} : vector<128x288xf32>, vector<288x64xf32>, vector<128x64xf32> -> vector<128x64xf32>
    %c0_64 = arith.constant 0 : index
    %c0_65 = arith.constant 0 : index
    %183 = vector.load %arg8[%c0_64, %c0_65] : memref<1x64xf32, #tpu.memory_space<vmem>>, vector<1x64xf32>
    %184 = vector.broadcast %183 : vector<1x64xf32> to vector<128x64xf32>
    %185 = arith.mulf %182, %184 : vector<128x64xf32>
    %c0_66 = arith.constant 0 : index
    %c0_67 = arith.constant 0 : index
    %186 = vector.load %arg9[%c0_66, %c0_67] : memref<1x64xf32, #tpu.memory_space<vmem>>, vector<1x64xf32>
    %187 = vector.broadcast %186 : vector<1x64xf32> to vector<128x64xf32>
    %188 = arith.addf %185, %187 : vector<128x64xf32>
    %cst_68 = arith.constant 5.000000e-01 : f32
    %189 = vector.broadcast %cst_68 : f32 to vector<128x64xf32>
    %190 = arith.mulf %189, %188 : vector<128x64xf32>
    %cst_69 = arith.constant 0.707106769 : f32
    %191 = vector.broadcast %cst_69 : f32 to vector<128x64xf32>
    %192 = arith.mulf %188, %191 : vector<128x64xf32>
    %193 = math.erf %192 : vector<128x64xf32>
    %cst_70 = arith.constant 1.000000e+00 : f32
    %194 = vector.broadcast %cst_70 : f32 to vector<128x64xf32>
    %195 = arith.addf %194, %193 : vector<128x64xf32>
    %196 = arith.mulf %190, %195 : vector<128x64xf32>
    %c127_i32_71 = arith.constant 127 : i32
    %197 = tpu.dynamic_rotate %196 by %c127_i32_71 dim 0 : vector<128x64xf32>, i32 -> vector<128x64xf32>
    %198 = arith.maximumf %196, %197 : vector<128x64xf32>
    %c120_i32_72 = arith.constant 120 : i32
    %199 = tpu.dynamic_rotate %196 by %c120_i32_72 dim 0 : vector<128x64xf32>, i32 -> vector<128x64xf32>
    %c119_i32_73 = arith.constant 119 : i32
    %200 = tpu.dynamic_rotate %196 by %c119_i32_73 dim 0 : vector<128x64xf32>, i32 -> vector<128x64xf32>
    %201 = arith.maximumf %199, %200 : vector<128x64xf32>
    %202 = arith.maximumf %198, %201 : vector<128x64xf32>
    %c0_74 = arith.constant 0 : index
    %c0_75 = arith.constant 0 : index
    %203 = vector.load %arg10[%c0_74, %c0_75] : memref<32x128xf32, #tpu.memory_space<vmem>>, vector<32x128xf32>
    %cst_76 = arith.constant dense<0.000000e+00> : vector<32x64xf32>
    %204 = tpu.matmul %203, %202, %cst_76 {dimension_numbers = #tpu.dot_dimension_numbers<[1], [0], [0], [1], [0, 0, 1, 1], [], []>} : vector<32x128xf32>, vector<128x64xf32>, vector<32x64xf32> -> vector<32x64xf32>
    %205 = tpu.iota {dimensions = array<i32: 0>} : vector<32x1xi32>
    %c16_i32 = arith.constant 16 : i32
    %c0_i32_77 = arith.constant 0 : i32
    %206 = arith.cmpi eq, %c16_i32, %c0_i32_77 : i32
    %c1_i32_78 = arith.constant 1 : i32
    %207 = arith.select %206, %c1_i32_78, %c16_i32 : i32
    %208 = vector.broadcast %207 : i32 to vector<32x1xi32>
    %209 = arith.remsi %205, %208 : vector<32x1xi32>
    %c0_i32_79 = arith.constant 0 : i32
    %210 = vector.broadcast %c0_i32_79 : i32 to vector<32x1xi32>
    %211 = arith.cmpi ne, %209, %210 : vector<32x1xi32>
    %c0_i32_80 = arith.constant 0 : i32
    %212 = vector.broadcast %c0_i32_80 : i32 to vector<32x1xi32>
    %213 = arith.cmpi slt, %209, %212 : vector<32x1xi32>
    %c0_i32_81 = arith.constant 0 : i32
    %214 = arith.cmpi slt, %207, %c0_i32_81 : i32
    %215 = vector.broadcast %214 : i1 to vector<32x1xi1>
    %216 = vector.broadcast %215 : vector<32x1xi1> to vector<32x1xi1>
    %217 = arith.xori %213, %216 : vector<32x1xi1>
    %218 = arith.andi %217, %211 : vector<32x1xi1>
    %219 = vector.broadcast %207 : i32 to vector<32x1xi32>
    %220 = arith.addi %209, %219 : vector<32x1xi32>
    %221 = arith.select %218, %220, %209 : vector<32x1xi1>, vector<32x1xi32>
    %c4_i32 = arith.constant 4 : i32
    %c0_i32_82 = arith.constant 0 : i32
    %222 = arith.cmpi eq, %c4_i32, %c0_i32_82 : i32
    %c1_i32_83 = arith.constant 1 : i32
    %223 = arith.select %222, %c1_i32_83, %c4_i32 : i32
    %224 = vector.broadcast %223 : i32 to vector<32x1xi32>
    %225 = arith.remsi %205, %224 : vector<32x1xi32>
    %c0_i32_84 = arith.constant 0 : i32
    %226 = vector.broadcast %c0_i32_84 : i32 to vector<32x1xi32>
    %227 = arith.cmpi ne, %225, %226 : vector<32x1xi32>
    %c0_i32_85 = arith.constant 0 : i32
    %228 = vector.broadcast %c0_i32_85 : i32 to vector<32x1xi32>
    %229 = arith.cmpi slt, %225, %228 : vector<32x1xi32>
    %c0_i32_86 = arith.constant 0 : i32
    %230 = arith.cmpi slt, %223, %c0_i32_86 : i32
    %231 = vector.broadcast %230 : i1 to vector<32x1xi1>
    %232 = vector.broadcast %231 : vector<32x1xi1> to vector<32x1xi1>
    %233 = arith.xori %229, %232 : vector<32x1xi1>
    %234 = arith.andi %233, %227 : vector<32x1xi1>
    %235 = vector.broadcast %223 : i32 to vector<32x1xi32>
    %236 = arith.addi %225, %235 : vector<32x1xi32>
    %237 = arith.select %234, %236, %225 : vector<32x1xi1>, vector<32x1xi32>
    %c1_i32_87 = arith.constant 1 : i32
    %238 = vector.broadcast %c1_i32_87 : i32 to vector<32x1xi32>
    %239 = arith.cmpi sge, %237, %238 : vector<32x1xi32>
    %c3_i32 = arith.constant 3 : i32
    %240 = vector.broadcast %c3_i32 : i32 to vector<32x1xi32>
    %241 = arith.cmpi slt, %237, %240 : vector<32x1xi32>
    %c5_i32 = arith.constant 5 : i32
    %242 = tpu.dynamic_rotate %204 by %c5_i32 dim 0 : vector<32x64xf32>, i32 -> vector<32x64xf32>
    %c-5_i32 = arith.constant -5 : i32
    %243 = vector.broadcast %c-5_i32 : i32 to vector<32x1xi32>
    %244 = arith.addi %221, %243 : vector<32x1xi32>
    %c0_i32_88 = arith.constant 0 : i32
    %245 = vector.broadcast %c0_i32_88 : i32 to vector<32x1xi32>
    %246 = arith.cmpi sge, %244, %245 : vector<32x1xi32>
    %c-5_i32_89 = arith.constant -5 : i32
    %247 = vector.broadcast %c-5_i32_89 : i32 to vector<32x1xi32>
    %248 = arith.addi %221, %247 : vector<32x1xi32>
    %c16_i32_90 = arith.constant 16 : i32
    %249 = vector.broadcast %c16_i32_90 : i32 to vector<32x1xi32>
    %250 = arith.cmpi slt, %248, %249 : vector<32x1xi32>
    %251 = arith.andi %246, %250 : vector<32x1xi1>
    %252 = arith.andi %251, %239 : vector<32x1xi1>
    %cst_91 = arith.constant 0.000000e+00 : f32
    %253 = vector.shape_cast %252 : vector<32x1xi1> to vector<32x1xi1>
    %254 = vector.broadcast %253 : vector<32x1xi1> to vector<32x64xi1>
    %255 = vector.broadcast %cst_91 : f32 to vector<32x64xf32>
    %256 = arith.select %254, %242, %255 : vector<32x64xi1>, vector<32x64xf32>
    %c4_i32_92 = arith.constant 4 : i32
    %257 = tpu.dynamic_rotate %204 by %c4_i32_92 dim 0 : vector<32x64xf32>, i32 -> vector<32x64xf32>
    %c-4_i32 = arith.constant -4 : i32
    %258 = vector.broadcast %c-4_i32 : i32 to vector<32x1xi32>
    %259 = arith.addi %221, %258 : vector<32x1xi32>
    %c0_i32_93 = arith.constant 0 : i32
    %260 = vector.broadcast %c0_i32_93 : i32 to vector<32x1xi32>
    %261 = arith.cmpi sge, %259, %260 : vector<32x1xi32>
    %c-4_i32_94 = arith.constant -4 : i32
    %262 = vector.broadcast %c-4_i32_94 : i32 to vector<32x1xi32>
    %263 = arith.addi %221, %262 : vector<32x1xi32>
    %c16_i32_95 = arith.constant 16 : i32
    %264 = vector.broadcast %c16_i32_95 : i32 to vector<32x1xi32>
    %265 = arith.cmpi slt, %263, %264 : vector<32x1xi32>
    %266 = arith.andi %261, %265 : vector<32x1xi1>
    %cst_96 = arith.constant 0.000000e+00 : f32
    %267 = vector.shape_cast %266 : vector<32x1xi1> to vector<32x1xi1>
    %268 = vector.broadcast %267 : vector<32x1xi1> to vector<32x64xi1>
    %269 = vector.broadcast %cst_96 : f32 to vector<32x64xf32>
    %270 = arith.select %268, %257, %269 : vector<32x64xi1>, vector<32x64xf32>
    %c3_i32_97 = arith.constant 3 : i32
    %271 = tpu.dynamic_rotate %204 by %c3_i32_97 dim 0 : vector<32x64xf32>, i32 -> vector<32x64xf32>
    %c-3_i32 = arith.constant -3 : i32
    %272 = vector.broadcast %c-3_i32 : i32 to vector<32x1xi32>
    %273 = arith.addi %221, %272 : vector<32x1xi32>
    %c0_i32_98 = arith.constant 0 : i32
    %274 = vector.broadcast %c0_i32_98 : i32 to vector<32x1xi32>
    %275 = arith.cmpi sge, %273, %274 : vector<32x1xi32>
    %c-3_i32_99 = arith.constant -3 : i32
    %276 = vector.broadcast %c-3_i32_99 : i32 to vector<32x1xi32>
    %277 = arith.addi %221, %276 : vector<32x1xi32>
    %c16_i32_100 = arith.constant 16 : i32
    %278 = vector.broadcast %c16_i32_100 : i32 to vector<32x1xi32>
    %279 = arith.cmpi slt, %277, %278 : vector<32x1xi32>
    %280 = arith.andi %275, %279 : vector<32x1xi1>
    %281 = arith.andi %280, %241 : vector<32x1xi1>
    %cst_101 = arith.constant 0.000000e+00 : f32
    %282 = vector.shape_cast %281 : vector<32x1xi1> to vector<32x1xi1>
    %283 = vector.broadcast %282 : vector<32x1xi1> to vector<32x64xi1>
    %284 = vector.broadcast %cst_101 : f32 to vector<32x64xf32>
    %285 = arith.select %283, %271, %284 : vector<32x64xi1>, vector<32x64xf32>
    %c1_i32_102 = arith.constant 1 : i32
    %286 = tpu.dynamic_rotate %204 by %c1_i32_102 dim 0 : vector<32x64xf32>, i32 -> vector<32x64xf32>
    %c-1_i32_103 = arith.constant -1 : i32
    %287 = vector.broadcast %c-1_i32_103 : i32 to vector<32x1xi32>
    %288 = arith.addi %221, %287 : vector<32x1xi32>
    %c0_i32_104 = arith.constant 0 : i32
    %289 = vector.broadcast %c0_i32_104 : i32 to vector<32x1xi32>
    %290 = arith.cmpi sge, %288, %289 : vector<32x1xi32>
    %c-1_i32_105 = arith.constant -1 : i32
    %291 = vector.broadcast %c-1_i32_105 : i32 to vector<32x1xi32>
    %292 = arith.addi %221, %291 : vector<32x1xi32>
    %c16_i32_106 = arith.constant 16 : i32
    %293 = vector.broadcast %c16_i32_106 : i32 to vector<32x1xi32>
    %294 = arith.cmpi slt, %292, %293 : vector<32x1xi32>
    %295 = arith.andi %290, %294 : vector<32x1xi1>
    %296 = arith.andi %295, %239 : vector<32x1xi1>
    %cst_107 = arith.constant 0.000000e+00 : f32
    %297 = vector.shape_cast %296 : vector<32x1xi1> to vector<32x1xi1>
    %298 = vector.broadcast %297 : vector<32x1xi1> to vector<32x64xi1>
    %299 = vector.broadcast %cst_107 : f32 to vector<32x64xf32>
    %300 = arith.select %298, %286, %299 : vector<32x64xi1>, vector<32x64xf32>
    %c31_i32 = arith.constant 31 : i32
    %301 = tpu.dynamic_rotate %204 by %c31_i32 dim 0 : vector<32x64xf32>, i32 -> vector<32x64xf32>
    %c1_i32_108 = arith.constant 1 : i32
    %302 = vector.broadcast %c1_i32_108 : i32 to vector<32x1xi32>
    %303 = arith.addi %221, %302 : vector<32x1xi32>
    %c0_i32_109 = arith.constant 0 : i32
    %304 = vector.broadcast %c0_i32_109 : i32 to vector<32x1xi32>
    %305 = arith.cmpi sge, %303, %304 : vector<32x1xi32>
    %c1_i32_110 = arith.constant 1 : i32
    %306 = vector.broadcast %c1_i32_110 : i32 to vector<32x1xi32>
    %307 = arith.addi %221, %306 : vector<32x1xi32>
    %c16_i32_111 = arith.constant 16 : i32
    %308 = vector.broadcast %c16_i32_111 : i32 to vector<32x1xi32>
    %309 = arith.cmpi slt, %307, %308 : vector<32x1xi32>
    %310 = arith.andi %305, %309 : vector<32x1xi1>
    %311 = arith.andi %310, %241 : vector<32x1xi1>
    %cst_112 = arith.constant 0.000000e+00 : f32
    %312 = vector.shape_cast %311 : vector<32x1xi1> to vector<32x1xi1>
    %313 = vector.broadcast %312 : vector<32x1xi1> to vector<32x64xi1>
    %314 = vector.broadcast %cst_112 : f32 to vector<32x64xf32>
    %315 = arith.select %313, %301, %314 : vector<32x64xi1>, vector<32x64xf32>
    %c29_i32 = arith.constant 29 : i32
    %316 = tpu.dynamic_rotate %204 by %c29_i32 dim 0 : vector<32x64xf32>, i32 -> vector<32x64xf32>
    %c3_i32_113 = arith.constant 3 : i32
    %317 = vector.broadcast %c3_i32_113 : i32 to vector<32x1xi32>
    %318 = arith.addi %221, %317 : vector<32x1xi32>
    %c0_i32_114 = arith.constant 0 : i32
    %319 = vector.broadcast %c0_i32_114 : i32 to vector<32x1xi32>
    %320 = arith.cmpi sge, %318, %319 : vector<32x1xi32>
    %c3_i32_115 = arith.constant 3 : i32
    %321 = vector.broadcast %c3_i32_115 : i32 to vector<32x1xi32>
    %322 = arith.addi %221, %321 : vector<32x1xi32>
    %c16_i32_116 = arith.constant 16 : i32
    %323 = vector.broadcast %c16_i32_116 : i32 to vector<32x1xi32>
    %324 = arith.cmpi slt, %322, %323 : vector<32x1xi32>
    %325 = arith.andi %320, %324 : vector<32x1xi1>
    %326 = arith.andi %325, %239 : vector<32x1xi1>
    %cst_117 = arith.constant 0.000000e+00 : f32
    %327 = vector.shape_cast %326 : vector<32x1xi1> to vector<32x1xi1>
    %328 = vector.broadcast %327 : vector<32x1xi1> to vector<32x64xi1>
    %329 = vector.broadcast %cst_117 : f32 to vector<32x64xf32>
    %330 = arith.select %328, %316, %329 : vector<32x64xi1>, vector<32x64xf32>
    %c28_i32 = arith.constant 28 : i32
    %331 = tpu.dynamic_rotate %204 by %c28_i32 dim 0 : vector<32x64xf32>, i32 -> vector<32x64xf32>
    %c4_i32_118 = arith.constant 4 : i32
    %332 = vector.broadcast %c4_i32_118 : i32 to vector<32x1xi32>
    %333 = arith.addi %221, %332 : vector<32x1xi32>
    %c0_i32_119 = arith.constant 0 : i32
    %334 = vector.broadcast %c0_i32_119 : i32 to vector<32x1xi32>
    %335 = arith.cmpi sge, %333, %334 : vector<32x1xi32>
    %c4_i32_120 = arith.constant 4 : i32
    %336 = vector.broadcast %c4_i32_120 : i32 to vector<32x1xi32>
    %337 = arith.addi %221, %336 : vector<32x1xi32>
    %c16_i32_121 = arith.constant 16 : i32
    %338 = vector.broadcast %c16_i32_121 : i32 to vector<32x1xi32>
    %339 = arith.cmpi slt, %337, %338 : vector<32x1xi32>
    %340 = arith.andi %335, %339 : vector<32x1xi1>
    %cst_122 = arith.constant 0.000000e+00 : f32
    %341 = vector.shape_cast %340 : vector<32x1xi1> to vector<32x1xi1>
    %342 = vector.broadcast %341 : vector<32x1xi1> to vector<32x64xi1>
    %343 = vector.broadcast %cst_122 : f32 to vector<32x64xf32>
    %344 = arith.select %342, %331, %343 : vector<32x64xi1>, vector<32x64xf32>
    %c27_i32 = arith.constant 27 : i32
    %345 = tpu.dynamic_rotate %204 by %c27_i32 dim 0 : vector<32x64xf32>, i32 -> vector<32x64xf32>
    %c5_i32_123 = arith.constant 5 : i32
    %346 = vector.broadcast %c5_i32_123 : i32 to vector<32x1xi32>
    %347 = arith.addi %221, %346 : vector<32x1xi32>
    %c0_i32_124 = arith.constant 0 : i32
    %348 = vector.broadcast %c0_i32_124 : i32 to vector<32x1xi32>
    %349 = arith.cmpi sge, %347, %348 : vector<32x1xi32>
    %c5_i32_125 = arith.constant 5 : i32
    %350 = vector.broadcast %c5_i32_125 : i32 to vector<32x1xi32>
    %351 = arith.addi %221, %350 : vector<32x1xi32>
    %c16_i32_126 = arith.constant 16 : i32
    %352 = vector.broadcast %c16_i32_126 : i32 to vector<32x1xi32>
    %353 = arith.cmpi slt, %351, %352 : vector<32x1xi32>
    %354 = arith.andi %349, %353 : vector<32x1xi1>
    %355 = arith.andi %354, %241 : vector<32x1xi1>
    %cst_127 = arith.constant 0.000000e+00 : f32
    %356 = vector.shape_cast %355 : vector<32x1xi1> to vector<32x1xi1>
    %357 = vector.broadcast %356 : vector<32x1xi1> to vector<32x64xi1>
    %358 = vector.broadcast %cst_127 : f32 to vector<32x64xf32>
    %359 = arith.select %357, %345, %358 : vector<32x64xi1>, vector<32x64xf32>
    %360 = tpu.concatenate %256, %270, %285, %300, %204, %315, %330, %344, %359 in 1 : vector<32x64xf32>, vector<32x64xf32>, vector<32x64xf32>, vector<32x64xf32>, vector<32x64xf32>, vector<32x64xf32>, vector<32x64xf32>, vector<32x64xf32>, vector<32x64xf32> -> vector<32x576xf32>
    %c0_128 = arith.constant 0 : index
    %c0_129 = arith.constant 0 : index
    %361 = vector.load %arg11[%c0_128, %c0_129] : memref<576x128xf32, #tpu.memory_space<vmem>>, vector<576x128xf32>
    %cst_130 = arith.constant dense<0.000000e+00> : vector<32x128xf32>
    %362 = tpu.matmul %360, %361, %cst_130 {dimension_numbers = #tpu.dot_dimension_numbers<[1], [0], [0], [1], [0, 0, 1, 1], [], []>} : vector<32x576xf32>, vector<576x128xf32>, vector<32x128xf32> -> vector<32x128xf32>
    %c0_131 = arith.constant 0 : index
    %c0_132 = arith.constant 0 : index
    %363 = vector.load %arg12[%c0_131, %c0_132] : memref<1x128xf32, #tpu.memory_space<vmem>>, vector<1x128xf32>
    %364 = vector.broadcast %363 : vector<1x128xf32> to vector<32x128xf32>
    %365 = arith.mulf %362, %364 : vector<32x128xf32>
    %c0_133 = arith.constant 0 : index
    %c0_134 = arith.constant 0 : index
    %366 = vector.load %arg13[%c0_133, %c0_134] : memref<1x128xf32, #tpu.memory_space<vmem>>, vector<1x128xf32>
    %367 = vector.broadcast %366 : vector<1x128xf32> to vector<32x128xf32>
    %368 = arith.addf %365, %367 : vector<32x128xf32>
    %cst_135 = arith.constant 5.000000e-01 : f32
    %369 = vector.broadcast %cst_135 : f32 to vector<32x128xf32>
    %370 = arith.mulf %369, %368 : vector<32x128xf32>
    %cst_136 = arith.constant 0.707106769 : f32
    %371 = vector.broadcast %cst_136 : f32 to vector<32x128xf32>
    %372 = arith.mulf %368, %371 : vector<32x128xf32>
    %373 = math.erf %372 : vector<32x128xf32>
    %cst_137 = arith.constant 1.000000e+00 : f32
    %374 = vector.broadcast %cst_137 : f32 to vector<32x128xf32>
    %375 = arith.addf %374, %373 : vector<32x128xf32>
    %376 = arith.mulf %370, %375 : vector<32x128xf32>
    %c31_i32_138 = arith.constant 31 : i32
    %377 = tpu.dynamic_rotate %376 by %c31_i32_138 dim 0 : vector<32x128xf32>, i32 -> vector<32x128xf32>
    %378 = arith.maximumf %376, %377 : vector<32x128xf32>
    %c28_i32_139 = arith.constant 28 : i32
    %379 = tpu.dynamic_rotate %376 by %c28_i32_139 dim 0 : vector<32x128xf32>, i32 -> vector<32x128xf32>
    %c27_i32_140 = arith.constant 27 : i32
    %380 = tpu.dynamic_rotate %376 by %c27_i32_140 dim 0 : vector<32x128xf32>, i32 -> vector<32x128xf32>
    %381 = arith.maximumf %379, %380 : vector<32x128xf32>
    %382 = arith.maximumf %378, %381 : vector<32x128xf32>
    %c0_141 = arith.constant 0 : index
    %c0_142 = arith.constant 0 : index
    %383 = vector.load %arg14[%c0_141, %c0_142] : memref<8x32xf32, #tpu.memory_space<vmem>>, vector<8x32xf32>
    %cst_143 = arith.constant dense<0.000000e+00> : vector<8x128xf32>
    %384 = tpu.matmul %383, %382, %cst_143 {dimension_numbers = #tpu.dot_dimension_numbers<[1], [0], [0], [1], [0, 0, 1, 1], [], []>} : vector<8x32xf32>, vector<32x128xf32>, vector<8x128xf32> -> vector<8x128xf32>
    %385 = vector.extract_strided_slice %384 {offsets = [0, 0], sizes = [4, 128], strides = [1, 1]} : vector<8x128xf32> to vector<4x128xf32>
    %cst_144 = arith.constant dense<0.000000e+00> : vector<128xf32>
    %386 = vector.multi_reduction <add>, %385, %cst_144 [0] : vector<4x128xf32> to vector<128xf32>
    %387 = vector.shape_cast %386 : vector<128xf32> to vector<1x128xf32>
    %cst_145 = arith.constant 4.000000e+00 : f32
    %388 = vector.broadcast %cst_145 : f32 to vector<1x128xf32>
    %389 = arith.divf %387, %388 : vector<1x128xf32>
    %390 = vector.extract_strided_slice %384 {offsets = [4, 0], sizes = [4, 128], strides = [1, 1]} : vector<8x128xf32> to vector<4x128xf32>
    %cst_146 = arith.constant dense<0.000000e+00> : vector<128xf32>
    %391 = vector.multi_reduction <add>, %390, %cst_146 [0] : vector<4x128xf32> to vector<128xf32>
    %392 = vector.shape_cast %391 : vector<128xf32> to vector<1x128xf32>
    %cst_147 = arith.constant 4.000000e+00 : f32
    %393 = vector.broadcast %cst_147 : f32 to vector<1x128xf32>
    %394 = arith.divf %392, %393 : vector<1x128xf32>
    %395 = tpu.concatenate %389, %394 in 0 : vector<1x128xf32>, vector<1x128xf32> -> vector<2x128xf32>
    %396 = vector.extract_strided_slice %384 {offsets = [0, 0], sizes = [4, 128], strides = [1, 1]} : vector<8x128xf32> to vector<4x128xf32>
    %cst_148 = arith.constant dense<0xFF800000> : vector<128xf32>
    %397 = vector.multi_reduction <maximumf>, %396, %cst_148 [0] : vector<4x128xf32> to vector<128xf32>
    %398 = vector.shape_cast %397 : vector<128xf32> to vector<1x128xf32>
    %399 = vector.extract_strided_slice %384 {offsets = [4, 0], sizes = [4, 128], strides = [1, 1]} : vector<8x128xf32> to vector<4x128xf32>
    %cst_149 = arith.constant dense<0xFF800000> : vector<128xf32>
    %400 = vector.multi_reduction <maximumf>, %399, %cst_149 [0] : vector<4x128xf32> to vector<128xf32>
    %401 = vector.shape_cast %400 : vector<128xf32> to vector<1x128xf32>
    %402 = tpu.concatenate %398, %401 in 0 : vector<1x128xf32>, vector<1x128xf32> -> vector<2x128xf32>
    %403 = tpu.concatenate %395, %402 in 0 : vector<2x128xf32>, vector<2x128xf32> -> vector<4x128xf32>
    %c0_150 = arith.constant 0 : index
    %c0_151 = arith.constant 0 : index
    %404 = vector.load %arg15[%c0_150, %c0_151] : memref<128x8xf32, #tpu.memory_space<vmem>>, vector<128x8xf32>
    %cst_152 = arith.constant dense<0.000000e+00> : vector<4x8xf32>
    %405 = tpu.matmul %403, %404, %cst_152 {dimension_numbers = #tpu.dot_dimension_numbers<[1], [0], [0], [1], [0, 0, 1, 1], [], []>} : vector<4x128xf32>, vector<128x8xf32>, vector<4x8xf32> -> vector<4x8xf32>
    %cst_153 = arith.constant 0.000000e+00 : f32
    %406 = vector.broadcast %cst_153 : f32 to vector<4x8xf32>
    %407 = arith.maximumf %405, %406 : vector<4x8xf32>
    %c0_154 = arith.constant 0 : index
    %c0_155 = arith.constant 0 : index
    %408 = vector.load %arg16[%c0_154, %c0_155] : memref<8x128xf32, #tpu.memory_space<vmem>>, vector<8x128xf32>
    %cst_156 = arith.constant dense<0.000000e+00> : vector<4x128xf32>
    %409 = tpu.matmul %407, %408, %cst_156 {dimension_numbers = #tpu.dot_dimension_numbers<[1], [0], [0], [1], [0, 0, 1, 1], [], []>} : vector<4x8xf32>, vector<8x128xf32>, vector<4x128xf32> -> vector<4x128xf32>
    %410 = arith.negf %409 : vector<4x128xf32>
    %411 = math.exp %410 : vector<4x128xf32>
    %cst_157 = arith.constant 1.000000e+00 : f32
    %412 = vector.broadcast %cst_157 : f32 to vector<4x128xf32>
    %413 = arith.addf %412, %411 : vector<4x128xf32>
    %414 = arith.divf %412, %413 : vector<4x128xf32>
    %415 = vector.extract_strided_slice %414 {offsets = [0, 0], sizes = [2, 128], strides = [1, 1]} : vector<4x128xf32> to vector<2x128xf32>
    %416 = vector.extract_strided_slice %414 {offsets = [2, 0], sizes = [2, 128], strides = [1, 1]} : vector<4x128xf32> to vector<2x128xf32>
    %417 = arith.addf %415, %416 : vector<2x128xf32>
    %418 = vector.extract_strided_slice %384 {offsets = [0, 0], sizes = [4, 128], strides = [1, 1]} : vector<8x128xf32> to vector<4x128xf32>
    %419 = vector.extract_strided_slice %417 {offsets = [0, 0], sizes = [1, 128], strides = [1, 1]} : vector<2x128xf32> to vector<1x128xf32>
    %420 = vector.broadcast %419 : vector<1x128xf32> to vector<4x128xf32>
    %421 = arith.mulf %418, %420 : vector<4x128xf32>
    %422 = vector.extract_strided_slice %384 {offsets = [4, 0], sizes = [4, 128], strides = [1, 1]} : vector<8x128xf32> to vector<4x128xf32>
    %423 = vector.extract_strided_slice %417 {offsets = [1, 0], sizes = [1, 128], strides = [1, 1]} : vector<2x128xf32> to vector<1x128xf32>
    %424 = vector.broadcast %423 : vector<1x128xf32> to vector<4x128xf32>
    %425 = arith.mulf %422, %424 : vector<4x128xf32>
    %426 = tpu.concatenate %421, %425 in 0 : vector<4x128xf32>, vector<4x128xf32> -> vector<8x128xf32>
    %cst_158 = arith.constant dense<0.000000e+00> : vector<8xf32>
    %427 = vector.multi_reduction <add>, %426, %cst_158 [1] : vector<8x128xf32> to vector<8xf32>
    %428 = vector.shape_cast %427 : vector<8xf32> to vector<8x1xf32>
    %cst_159 = arith.constant 1.280000e+02 : f32
    %429 = vector.broadcast %cst_159 : f32 to vector<8x1xf32>
    %430 = arith.divf %428, %429 : vector<8x1xf32>
    %cst_160 = arith.constant dense<0xFF800000> : vector<8xf32>
    %431 = vector.multi_reduction <maximumf>, %426, %cst_160 [1] : vector<8x128xf32> to vector<8xf32>
    %432 = vector.shape_cast %431 : vector<8xf32> to vector<8x1xf32>
    %433 = tpu.concatenate %430, %432 in 0 : vector<8x1xf32>, vector<8x1xf32> -> vector<16x1xf32>
    %c0_161 = arith.constant 0 : index
    %c0_162 = arith.constant 0 : index
    %434 = vector.load %arg17[%c0_161, %c0_162] : memref<8x16xf32, #tpu.memory_space<vmem>>, vector<8x16xf32>
    %cst_163 = arith.constant dense<0.000000e+00> : vector<8x1xf32>
    %435 = tpu.matmul %434, %433, %cst_163 {dimension_numbers = #tpu.dot_dimension_numbers<[1], [0], [0], [1], [0, 0, 1, 1], [], []>} : vector<8x16xf32>, vector<16x1xf32>, vector<8x1xf32> -> vector<8x1xf32>
    %c0_164 = arith.constant 0 : index
    %c0_165 = arith.constant 0 : index
    %436 = vector.load %arg18[%c0_164, %c0_165] : memref<1x1xf32, #tpu.memory_space<vmem>>, vector<1x1xf32>
    %437 = vector.broadcast %436 : vector<1x1xf32> to vector<8x1xf32>
    %438 = arith.addf %435, %437 : vector<8x1xf32>
    %439 = arith.negf %438 : vector<8x1xf32>
    %440 = math.exp %439 : vector<8x1xf32>
    %cst_166 = arith.constant 1.000000e+00 : f32
    %441 = vector.broadcast %cst_166 : f32 to vector<8x1xf32>
    %442 = arith.addf %441, %440 : vector<8x1xf32>
    %443 = arith.divf %441, %442 : vector<8x1xf32>
    %444 = vector.broadcast %443 : vector<8x1xf32> to vector<8x128xf32>
    %445 = arith.mulf %426, %444 : vector<8x128xf32>
    %c0_167 = arith.constant 0 : index
    %c0_168 = arith.constant 0 : index
    %c0_169 = arith.constant 0 : index
    %446 = vector.load %arg2[%c0_167, %c0_168, %c0_169] : memref<1x2x12xf32, #tpu.memory_space<vmem>>, vector<1x2x12xf32>
    %447 = vector.shape_cast %446 : vector<1x2x12xf32> to vector<2x12xf32>
    %c0_170 = arith.constant 0 : index
    %c0_171 = arith.constant 0 : index
    %448 = vector.load %arg19[%c0_170, %c0_171] : memref<12x128xf32, #tpu.memory_space<vmem>>, vector<12x128xf32>
    %cst_172 = arith.constant dense<0.000000e+00> : vector<2x128xf32>
    %449 = tpu.matmul %447, %448, %cst_172 {dimension_numbers = #tpu.dot_dimension_numbers<[1], [0], [0], [1], [0, 0, 1, 1], [], []>} : vector<2x12xf32>, vector<12x128xf32>, vector<2x128xf32> -> vector<2x128xf32>
    %c0_173 = arith.constant 0 : index
    %c0_174 = arith.constant 0 : index
    %450 = vector.load %arg20[%c0_173, %c0_174] : memref<1x128xf32, #tpu.memory_space<vmem>>, vector<1x128xf32>
    %451 = vector.broadcast %450 : vector<1x128xf32> to vector<2x128xf32>
    %452 = arith.addf %449, %451 : vector<2x128xf32>
    %cst_175 = arith.constant 5.000000e-01 : f32
    %453 = vector.broadcast %cst_175 : f32 to vector<2x128xf32>
    %454 = arith.mulf %453, %452 : vector<2x128xf32>
    %cst_176 = arith.constant 0.707106769 : f32
    %455 = vector.broadcast %cst_176 : f32 to vector<2x128xf32>
    %456 = arith.mulf %452, %455 : vector<2x128xf32>
    %457 = math.erf %456 : vector<2x128xf32>
    %cst_177 = arith.constant 1.000000e+00 : f32
    %458 = vector.broadcast %cst_177 : f32 to vector<2x128xf32>
    %459 = arith.addf %458, %457 : vector<2x128xf32>
    %460 = arith.mulf %454, %459 : vector<2x128xf32>
    %c0_178 = arith.constant 0 : index
    %c0_179 = arith.constant 0 : index
    %461 = vector.load %arg21[%c0_178, %c0_179] : memref<128x64xf32, #tpu.memory_space<vmem>>, vector<128x64xf32>
    %cst_180 = arith.constant dense<0.000000e+00> : vector<2x64xf32>
    %462 = tpu.matmul %460, %461, %cst_180 {dimension_numbers = #tpu.dot_dimension_numbers<[1], [0], [0], [1], [0, 0, 1, 1], [], []>} : vector<2x128xf32>, vector<128x64xf32>, vector<2x64xf32> -> vector<2x64xf32>
    %c0_181 = arith.constant 0 : index
    %c0_182 = arith.constant 0 : index
    %463 = vector.load %arg22[%c0_181, %c0_182] : memref<1x64xf32, #tpu.memory_space<vmem>>, vector<1x64xf32>
    %464 = vector.broadcast %463 : vector<1x64xf32> to vector<2x64xf32>
    %465 = arith.addf %462, %464 : vector<2x64xf32>
    %cst_183 = arith.constant dense<0.000000e+00> : vector<2xf32>
    %466 = vector.multi_reduction <add>, %465, %cst_183 [1] : vector<2x64xf32> to vector<2xf32>
    %467 = vector.shape_cast %466 : vector<2xf32> to vector<2x1xf32>
    %cst_184 = arith.constant 6.400000e+01 : f32
    %468 = vector.broadcast %cst_184 : f32 to vector<2x1xf32>
    %469 = arith.divf %467, %468 : vector<2x1xf32>
    %470 = vector.broadcast %469 : vector<2x1xf32> to vector<2x64xf32>
    %471 = arith.subf %465, %470 : vector<2x64xf32>
    %472 = arith.mulf %471, %471 : vector<2x64xf32>
    %cst_185 = arith.constant dense<0.000000e+00> : vector<2xf32>
    %473 = vector.multi_reduction <add>, %472, %cst_185 [1] : vector<2x64xf32> to vector<2xf32>
    %474 = vector.shape_cast %473 : vector<2xf32> to vector<2x1xf32>
    %cst_186 = arith.constant 6.400000e+01 : f32
    %475 = vector.broadcast %cst_186 : f32 to vector<2x1xf32>
    %476 = arith.divf %474, %475 : vector<2x1xf32>
    %477 = vector.broadcast %469 : vector<2x1xf32> to vector<2x64xf32>
    %478 = arith.subf %465, %477 : vector<2x64xf32>
    %cst_187 = arith.constant 9.99999974E-6 : f32
    %479 = vector.broadcast %cst_187 : f32 to vector<2x1xf32>
    %480 = arith.addf %476, %479 : vector<2x1xf32>
    %481 = math.rsqrt %480 : vector<2x1xf32>
    %482 = vector.broadcast %481 : vector<2x1xf32> to vector<2x64xf32>
    %483 = arith.mulf %478, %482 : vector<2x64xf32>
    %c0_188 = arith.constant 0 : index
    %c0_189 = arith.constant 0 : index
    %484 = vector.load %arg23[%c0_188, %c0_189] : memref<1x64xf32, #tpu.memory_space<vmem>>, vector<1x64xf32>
    %485 = vector.broadcast %484 : vector<1x64xf32> to vector<2x64xf32>
    %486 = arith.mulf %483, %485 : vector<2x64xf32>
    %c0_190 = arith.constant 0 : index
    %c0_191 = arith.constant 0 : index
    %487 = vector.load %arg24[%c0_190, %c0_191] : memref<1x64xf32, #tpu.memory_space<vmem>>, vector<1x64xf32>
    %488 = vector.broadcast %487 : vector<1x64xf32> to vector<2x64xf32>
    %489 = arith.addf %486, %488 : vector<2x64xf32>
    %cst_192 = arith.constant 5.000000e-01 : f32
    %490 = vector.broadcast %cst_192 : f32 to vector<2x64xf32>
    %491 = arith.mulf %490, %489 : vector<2x64xf32>
    %cst_193 = arith.constant 0.707106769 : f32
    %492 = vector.broadcast %cst_193 : f32 to vector<2x64xf32>
    %493 = arith.mulf %489, %492 : vector<2x64xf32>
    %494 = math.erf %493 : vector<2x64xf32>
    %cst_194 = arith.constant 1.000000e+00 : f32
    %495 = vector.broadcast %cst_194 : f32 to vector<2x64xf32>
    %496 = arith.addf %495, %494 : vector<2x64xf32>
    %497 = arith.mulf %491, %496 : vector<2x64xf32>
    %498 = vector.extract_strided_slice %445 {offsets = [0, 0], sizes = [1, 128], strides = [1, 1]} : vector<8x128xf32> to vector<1x128xf32>
    %499 = vector.extract_strided_slice %445 {offsets = [1, 0], sizes = [1, 128], strides = [1, 1]} : vector<8x128xf32> to vector<1x128xf32>
    %500 = vector.extract_strided_slice %445 {offsets = [2, 0], sizes = [1, 128], strides = [1, 1]} : vector<8x128xf32> to vector<1x128xf32>
    %501 = vector.extract_strided_slice %445 {offsets = [3, 0], sizes = [1, 128], strides = [1, 1]} : vector<8x128xf32> to vector<1x128xf32>
    %502 = tpu.concatenate %498, %499, %500, %501 in 1 : vector<1x128xf32>, vector<1x128xf32>, vector<1x128xf32>, vector<1x128xf32> -> vector<1x512xf32>
    %503 = vector.extract_strided_slice %445 {offsets = [4, 0], sizes = [1, 128], strides = [1, 1]} : vector<8x128xf32> to vector<1x128xf32>
    %504 = vector.extract_strided_slice %445 {offsets = [5, 0], sizes = [1, 128], strides = [1, 1]} : vector<8x128xf32> to vector<1x128xf32>
    %505 = vector.extract_strided_slice %445 {offsets = [6, 0], sizes = [1, 128], strides = [1, 1]} : vector<8x128xf32> to vector<1x128xf32>
    %506 = vector.extract_strided_slice %445 {offsets = [7, 0], sizes = [1, 128], strides = [1, 1]} : vector<8x128xf32> to vector<1x128xf32>
    %507 = tpu.concatenate %503, %504, %505, %506 in 1 : vector<1x128xf32>, vector<1x128xf32>, vector<1x128xf32>, vector<1x128xf32> -> vector<1x512xf32>
    %508 = tpu.concatenate %502, %507 in 0 : vector<1x512xf32>, vector<1x512xf32> -> vector<2x512xf32>
    %c0_195 = arith.constant 0 : index
    %c0_196 = arith.constant 0 : index
    %509 = vector.load %arg25[%c0_195, %c0_196] : memref<512x128xf32, #tpu.memory_space<vmem>>, vector<512x128xf32>
    %cst_197 = arith.constant dense<0.000000e+00> : vector<2x128xf32>
    %510 = tpu.matmul %508, %509, %cst_197 {dimension_numbers = #tpu.dot_dimension_numbers<[1], [0], [0], [1], [0, 0, 1, 1], [], []>} : vector<2x512xf32>, vector<512x128xf32>, vector<2x128xf32> -> vector<2x128xf32>
    %c0_198 = arith.constant 0 : index
    %c0_199 = arith.constant 0 : index
    %511 = vector.load %arg26[%c0_198, %c0_199] : memref<64x128xf32, #tpu.memory_space<vmem>>, vector<64x128xf32>
    %cst_200 = arith.constant dense<0.000000e+00> : vector<2x128xf32>
    %512 = tpu.matmul %497, %511, %cst_200 {dimension_numbers = #tpu.dot_dimension_numbers<[1], [0], [0], [1], [0, 0, 1, 1], [], []>} : vector<2x64xf32>, vector<64x128xf32>, vector<2x128xf32> -> vector<2x128xf32>
    %513 = arith.addf %510, %512 : vector<2x128xf32>
    %c0_201 = arith.constant 0 : index
    %c0_202 = arith.constant 0 : index
    %514 = vector.load %arg27[%c0_201, %c0_202] : memref<1x128xf32, #tpu.memory_space<vmem>>, vector<1x128xf32>
    %515 = vector.broadcast %514 : vector<1x128xf32> to vector<2x128xf32>
    %516 = arith.addf %513, %515 : vector<2x128xf32>
    %cst_203 = arith.constant 5.000000e-01 : f32
    %517 = vector.broadcast %cst_203 : f32 to vector<2x128xf32>
    %518 = arith.mulf %517, %516 : vector<2x128xf32>
    %cst_204 = arith.constant 0.707106769 : f32
    %519 = vector.broadcast %cst_204 : f32 to vector<2x128xf32>
    %520 = arith.mulf %516, %519 : vector<2x128xf32>
    %521 = math.erf %520 : vector<2x128xf32>
    %cst_205 = arith.constant 1.000000e+00 : f32
    %522 = vector.broadcast %cst_205 : f32 to vector<2x128xf32>
    %523 = arith.addf %522, %521 : vector<2x128xf32>
    %524 = arith.mulf %518, %523 : vector<2x128xf32>
    %c0_206 = arith.constant 0 : index
    %c0_207 = arith.constant 0 : index
    %525 = vector.load %arg28[%c0_206, %c0_207] : memref<128x1xf32, #tpu.memory_space<vmem>>, vector<128x1xf32>
    %cst_208 = arith.constant dense<0.000000e+00> : vector<2x1xf32>
    %526 = tpu.matmul %524, %525, %cst_208 {dimension_numbers = #tpu.dot_dimension_numbers<[1], [0], [0], [1], [0, 0, 1, 1], [], []>} : vector<2x128xf32>, vector<128x1xf32>, vector<2x1xf32> -> vector<2x1xf32>
    %c0_209 = arith.constant 0 : index
    %c0_210 = arith.constant 0 : index
    %527 = vector.load %arg29[%c0_209, %c0_210] : memref<1x1xf32, #tpu.memory_space<vmem>>, vector<1x1xf32>
    %528 = vector.broadcast %527 : vector<1x1xf32> to vector<2x1xf32>
    %529 = arith.addf %526, %528 : vector<2x1xf32>
    %530 = arith.negf %529 : vector<2x1xf32>
    %531 = math.exp %530 : vector<2x1xf32>
    %cst_211 = arith.constant 1.000000e+00 : f32
    %532 = vector.broadcast %cst_211 : f32 to vector<2x1xf32>
    %533 = arith.addf %532, %531 : vector<2x1xf32>
    %534 = arith.divf %532, %533 : vector<2x1xf32>
    %c0_212 = arith.constant 0 : index
    %c0_213 = arith.constant 0 : index
    %c0_214 = arith.constant 0 : index
    %535 = vector.load %arg30[%c0_212, %c0_213, %c0_214] : memref<1x2x1xf32, #tpu.memory_space<vmem>>, vector<1x2x1xf32>
    %536 = vector.shape_cast %535 : vector<1x2x1xf32> to vector<2x1xf32>
    %537 = vector.shape_cast %534 : vector<2x1xf32> to vector<1x2x1xf32>
    tpu.vector_store %arg30[%c0_212, %c0_213, %c0_214], %537 {strides = array<i32>} : memref<1x2x1xf32, #tpu.memory_space<vmem>>, vector<1x2x1xf32>,
    return
  }
  func.func @transform_0(%arg0: i32) -> (i32, i32) {
    %c0_i32 = arith.constant 0 : i32
    %c0_i32_0 = arith.constant 0 : i32
    return %arg0, %c0_i32 : i32, i32
  }
  func.func @transform_1(%arg0: i32) -> (i32, i32, i32) {
    %c0_i32 = arith.constant 0 : i32
    %c0_i32_0 = arith.constant 0 : i32
    %c0_i32_1 = arith.constant 0 : i32
    return %arg0, %c0_i32, %c0_i32_0 : i32, i32, i32
  }
  func.func @transform_2(%arg0: i32) -> (i32, i32) {
    %c0_i32 = arith.constant 0 : i32
    %c0_i32_0 = arith.constant 0 : i32
    %c0_i32_1 = arith.constant 0 : i32
    return %c0_i32, %c0_i32_0 : i32, i32
  }
  func.func @transform_3(%arg0: i32) -> (i32, i32) {
    %c0_i32 = arith.constant 0 : i32
    %c0_i32_0 = arith.constant 0 : i32
    %c0_i32_1 = arith.constant 0 : i32
    return %c0_i32, %c0_i32_0 : i32, i32
  }
  func.func @transform_4(%arg0: i32) -> (i32, i32) {
    %c0_i32 = arith.constant 0 : i32
    %c0_i32_0 = arith.constant 0 : i32
    %c0_i32_1 = arith.constant 0 : i32
    return %c0_i32, %c0_i32_0 : i32, i32
  }
  func.func @transform_5(%arg0: i32) -> (i32, i32) {
    %c0_i32 = arith.constant 0 : i32
    %c0_i32_0 = arith.constant 0 : i32
    %c0_i32_1 = arith.constant 0 : i32
    return %c0_i32, %c0_i32_0 : i32, i32
  }
  func.func @transform_6(%arg0: i32) -> (i32, i32) {
    %c0_i32 = arith.constant 0 : i32
    %c0_i32_0 = arith.constant 0 : i32
    %c0_i32_1 = arith.constant 0 : i32
    return %c0_i32, %c0_i32_0 : i32, i32
  }
  func.func @transform_7(%arg0: i32) -> (i32, i32) {
    %c0_i32 = arith.constant 0 : i32
    %c0_i32_0 = arith.constant 0 : i32
    %c0_i32_1 = arith.constant 0 : i32
    return %c0_i32, %c0_i32_0 : i32, i32
  }
  func.func @transform_8(%arg0: i32) -> (i32, i32) {
    %c0_i32 = arith.constant 0 : i32
    %c0_i32_0 = arith.constant 0 : i32
    %c0_i32_1 = arith.constant 0 : i32
    return %c0_i32, %c0_i32_0 : i32, i32
  }
  func.func @transform_9(%arg0: i32) -> (i32, i32) {
    %c0_i32 = arith.constant 0 : i32
    %c0_i32_0 = arith.constant 0 : i32
    %c0_i32_1 = arith.constant 0 : i32
    return %c0_i32, %c0_i32_0 : i32, i32
  }
  func.func @transform_10(%arg0: i32) -> (i32, i32) {
    %c0_i32 = arith.constant 0 : i32
    %c0_i32_0 = arith.constant 0 : i32
    %c0_i32_1 = arith.constant 0 : i32
    return %c0_i32, %c0_i32_0 : i32, i32
  }
  func.func @transform_11(%arg0: i32) -> (i32, i32) {
    %c0_i32 = arith.constant 0 : i32
    %c0_i32_0 = arith.constant 0 : i32
    %c0_i32_1 = arith.constant 0 : i32
    return %c0_i32, %c0_i32_0 : i32, i32
  }
  func.func @transform_12(%arg0: i32) -> (i32, i32) {
    %c0_i32 = arith.constant 0 : i32
    %c0_i32_0 = arith.constant 0 : i32
    %c0_i32_1 = arith.constant 0 : i32
    return %c0_i32, %c0_i32_0 : i32, i32
  }
  func.func @transform_13(%arg0: i32) -> (i32, i32) {
    %c0_i32 = arith.constant 0 : i32
    %c0_i32_0 = arith.constant 0 : i32
    %c0_i32_1 = arith.constant 0 : i32
    return %c0_i32, %c0_i32_0 : i32, i32
  }
  func.func @transform_14(%arg0: i32) -> (i32, i32) {
    %c0_i32 = arith.constant 0 : i32
    %c0_i32_0 = arith.constant 0 : i32
    %c0_i32_1 = arith.constant 0 : i32
    return %c0_i32, %c0_i32_0 : i32, i32
  }
  func.func @transform_15(%arg0: i32) -> (i32, i32) {
    %c0_i32 = arith.constant 0 : i32
    %c0_i32_0 = arith.constant 0 : i32
    %c0_i32_1 = arith.constant 0 : i32
    return %c0_i32, %c0_i32_0 : i32, i32
  }
  func.func @transform_16(%arg0: i32) -> (i32, i32) {
    %c0_i32 = arith.constant 0 : i32
    %c0_i32_0 = arith.constant 0 : i32
    %c0_i32_1 = arith.constant 0 : i32
    return %c0_i32, %c0_i32_0 : i32, i32
  }
  func.func @transform_17(%arg0: i32) -> (i32, i32) {
    %c0_i32 = arith.constant 0 : i32
    %c0_i32_0 = arith.constant 0 : i32
    %c0_i32_1 = arith.constant 0 : i32
    return %c0_i32, %c0_i32_0 : i32, i32
  }
  func.func @transform_18(%arg0: i32) -> (i32, i32) {
    %c0_i32 = arith.constant 0 : i32
    %c0_i32_0 = arith.constant 0 : i32
    %c0_i32_1 = arith.constant 0 : i32
    return %c0_i32, %c0_i32_0 : i32, i32
  }
  func.func @transform_19(%arg0: i32) -> (i32, i32) {
    %c0_i32 = arith.constant 0 : i32
    %c0_i32_0 = arith.constant 0 : i32
    %c0_i32_1 = arith.constant 0 : i32
    return %c0_i32, %c0_i32_0 : i32, i32
  }
  func.func @transform_20(%arg0: i32) -> (i32, i32) {
    %c0_i32 = arith.constant 0 : i32
    %c0_i32_0 = arith.constant 0 : i32
    %c0_i32_1 = arith.constant 0 : i32
    return %c0_i32, %c0_i32_0 : i32, i32
  }
  func.func @transform_21(%arg0: i32) -> (i32, i32) {
    %c0_i32 = arith.constant 0 : i32
    %c0_i32_0 = arith.constant 0 : i32
    %c0_i32_1 = arith.constant 0 : i32
    return %c0_i32, %c0_i32_0 : i32, i32
  }
  func.func @transform_22(%arg0: i32) -> (i32, i32) {
    %c0_i32 = arith.constant 0 : i32
    %c0_i32_0 = arith.constant 0 : i32
    %c0_i32_1 = arith.constant 0 : i32
    return %c0_i32, %c0_i32_0 : i32, i32
  }
  func.func @transform_23(%arg0: i32) -> (i32, i32) {
    %c0_i32 = arith.constant 0 : i32
    %c0_i32_0 = arith.constant 0 : i32
    %c0_i32_1 = arith.constant 0 : i32
    return %c0_i32, %c0_i32_0 : i32, i32
  }
  func.func @transform_24(%arg0: i32) -> (i32, i32) {
    %c0_i32 = arith.constant 0 : i32
    %c0_i32_0 = arith.constant 0 : i32
    %c0_i32_1 = arith.constant 0 : i32
    return %c0_i32, %c0_i32_0 : i32, i32
  }
  func.func @transform_25(%arg0: i32) -> (i32, i32) {
    %c0_i32 = arith.constant 0 : i32
    %c0_i32_0 = arith.constant 0 : i32
    %c0_i32_1 = arith.constant 0 : i32
    return %c0_i32, %c0_i32_0 : i32, i32
  }
  func.func @transform_26(%arg0: i32) -> (i32, i32) {
    %c0_i32 = arith.constant 0 : i32
    %c0_i32_0 = arith.constant 0 : i32
    %c0_i32_1 = arith.constant 0 : i32
    return %c0_i32, %c0_i32_0 : i32, i32
  }
  func.func @transform_27(%arg0: i32) -> (i32, i32) {
    %c0_i32 = arith.constant 0 : i32
    %c0_i32_0 = arith.constant 0 : i32
    %c0_i32_1 = arith.constant 0 : i32
    return %c0_i32, %c0_i32_0 : i32, i32
  }
  func.func @transform_28(%arg0: i32) -> (i32, i32) {
    %c0_i32 = arith.constant 0 : i32
    %c0_i32_0 = arith.constant 0 : i32
    %c0_i32_1 = arith.constant 0 : i32
    return %c0_i32, %c0_i32_0 : i32, i32
  }
  func.func @transform_29(%arg0: i32) -> (i32, i32, i32) {
    %c0_i32 = arith.constant 0 : i32
    %c0_i32_0 = arith.constant 0 : i32
    %c0_i32_1 = arith.constant 0 : i32
    return %arg0, %c0_i32, %c0_i32_0 : i32, i32, i32
  }
}

</mosaic_0001>

<bundles_post_ra>
// kernel: forward.1
= control target key start
LH: loop header
LB: loop body
LE: loop exit
PB: predicated region body
PF: predicated region fallthrough
CT: control target
= control target key end

     0   :  { %s8900_s6 = smov 1   ;;  %s8901_s10 = smov 2   ;;  %s12505_s0 = inlined_call_operand.smem [shape: u32[30], index: -1, kind: input, shape index: {}] }
   0x1   :  { %s8943_s5 = sld [smem:[%s12505_s0]]   ;;  %s8902_s14 = smov 3  }
   0x2   :  { %s8948_s9 = sld [smem:[%s12505_s0 + %s8900_s6]]   ;;  %s8903_s18 = smov 4  }
   0x3   :  { %s8953_s13 = sld [smem:[%s12505_s0 + %s8901_s10]]   ;;  %s8904_s22 = smov 5  }
   0x4   :  { %s8958_s17 = sld [smem:[%s12505_s0 + %s8902_s14]]   ;;  %s8905_s26 = smov 6  }
   0x5   :  { %s8963_s21 = sld [smem:[%s12505_s0 + %s8903_s18]]   ;;  %s8906_s30 = smov 7  }
   0x6   :  { %s8968_s25 = sld [smem:[%s12505_s0 + %s8904_s22]]   ;;  %s8907_s4 = smov 8  }
   0x7   :  { %s8973_s29 = sld [smem:[%s12505_s0 + %s8905_s26]]   ;;  %s8908_s10 = smov 9  }
   0x8   :  { %12671 = sst [smem:[#allocation4_spill]] %s8948_s9  ;;  %s8909_s15 = smov 10  }
   0x9   :  { %s8978_s3 = sld [smem:[%s12505_s0 + %s8906_s30]]   ;;  %s8910_s20 = smov 11  }
   0xa   :  { %s8983_s8 = sld [smem:[%s12505_s0 + %s8907_s4]]   ;;  %s8911_s26 = smov 12  }
   0xb   :  { %s8988_s14 = sld [smem:[%s12505_s0 + %s8908_s10]]   ;;  %s8912_s1 = smov 13  }
   0xc   :  { %s8993_s19 = sld [smem:[%s12505_s0 + %s8909_s15]]   ;;  %s8913_s7 = smov 14  }
   0xd   :  { %s8998_s24 = sld [smem:[%s12505_s0 + %s8910_s20]]   ;;  %s8914_s15 = smov 15  }
   0xe   :  { %s9003_s30 = sld [smem:[%s12505_s0 + %s8911_s26]]   ;;  %s8915_s22 = smov 16  }
   0xf   :  { %s9008_s6 = sld [smem:[%s12505_s0 + %s8912_s1]]   ;;  %s8916_s28 = smov 17  }
  0x10   :  { %s9013_s12 = sld [smem:[%s12505_s0 + %s8913_s7]]   ;;  %s8917_s10 = smov 18  }
  0x11   :  { %s9018_s20 = sld [smem:[%s12505_s0 + %s8914_s15]]   ;;  %s8918_s16 = smov 19  }
  0x12   :  { %s9023_s27 = sld [smem:[%s12505_s0 + %s8915_s22]]   ;;  %s8919_s23 = smov 20  }
  0x13   :  { %s7281_s4 = sld [smem:[%s12505_s0 + %s8916_s28]]   ;;  %s8920_s1 = smov 21  }
  0x14   :  { %s9031_s9 = sld [smem:[%s12505_s0 + %s8917_s10]]   ;;  %s8921_s10 = smov 22  }
  0x15   :  { %s8925_s7 = smov 26  }
  0x16   :  { %12672 = sst [smem:[#allocation5_spill]] %s9013_s12 }
  0x17   :  { %12673 = sst [smem:[#allocation6_spill]] %s9018_s20 }
  0x18   :  { %12674 = sst [smem:[#allocation7_spill]] %s9023_s27 }
  0x19   :  { %s9036_s20 = sld [smem:[%s12505_s0 + %s8918_s16]]   ;;  %s8922_s16 = smov 23   ;;  %v64_v0 = vstv %s7281_s4 }
  0x1a   :  { %12675 = sst [smem:[#allocation8_spill]] %s9031_s9  ;;  %65 = vst [vmem:[#allocation2] sm:$0x1] %v64_v0  ;;  %s8926_s4 = smov 27  }
  0x1b   :  { %s9041_s27 = sld [smem:[%s12505_s0 + %s8919_s23]]   ;;  %s8923_s23 = smov 24  }
  0x1c   :  { %s9046_s12 = sld [smem:[%s12505_s0 + %s8920_s1]]   ;;  %s8924_s1 = smov 25  }
  0x1d   :  { %s9051_s9 = sld [smem:[%s12505_s0 + %s8921_s10]]  }
  0x1e   :  { %s9061_s28 = sld [smem:[%s12505_s0 + %s8923_s23]]   ;;  %s8927_s23 = smov 29  }
  0x1f   :  { %12676 = sst [smem:[#allocation9_spill]] %s9036_s20 }
  0x20   :  { %s9056_s20 = sld [smem:[%s12505_s0 + %s8922_s16]]  }
  0x21   :  { %s9066_s10 = sld [smem:[%s12505_s0 + %s8924_s1]]  }
  0x22   :  { %12677 = sst [smem:[#allocation10_spill]] %s9046_s12  ;;  %s8928_s12 = smov 28  }
  0x23   :  { %12678 = sst [smem:[#allocation11_spill]] %s9051_s9  ;;  %s9086_s9 = smov 0  }
  0x24   :  { %12680 = sst [smem:[#allocation13_spill]] %s9061_s28 }
  0x25   :  { %s9071_s16 = sld [smem:[%s12505_s0 + %s8925_s7]]  }
  0x26   :  { %12679 = sst [smem:[#allocation12_spill]] %s9056_s20 }
  0x27   :  { %12681 = sst [smem:[#allocation14_spill]] %s9066_s10 }
  0x28   :  { %s9076_s22 = sld [smem:[%s12505_s0 + %s8926_s4]]  }
  0x29   :  { %s9081_s28 = sld [smem:[%s12505_s0 + %s8927_s23]]  }
  0x2a   :  { %s7292_s10 = sld [smem:[%s12505_s0 + %s8928_s12]]  }
  0x30   :  { %v66_v1 = vstv %s7292_s10 }
  0x31   :  { %67 = vst [vmem:[#allocation3] sm:$0x1] %v66_v1 }
  0x32 LB: > { %s9092_s20 = sadd.s32 4294967295, %s8898_s9   ;;  %p7298_p0 = scmp.ge.s32.totalorder %s8898_s9, 1  ;;  %s8898_s9 = sphi %s9086_s9, %s73_s9  }
  0x33   : > { %p831_p1 = scmp.lt.s32.totalorder %s8898_s9, 3 }
  0x35   : > { %p832_p2 = pnand %p7298_p0, %p831_p1 }
  0x37   : > { %835 = sbr.rel (%p832_p2) target bundleno = 3791 (0xecf), region = 136 }
  0x3c   : > { %v989_v2 = vld [vmem:[%s8953_s13 + $0x8] sm:$0x1]  ;;  %vm12559_vm0 = vcmask 1040384   ;;  %v988_v3 = vld [vmem:[%s8953_s13] sm:$0xff]  ;;  %s7299_s0 = sshll.u32 %s9092_s20, 6  ;;  %vm990_vm1 = vcmask 72704  }
  0x3d   : > { %7999 = vmatprep.subr.msk.mxu0 %vm12559_vm0, %v989_v2  ;;  %p911_p3 = scmp.lt.s32.totalorder %s7299_s0, 127  ;;  %s8930_s11 = smov 32  }
  0x3e   : > { %8000 = vmatpush3.msk.msra.mxu0 %vm12559_vm0, %v989_v2  ;;  %s8931_s4 = smov 96   ;;  %s8932_s15 = smov 64  }
  0x3f   : > { %8001 = vmatprep.subr.mxu0 %v988_v3  ;;  %s13175_s0 = smov (!%p911_p3, %s7299_s0), 127  ;;  %s13155_s18 = sld [smem:[#allocation5_spill]] }
  0x40   : > { %8002 = vmatpush3.msra.mxu0 %v988_v3  ;;  %s7300_s10 = sshll.u32 %s13175_s0, 3  ;;  %s13157_s23 = sld [smem:[#allocation6_spill]] }
  0x41   : > { %s9102_s7 = scalar_lea.vmem %s8943_s5, %s7300_s10  ;;  %s13160_s26 = sld [smem:[#allocation7_spill]] }
  0x42   : > { %v924_v4 = vld [vmem:[%s9102_s7] sm:$0xff]  ;;  %v925_v5 = vld [vmem:[%s9102_s7 + $0x8] sm:$0xff]  ;;  %v926_v6 = vld [vmem:[%s9102_s7 + $0x10] sm:$0xff]  ;;  %s13161_s12 = sld [smem:[#allocation8_spill]]  ;;  %p916_p4 = scmp.lt.s32.totalorder %s9092_s20, 1 }
  0x43   : > { %8003 = vmatprep.mubr.msk.f32.mxu0 %vm990_vm1, %v924_v4  ;;  %v927_v7 = vld [vmem:[%s9102_s7 + $0x18] sm:$0xff]  ;;  %v928_v8 = vld [vmem:[%s9102_s7 + $0x20] sm:$0xff]  ;;  %v929_v9 = vld [vmem:[%s9102_s7 + $0x28] sm:$0xff]  ;;  %s13162_s1 = sld [smem:[#allocation4_spill]] }
  0x44   : > { %8004 = vmatmul.mubr.msk.f32.vlgmr.msra.gmra.mxu0 %vm990_vm1, %v925_v5  ;;  %v930_v10 = vld [vmem:[%s9102_s7 + $0x30] sm:$0xff]  ;;  %v931_v11 = vld [vmem:[%s9102_s7 + $0x38] sm:$0xff]  ;;  %v932_v12 = vld [vmem:[%s9102_s7 + $0x40] sm:$0xff]  ;;  %s13177_s20 = smov (!%p916_p4, %s9092_s20), 1  ;;  %s13163_s10 = sld [smem:[#allocation13_spill]] }
  0x45   : > { %8006 = vmatprep.mubr.msk.f32.mxu0 %vm990_vm1, %v926_v6  ;;  %v933_v13 = vld [vmem:[%s9102_s7 + $0x48] sm:$0xff]  ;;  %v934_v14 = vld [vmem:[%s9102_s7 + $0x50] sm:$0xff]  ;;  %v935_v15 = vld [vmem:[%s9102_s7 + $0x58] sm:$0xff]  ;;  %s7301_s2 = sshll.u32 %s13177_s20, 1 }
  0x46   : > { %v936_v16 = vld [vmem:[%s9102_s7 + $0x60] sm:$0xff]  ;;  %v937_v17 = vld [vmem:[%s9102_s7 + $0x68] sm:$0xff]  ;;  %v938_v18 = vld [vmem:[%s9102_s7 + $0x70] sm:$0xff] }
  0x47   : > { %v939_v19 = vld [vmem:[%s9102_s7 + $0x78] sm:$0xff]  ;;  %v940_v20 = vld [vmem:[%s9102_s7 + $0x80] sm:$0xff]  ;;  %v941_v21 = vld [vmem:[%s9102_s7 + $0x88] sm:$0xff] }
  0x48   : > { %8007 = vmatmul.mubr.msk.f32.gmra.mxu0 %vm990_vm1, %v927_v7  ;;  %v942_v22 = vld [vmem:[%s9102_s7 + $0x90] sm:$0xff]  ;;  %v943_v23 = vld [vmem:[%s9102_s7 + $0x98] sm:$0xff]  ;;  %v944_v24 = vld [vmem:[%s9102_s7 + $0xa0] sm:$0xff] }
  0x49   : > { %8009 = vmatprep.mubr.msk.f32.mxu0 %vm990_vm1, %v928_v8  ;;  %v945_v25 = vld [vmem:[%s9102_s7 + $0xa8] sm:$0xff]  ;;  %v946_v26 = vld [vmem:[%s9102_s7 + $0xb0] sm:$0xff]  ;;  %v947_v27 = vld [vmem:[%s9102_s7 + $0xb8] sm:$0xff]  ;;  %s919_s0 = scalar_lea.vmem %s13162_s1, %s7301_s2 }
  0x4a   : > { %v948_v28 = vld [vmem:[%s9102_s7 + $0xc0] sm:$0xff]  ;;  %v949_v29 = vld [vmem:[%s9102_s7 + $0xc8] sm:$0xff]  ;;  %v950_v30 = vld [vmem:[%s9102_s7 + $0xd0] sm:$0xff] }
  0x4b   : > { %v951_v31 = vld [vmem:[%s9102_s7 + $0xd8] sm:$0xff]  ;;  %v952_v32 = vld [vmem:[%s9102_s7 + $0xe0] sm:$0xff]  ;;  %v953_v33 = vld [vmem:[%s9102_s7 + $0xe8] sm:$0xff] }
  0x4c   : > { %8010 = vmatmul.mubr.msk.f32.gmra.mxu0 %vm990_vm1, %v929_v9  ;;  %v954_v34 = vld [vmem:[%s9102_s7 + $0xf0] sm:$0xff]  ;;  %v955_v35 = vld [vmem:[%s9102_s7 + $0xf8] sm:$0xff]  ;;  %v956_v36 = vld [vmem:[%s9102_s7 + $0x100] sm:$0xff] }
  0x4d   : > { %8012 = vmatprep.mubr.msk.f32.mxu0 %vm990_vm1, %v930_v10  ;;  %v957_v37 = vld [vmem:[%s9102_s7 + $0x108] sm:$0xff]  ;;  %v958_v38 = vld [vmem:[%s9102_s7 + $0x110] sm:$0xff]  ;;  %v959_v39 = vld [vmem:[%s9102_s7 + $0x118] sm:$0xff] }
  0x4e   : > { %v960_v40 = vld [vmem:[%s9102_s7 + $0x120] sm:$0xff]  ;;  %v961_v41 = vld [vmem:[%s9102_s7 + $0x128] sm:$0xff]  ;;  %v962_v42 = vld [vmem:[%s9102_s7 + $0x130] sm:$0xff] }
  0x4f   : > { %v963_v43 = vld [vmem:[%s9102_s7 + $0x138] sm:$0xff]  ;;  %v964_v44 = vld [vmem:[%s9102_s7 + $0x140] sm:$0xff]  ;;  %v965_v45 = vld [vmem:[%s9102_s7 + $0x148] sm:$0xff] }
  0x50   : > { %8013 = vmatmul.mubr.msk.f32.gmra.mxu0 %vm990_vm1, %v931_v11  ;;  %v966_v46 = vld [vmem:[%s9102_s7 + $0x150] sm:$0xff]  ;;  %v967_v47 = vld [vmem:[%s9102_s7 + $0x158] sm:$0xff]  ;;  %v968_v48 = vld [vmem:[%s9102_s7 + $0x160] sm:$0xff] }
  0x51   : > { %8015 = vmatprep.mubr.msk.f32.mxu0 %vm990_vm1, %v932_v12  ;;  %v969_v49 = vld [vmem:[%s9102_s7 + $0x168] sm:$0xff]  ;;  %v970_v50 = vld [vmem:[%s9102_s7 + $0x170] sm:$0xff]  ;;  %v971_v51 = vld [vmem:[%s9102_s7 + $0x178] sm:$0xff] }
  0x52   : > { %v972_v52 = vld [vmem:[%s9102_s7 + $0x180] sm:$0xff]  ;;  %v973_v53 = vld [vmem:[%s9102_s7 + $0x188] sm:$0xff]  ;;  %v974_v54 = vld [vmem:[%s9102_s7 + $0x190] sm:$0xff] }
  0x53   : > { %v975_v55 = vld [vmem:[%s9102_s7 + $0x198] sm:$0xff]  ;;  %v976_v56 = vld [vmem:[%s9102_s7 + $0x1a0] sm:$0xff]  ;;  %v977_v57 = vld [vmem:[%s9102_s7 + $0x1a8] sm:$0xff] }
  0x54   : > { %8016 = vmatmul.mubr.msk.f32.gmra.mxu0 %vm990_vm1, %v933_v13  ;;  %v978_v58 = vld [vmem:[%s9102_s7 + $0x1b0] sm:$0xff]  ;;  %v979_v59 = vld [vmem:[%s9102_s7 + $0x1b8] sm:$0xff]  ;;  %v980_v60 = vld [vmem:[%s9102_s7 + $0x1c0] sm:$0xff] }
  0x55   : > { %8018 = vmatprep.mubr.msk.f32.mxu0 %vm990_vm1, %v934_v14  ;;  %v981_v61 = vld [vmem:[%s9102_s7 + $0x1c8] sm:$0xff]  ;;  %v982_v62 = vld [vmem:[%s9102_s7 + $0x1d0] sm:$0xff]  ;;  %v983_v63 = vld [vmem:[%s9102_s7 + $0x1d8] sm:$0xff] }
  0x56   : > { %v984_v0 = vld [vmem:[%s9102_s7 + $0x1e0] sm:$0xff]  ;;  %v985_v1 = vld [vmem:[%s9102_s7 + $0x1e8] sm:$0xff]  ;;  %v986_v2 = vld [vmem:[%s9102_s7 + $0x1f0] sm:$0xff] }
  0x57   : > { %v987_v3 = vld [vmem:[%s9102_s7 + $0x1f8] sm:$0xff]  ;;  %v9233_v8 = vld [vmem:[%s8958_s17] ss:$0 sm:$0xff]  ;;  %s13164_s7 = sld [smem:[#allocation9_spill]] }
  0x58   : > { %8019 = vmatmul.mubr.msk.f32.gmra.mxu0 %vm990_vm1, %v935_v15  ;;  %v9237_v11 = vld [vmem:[%s8963_s21] ss:$0 sm:$0xff] }
  0x59   : > { %8021 = vmatprep.mubr.msk.f32.mxu0 %vm990_vm1, %v936_v16 }
  0x5c   : > { %8022 = vmatmul.mubr.msk.f32.gmra.mxu0 %vm990_vm1, %v937_v17 }
  0x5d   : > { %8024 = vmatprep.mubr.msk.f32.mxu0 %vm990_vm1, %v938_v18 }
  0x60   : > { %8025 = vmatmul.mubr.msk.f32.gmra.mxu0 %vm990_vm1, %v939_v19 }
  0x61   : > { %8027 = vmatprep.mubr.msk.f32.mxu0 %vm990_vm1, %v940_v20 }
  0x64   : > { %8028 = vmatmul.mubr.msk.f32.gmra.mxu0 %vm990_vm1, %v941_v21 }
  0x65   : > { %8030 = vmatprep.mubr.msk.f32.mxu0 %vm990_vm1, %v942_v22 }
  0x68   : > { %8031 = vmatmul.mubr.msk.f32.gmra.mxu0 %vm990_vm1, %v943_v23 }
  0x69   : > { %8033 = vmatprep.mubr.msk.f32.mxu0 %vm990_vm1, %v944_v24 }
  0x6c   : > { %8034 = vmatmul.mubr.msk.f32.gmra.mxu0 %vm990_vm1, %v945_v25 }
  0x6d   : > { %8036 = vmatprep.mubr.msk.f32.mxu0 %vm990_vm1, %v946_v26 }
  0x70   : > { %8037 = vmatmul.mubr.msk.f32.gmra.mxu0 %vm990_vm1, %v947_v27 }
  0x71   : > { %8039 = vmatprep.mubr.msk.f32.mxu0 %vm990_vm1, %v948_v28 }
  0x74   : > { %8040 = vmatmul.mubr.msk.f32.gmra.mxu0 %vm990_vm1, %v949_v29 }
  0x75   : > { %8042 = vmatprep.mubr.msk.f32.mxu0 %vm990_vm1, %v950_v30 }
  0x78   : > { %8043 = vmatmul.mubr.msk.f32.gmra.mxu0 %vm990_vm1, %v951_v31 }
  0x79   : > { %8045 = vmatprep.mubr.msk.f32.mxu0 %vm990_vm1, %v952_v32 }
  0x7c   : > { %8046 = vmatmul.mubr.msk.f32.gmra.mxu0 %vm990_vm1, %v953_v33 }
  0x7d   : > { %8048 = vmatprep.mubr.msk.f32.mxu0 %vm990_vm1, %v954_v34 }
  0x80   : > { %8049 = vmatmul.mubr.msk.f32.gmra.mxu0 %vm990_vm1, %v955_v35 }
  0x81   : > { %8051 = vmatprep.mubr.msk.f32.mxu0 %vm990_vm1, %v956_v36 }
  0x84   : > { %8052 = vmatmul.mubr.msk.f32.gmra.mxu0 %vm990_vm1, %v957_v37 }
  0x85   : > { %8054 = vmatprep.mubr.msk.f32.mxu0 %vm990_vm1, %v958_v38 }
  0x88   : > { %8055 = vmatmul.mubr.msk.f32.gmra.mxu0 %vm990_vm1, %v959_v39 }
  0x89   : > { %8057 = vmatprep.mubr.msk.f32.mxu0 %vm990_vm1, %v960_v40 }
  0x8c   : > { %8058 = vmatmul.mubr.msk.f32.gmra.mxu0 %vm990_vm1, %v961_v41 }
  0x8d   : > { %8060 = vmatprep.mubr.msk.f32.mxu0 %vm990_vm1, %v962_v42 }
  0x90   : > { %8061 = vmatmul.mubr.msk.f32.gmra.mxu0 %vm990_vm1, %v963_v43 }
  0x91   : > { %8063 = vmatprep.mubr.msk.f32.mxu0 %vm990_vm1, %v964_v44 }
  0x94   : > { %8064 = vmatmul.mubr.msk.f32.gmra.mxu0 %vm990_vm1, %v965_v45 }
  0x95   : > { %8066 = vmatprep.mubr.msk.f32.mxu0 %vm990_vm1, %v966_v46 }
  0x98   : > { %8067 = vmatmul.mubr.msk.f32.gmra.mxu0 %vm990_vm1, %v967_v47 }
  0x99   : > { %8069 = vmatprep.mubr.msk.f32.mxu0 %vm990_vm1, %v968_v48 }
  0x9c   : > { %8070 = vmatmul.mubr.msk.f32.gmra.mxu0 %vm990_vm1, %v969_v49 }
  0x9d   : > { %8072 = vmatprep.mubr.msk.f32.mxu0 %vm990_vm1, %v970_v50 }
  0xa0   : > { %8073 = vmatmul.mubr.msk.f32.gmra.mxu0 %vm990_vm1, %v971_v51 }
  0xa1   : > { %8075 = vmatprep.mubr.msk.f32.mxu0 %vm990_vm1, %v972_v52 }
  0xa4   : > { %8076 = vmatmul.mubr.msk.f32.gmra.mxu0 %vm990_vm1, %v973_v53 }
  0xa5   : > { %8078 = vmatprep.mubr.msk.f32.mxu0 %vm990_vm1, %v974_v54 }
  0xa8   : > { %8079 = vmatmul.mubr.msk.f32.gmra.mxu0 %vm990_vm1, %v975_v55 }
  0xa9   : > { %8081 = vmatprep.mubr.msk.f32.mxu0 %vm990_vm1, %v976_v56 }
  0xac   : > { %8082 = vmatmul.mubr.msk.f32.gmra.mxu0 %vm990_vm1, %v977_v57  ;;  %v2098_v57 = vlaneseq }
  0xad   : > { %8084 = vmatprep.mubr.msk.f32.mxu0 %vm990_vm1, %v978_v58 }
  0xb0   : > { %8085 = vmatmul.mubr.msk.f32.gmra.mxu0 %vm990_vm1, %v979_v59 }
  0xb1   : > { %8087 = vmatprep.mubr.msk.f32.mxu0 %vm990_vm1, %v980_v60 }
  0xb4   : > { %8088 = vmatmul.mubr.msk.f32.gmra.mxu0 %vm990_vm1, %v981_v61 }
  0xb5   : > { %8090 = vmatprep.mubr.msk.f32.mxu0 %vm990_vm1, %v982_v62 }
  0xb8   : > { %8091 = vmatmul.mubr.msk.f32.gmra.mxu0 %vm990_vm1, %v983_v63 }
  0xb9   : > { %8093 = vmatprep.mubr.msk.f32.mxu0 %vm990_vm1, %v984_v0 }
  0xbc   : > { %8094 = vmatmul.mubr.msk.f32.gmra.mxu0 %vm990_vm1, %v985_v1 }
  0xbd   : > { %8096 = vmatprep.mubr.msk.f32.mxu0 %vm990_vm1, %v986_v2 }
  0xc0   : > { %8097 = vmatmul.mubr.msk.f32.gmra.mxu0 %vm990_vm1, %v987_v3 }
 0x104   : > { %v8005_v4 = vpop.f32.mrf.mxu0 }
 0x105   : > { %v1580_v19 = vmul.f32 %v8005_v4, %v9233_v8 }
 0x106   : > { %v1253_v5 = vpop.f32.mrf.mxu0 }
 0x107   : > { %v1579_v21 = vmul.f32 %v9233_v8, %v1253_v5  ;;  %v9250_v29 = vadd.f32 %v9237_v11, %v1580_v19 }
 0x108   : > { %v8008_v6 = vpop.f32.mrf.mxu0 }
 0x109   : > { %v1582_v24 = vmul.f32 %v8008_v6, %v9233_v8  ;;  %v9254_v32 = vadd.f32 %v9237_v11, %v1579_v21  ;;  %v1779_v37 = vmul.f32 0.70710677, %v9250_v29 }
 0x10a   : > { %v1263_v7 = vpop.f32.mrf.mxu0 }
 0x10b   : > { %v1581_v27 = vmul.f32 %v9233_v8, %v1263_v7  ;;  %v9257_v33 = vadd.f32 %v9237_v11, %v1582_v24  ;;  %v1778_v39 = vmul.f32 0.70710677, %v9254_v32  ;;  %v9290_v7 = vshrl.u32 %v2098_v57, 7 }
 0x10c   : > { %v8011_v9 = vpop.f32.mrf.mxu0 }
 0x10d   : > { %v1584_v10 = vmul.f32 %v8011_v9, %v9233_v8  ;;  %v9260_v36 = vadd.f32 %v9237_v11, %v1581_v27  ;;  %v1781_v41 = vmul.f32 0.70710677, %v9257_v33  ;;  %12684 = vst [vmem:[#allocation17_spill] sm:$0xff] %v9290_v7  ;;  %vm12561_vm2 = vcmp.lt.s32.totalorder %v9290_v7, 7 }
 0x10e   : > { %v1273_v12 = vpop.f32.mrf.mxu0  ;;  %vm12560_vm6 = vcmp.lt.s32.totalorder %v9290_v7, 1 }
 0x10f   : > { %v1655_v13 = vadd.f32 %v9237_v11, %v1584_v10  ;;  %v1583_v14 = vmul.f32 %v9233_v8, %v1273_v12  ;;  %v1780_v44 = vmul.f32 0.70710677, %v9260_v36 }
 0x110   : > { %v8014_v15 = vpop.f32.mrf.mxu0 }
 0x111   : > { %v1783_v16 = vmul.f32 0.70710677, %v1655_v13  ;;  %v1654_v17 = vadd.f32 %v9237_v11, %v1583_v14  ;;  %v1586_v18 = vmul.f32 %v8014_v15, %v9233_v8  ;;  %v1719_v54 = vmul.f32 0.5, %v1655_v13 }
 0x112   : > { %v1283_v20 = vpop.f32.mrf.mxu0 }
 0x113   : > { %8702 = verf.f32 %v1783_v16  ;;  %v1782_v22 = vmul.f32 0.70710677, %v1654_v17  ;;  %v1657_v23 = vadd.f32 %v9237_v11, %v1586_v18  ;;  %v1585_v25 = vmul.f32 %v9233_v8, %v1283_v20 }
 0x114   : > { %v8017_v26 = vpop.f32.mrf.mxu0  ;;  %v1718_v58 = vmul.f32 0.5, %v1654_v17 }
 0x115   : > { %8704 = verf.f32 %v1782_v22  ;;  %v1785_v28 = vmul.f32 0.70710677, %v1657_v23  ;;  %v1656_v30 = vadd.f32 %v9237_v11, %v1585_v25  ;;  %v1588_v40 = vmul.f32 %v8017_v26, %v9233_v8 }
 0x116   : > { %v1293_v31 = vpop.f32.mrf.mxu0  ;;  %v1721_v12 = vmul.f32 0.5, %v1657_v23 }
 0x117   : > { %8706 = verf.f32 %v1785_v28  ;;  %v1784_v34 = vmul.f32 0.70710677, %v1656_v30  ;;  %v1587_v42 = vmul.f32 %v9233_v8, %v1293_v31  ;;  %v9270_v47 = vadd.f32 %v9237_v11, %v1588_v40 }
 0x118   : > { %v8020_v35 = vpop.f32.mrf.mxu0  ;;  %v1720_v14 = vmul.f32 0.5, %v1656_v30 }
 0x119   : > { %8708 = verf.f32 %v1784_v34  ;;  %v1590_v45 = vmul.f32 %v8020_v35, %v9233_v8  ;;  %v9273_v49 = vadd.f32 %v9237_v11, %v1587_v42  ;;  %v1787_v60 = vmul.f32 0.70710677, %v9270_v47 }
 0x11a   : > { %v1303_v38 = vpop.f32.mrf.mxu0  ;;  %8710 = verf.f32 %v1779_v37 }
 0x11b   : > { %8712 = verf.f32 %v1778_v39  ;;  %v1589_v52 = vmul.f32 %v9233_v8, %v1303_v38  ;;  %v9277_v55 = vadd.f32 %v9237_v11, %v1590_v45  ;;  %v1786_v63 = vmul.f32 0.70710677, %v9273_v49 }
 0x11c   : > { %v8023_v43 = vpop.f32.mrf.mxu0  ;;  %8714 = verf.f32 %v1781_v41 }
 0x11d   : > { %8716 = verf.f32 %v1780_v44  ;;  %v1592_v61 = vmul.f32 %v8023_v43, %v9233_v8  ;;  %v9287_v4 = vadd.f32 %v9237_v11, %v1589_v52  ;;  %v1789_v5 = vmul.f32 0.70710677, %v9277_v55 }
 0x11e   : > { %v1313_v46 = vpop.f32.mrf.mxu0  ;;  %8718 = verf.f32 %v1787_v60  ;;  %v1715_v44 = vmul.f32 0.5, %v9250_v29  ;;  %v1716_v29 = vmul.f32 0.5, %v9260_v36  ;;  %v1722_v36 = vmul.f32 0.5, %v9273_v49 }
 0x11f   : > { %v9294_v13 = vadd.f32 %v9237_v11, %v1592_v61  ;;  %8720 = verf.f32 %v1786_v63  ;;  %v1788_v19 = vmul.f32 0.70710677, %v9287_v4  ;;  %v1591_v20 = vmul.f32 %v9233_v8, %v1313_v46 }
 0x120   : > { %v8703_v48 = vpop.eup %8702  ;;  %v8026_v50 = vpop.f32.mrf.mxu0  ;;  %8722 = verf.f32 %v1789_v5 }
 0x121   : > { %v1911_v51 = vadd.f32 1.0, %v8703_v48  ;;  %v1791_v24 = vmul.f32 0.70710677, %v9294_v13  ;;  %8724 = verf.f32 %v1788_v19  ;;  %v1662_v35 = vadd.f32 %v9237_v11, %v1591_v20 }
 0x122   : > { %v8705_v53 = vpop.eup %8704  ;;  %v1323_v56 = vpop.f32.mrf.mxu0  ;;  %v1594_v39 = vmul.f32 %v8026_v50, %v9233_v8  ;;  %v1714_v50 = vmul.f32 0.5, %v9254_v32  ;;  %v1725_v20 = vmul.f32 0.5, %v9277_v55 }
 0x123   : > { %v1910_v59 = vadd.f32 1.0, %v8705_v53  ;;  %v9282_v1 = vmul.f32 %v1911_v51, %v1719_v54  ;;  %v1593_v28 = vmul.f32 %v9233_v8, %v1323_v56  ;;  %8726 = verf.f32 %v1791_v24 }
 0x124   : > { %v8707_v62 = vpop.eup %8706  ;;  %v8029_v0 = vpop.f32.mrf.mxu0  ;;  %v1790_v52 = vmul.f32 0.70710677, %v1662_v35  ;;  %v1717_v54 = vmul.f32 0.5, %v9257_v33  ;;  %v1665_v56 = vadd.f32 %v9237_v11, %v1594_v39  ;;  %v1723_v33 = vmul.f32 0.5, %v9270_v47  ;;  %v2294_v47 = vld [vmem:[%s8968_s25 + $0x8] sm:$0xff] }
 0x125   : > { %12682 = vst [vmem:[#allocation15_spill] sm:$0xff] %v9282_v1  ;;  %v9284_v2 = vmul.f32 %v1910_v59, %v1718_v58  ;;  %v1913_v3 = vadd.f32 1.0, %v8707_v62  ;;  %v2039_v17 = vrot.slane %v9282_v1, 1  ;;  %v1664_v46 = vadd.f32 %v9237_v11, %v1593_v28  ;;  %2421 = vmatprep.mubr.f32.mxu1 %v2294_v47 }
 0x126   : > { %v1333_v6 = vpop.f32.mrf.mxu0  ;;  %v8709_v9 = vpop.eup %8708  ;;  %v1596_v57 = vmul.f32 %v8029_v0, %v9233_v8  ;;  %8728 = verf.f32 %v1790_v52 }
 0x127   : > { %12683 = vst [vmem:[#allocation16_spill] sm:$0xff] %v9284_v2  ;;  %v12510_v10 = vrot.slane %v9284_v2, 1  ;;  %v1912_v15 = vadd.f32 1.0, %v8709_v9  ;;  %v9297_v18 = vmul.f32 %v1913_v3, %v1721_v12  ;;  %v8711_v23 = vpop.eup %8710  ;;  %v1792_v62 = vmul.f32 0.70710677, %v1664_v46 }
 0x128   : > { %v8032_v16 = vpop.f32.mrf.mxu0  ;;  %v8713_v26 = vpop.eup %8712  ;;  %v1907_v38 = vadd.f32 1.0, %v8711_v23  ;;  %v1595_v32 = vmul.f32 %v9233_v8, %v1333_v6  ;;  %v1793_v12 = vmul.f32 0.70710677, %v1665_v56  ;;  %v1724_v23 = vmul.f32 0.5, %v9287_v4 }
 0x129   : > { %12685 = vst [vmem:[#allocation18_spill] sm:$0xff] %v9297_v18  ;;  %v9301_v21 = vmul.f32 %v1912_v15, %v1720_v14  ;;  %v9309_v25 = vsel %vm12561_vm2, %v12510_v10, %v2039_v17  ;;  %v8715_v31 = vpop.eup %8714  ;;  %v12511_v34 = vrot.slane %v9297_v18, 1  ;;  %v1906_v41 = vadd.f32 1.0, %v8713_v26 }
 0x12a   : > { %v1343_v22 = vpop.f32.mrf.mxu0  ;;  %12687 = vst [vmem:[#allocation20_spill] sm:$0xff] %v9309_v25  ;;  %v8717_v37 = vpop.eup %8716  ;;  %v1909_v45 = vadd.f32 1.0, %v8715_v31  ;;  %v9333_v53 = vmul.f32 %v1907_v38, %v1715_v44  ;;  %v1598_v0 = vmul.f32 %v8032_v16, %v9233_v8  ;;  %v1667_v14 = vadd.f32 %v9237_v11, %v1596_v57 }
 0x12b   : > { %12686 = vst [vmem:[#allocation19_spill] sm:$0xff] %v9301_v21  ;;  %v2040_v27 = vrot.slane %v9301_v21, 1  ;;  %v1908_v51 = vadd.f32 1.0, %v8717_v37  ;;  %v9338_v59 = vmul.f32 %v1906_v41, %v1714_v50  ;;  %v8719_v60 = vpop.eup %8718  ;;  %8730 = verf.f32 %v1792_v62 }
 0x12c   : > { %v9313_v30 = vpop.f32.mrf.mxu0  ;;  %12690 = vst [vmem:[#allocation23_spill] sm:$0xff] %v9333_v53  ;;  %v9341_v61 = vmul.f32 %v1909_v45, %v1717_v54  ;;  %v8721_v3 = vpop.eup %8720  ;;  %v1915_v19 = vadd.f32 1.0, %v8719_v60  ;;  %v1666_v16 = vadd.f32 %v9237_v11, %v1595_v32  ;;  %v1597_v49 = vmul.f32 %v9233_v8, %v1343_v22 }
 0x12d   : > { %v9324_v42 = vsel %vm12561_vm2, %v2040_v27, %v12511_v34  ;;  %v9328_v43 = vsel %vm12561_vm2, %v2039_v17, %v2040_v27  ;;  %12691 = vst [vmem:[#allocation24_spill] sm:$0xff] %v9338_v59  ;;  %v9344_v5 = vmul.f32 %v1908_v51, %v1716_v29  ;;  %v8723_v17 = vpop.eup %8722  ;;  %v1914_v28 = vadd.f32 1.0, %v8721_v3 }
 0x12e   : > { %v9318_v40 = vpop.f32.mrf.mxu0  ;;  %12688 = vst [vmem:[#allocation21_spill] sm:$0xff] %v9324_v42  ;;  %12689 = vst [vmem:[#allocation22_spill] sm:$0xff] %v9328_v43  ;;  %v1727_v31 = vmul.f32 0.5, %v9294_v13  ;;  %v1669_v37 = vadd.f32 %v9237_v11, %v1598_v0  ;;  %v8725_v55 = vpop.eup %8724  ;;  %v1917_v38 = vadd.f32 1.0, %v8723_v17  ;;  %v9361_v4 = vmul.f32 0.5, %v1662_v35 }
 0x12f   : > { %12692 = vst [vmem:[#allocation25_spill] sm:$0xff] %v9341_v61  ;;  %12693 = vst [vmem:[#allocation26_spill] sm:$0xff] %v9344_v5  ;;  %8732 = verf.f32 %v1793_v12  ;;  %v1795_v39 = vmul.f32 0.70710677, %v1667_v14  ;;  %v9363_v44 = vmul.f32 %v1915_v19, %v1723_v33  ;;  %v9365_v45 = vmul.f32 0.5, %v1665_v56 }
 0x130   : > { %v8038_v48 = vpop.f32.mrf.mxu0  ;;  %v9367_v22 = vmul.f32 0.5, %v1664_v46  ;;  %v1600_v50 = vmul.f32 %v9313_v30, %v9233_v8  ;;  %v8727_v51 = vpop.eup %8726  ;;  %v9371_v13 = vmul.f32 0.5, %v1667_v14  ;;  %v1794_v52 = vmul.f32 0.70710677, %v1666_v16 }
 0x131   : > { %v1668_v54 = vadd.f32 %v9237_v11, %v1597_v49  ;;  %v1599_v35 = vmul.f32 %v9233_v8, %v9318_v40  ;;  %v9376_v29 = vmul.f32 %v1914_v28, %v1722_v36  ;;  %v1916_v60 = vadd.f32 1.0, %v8725_v55 }
 0x132   : > { %v1363_v58 = vpop.f32.mrf.mxu0  ;;  %v1797_v56 = vmul.f32 0.70710677, %v1669_v37  ;;  %v1602_v46 = vmul.f32 %v8038_v48, %v9233_v8  ;;  %v9379_v62 = vmul.f32 %v1917_v38, %v1725_v20  ;;  %8734 = verf.f32 %v1795_v39 }
 0x133   : > { %v9381_v30 = vmul.f32 0.5, %v1666_v16  ;;  %v1601_v32 = vmul.f32 %v9233_v8, %v1363_v58  ;;  %v1919_v0 = vadd.f32 1.0, %v8727_v51  ;;  %v1671_v40 = vadd.f32 %v9237_v11, %v1600_v50  ;;  %v8729_v47 = vpop.eup %8728 }
 0x134   : > { %v8041_v63 = vpop.f32.mrf.mxu0  ;;  %8736 = verf.f32 %v1794_v52  ;;  %v9389_v12 = vmul.f32 0.5, %v1669_v37  ;;  %v1796_v48 = vmul.f32 0.70710677, %v1668_v54  ;;  %v1670_v14 = vadd.f32 %v9237_v11, %v1599_v35 }
 0x135   : > { %v1604_v36 = vmul.f32 %v8041_v63, %v9233_v8  ;;  %v9393_v20 = vmul.f32 %v1916_v60, %v1724_v23  ;;  %8738 = verf.f32 %v1797_v56  ;;  %v1673_v58 = vadd.f32 %v9237_v11, %v1602_v46 }
 0x136   : > { %v1373_v15 = vpop.f32.mrf.mxu0  ;;  %v9397_v49 = vmul.f32 0.5, %v1668_v54  ;;  %v1672_v63 = vadd.f32 %v9237_v11, %v1601_v32  ;;  %v9403_v55 = vmul.f32 %v1919_v0, %v1727_v31  ;;  %v1799_v38 = vmul.f32 0.70710677, %v1671_v40 }
 0x137   : > { %v1603_v28 = vmul.f32 %v9233_v8, %v1373_v15  ;;  %v1675_v23 = vadd.f32 %v9237_v11, %v1604_v36  ;;  %8740 = verf.f32 %v1796_v48  ;;  %v9407_v50 = vmul.f32 0.5, %v1671_v40 }
 0x138   : > { %v8044_v26 = vpop.f32.mrf.mxu0  ;;  %v1798_v51 = vmul.f32 0.70710677, %v1670_v14  ;;  %v8731_v35 = vpop.eup %8730  ;;  %v1918_v15 = vadd.f32 1.0, %v8729_v47  ;;  %v1801_v56 = vmul.f32 0.70710677, %v1673_v58  ;;  %v9412_v46 = vmul.f32 0.5, %v1670_v14 }
 0x139   : > { %v1606_v39 = vmul.f32 %v8044_v26, %v9233_v8  ;;  %v1800_v32 = vmul.f32 0.70710677, %v1672_v63  ;;  %v9415_v0 = vadd.f32 %v9237_v11, %v1603_v28  ;;  %8742 = verf.f32 %v1799_v38 }
 0x13a   : > { %v1383_v41 = vpop.f32.mrf.mxu0  ;;  %8744 = verf.f32 %v1798_v51  ;;  %v9427_v9 = vmul.f32 %v1918_v15, %v9361_v4  ;;  %v9451_v24 = vmul.f32 0.5, %v1673_v58  ;;  %v9464_v34 = vmul.f32 0.5, %v1672_v63 }
 0x13b   : > { %v1605_v52 = vmul.f32 %v9233_v8, %v1383_v41  ;;  %v1803_v41 = vmul.f32 0.70710677, %v1675_v23  ;;  %v9419_v48 = vadd.f32 %v9237_v11, %v1606_v39  ;;  %8746 = verf.f32 %v1801_v56 }
 0x13c   : > { %v8047_v57 = vpop.f32.mrf.mxu0  ;;  %v8733_v36 = vpop.eup %8732  ;;  %8748 = verf.f32 %v1800_v32  ;;  %v1802_v39 = vmul.f32 0.70710677, %v9415_v0  ;;  %v9466_v58 = vmul.f32 0.5, %v1675_v23  ;;  %v9495_v59 = vmul.f32 0.5, %v9415_v0 }
 0x13d   : > { %v1608_v31 = vmul.f32 %v8047_v57, %v9233_v8  ;;  %v1920_v57 = vadd.f32 1.0, %v8731_v35  ;;  %v9424_v14 = vadd.f32 %v9237_v11, %v1605_v52  ;;  %v1921_v35 = vadd.f32 1.0, %v8733_v36 }
 0x13e   : > { %v9384_v3 = vpop.f32.mrf.mxu0  ;;  %8750 = verf.f32 %v1803_v41  ;;  %v1805_v27 = vmul.f32 0.70710677, %v9419_v48  ;;  %v1741_v2 = vmul.f32 0.5, %v9419_v48 }
 0x13f   : > { %v8735_v52 = vpop.eup %8734  ;;  %v9443_v56 = vmul.f32 %v1920_v57, %v9367_v22  ;;  %8752 = verf.f32 %v1802_v39  ;;  %v1607_v39 = vmul.f32 %v9233_v8, %v9384_v3 }
 0x140   : > { %v8050_v17 = vpop.f32.mrf.mxu0  ;;  %8754 = verf.f32 %v1805_v27  ;;  %v1923_v6 = vadd.f32 1.0, %v8735_v52 }
 0x141   : > { %v1610_v26 = vmul.f32 %v8050_v17, %v9233_v8  ;;  %v9430_v17 = vadd.f32 %v9237_v11, %v1608_v31  ;;  %v1804_v31 = vmul.f32 0.70710677, %v9424_v14  ;;  %v8737_v36 = vpop.eup %8736 }
 0x142   : > { %v9401_v37 = vpop.f32.mrf.mxu0  ;;  %v8739_v22 = vpop.eup %8738 }
 0x143   : > { %8756 = verf.f32 %v1804_v31  ;;  %v1609_v27 = vmul.f32 %v9233_v8, %v9401_v37 }
 0x144   : > { %v8053_v54 = vpop.f32.mrf.mxu0  ;;  %v8741_v60 = vpop.eup %8740 }
 0x145   : > { %v1612_v47 = vmul.f32 %v8053_v54, %v9233_v8  ;;  %v9435_v54 = vadd.f32 %v9237_v11, %v1610_v26  ;;  %v1924_v52 = vadd.f32 1.0, %v8741_v60 }
 0x146   : > { %v1413_v40 = vpop.f32.mrf.mxu0  ;;  %v8743_v41 = vpop.eup %8742 }
 0x147   : > { %v1611_v38 = vmul.f32 %v9233_v8, %v1413_v40  ;;  %v9439_v4 = vadd.f32 %v9237_v11, %v1612_v47  ;;  %v1807_v47 = vmul.f32 0.70710677, %v9430_v17  ;;  %v1809_v57 = vmul.f32 0.70710677, %v9435_v54 }
 0x148   : > { %v8056_v28 = vpop.f32.mrf.mxu0  ;;  %v1927_v0 = vadd.f32 1.0, %v8743_v41 }
 0x149   : > { %v1614_v15 = vmul.f32 %v8056_v28, %v9233_v8  ;;  %v9447_v32 = vadd.f32 %v9237_v11, %v1611_v38  ;;  %v1811_v19 = vmul.f32 0.70710677, %v9439_v4  ;;  %8758 = verf.f32 %v1807_v47 }
 0x14a   : > { %v1423_v51 = vpop.f32.mrf.mxu0  ;;  %8760 = verf.f32 %v1809_v57 }
 0x14b   : > { %v1613_v26 = vmul.f32 %v9233_v8, %v1423_v51  ;;  %v9455_v28 = vadd.f32 %v9237_v11, %v1614_v15  ;;  %v9462_v51 = vmul.f32 %v1921_v35, %v9365_v45  ;;  %8762 = verf.f32 %v1811_v19 }
 0x14c   : > { %v8059_v40 = vpop.f32.mrf.mxu0  ;;  %v1925_v15 = vadd.f32 1.0, %v8739_v22  ;;  %v1678_v22 = vadd.f32 %v9237_v11, %v1607_v39 }
 0x14d   : > { %v9459_v38 = vadd.f32 %v9237_v11, %v1613_v26  ;;  %v1810_v26 = vmul.f32 0.70710677, %v9447_v32  ;;  %v1813_v45 = vmul.f32 0.70710677, %v9455_v28  ;;  %v1616_v63 = vmul.f32 %v8059_v40, %v9233_v8 }
 0x14e   : > { %v1433_v10 = vpop.f32.mrf.mxu0  ;;  %v9514_v61 = vmul.f32 %v1925_v15, %v9389_v12 }
 0x14f   : > { %v1615_v23 = vmul.f32 %v9233_v8, %v1433_v10  ;;  %v1812_v35 = vmul.f32 0.70710677, %v9459_v38  ;;  %v9481_v16 = vadd.f32 %v9237_v11, %v1616_v63  ;;  %v1922_v10 = vadd.f32 1.0, %v8737_v36 }
 0x150   : > { %v8062_v33 = vpop.f32.mrf.mxu0  ;;  %8764 = verf.f32 %v1810_v26  ;;  %v1680_v36 = vadd.f32 %v9237_v11, %v1609_v27  ;;  %12694 = vst [vmem:[#allocation27_spill] sm:$0xff] %v9514_v61 }
 0x151   : > { %v1618_v31 = vmul.f32 %v8062_v33, %v9233_v8  ;;  %v9484_v47 = vadd.f32 %v9237_v11, %v1615_v23  ;;  %v8745_v33 = vpop.eup %8744  ;;  %8766 = verf.f32 %v1813_v45  ;;  %v1815_v19 = vmul.f32 0.70710677, %v9481_v16 }
 0x152   : > { %v1443_v3 = vpop.f32.mrf.mxu0  ;;  %v8747_v23 = vpop.eup %8746  ;;  %8768 = verf.f32 %v1812_v35  ;;  %v9506_v5 = vmul.f32 %v1922_v10, %v9381_v30  ;;  %v9511_v35 = vmul.f32 %v1923_v6, %v9371_v13  ;;  %v1926_v60 = vadd.f32 1.0, %v8745_v33 }
 0x153   : > { %v1617_v40 = vmul.f32 %v9233_v8, %v1443_v3  ;;  %v9488_v57 = vadd.f32 %v9237_v11, %v1618_v31  ;;  %v1814_v63 = vmul.f32 0.70710677, %v9484_v47  ;;  %v8749_v3 = vpop.eup %8748  ;;  %8770 = verf.f32 %v1815_v19 }
 0x154   : > { %v9490_v37 = vpop.f32.mrf.mxu0  ;;  %v8751_v53 = vpop.eup %8750  ;;  %v1928_v19 = vadd.f32 1.0, %v8749_v3  ;;  %v1808_v30 = vmul.f32 0.70710677, %v1680_v36  ;;  %v1806_v13 = vmul.f32 0.70710677, %v1678_v22  ;;  %v9525_v33 = vmul.f32 %v1927_v0, %v9407_v50 }
 0x155   : > { %v1817_v26 = vmul.f32 0.70710677, %v9488_v57  ;;  %v9503_v45 = vadd.f32 %v9237_v11, %v1617_v40  ;;  %8772 = verf.f32 %v1814_v63  ;;  %v1929_v40 = vadd.f32 1.0, %v8747_v23  ;;  %v8753_v41 = vpop.eup %8752 }
 0x156   : > { %v9499_v31 = vpop.f32.mrf.mxu0  ;;  %v9521_v63 = vmul.f32 %v1924_v52, %v9397_v49  ;;  %v1931_v6 = vadd.f32 1.0, %v8751_v53  ;;  %v8755_v12 = vpop.eup %8754  ;;  %12695 = vst [vmem:[#allocation28_spill] sm:$0xff] %v9525_v33  ;;  %v1740_v23 = vmul.f32 0.5, %v9424_v14  ;;  %v9533_v49 = vmul.f32 %v1926_v60, %v9412_v46 }
 0x157   : > { %8774 = verf.f32 %v1817_v26  ;;  %v1816_v39 = vmul.f32 0.70710677, %v9503_v45  ;;  %v8757_v3 = vpop.eup %8756  ;;  %v9536_v53 = vmul.f32 0.5, %v9430_v17  ;;  %v9540_v50 = vmul.f32 %v1929_v40, %v9451_v24 }
 0x158   : > { %v9508_v27 = vpop.f32.mrf.mxu0  ;;  %12696 = vst [vmem:[#allocation29_spill] sm:$0xff] %v9533_v49  ;;  %v9543_v14 = vmul.f32 %v1928_v19, %v9464_v34  ;;  %v9545_v0 = vmul.f32 0.5, %v1678_v22  ;;  %v9551_v17 = vmul.f32 %v1931_v6, %v9466_v58  ;;  %v1930_v60 = vadd.f32 1.0, %v8753_v41 }
 0x159   : > { %8776 = verf.f32 %v1816_v39  ;;  %v8759_v39 = vpop.eup %8758  ;;  %12697 = vst [vmem:[#allocation30_spill] sm:$0xff] %v9540_v50  ;;  %v1933_v40 = vadd.f32 1.0, %v8755_v12  ;;  %v1932_v15 = vadd.f32 1.0, %v8757_v3  ;;  %v12699_v22 = vrot.slane %v9506_v5, 1 }
 0x15a   : > { %v9518_v10 = vpop.f32.mrf.mxu0  ;;  %12698 = vst [vmem:[#allocation31_spill] sm:$0xff] %v9543_v14  ;;  %8778 = verf.f32 %v1808_v30  ;;  %v8761_v25 = vpop.eup %8760  ;;  %v12700_v19 = vrot.slane %v9462_v51, 1  ;;  %v9566_v41 = vmul.f32 0.5, %v9435_v54  ;;  %v9568_v6 = vmul.f32 0.5, %v1680_v36 }
 0x15b   : > { %8780 = verf.f32 %v1806_v13  ;;  %v8763_v52 = vpop.eup %8762  ;;  %v1747_v13 = vmul.f32 0.5, %v9439_v4  ;;  %v1620_v61 = vmul.f32 %v9490_v37, %v9233_v8  ;;  %v9581_v36 = vmul.f32 %v1930_v60, %v9495_v59 }
 0x15c   : > { %v9528_v26 = vpop.f32.mrf.mxu0  ;;  %v9562_v30 = vsel %vm12561_vm2, %v12700_v19, %v12699_v22  ;;  %v1619_v22 = vmul.f32 %v9233_v8, %v9499_v31  ;;  %v1746_v4 = vmul.f32 0.5, %v9447_v32  ;;  %v1749_v3 = vmul.f32 0.5, %v9455_v28 }
 0x15d   : > { %v8765_v46 = vpop.eup %8764  ;;  %v9585_v24 = vmul.f32 %v1933_v40, %v1741_v2  ;;  %v9587_v1 = vmul.f32 %v1932_v15, %v1740_v23  ;;  %v1935_v37 = vadd.f32 1.0, %v8759_v39  ;;  %v1748_v31 = vmul.f32 0.5, %v9459_v38 }
 0x15e   : > { %v9547_v48 = vpop.f32.mrf.mxu0  ;;  %v8767_v12 = vpop.eup %8766  ;;  %v1751_v54 = vmul.f32 0.5, %v9481_v16  ;;  %v1750_v59 = vmul.f32 0.5, %v9484_v47  ;;  %v1753_v32 = vmul.f32 0.5, %v9488_v57  ;;  %v9596_v2 = vadd.f32 %v9237_v11, %v1620_v61 }
 0x15f   : > { %v8769_v58 = vpop.eup %8768  ;;  %v9599_v15 = vadd.f32 %v9237_v11, %v1619_v22  ;;  %v1622_v38 = vmul.f32 %v9508_v27, %v9233_v8  ;;  %v1938_v39 = vadd.f32 1.0, %v8765_v46  ;;  %v1621_v47 = vmul.f32 %v9233_v8, %v9518_v10 }
 0x160   : > { %v9554_v34 = vpop.f32.mrf.mxu0  ;;  %v8771_v49 = vpop.eup %8770  ;;  %v1937_v42 = vadd.f32 1.0, %v8761_v25  ;;  %v1939_v22 = vadd.f32 1.0, %v8763_v52  ;;  %v1940_v14 = vadd.f32 1.0, %v8769_v58  ;;  %v1752_v27 = vmul.f32 0.5, %v9503_v45 }
 0x161   : > { %v1943_v21 = vadd.f32 1.0, %v8771_v49  ;;  %v1818_v10 = vmul.f32 0.70710677, %v9599_v15  ;;  %v9622_v25 = vadd.f32 %v9237_v11, %v1622_v38  ;;  %v9625_v52 = vadd.f32 %v9237_v11, %v1621_v47 }
 0x162   : > { %v9577_v19 = vpop.f32.mrf.mxu0  ;;  %v8773_v33 = vpop.eup %8772 }
 0x163   : > { %v1942_v28 = vadd.f32 1.0, %v8773_v33  ;;  %v9605_v16 = vmul.f32 %v1943_v21, %v1751_v54  ;;  %v1941_v33 = vadd.f32 1.0, %v8767_v12  ;;  %v1819_v54 = vmul.f32 0.70710677, %v9596_v2 }
 0x164   : > { %v9590_v43 = vpop.f32.mrf.mxu0  ;;  %v8775_v60 = vpop.eup %8774  ;;  %v9617_v12 = vmul.f32 %v1938_v39, %v1746_v4  ;;  %v1623_v4 = vmul.f32 %v9233_v8, %v9547_v48  ;;  %v9637_v39 = vmul.f32 %v1940_v14, %v1748_v31  ;;  %v1821_v14 = vmul.f32 0.70710677, %v9622_v25 }
 0x165   : > { %v1945_v49 = vadd.f32 1.0, %v8775_v60  ;;  %v2006_v40 = vmul.f32 %v1942_v28, %v1750_v59  ;;  %v12536_v21 = vrot.slane %v9605_v16, 1  ;;  %v9627_v58 = vmul.f32 %v1941_v33, %v1749_v3 }
 0x166   : > { %v9603_v23 = vpop.f32.mrf.mxu0  ;;  %v8777_v57 = vpop.eup %8776  ;;  %12702 = vst [vmem:[#allocation33_spill] sm:$0xff] %v9637_v39  ;;  %8782 = verf.f32 %v1819_v54  ;;  %v2001_v33 = vmul.f32 %v1937_v42, %v9566_v41  ;;  %v1820_v42 = vmul.f32 0.70710677, %v9625_v52 }
 0x167   : > { %v9611_v18 = vmul.f32 %v1945_v49, %v1753_v32  ;;  %v1944_v50 = vadd.f32 1.0, %v8777_v57  ;;  %v2070_v46 = vrot.slane %v2006_v40, 1  ;;  %v8779_v60 = vpop.eup %8778  ;;  %12701 = vst [vmem:[#allocation32_spill] sm:$0xff] %v9627_v58  ;;  %v1624_v57 = vmul.f32 %v9528_v26, %v9233_v8 }
 0x168   : > { %v9609_v61 = vpop.f32.mrf.mxu0  ;;  %v8781_v45 = vpop.eup %8780  ;;  %v1936_v47 = vadd.f32 1.0, %v8779_v60  ;;  %8784 = verf.f32 %v1818_v10  ;;  %v12538_v31 = vrot.slane %v9627_v58, 1  ;;  %v2066_v26 = vrot.slane %v9617_v12, 1 }
 0x169   : > { %v9619_v59 = vmul.f32 %v1944_v50, %v1752_v27  ;;  %v2127_v32 = vsel %vm12561_vm2, %v2070_v46, %v12536_v21  ;;  %v2003_v50 = vmul.f32 %v1939_v22, %v1747_v13  ;;  %v12540_v49 = vrot.slane %v9611_v18, 1 }
 0x16a   : > { %v9635_v28 = vpop.f32.mrf.mxu0  ;;  %v9639_v38 = vmax.f32 %v2006_v40, %v2127_v32  ;;  %v1626_v13 = vmul.f32 %v9554_v34, %v9233_v8  ;;  %v9664_v22 = vmul.f32 %v1935_v37, %v9536_v53  ;;  %v1694_v27 = vadd.f32 %v9237_v11, %v1623_v4 }
 0x16b   : > { %v12539_v3 = vrot.slane %v9619_v59, 1  ;;  %v2067_v54 = vrot.slane %v2003_v50, 1  ;;  %v12537_v10 = vrot.slane %v9637_v39, 1  ;;  %v1934_v34 = vadd.f32 1.0, %v8781_v45 }
 0x16c   : > { %v9661_v41 = vpop.f32.mrf.mxu0  ;;  %v9669_v60 = vmul.f32 %v1936_v47, %v9568_v6  ;;  %v2065_v32 = vrot.slane %v2001_v33, 1  ;;  %8786 = verf.f32 %v1821_v14  ;;  %v1695_v21 = vadd.f32 %v9237_v11, %v1624_v57 }
 0x16d   : > { %v2125_v48 = vsel %vm12561_vm2, %v12539_v3, %v12540_v49  ;;  %v1697_v53 = vadd.f32 %v9237_v11, %v1626_v13  ;;  %v2130_v37 = vsel %vm12561_vm2, %v2067_v54, %v12537_v10  ;;  %8788 = verf.f32 %v1820_v42 }
 0x16e   : > { %v9657_v40 = vmax.f32 %v9619_v59, %v2125_v48  ;;  %v2128_v48 = vsel %vm12561_vm2, %v12538_v31, %v2070_v46  ;;  %v1625_v6 = vmul.f32 %v9233_v8, %v9577_v19  ;;  %v2132_v45 = vsel %vm12561_vm2, %v2065_v32, %v2066_v26  ;;  %v9687_v46 = vpop.f32.mrf.mxu0 }
 0x16f   : > { %v9685_v4 = vmax.f32 %v2003_v50, %v2130_v37  ;;  %v1822_v14 = vmul.f32 0.70710677, %v1694_v27  ;;  %v12703_v13 = vrot.slane %v9521_v63, 1  ;;  %v12704_v10 = vrot.slane %v9511_v35, 1 }
 0x170   : > { %v2063_v31 = vrot.slane %v9664_v22, 1  ;;  %v9700_v50 = vmul.f32 %v1934_v34, %v9545_v0  ;;  %v9702_v37 = vmax.f32 %v2001_v33, %v2132_v45  ;;  %v2064_v3 = vrot.slane %v9669_v60, 1  ;;  %v9718_v33 = vpop.f32.mrf.mxu0 }
 0x171   : > { %v2146_v42 = vsel %vm12561_vm2, %v12704_v10, %v12703_v13  ;;  %v1823_v49 = vmul.f32 0.70710677, %v1695_v21  ;;  %v1825_v47 = vmul.f32 0.70710677, %v1697_v53  ;;  %v9706_v57 = vmax.f32 %v9627_v58, %v2128_v48 }
 0x172   : > { %v1696_v39 = vadd.f32 %v9237_v11, %v1625_v6  ;;  %v2260_v10 = vmax.f32 %v9702_v37, %v9685_v4  ;;  %v9713_v13 = vmax.f32 %v9462_v51, %v9562_v30  ;;  %v9716_v0 = vmax.f32 %v9511_v35, %v2146_v42  ;;  %v9749_v48 = vpop.f32.mrf.mxu0 }
 0x173   : > { %8790 = verf.f32 %v1822_v14  ;;  %v1628_v34 = vmul.f32 %v9590_v43, %v9233_v8  ;;  %v2131_v6 = vsel %vm12561_vm2, %v2066_v26, %v2067_v54  ;;  %v1755_v30 = vmul.f32 0.5, %v9596_v2  ;;  %v8783_v14 = vpop.eup %8782 }
 0x174   : > { %v1754_v19 = vmul.f32 0.5, %v9599_v15  ;;  %7476 = vmatprep.subr.mxu1 %v2260_v10  ;;  %v2244_v42 = vmax.f32 %v9713_v13, %v9716_v0  ;;  %v9732_v58 = vmul.f32 0.5, %v9622_v25  ;;  %8792 = verf.f32 %v1823_v49 }
 0x175   : > { %v2133_v43 = vsel %vm12561_vm2, %v2064_v3, %v2065_v32  ;;  %v9737_v26 = vmax.f32 %v9617_v12, %v2131_v6  ;;  %v8785_v54 = vpop.eup %8784  ;;  %v9740_v2 = vmul.f32 0.5, %v9625_v52  ;;  %8794 = verf.f32 %v1825_v47 }
 0x176   : > { %7477 = vmatpush3.msra.mxu1 %v2244_v42  ;;  %v2195_v15 = vmax.f32 %v9669_v60, %v2133_v43  ;;  %v12706_v10 = vrot.slane %v9511_v35, 1  ;;  %v12707_v25 = vrot.slane %v9506_v5, 1  ;;  %v1824_v32 = vmul.f32 0.70710677, %v1696_v39 }
 0x177   : > { %12705 = vst [vmem:[#allocation34_spill] sm:$0xff] %v9737_v26  ;;  %v1699_v12 = vadd.f32 %v9237_v11, %v1628_v34  ;;  %v12708_v6 = vrot.slane %v9462_v51, 1  ;;  %v12709_v52 = vrot.slane %v9443_v56, 1  ;;  %v1947_v35 = vadd.f32 1.0, %v8783_v14 }
 0x178   : > { %v2147_v49 = vsel %vm12561_vm2, %v12707_v25, %v12706_v10  ;;  %v9761_v42 = vmul.f32 0.5, %v1695_v21  ;;  %v1627_v43 = vmul.f32 %v9233_v8, %v9603_v23  ;;  %v2259_v10 = vmax.f32 %v2195_v15, %v9737_v26 }
 0x179   : > { %v2149_v47 = vsel %vm12561_vm2, %v12709_v52, %v12708_v6  ;;  %v9759_v60 = vmax.f32 %v9506_v5, %v2147_v49  ;;  %v1946_v25 = vadd.f32 1.0, %v8785_v54  ;;  %v9766_v34 = vmul.f32 0.5, %v1694_v27  ;;  %v8787_v6 = vpop.eup %8786  ;;  %v9783_v54 = vpop.f32.mrf.mxu0 }
 0x17a   : > { %v1630_v51 = vmul.f32 %v9609_v61, %v9233_v8  ;;  %v2179_v45 = vmax.f32 %v9443_v56, %v2149_v47  ;;  %v9771_v52 = vmul.f32 0.5, %v1697_v53  ;;  %v9773_v5 = vmul.f32 0.5, %v1696_v39  ;;  %7478 = vmatprep.subr.mxu1 %v2259_v10  ;;  %v8789_v8 = vpop.eup %8788 }
 0x17b   : > { %v2134_v21 = vsel %vm12561_vm2, %v2063_v31, %v2064_v3  ;;  %v12710_v23 = vrot.slane %v9443_v56, 1  ;;  %v12711_v14 = vrot.slane %v9403_v55, 1  ;;  %8796 = verf.f32 %v1824_v32 }
 0x17c   : > { %v1827_v61 = vmul.f32 0.70710677, %v1699_v12  ;;  %v2243_v53 = vmax.f32 %v2179_v45, %v9759_v60  ;;  %v2194_v39 = vmax.f32 %v9664_v22, %v2134_v21  ;;  %v9787_v49 = vmul.f32 %v1947_v35, %v1755_v30 }
 0x17d   : > { %v2150_v27 = vsel %vm12561_vm2, %v12711_v14, %v12710_v23  ;;  %v1698_v3 = vadd.f32 %v9237_v11, %v1627_v43  ;;  %v12712_v47 = vrot.slane %v9700_v50, 1  ;;  %v9795_v23 = vmul.f32 %v1946_v25, %v1754_v19 }
 0x17e   : > { %v2178_v56 = vmax.f32 %v9403_v55, %v2150_v27  ;;  %v9798_v32 = vadd.f32 %v9237_v11, %v1630_v51  ;;  %7479 = vmatpush3.msra.mxu1 %v2243_v53  ;;  %v2258_v22 = vmax.f32 %v2194_v39, %v9702_v37  ;;  %v1949_v35 = vadd.f32 1.0, %v8787_v6  ;;  %v9805_v27 = vpop.f32.mrf.mxu0 }
 0x17f   : > { %v2135_v10 = vsel %vm12561_vm2, %v12712_v47, %v2063_v31  ;;  %v1948_v21 = vadd.f32 1.0, %v8789_v8  ;;  %v9802_v43 = vmul.f32 0.5, %v1699_v12  ;;  %8798 = verf.f32 %v1827_v61  ;;  %v9808_v31 = vld [vmem:[%s8958_s17] ss:$0 sm:$0xff] }
 0x180   : > { %v2193_v30 = vmax.f32 %v9700_v50, %v2135_v10  ;;  %v2242_v14 = vmax.f32 %v2178_v56, %v9713_v13  ;;  %v1629_v11 = vmul.f32 %v9808_v31, %v9635_v28  ;;  %7480 = vmatprep.subr.mxu1 %v2258_v22  ;;  %v12713_v37 = vrot.slane %v9403_v55, 1  ;;  %v8791_v51 = vpop.eup %8790 }
 0x181   : > { %v12714_v25 = vrot.slane %v9427_v9, 1  ;;  %v9819_v6 = vmul.f32 0.5, %v1698_v3  ;;  %v1826_v8 = vmul.f32 0.70710677, %v1698_v3  ;;  %v12715_v55 = vmov %v12712_v47 }
 0x182   : > { %v2257_v19 = vmax.f32 %v2193_v30, %v2195_v15  ;;  %7481 = vmatpush3.msra.mxu1 %v2242_v14  ;;  %v9824_v15 = vmul.f32 0.70710677, %v9798_v32  ;;  %v12716_v53 = vrot.slane %v9585_v24, 1  ;;  %v12718_v3 = vrot.slane %v9379_v62, 1  ;;  %v8793_v14 = vpop.eup %8792 }
 0x183   : > { %v2151_v12 = vsel %vm12561_vm2, %v12714_v25, %v12713_v37  ;;  %v12717_v10 = vmov %v12714_v25  ;;  %v9839_v37 = vmul.f32 %v1949_v35, %v9732_v58  ;;  %v8795_v28 = vpop.eup %8794  ;;  %v12720_v58 = vrot.slane %v9587_v1, 1 }
 0x184   : > { %v2177_v61 = vmax.f32 %v9427_v9, %v2151_v12  ;;  %7482 = vmatprep.subr.mxu1 %v2257_v19  ;;  %v2136_v47 = vsel %vm12561_vm2, %v12716_v53, %v12715_v55  ;;  %v2152_v22 = vsel %vm12561_vm2, %v12718_v3, %v12717_v10  ;;  %v9842_v19 = vmul.f32 %v1948_v21, %v9740_v2  ;;  %v8092_v12 = vpop.f32.mrf.mxu0  ;;  %v9846_v53 = vld [vmem:[%s8963_s21] ss:$0 sm:$0xff] }
 0x185   : > { %v2192_v25 = vmax.f32 %v9585_v24, %v2136_v47  ;;  %v1950_v55 = vadd.f32 1.0, %v8791_v51  ;;  %v1700_v9 = vadd.f32 %v9846_v53, %v1629_v11  ;;  %v2176_v13 = vmax.f32 %v9379_v62, %v2152_v22 }
 0x186   : > { %v2241_v50 = vmax.f32 %v2177_v61, %v2179_v45  ;;  %v12719_v10 = vrot.slane %v9585_v24, 1  ;;  %8800 = verf.f32 %v1826_v8  ;;  %v12721_v21 = vmov %v12718_v3 }
 0x187   : > { %v2256_v45 = vmax.f32 %v2192_v25, %v2194_v39  ;;  %v12722_v51 = vrot.slane %v9393_v20, 1  ;;  %v1951_v47 = vadd.f32 1.0, %v8793_v14  ;;  %v1634_v24 = vmul.f32 %v9808_v31, %v9718_v33 }
 0x188   : > { %v2137_v2 = vsel %vm12561_vm2, %v12720_v58, %v12719_v10  ;;  %7483 = vmatpush3.msra.mxu1 %v2241_v50  ;;  %v2240_v3 = vmax.f32 %v2176_v13, %v2178_v56  ;;  %v1953_v10 = vadd.f32 1.0, %v8795_v28  ;;  %v12723_v39 = vmov %v12720_v58  ;;  %v1543_v56 = vpop.f32.mrf.mxu0 }
 0x189   : > { %v2191_v35 = vmax.f32 %v9587_v1, %v2137_v2  ;;  %v2153_v11 = vsel %vm12561_vm2, %v12722_v51, %v12721_v21  ;;  %7484 = vmatprep.subr.mxu1 %v2256_v45  ;;  %v12724_v50 = vrot.slane %v9551_v17, 1  ;;  %v12725_v58 = vmov %v12722_v51  ;;  %v8797_v45 = vpop.eup %8796 }
 0x18a   : > { %v2175_v22 = vmax.f32 %v9393_v20, %v2153_v11  ;;  %v12726_v14 = vrot.slane %v9363_v44, 1  ;;  %v1828_v1 = vmul.f32 0.70710677, %v1700_v9  ;;  %7485 = vmatpush3.msra.mxu1 %v2240_v3  ;;  %v1633_v21 = vmul.f32 %v9808_v31, %v9749_v48 }
 0x18b   : > { %v2255_v8 = vmax.f32 %v2191_v35, %v2193_v30  ;;  %v2138_v62 = vsel %vm12561_vm2, %v12724_v50, %v12723_v39  ;;  %v9881_v30 = vmul.f32 %v1950_v55, %v9766_v34  ;;  %v9888_v39 = vmul.f32 %v1951_v47, %v9761_v42 }
 0x18c   : > { %v2154_v33 = vsel %vm12561_vm2, %v12726_v14, %v12725_v58  ;;  %v2239_v20 = vmax.f32 %v2175_v22, %v2177_v61  ;;  %v2190_v51 = vmax.f32 %v9551_v17, %v2138_v62  ;;  %v9890_v50 = vmul.f32 0.5, %v1700_v9  ;;  %v8095_v9 = vpop.f32.mrf.mxu0 }
 0x18d   : > { %7486 = vmatprep.subr.mxu1 %v2255_v8  ;;  %v2174_v11 = vmax.f32 %v9363_v44, %v2154_v33  ;;  %v9893_v34 = vadd.f32 %v9846_v53, %v1634_v24  ;;  %v12727_v55 = vrot.slane %v9551_v17, 1  ;;  %v12728_v3 = vrot.slane %v9581_v36, 1  ;;  %v12732_v33 = vld [vmem:[#allocation30_spill] sm:$0xff] }
 0x18e   : > { %v9902_v61 = vmul.f32 %v1953_v10, %v9771_v52  ;;  %7487 = vmatpush3.msra.mxu1 %v2239_v20  ;;  %v2254_v8 = vmax.f32 %v2190_v51, %v2192_v25  ;;  %v1638_v42 = vmul.f32 %v9808_v31, %v8092_v12  ;;  %8802 = verf.f32 %v1828_v1  ;;  %v8799_v52 = vpop.eup %8798 }
 0x18f   : > { %v2139_v48 = vsel %vm12561_vm2, %v12728_v3, %v12727_v55  ;;  %v2238_v62 = vmax.f32 %v2174_v11, %v2176_v13  ;;  %v12729_v17 = vmov %v12726_v14  ;;  %v12730_v58 = vrot.slane %v9376_v29, 1 }
 0x190   : > { %v2189_v24 = vmax.f32 %v9581_v36, %v2139_v48  ;;  %v1952_v10 = vadd.f32 1.0, %v8797_v45  ;;  %v9914_v25 = vadd.f32 %v9846_v53, %v1633_v21  ;;  %7488 = vmatprep.subr.mxu1 %v2254_v8  ;;  %v12731_v12 = vmov %v12728_v3 }
 0x191   : > { %v2155_v14 = vsel %vm12561_vm2, %v12730_v58, %v12729_v17  ;;  %v12733_v1 = vrot.slane %v12732_v33, 1  ;;  %v1632_v20 = vmul.f32 %v9808_v31, %v9661_v41  ;;  %v1833_v55 = vmul.f32 0.70710677, %v9893_v34  ;;  %7489 = vmatpush3.msra.mxu1 %v2238_v62  ;;  %v12735_v17 = vld [vmem:[#allocation18_spill] sm:$0xff] }
 0x192   : > { %v2173_v13 = vmax.f32 %v9376_v29, %v2155_v14  ;;  %v2253_v45 = vmax.f32 %v2189_v24, %v2191_v35  ;;  %v1636_v3 = vmul.f32 %v9808_v31, %v9783_v54  ;;  %v9930_v48 = vadd.f32 %v9846_v53, %v1638_v42  ;;  %v1553_v14 = vpop.f32.mrf.mxu0 }
 0x193   : > { %v2140_v44 = vsel %vm12561_vm2, %v12733_v1, %v12731_v12  ;;  %v12734_v8 = vmov %v12730_v58  ;;  %v12736_v58 = vrot.slane %v12735_v17, 1  ;;  %v1637_v35 = vmul.f32 %v9808_v31, %v1543_v56 }
 0x194   : > { %v2188_v21 = vmax.f32 %v12732_v33, %v2140_v44  ;;  %v2237_v36 = vmax.f32 %v2173_v13, %v2175_v22  ;;  %7490 = vmatprep.subr.mxu1 %v2253_v45  ;;  %v1640_v54 = vmul.f32 %v9808_v31, %v8095_v9  ;;  %v9942_v42 = vmul.f32 %v1952_v10, %v9773_v5  ;;  %v8801_v44 = vpop.eup %8800  ;;  %v12738_v9 = vld [vmem:[#allocation31_spill] sm:$0xff] }
 0x195   : > { %v2156_v41 = vsel %vm12561_vm2, %v12736_v58, %v12734_v8  ;;  %v9944_v22 = vadd.f32 1.0, %v8799_v52  ;;  %v1832_v29 = vmul.f32 0.70710677, %v9914_v25  ;;  %v1635_v1 = vmul.f32 %v9808_v31, %v9805_v27  ;;  %v12740_v52 = vld [vmem:[#allocation21_spill] sm:$0xff]  ;;  %v12741_v10 = vld [vmem:[#allocation19_spill] sm:$0xff] }
 0x196   : > { %v2252_v62 = vmax.f32 %v2188_v21, %v2190_v51  ;;  %v2172_v12 = vmax.f32 %v12735_v17, %v2156_v41  ;;  %7491 = vmatpush3.msra.mxu1 %v2237_v36  ;;  %v9950_v56 = vadd.f32 %v9846_v53, %v1640_v54  ;;  %v12737_v51 = vrot.slane %v12732_v33, 1  ;;  %v8098_v36 = vpop.f32.mrf.mxu0 }
 0x197   : > { %v12739_v8 = vrot.slane %v12738_v9, 1  ;;  %v2171_v17 = vmax.f32 %v12741_v10, %v12740_v52  ;;  %v9961_v58 = vadd.f32 %v9846_v53, %v1632_v20  ;;  %8804 = verf.f32 %v1833_v55  ;;  %v12743_v55 = vld [vmem:[#allocation28_spill] sm:$0xff]  ;;  %v12746_v52 = vld [vmem:[#allocation15_spill] sm:$0xff] }
 0x198   : > { %7492 = vmatprep.subr.mxu1 %v2252_v62  ;;  %v2236_v45 = vmax.f32 %v2172_v12, %v2174_v11  ;;  %v9964_v27 = vadd.f32 %v9846_v53, %v1636_v3  ;;  %v1837_v33 = vmul.f32 0.70710677, %v9930_v48  ;;  %v9969_v41 = vadd.f32 %v9846_v53, %v1637_v35  ;;  %v1563_v2 = vpop.f32.mrf.mxu0 }
 0x199   : > { %v2141_v5 = vsel %vm12561_vm2, %v12739_v8, %v12737_v51  ;;  %v2235_v62 = vmax.f32 %v2171_v17, %v2173_v13  ;;  %v1639_v54 = vmul.f32 %v9808_v31, %v1553_v14  ;;  %8806 = verf.f32 %v1832_v29 }
 0x19a   : > { %v2187_v11 = vmax.f32 %v12738_v9, %v2141_v5  ;;  %7493 = vmatpush3.msra.mxu1 %v2236_v45  ;;  %v12742_v20 = vmov %v12739_v8  ;;  %v12744_v8 = vrot.slane %v12743_v55, 1  ;;  %v12745_v5 = vld [vmem:[#allocation22_spill] sm:$0xff]  ;;  %v9981_v28 = vadd.f32 %v9846_v53, %v1635_v1  ;;  %v12748_v9 = vld [vmem:[#allocation29_spill] sm:$0xff]  ;;  %v12750_v1 = vld [vmem:[#allocation20_spill] sm:$0xff] }
 0x19b   : > { %v2170_v10 = vmax.f32 %v12746_v52, %v12745_v5  ;;  %v1839_v35 = vmul.f32 0.70710677, %v9950_v56  ;;  %v9985_v13 = vadd.f32 %v9846_v53, %v1639_v54  ;;  %v1642_v29 = vmul.f32 %v9808_v31, %v8098_v36  ;;  %v12751_v5 = vld [vmem:[#allocation16_spill] sm:$0xff]  ;;  %v8803_v36 = vpop.eup %8802 }
 0x19c   : > { %v2251_v51 = vmax.f32 %v2187_v11, %v2189_v24  ;;  %v2142_v3 = vsel %vm12561_vm2, %v12744_v8, %v12742_v20  ;;  %v12747_v45 = vmov %v12744_v8  ;;  %v12749_v20 = vrot.slane %v12748_v9, 1 }
 0x19d   : > { %v2186_v24 = vmax.f32 %v12743_v55, %v2142_v3  ;;  %v2234_v14 = vmax.f32 %v2170_v10, %v2172_v12  ;;  %v9997_v52 = vmax.f32 %v12751_v5, %v12750_v1  ;;  %v1954_v54 = vadd.f32 1.0, %v8801_v44 }
 0x19e   : > { %7494 = vmatprep.subr.mxu1 %v2251_v51  ;;  %v2143_v8 = vsel %vm12561_vm2, %v12749_v20, %v12747_v45  ;;  %8808 = verf.f32 %v1837_v33  ;;  %v1836_v3 = vmul.f32 0.70710677, %v9969_v41  ;;  %v1838_v12 = vmul.f32 0.70710677, %v9985_v13 }
 0x19f   : > { %7495 = vmatpush3.msra.mxu1 %v2235_v62  ;;  %v2250_v51 = vmax.f32 %v2186_v24, %v2188_v21  ;;  %v10002_v55 = vadd.f32 %v9846_v53, %v1642_v29  ;;  %v2185_v47 = vmax.f32 %v12748_v9, %v2143_v8  ;;  %v2233_v45 = vmax.f32 %v9997_v52, %v2171_v17 }
 0x1a0   : > { %v1631_v20 = vmul.f32 %v9808_v31, %v9687_v46  ;;  %v1835_v44 = vmul.f32 0.70710677, %v9964_v27  ;;  %8810 = verf.f32 %v1839_v35  ;;  %v1641_v33 = vmul.f32 %v9808_v31, %v1563_v2  ;;  %v12753_v46 = vld [vmem:[#allocation27_spill] sm:$0xff]  ;;  %v12756_v2 = vld [vmem:[#allocation25_spill] sm:$0xff] }
 0x1a1   : > { %v1834_v62 = vmul.f32 0.70710677, %v9981_v28  ;;  %8812 = verf.f32 %v1838_v12  ;;  %7496 = vmatprep.subr.mxu1 %v2250_v51  ;;  %v1841_v21 = vmul.f32 0.70710677, %v10002_v55  ;;  %v2249_v29 = vmax.f32 %v2185_v47, %v2187_v11 }
 0x1a2   : > { %8814 = verf.f32 %v1836_v3  ;;  %7497 = vmatpush3.msra.mxu1 %v2234_v14  ;;  %v10013_v8 = vadd.f32 %v9846_v53, %v1641_v33  ;;  %v12752_v17 = vrot.slane %v12748_v9, 1  ;;  %v12754_v1 = vrot.slane %v12753_v46, 1 }
 0x1a3   : > { %v12755_v31 = vrot.slane %v12751_v5, 1  ;;  %v12757_v12 = vrot.slane %v12756_v2, 1  ;;  %v12545_v11 = vrot.slane %v9942_v42, 1  ;;  %8816 = verf.f32 %v1841_v21  ;;  %7498 = vmatprep.subr.mxu1 %v2249_v29 }
 0x1a4   : > { %v2144_v35 = vsel %vm12561_vm2, %v12754_v1, %v12752_v17  ;;  %v10031_v3 = vmul.f32 %v1954_v54, %v9819_v6  ;;  %8818 = verf.f32 %v1835_v44  ;;  %7499 = vmatpush3.msra.mxu1 %v2233_v45  ;;  %v1840_v5 = vmul.f32 0.70710677, %v10013_v8  ;;  %v12761_v44 = vld [vmem:[#allocation26_spill] sm:$0xff] }
 0x1a5   : > { %v2160_v51 = vsel %vm12561_vm2, %v12757_v12, %v12755_v31  ;;  %v2184_v14 = vmax.f32 %v12753_v46, %v2144_v35  ;;  %v12758_v33 = vmov %v12754_v1  ;;  %v12759_v17 = vrot.slane %v9521_v63, 1  ;;  %v10041_v31 = vpop.eup %8804 }
 0x1a6   : > { %v2168_v9 = vmax.f32 %v12756_v2, %v2160_v51  ;;  %8820 = verf.f32 %v1834_v62  ;;  %v10045_v6 = vmul.f32 %v9944_v22, %v9802_v43  ;;  %v1702_v54 = vadd.f32 %v9846_v53, %v1631_v20  ;;  %v12764_v51 = vld [vmem:[#allocation23_spill] sm:$0xff]  ;;  %v10061_v22 = vpop.eup %8806 }
 0x1a7   : > { %v2145_v1 = vsel %vm12561_vm2, %v12759_v17, %v12758_v33  ;;  %v2248_v21 = vmax.f32 %v2184_v14, %v2186_v24  ;;  %8822 = verf.f32 %v1840_v5  ;;  %v12760_v45 = vmov %v12757_v12  ;;  %v12767_v5 = vld [vmem:[#allocation24_spill] sm:$0xff] }
 0x1a8   : > { %v2232_v29 = vmax.f32 %v2168_v9, %v2170_v10  ;;  %v2183_v35 = vmax.f32 %v9521_v63, %v2145_v1  ;;  %v12762_v46 = vrot.slane %v12761_v44, 1  ;;  %v1956_v24 = vadd.f32 1.0, %v8803_v36 }
 0x1a9   : > { %7500 = vmatprep.subr.mxu1 %v2248_v21  ;;  %v12765_v43 = vrot.slane %v12764_v51, 1  ;;  %v12547_v20 = vrot.slane %v10031_v3, 1  ;;  %v1831_v2 = vmul.f32 0.70710677, %v9961_v58  ;;  %v12768_v33 = vrot.slane %v12767_v5, 1 }
 0x1aa   : > { %v2161_v62 = vsel %vm12561_vm2, %v12762_v46, %v12760_v45  ;;  %v2247_v10 = vmax.f32 %v2183_v35, %v2185_v47  ;;  %v12763_v12 = vmov %v12762_v46  ;;  %7501 = vmatpush3.msra.mxu1 %v2232_v29  ;;  %v12544_v1 = vrot.slane %v9888_v39, 1 }
 0x1ab   : > { %v2167_v63 = vmax.f32 %v12761_v44, %v2161_v62  ;;  %v2162_v53 = vsel %vm12561_vm2, %v12765_v43, %v12763_v12  ;;  %v12766_v47 = vmov %v12765_v43  ;;  %v12546_v21 = vrot.slane %v9902_v61, 1 }
 0x1ac   : > { %v10066_v36 = vmax.f32 %v12764_v51, %v2162_v53  ;;  %v2163_v17 = vsel %vm12561_vm2, %v12768_v33, %v12766_v47  ;;  %7502 = vmatprep.subr.mxu1 %v2247_v10  ;;  %v2083_v29 = vrot.slane %v10045_v6, 1  ;;  %v1830_v46 = vmul.f32 0.70710677, %v1702_v54  ;;  %v8809_v51 = vpop.eup %8808 }
 0x1ad   : > { %v2231_v45 = vmax.f32 %v2167_v63, %v9997_v52  ;;  %v10078_v44 = vmax.f32 %v12767_v5, %v2163_v17  ;;  %v2246_v62 = vmax.f32 %v9716_v0, %v2184_v14  ;;  %v12769_v43 = vrot.slane %v9881_v30, 1  ;;  %v8811_v47 = vpop.eup %8810 }
 0x1ae   : > { %v2230_v12 = vmax.f32 %v10066_v36, %v2168_v9  ;;  %v2117_v52 = vsel %vm12561_vm2, %v12545_v11, %v12546_v21  ;;  %v10096_v0 = vmul.f32 %v1956_v24, %v9890_v50  ;;  %v2115_v9 = vsel %vm12561_vm2, %v12547_v20, %v2083_v29 }
 0x1af   : > { %v2119_v10 = vsel %vm12561_vm2, %v12769_v43, %v12544_v1  ;;  %7503 = vmatpush3.msra.mxu1 %v2231_v45  ;;  %v2229_v14 = vmax.f32 %v10078_v44, %v2167_v63  ;;  %8824 = verf.f32 %v1831_v2  ;;  %v2245_v53 = vmax.f32 %v9759_v60, %v2183_v35  ;;  %v2293_v60 = vld [vmem:[%s8968_s25] sm:$0xff]  ;;  %v8813_v35 = vpop.eup %8812 }
 0x1b0   : > { %7504 = vmatprep.subr.mxu1 %v2246_v62  ;;  %v12770_v33 = vrot.slane %v9787_v49, 1  ;;  %v12771_v17 = vrot.slane %v9795_v23, 1  ;;  %v12772_v24 = vrot.slane %v9839_v37, 1  ;;  %v12773_v63 = vrot.slane %v9842_v19, 1 }
 0x1b1   : > { %8826 = verf.f32 %v9824_v15  ;;  %7505 = vmatpush3.msra.mxu1 %v2230_v12  ;;  %v10123_v2 = vmax.f32 %v9881_v30, %v2119_v10  ;;  %v10126_v62 = vmax.f32 %v9942_v42, %v2117_v52  ;;  %v10129_v43 = vmul.f32 0.5, %v9961_v58 }
 0x1b2   : > { %v10110_v50 = vsel %vm12561_vm2, %v12771_v17, %v12770_v33  ;;  %v10118_v45 = vsel %vm12561_vm2, %v12773_v63, %v12772_v24  ;;  %8828 = verf.f32 %v1830_v46  ;;  %7506 = vmatprep.subr.mxu1 %v2245_v53  ;;  %v2298_v33 = vld [vmem:[%s8968_s25 + $0x28] sm:$0xff]  ;;  %v8815_v17 = vpop.eup %8814  ;;  %v10133_v24 = vmax.f32 %v10031_v3, %v2115_v9 }
 0x1b3   : > { %v10136_v12 = vmul.f32 0.5, %v1702_v54  ;;  %v10139_v10 = vmul.f32 0.5, %v9893_v34  ;;  %7507 = vmatpush3.msra.mxu1 %v2229_v14  ;;  %v8817_v52 = vpop.eup %8816  ;;  %v10142_v58 = vmul.f32 0.5, %v9914_v25  ;;  %v1771_v46 = vmul.f32 0.5, %v9964_v27  ;;  %v2297_v14 = vld [vmem:[%s8968_s25 + $0x20] sm:$0xff] }
 0x1b4   : > { %v1770_v53 = vmul.f32 0.5, %v9981_v28  ;;  %v1967_v9 = vadd.f32 1.0, %v8811_v47  ;;  %2422 = vmatmul.mubr.f32.vlgmr.msra.gmra.mxu1 %v2293_v60  ;;  %v8819_v63 = vpop.eup %8818  ;;  %v1773_v1 = vmul.f32 0.5, %v9930_v48  ;;  %v1966_v54 = vadd.f32 1.0, %v8813_v35  ;;  %v2302_v47 = vld [vmem:[%s8968_s25 + $0x48] sm:$0xff] }
 0x1b5   : > { %v1777_v11 = vmul.f32 0.5, %v10002_v55  ;;  %v1969_v34 = vadd.f32 1.0, %v8817_v52  ;;  %2426 = vmatprep.mubr.f32.mxu1 %v2298_v33  ;;  %v8821_v21 = vpop.eup %8820  ;;  %v10150_v25 = vadd.f32 1.0, %v10041_v31  ;;  %v1965_v20 = vadd.f32 1.0, %v8809_v51 }
 0x1b6   : > { %v1772_v27 = vmul.f32 0.5, %v9969_v41  ;;  %v1775_v28 = vmul.f32 0.5, %v9950_v56  ;;  %v8823_v60 = vpop.eup %8822  ;;  %v1964_v15 = vadd.f32 1.0, %v8815_v17  ;;  %v1774_v48 = vmul.f32 0.5, %v9985_v13 }
 0x1b7   : > { %v2033_v35 = vmul.f32 %v1969_v34, %v1777_v11  ;;  %v1776_v55 = vmul.f32 0.5, %v10013_v8  ;;  %v1968_v52 = vadd.f32 1.0, %v8823_v60  ;;  %v12774_v31 = vrot.slane %v10096_v0, 1 }
 0x1b8   : > { %v2031_v33 = vmul.f32 %v1967_v9, %v1775_v28  ;;  %2427 = vmatmul.mubr.f32.gmra.mxu1 %v2297_v14  ;;  %v12775_v56 = vrot.slane %v9795_v23, 1  ;;  %v12776_v51 = vrot.slane %v9611_v18, 1  ;;  %v1960_v13 = vadd.f32 1.0, %v10061_v22  ;;  %v2301_v9 = vld [vmem:[%s8968_s25 + $0x40] sm:$0xff] }
 0x1b9   : > { %v2114_v41 = vsel %vm12561_vm2, %v2083_v29, %v12774_v31  ;;  %v1963_v11 = vadd.f32 1.0, %v8819_v63  ;;  %v2030_v34 = vmul.f32 %v1966_v54, %v1774_v48  ;;  %v2097_v8 = vrot.slane %v2033_v35, 1  ;;  %2431 = vmatprep.mubr.f32.mxu1 %v2302_v47  ;;  %v2306_v29 = vld [vmem:[%s8968_s25 + $0x68] sm:$0xff] }
 0x1ba   : > { %v2124_v17 = vsel %vm12561_vm2, %v12776_v51, %v12775_v56  ;;  %v1962_v14 = vadd.f32 1.0, %v8821_v21  ;;  %v10169_v28 = vmul.f32 %v1965_v20, %v1773_v1  ;;  %v2032_v60 = vmul.f32 %v1968_v52, %v1776_v55 }
 0x1bb   : > { %v12777_v31 = vrot.slane %v10031_v3, 1  ;;  %v12778_v26 = vrot.slane %v9902_v61, 1  ;;  %v10178_v51 = vmul.f32 %v1964_v15, %v1772_v27  ;;  %v12779_v22 = vrot.slane %v12767_v5, 1 }
 0x1bc   : > { %v10185_v20 = vmax.f32 %v10045_v6, %v2114_v41  ;;  %v10188_v1 = vmax.f32 %v9611_v18, %v2124_v17  ;;  %v2095_v3 = vrot.slane %v2031_v33, 1  ;;  %v2096_v21 = vrot.slane %v2032_v60, 1  ;;  %2432 = vmatmul.mubr.f32.gmra.mxu1 %v2301_v9  ;;  %v8825_v27 = vpop.eup %8824  ;;  %v2305_v6 = vld [vmem:[%s8968_s25 + $0x60] sm:$0xff] }
 0x1bd   : > { %v2116_v56 = vsel %vm12561_vm2, %v12778_v26, %v12777_v31  ;;  %v2164_v63 = vsel %vm12561_vm2, %v2097_v8, %v12779_v22  ;;  %v12780_v26 = vrot.slane %v9619_v59, 1  ;;  %v12781_v15 = vrot.slane %v9605_v16, 1  ;;  %2436 = vmatprep.mubr.f32.mxu1 %v2306_v29  ;;  %v2310_v59 = vld [vmem:[%s8968_s25 + $0x88] sm:$0xff] }
 0x1be   : > { %v2228_v54 = vmax.f32 %v2033_v35, %v2164_v63  ;;  %v2094_v47 = vrot.slane %v2030_v34, 1  ;;  %v2212_v48 = vmax.f32 %v9902_v61, %v2116_v56  ;;  %v2265_v55 = vmax.f32 %v9639_v38, %v9657_v40  ;;  %v8827_v35 = vpop.eup %8826  ;;  %v2309_v63 = vld [vmem:[%s8968_s25 + $0x80] sm:$0xff] }
 0x1bf   : > { %v2126_v5 = vsel %vm12561_vm2, %v12781_v15, %v12780_v26  ;;  %v10203_v52 = vmul.f32 %v1963_v11, %v1771_v46  ;;  %v2101_v17 = vsel %vm12561_vm2, %v2096_v21, %v2097_v8  ;;  %v2102_v9 = vsel %vm12561_vm2, %v2095_v3, %v2096_v21  ;;  %v8829_v61 = vpop.eup %8828 }
 0x1c0   : > { %v10199_v18 = vmax.f32 %v9605_v16, %v2126_v5  ;;  %v2292_v41 = vmax.f32 %v2228_v54, %v10066_v36  ;;  %v10211_v29 = vmul.f32 %v1962_v14, %v1770_v53  ;;  %v2276_v16 = vmax.f32 %v2212_v48, %v10185_v20  ;;  %2437 = vmatmul.mubr.f32.gmra.mxu1 %v2305_v6  ;;  %v2314_v5 = vld [vmem:[%s8968_s25 + $0xa8] sm:$0xff] }
 0x1c1   : > { %v2227_v31 = vmax.f32 %v2032_v60, %v2101_v17  ;;  %v1959_v11 = vadd.f32 1.0, %v8825_v27  ;;  %v2226_v36 = vmax.f32 %v2031_v33, %v2102_v9  ;;  %v12782_v8 = vrot.slane %v9942_v42, 1  ;;  %2441 = vmatprep.mubr.f32.mxu1 %v2310_v59  ;;  %v12784_v27 = vld [vmem:[#allocation32_spill] sm:$0xff]  ;;  %v12786_v59 = vld [vmem:[#allocation33_spill] sm:$0xff] }
 0x1c2   : > { %v2266_v46 = vmax.f32 %v10199_v18, %v10188_v1  ;;  %7556 = vmatprep.subr.mxu1 %v2292_v41  ;;  %v12783_v56 = vrot.slane %v9888_v39, 1  ;;  %v2264_v53 = vmax.f32 %v9706_v57, %v10199_v18  ;;  %v2093_v14 = vrot.slane %v10169_v28, 1 }
 0x1c3   : > { %v2092_v60 = vrot.slane %v10178_v51, 1  ;;  %7557 = vmatpush3.msra.mxu1 %v2276_v16  ;;  %v2291_v21 = vmax.f32 %v2227_v31, %v10078_v44  ;;  %v2103_v42 = vsel %vm12561_vm2, %v2094_v47, %v2095_v3  ;;  %v1958_v33 = vadd.f32 1.0, %v8829_v61 }
 0x1c4   : > { %v2118_v22 = vsel %vm12561_vm2, %v12783_v56, %v12782_v8  ;;  %v10232_v26 = vmul.f32 %v10150_v25, %v10139_v10  ;;  %v10235_v15 = vmul.f32 %v1960_v13, %v10142_v58  ;;  %v12785_v6 = vrot.slane %v12784_v27, 1  ;;  %2442 = vmatmul.mubr.f32.gmra.mxu1 %v2309_v63  ;;  %v2318_v63 = vld [vmem:[%s8968_s25 + $0xc8] sm:$0xff]  ;;  %v2317_v27 = vld [vmem:[%s8968_s25 + $0xc0] sm:$0xff] }
 0x1c5   : > { %v12787_v41 = vrot.slane %v12786_v59, 1  ;;  %7558 = vmatprep.subr.mxu1 %v2291_v21  ;;  %v2275_v3 = vmax.f32 %v10126_v62, %v10133_v24  ;;  %v2210_v17 = vmax.f32 %v9888_v39, %v2118_v22  ;;  %v2104_v10 = vsel %vm12561_vm2, %v2093_v14, %v2094_v47  ;;  %2446 = vmatprep.mubr.f32.mxu1 %v2314_v5  ;;  %v2313_v47 = vld [vmem:[%s8968_s25 + $0xa0] sm:$0xff] }
 0x1c6   : > { %v2091_v25 = vrot.slane %v10203_v52, 1  ;;  %v2290_v13 = vmax.f32 %v2226_v36, %v2228_v54  ;;  %v2225_v9 = vmax.f32 %v2030_v34, %v2103_v42  ;;  %v12788_v61 = vrot.slane %v9881_v30, 1 }
 0x1c7   : > { %v2129_v44 = vsel %vm12561_vm2, %v12787_v41, %v12785_v6  ;;  %v12789_v16 = vrot.slane %v9839_v37, 1  ;;  %v2090_v39 = vrot.slane %v10211_v29, 1  ;;  %7559 = vmatpush3.msra.mxu1 %v2275_v3  ;;  %v2274_v56 = vmax.f32 %v2210_v17, %v2212_v48 }
 0x1c8   : > { %v10250_v58 = vmax.f32 %v12786_v59, %v2129_v44  ;;  %v2105_v22 = vsel %vm12561_vm2, %v2092_v60, %v2093_v14  ;;  %v2207_v30 = vmax.f32 %v9842_v19, %v10118_v45  ;;  %v10268_v34 = vmul.f32 %v1959_v11, %v10129_v43  ;;  %7560 = vmatprep.subr.mxu1 %v2290_v13 }
 0x1c9   : > { %v2120_v8 = vsel %vm12561_vm2, %v12789_v16, %v12788_v61  ;;  %v2289_v21 = vmax.f32 %v2225_v9, %v2227_v31  ;;  %v2224_v42 = vmax.f32 %v10169_v28, %v2104_v10  ;;  %v10273_v48 = vmul.f32 %v1958_v33, %v10136_v12  ;;  %7561 = vmatpush3.msra.mxu1 %v2274_v56 }
 0x1ca   : > { %v2263_v54 = vmax.f32 %v10250_v58, %v9639_v38  ;;  %v2273_v14 = vmax.f32 %v10123_v2, %v10126_v62  ;;  %v2208_v5 = vmax.f32 %v9839_v37, %v2120_v8  ;;  %v2106_v45 = vsel %vm12561_vm2, %v2091_v25, %v2092_v60  ;;  %2447 = vmatmul.mubr.f32.gmra.mxu1 %v2313_v47  ;;  %v2322_v60 = vld [vmem:[%s8968_s25 + $0xe8] sm:$0xff]  ;;  %v2325_v47 = vld [vmem:[%s8968_s25 + $0x100] sm:$0xff] }
 0x1cb   : > { %v1957_v43 = vadd.f32 1.0, %v8827_v35  ;;  %7562 = vmatprep.subr.mxu1 %v2289_v21  ;;  %v2288_v31 = vmax.f32 %v2224_v42, %v2226_v36  ;;  %v2223_v11 = vmax.f32 %v10178_v51, %v2105_v22  ;;  %v12790_v28 = vrot.slane %v9842_v19, 1  ;;  %2451 = vmatprep.mubr.f32.mxu1 %v2318_v63  ;;  %v2330_v22 = vld [vmem:[%s8968_s25 + $0x128] sm:$0xff]  ;;  %v2341_v38 = vld [vmem:[%s8968_s25 + $0x180] sm:$0xff] }
 0x1cc   : > { %v12791_v12 = vrot.slane %v9787_v49, 1  ;;  %v2089_v62 = vrot.slane %v10232_v26, 1  ;;  %v2088_v37 = vrot.slane %v10235_v15, 1  ;;  %7563 = vmatpush3.msra.mxu1 %v2273_v14  ;;  %v2272_v35 = vmax.f32 %v2208_v5, %v2210_v17 }
 0x1cd   : > { %v2107_v36 = vsel %vm12561_vm2, %v2090_v39, %v2091_v25  ;;  %v1765_v51 = vmul.f32 0.5, %v9798_v32  ;;  %7564 = vmatprep.subr.mxu1 %v2288_v31  ;;  %v2287_v19 = vmax.f32 %v2223_v11, %v2225_v9  ;;  %v2222_v6 = vmax.f32 %v10203_v52, %v2106_v45 }
 0x1ce   : > { %v2122_v33 = vsel %vm12561_vm2, %v12791_v12, %v12790_v28  ;;  %v2205_v59 = vmax.f32 %v9795_v23, %v10110_v50  ;;  %7565 = vmatpush3.msra.mxu1 %v2272_v35  ;;  %v2271_v41 = vmax.f32 %v2207_v30, %v10123_v2  ;;  %v2108_v3 = vsel %vm12561_vm2, %v2089_v62, %v2090_v39  ;;  %v2321_v23 = vld [vmem:[%s8968_s25 + $0xe0] sm:$0xff]  ;;  %v2326_v2 = vld [vmem:[%s8968_s25 + $0x108] sm:$0xff]  ;;  %v2300_v35 = vld [vmem:[%s8968_s25 + $0x38] sm:$0xff] }
 0x1cf   : > { %v2206_v44 = vmax.f32 %v9787_v49, %v2122_v33  ;;  %v2021_v17 = vmul.f32 %v1957_v43, %v1765_v51  ;;  %2452 = vmatmul.mubr.f32.gmra.mxu1 %v2317_v27  ;;  %7566 = vmatprep.subr.mxu1 %v2287_v19  ;;  %v2286_v32 = vmax.f32 %v2222_v6, %v2224_v42  ;;  %v2087_v52 = vrot.slane %v10268_v34, 1  ;;  %v2334_v43 = vld [vmem:[%s8968_s25 + $0x148] sm:$0xff]  ;;  %v2333_v12 = vld [vmem:[%s8968_s25 + $0x140] sm:$0xff]  ;;  %v2295_v27 = vld [vmem:[%s8968_s25 + $0x10] sm:$0xff] }
 0x1d0   : > { %v2221_v10 = vmax.f32 %v10211_v29, %v2107_v36  ;;  %v2086_v25 = vrot.slane %v10273_v48, 1  ;;  %2456 = vmatprep.mubr.f32.mxu1 %v2322_v60  ;;  %7567 = vmatpush3.msra.mxu1 %v2271_v41  ;;  %v2109_v49 = vsel %vm12561_vm2, %v2088_v37, %v2089_v62  ;;  %v2220_v9 = vmax.f32 %v10232_v26, %v2108_v3  ;;  %v2338_v33 = vld [vmem:[%s8968_s25 + $0x168] sm:$0xff]  ;;  %v2299_v36 = vld [vmem:[%s8968_s25 + $0x30] sm:$0xff]  ;;  %v2304_v51 = vld [vmem:[%s8968_s25 + $0x58] sm:$0xff] }
 0x1d1   : > { %v2270_v50 = vmax.f32 %v2206_v44, %v2208_v5  ;;  %7568 = vmatprep.subr.mxu1 %v2286_v32  ;;  %v2269_v29 = vmax.f32 %v2205_v59, %v2207_v30  ;;  %v2110_v61 = vsel %vm12561_vm2, %v2087_v52, %v2088_v37  ;;  %v2219_v8 = vmax.f32 %v10235_v15, %v2109_v49  ;;  %v2329_v5 = vld [vmem:[%s8968_s25 + $0x120] sm:$0xff]  ;;  %v2296_v37 = vld [vmem:[%s8968_s25 + $0x18] sm:$0xff]  ;;  %v2303_v60 = vld [vmem:[%s8968_s25 + $0x50] sm:$0xff] }
 0x1d2   : > { %v2285_v13 = vmax.f32 %v2221_v10, %v2223_v11  ;;  %v2284_v16 = vmax.f32 %v2220_v9, %v2222_v6  ;;  %v2085_v39 = vrot.slane %v2021_v17, 1  ;;  %v2268_v56 = vmax.f32 %v10188_v1, %v2206_v44  ;;  %v2308_v19 = vld [vmem:[%s8968_s25 + $0x78] sm:$0xff]  ;;  %v2307_v6 = vld [vmem:[%s8968_s25 + $0x70] sm:$0xff] }
 0x1d3   : > { %7569 = vmatpush3.msra.mxu1 %v2270_v50  ;;  %v2111_v26 = vsel %vm12561_vm2, %v2086_v25, %v2087_v52  ;;  %v2283_v30 = vmax.f32 %v2219_v8, %v2221_v10  ;;  %v2218_v63 = vmax.f32 %v10268_v34, %v2110_v61  ;;  %v2267_v21 = vmax.f32 %v9657_v40, %v2205_v59  ;;  %v2342_v40 = vld [vmem:[%s8968_s25 + $0x188] sm:$0xff]  ;;  %v2312_v59 = vld [vmem:[%s8968_s25 + $0x98] sm:$0xff]  ;;  %v2311_v41 = vld [vmem:[%s8968_s25 + $0x90] sm:$0xff] }
 0x1d4   : > { %2457 = vmatmul.mubr.f32.gmra.mxu1 %v2321_v23  ;;  %7570 = vmatprep.subr.mxu1 %v2285_v13  ;;  %v2112_v15 = vsel %vm12561_vm2, %v2085_v39, %v2086_v25  ;;  %v2217_v14 = vmax.f32 %v10273_v48, %v2111_v26  ;;  %v12792_v45 = vrot.slane %v10096_v0, 1  ;;  %v2316_v44 = vld [vmem:[%s8968_s25 + $0xb8] sm:$0xff]  ;;  %v2315_v3 = vld [vmem:[%s8968_s25 + $0xb0] sm:$0xff] }
 0x1d5   : > { %2461 = vmatprep.mubr.f32.mxu1 %v2326_v2  ;;  %7571 = vmatpush3.msra.mxu1 %v2269_v29  ;;  %v2282_v42 = vmax.f32 %v2218_v63, %v2220_v9  ;;  %v2216_v11 = vmax.f32 %v2021_v17, %v2112_v15  ;;  %v2320_v17 = vld [vmem:[%s8968_s25 + $0xd8] sm:$0xff]  ;;  %v2319_v32 = vld [vmem:[%s8968_s25 + $0xd0] sm:$0xff] }
 0x1d6   : > { %7572 = vmatprep.subr.mxu1 %v2284_v16  ;;  %v2113_v34 = vsel %vm12561_vm2, %v12792_v45, %v2085_v39  ;;  %v2281_v31 = vmax.f32 %v2217_v14, %v2219_v8  ;;  %v2324_v10 = vld [vmem:[%s8968_s25 + $0xf8] sm:$0xff]  ;;  %v2323_v52 = vld [vmem:[%s8968_s25 + $0xf0] sm:$0xff] }
 0x1d7   : > { %7573 = vmatpush3.msra.mxu1 %v2268_v56  ;;  %v2280_v48 = vmax.f32 %v2216_v11, %v2218_v63  ;;  %v2215_v28 = vmax.f32 %v10096_v0, %v2113_v34  ;;  %v2278_v1 = vmax.f32 %v10185_v20, %v2216_v11  ;;  %v2337_v0 = vld [vmem:[%s8968_s25 + $0x160] sm:$0xff]  ;;  %v2328_v25 = vld [vmem:[%s8968_s25 + $0x118] sm:$0xff]  ;;  %v2327_v23 = vld [vmem:[%s8968_s25 + $0x110] sm:$0xff] }
 0x1d8   : > { %2462 = vmatmul.mubr.f32.gmra.mxu1 %v2325_v47  ;;  %7574 = vmatprep.subr.mxu1 %v2283_v30  ;;  %v12794_v20 = vld [vmem:[#allocation34_spill] sm:$0xff]  ;;  %v2331_v49 = vld [vmem:[%s8968_s25 + $0x130] sm:$0xff] }
 0x1d9   : > { %2466 = vmatprep.mubr.f32.mxu1 %v2330_v22  ;;  %7575 = vmatpush3.msra.mxu1 %v2267_v21  ;;  %v2279_v62 = vmax.f32 %v2215_v28, %v2217_v14  ;;  %v2277_v18 = vmax.f32 %v10133_v24, %v2215_v28  ;;  %v2345_v24 = vld [vmem:[%s8968_s25 + $0x1a0] sm:$0xff]  ;;  %v2332_v50 = vld [vmem:[%s8968_s25 + $0x138] sm:$0xff]  ;;  %v2335_v13 = vld [vmem:[%s8968_s25 + $0x150] sm:$0xff] }
 0x1da   : > { %7576 = vmatprep.subr.mxu1 %v2282_v42  ;;  %v2336_v2 = vld [vmem:[%s8968_s25 + $0x158] sm:$0xff]  ;;  %v2339_v29 = vld [vmem:[%s8968_s25 + $0x170] sm:$0xff] }
 0x1db   : > { %7577 = vmatpush3.msra.mxu1 %v2266_v46  ;;  %v2261_v46 = vmax.f32 %v12794_v20, %v10250_v58  ;;  %v2354_v58 = vld [vmem:[%s8968_s25 + $0x1e8] sm:$0xff]  ;;  %v2340_v9 = vld [vmem:[%s8968_s25 + $0x178] sm:$0xff]  ;;  %v2343_v16 = vld [vmem:[%s8968_s25 + $0x190] sm:$0xff] }
 0x1dc   : > { %2467 = vmatmul.mubr.f32.gmra.mxu1 %v2329_v5  ;;  %7578 = vmatprep.subr.mxu1 %v2281_v31  ;;  %v2344_v61 = vld [vmem:[%s8968_s25 + $0x198] sm:$0xff]  ;;  %v2347_v39 = vld [vmem:[%s8968_s25 + $0x1b0] sm:$0xff] }
 0x1dd   : > { %2471 = vmatprep.mubr.f32.mxu1 %v2334_v43  ;;  %7579 = vmatpush3.msra.mxu1 %v2265_v55  ;;  %v12793_v55 = vmax.f32 %v9685_v4, %v9706_v57  ;;  %v2350_v4 = vld [vmem:[%s8968_s25 + $0x1c8] sm:$0xff]  ;;  %v2349_v57 = vld [vmem:[%s8968_s25 + $0x1c0] sm:$0xff]  ;;  %v2348_v8 = vld [vmem:[%s8968_s25 + $0x1b8] sm:$0xff] }
 0x1de   : > { %7580 = vmatprep.subr.mxu1 %v2280_v48  ;;  %v2352_v47 = vld [vmem:[%s8968_s25 + $0x1d8] sm:$0xff]  ;;  %v2351_v56 = vld [vmem:[%s8968_s25 + $0x1d0] sm:$0xff] }
 0x1df   : > { %7581 = vmatpush3.msra.mxu1 %v2264_v53  ;;  %v2346_v53 = vld [vmem:[%s8968_s25 + $0x1a8] sm:$0xff]  ;;  %v2356_v26 = vld [vmem:[%s8968_s25 + $0x1f8] sm:$0xff]  ;;  %v2355_v22 = vld [vmem:[%s8968_s25 + $0x1f0] sm:$0xff] }
 0x1e0   : > { %2472 = vmatmul.mubr.f32.gmra.mxu1 %v2333_v12  ;;  %7582 = vmatprep.subr.mxu1 %v2279_v62 }
 0x1e1   : > { %2476 = vmatprep.mubr.f32.mxu1 %v2338_v33  ;;  %7583 = vmatpush3.msra.mxu1 %v2263_v54  ;;  %v2353_v54 = vld [vmem:[%s8968_s25 + $0x1e0] sm:$0xff] }
 0x1e2   : > { %7584 = vmatprep.subr.mxu1 %v2278_v1 }
 0x1e3   : > { %7585 = vmatpush3.msra.mxu1 %v12793_v55 }
 0x1e4   : > { %2477 = vmatmul.mubr.f32.gmra.mxu1 %v2337_v0  ;;  %7586 = vmatprep.subr.mxu1 %v2277_v18  ;;  %v4633_v18 = vld [vmem:[%s8973_s29 + $0x78] sm:$0xff] }
 0x1e5   : > { %2481 = vmatprep.mubr.f32.mxu1 %v2342_v40  ;;  %7587 = vmatpush3.msra.mxu1 %v2261_v46  ;;  %v4649_v40 = vld [vmem:[%s8973_s29 + $0xf8] sm:$0xff] }
 0x1e6   : > { %7636 = vmatprep.subr.mxu0 %v4649_v40  ;;  %8345 = vmatprep.subr.mxu1 %v4649_v40 }
 0x1e7   : > { %7637 = vmatpush3.msra.mxu0 %v4633_v18 }
 0x1e8   : > { %2482 = vmatmul.mubr.f32.gmra.mxu1 %v2341_v38 }
 0x1e9   : > { %2486 = vmatprep.mubr.f32.mxu1 %v2346_v53 }
 0x1ec   : > { %2487 = vmatmul.mubr.f32.gmra.mxu1 %v2345_v24 }
 0x1ed   : > { %2491 = vmatprep.mubr.f32.mxu1 %v2350_v4  ;;  %v4648_v4 = vld [vmem:[%s8973_s29 + $0xf0] sm:$0xff] }
 0x1ee   : > { %7638 = vmatprep.subr.mxu0 %v4648_v4 }
 0x1f0   : > { %2492 = vmatmul.mubr.f32.gmra.mxu1 %v2349_v57  ;;  %v4632_v57 = vld [vmem:[%s8973_s29 + $0x70] sm:$0xff] }
 0x1f1   : > { %2496 = vmatprep.mubr.f32.mxu1 %v2354_v58  ;;  %7639 = vmatpush3.msra.mxu0 %v4632_v57 }
 0x1f4   : > { %2497 = vmatmul.mubr.f32.gmra.mxu1 %v2353_v54 }
 0x1f5   : > { %2566 = vmatprep.mubr.f32.mxu1 %v2296_v37 }
 0x1f8   : > { %2567 = vmatmul.mubr.f32.vlgmr.msra.gmra.mxu1 %v2295_v27 }
 0x1f9   : > { %2571 = vmatprep.mubr.f32.mxu1 %v2300_v35  ;;  %8361 = vmatpush3.msra.mxu1 %v4633_v18  ;;  %v12798_v18 = vmov 0 }
 0x1fa   : > { %8346 = vmatprep.subr.mxu1 %v4648_v4 }
 0x1fb   : > { %8362 = vmatpush3.msra.mxu1 %v4632_v57 }
 0x1fc   : > { %2572 = vmatmul.mubr.f32.gmra.mxu1 %v2299_v36 }
 0x1fd   : > { %2576 = vmatprep.mubr.f32.mxu1 %v2304_v51  ;;  %v4647_v51 = vld [vmem:[%s8973_s29 + $0xe8] sm:$0xff] }
 0x1fe   : > { %7640 = vmatprep.subr.mxu0 %v4647_v51  ;;  %8347 = vmatprep.subr.mxu1 %v4647_v51 }
 0x200   : > { %2577 = vmatmul.mubr.f32.gmra.mxu1 %v2303_v60  ;;  %v4631_v60 = vld [vmem:[%s8973_s29 + $0x68] sm:$0xff] }
 0x201   : > { %2581 = vmatprep.mubr.f32.mxu1 %v2308_v19  ;;  %7641 = vmatpush3.msra.mxu0 %v4631_v60 }
 0x202   : > { %8363 = vmatpush3.msra.mxu1 %v4631_v60  ;;  %v12808_v60 = vmov 0 }
 0x204   : > { %2582 = vmatmul.mubr.f32.gmra.mxu1 %v2307_v6 }
 0x205   : > { %2586 = vmatprep.mubr.f32.mxu1 %v2312_v59 }
 0x208   : > { %2587 = vmatmul.mubr.f32.gmra.mxu1 %v2311_v41 }
 0x209   : > { %2591 = vmatprep.mubr.f32.mxu1 %v2316_v44 }
 0x20c   : > { %2592 = vmatmul.mubr.f32.gmra.mxu1 %v2315_v3 }
 0x20d   : > { %2596 = vmatprep.mubr.f32.mxu1 %v2320_v17  ;;  %v4646_v17 = vld [vmem:[%s8973_s29 + $0xe0] sm:$0xff] }
 0x20e   : > { %7642 = vmatprep.subr.mxu0 %v4646_v17  ;;  %8348 = vmatprep.subr.mxu1 %v4646_v17 }
 0x210   : > { %2597 = vmatmul.mubr.f32.gmra.mxu1 %v2319_v32  ;;  %v4630_v32 = vld [vmem:[%s8973_s29 + $0x60] sm:$0xff] }
 0x211   : > { %2601 = vmatprep.mubr.f32.mxu1 %v2324_v10  ;;  %7643 = vmatpush3.msra.mxu0 %v4630_v32 }
 0x212   : > { %8364 = vmatpush3.msra.mxu1 %v4630_v32  ;;  %v10509_v32 = vadd.s32 32, %v9290_v7 }
 0x214   : > { %2602 = vmatmul.mubr.f32.gmra.mxu1 %v2323_v52 }
 0x215   : > { %2606 = vmatprep.mubr.f32.mxu1 %v2328_v25 }
 0x218   : > { %2607 = vmatmul.mubr.f32.gmra.mxu1 %v2327_v23 }
 0x219   : > { %2611 = vmatprep.mubr.f32.mxu1 %v2332_v50 }
 0x21c   : > { %2612 = vmatmul.mubr.f32.gmra.mxu1 %v2331_v49 }
 0x21d   : > { %2616 = vmatprep.mubr.f32.mxu1 %v2336_v2  ;;  %v4645_v2 = vld [vmem:[%s8973_s29 + $0xd8] sm:$0xff] }
 0x21e   : > { %7644 = vmatprep.subr.mxu0 %v4645_v2  ;;  %8349 = vmatprep.subr.mxu1 %v4645_v2  ;;  %v12815_v2 = vmov 0 }
 0x220   : > { %2617 = vmatmul.mubr.f32.gmra.mxu1 %v2335_v13  ;;  %v4629_v13 = vld [vmem:[%s8973_s29 + $0x58] sm:$0xff] }
 0x221   : > { %2621 = vmatprep.mubr.f32.mxu1 %v2340_v9  ;;  %7645 = vmatpush3.msra.mxu0 %v4629_v13 }
 0x222   : > { %8365 = vmatpush3.msra.mxu1 %v4629_v13 }
 0x224   : > { %2622 = vmatmul.mubr.f32.gmra.mxu1 %v2339_v29 }
 0x225   : > { %2626 = vmatprep.mubr.f32.mxu1 %v2344_v61 }
 0x228   : > { %2627 = vmatmul.mubr.f32.gmra.mxu1 %v2343_v16 }
 0x229   : > { %2631 = vmatprep.mubr.f32.mxu1 %v2348_v8 }
 0x22c   : > { %2632 = vmatmul.mubr.f32.gmra.mxu1 %v2347_v39 }
 0x22d   : > { %2636 = vmatprep.mubr.f32.mxu1 %v2352_v47  ;;  %v10434_v47 = vadd.s32 8, %v9290_v7 }
 0x22f   : > { %12795 = vst [vmem:[#allocation30_spill] sm:$0xff] %v10434_v47 }
 0x230   : > { %2637 = vmatmul.mubr.f32.gmra.mxu1 %v2351_v56  ;;  %v10437_v56 = vadd.s32 72, %v9290_v7 }
 0x231   : > { %2641 = vmatprep.mubr.f32.mxu1 %v2356_v26  ;;  %v4644_v26 = vld [vmem:[%s8973_s29 + $0xd0] sm:$0xff] }
 0x232   : > { %7646 = vmatprep.subr.mxu0 %v4644_v26  ;;  %8350 = vmatprep.subr.mxu1 %v4644_v26 }
 0x234   : > { %2642 = vmatmul.mubr.f32.gmra.mxu1 %v2355_v22 }
 0x274   : > { %v7508_v30 = vpop.f32.mrf.mxu1 }
 0x276   : > { %v7509_v63 = vpop.f32.mrf.mxu1 }
 0x277   : > { %v10391_v21 = vadd.f32 %v7509_v63, %v7508_v30  ;;  %v10441_v30 = vadd.s32 16, %v9290_v7 }
 0x278   : > { %v7511_v15 = vpop.f32.mrf.mxu1 }
 0x279   : > { %12796 = vst [vmem:[#allocation18_spill] sm:$0xff] %v10441_v30 }
 0x27a   : > { %v7512_v42 = vpop.f32.mrf.mxu1 }
 0x27b   : > { %v10393_v14 = vadd.f32 %v7512_v42, %v7511_v15  ;;  %v12552_v42 = vand.u32 7, %v10437_v56 }
 0x27c   : > { %v7514_v5 = vpop.f32.mrf.mxu1 }
 0x27d   : > { %vm10457_vm3 = vcmp.ge.s32.totalorder %v12552_v42, 1 }
 0x27e   : > { %v7515_v45 = vpop.f32.mrf.mxu1  ;;  %v12799_v18 = vsel %vm10457_vm3, 4294967295, %v12798_v18 }
 0x27f   : > { %v10395_v34 = vadd.f32 %v7515_v45, %v7514_v5  ;;  %v12551_v5 = vand.u32 7, %v9290_v7  ;;  %v2865_v45 = vand.u32 7, %v10434_v47 }
 0x280   : > { %v7517_v43 = vpop.f32.mrf.mxu1 }
 0x281   : > { %vm10466_vm4 = vcmp.lt.s32.totalorder %v12551_v5, 7  ;;  %vm10470_vm5 = vcmp.ge.s32.totalorder %v2865_v45, 1  ;;  %vm10491_vm10 = vcmp.lt.s32.totalorder %v2865_v45, 7 }
 0x282   : > { %v7518_v31 = vpop.f32.mrf.mxu1 }
 0x283   : > { %v10397_v11 = vadd.f32 %v7518_v31, %v7517_v43  ;;  %v2729_v43 = vand.u32 63, %v10437_v56 }
 0x284   : > { %v7520_v48 = vpop.f32.mrf.mxu1 }
 0x286   : > { %v7521_v28 = vpop.f32.mrf.mxu1 }
 0x287   : > { %v10399_v12 = vadd.f32 %v7521_v28, %v7520_v48  ;;  %v2872_v28 = vand.u32 7, %v10441_v30 }
 0x289   : > { %vm10477_vm7 = vcmp.ge.s32.totalorder %v2872_v28, 1  ;;  %vm10530_vm12 = vcmp.lt.s32.totalorder %v2872_v28, 7  ;;  %v4642_v28 = vld [vmem:[%s8973_s29 + $0xc0] sm:$0xff] }
 0x28a   : > { %v7523_v33 = vpop.f32.mrf.mxu1 }
 0x28c   : > { %v7524_v62 = vpop.f32.mrf.mxu1 }
 0x28d   : > { %v10401_v1 = vadd.f32 %v7524_v62, %v7523_v33  ;;  %v10452_v33 = vadd.s32 24, %v9290_v7  ;;  %v4628_v62 = vld [vmem:[%s8973_s29 + $0x50] sm:$0xff] }
 0x28e   : > { %7647 = vmatpush3.msra.mxu0 %v4628_v62  ;;  %8366 = vmatpush3.msra.mxu1 %v4628_v62 }
 0x28f   : > { %v7526_v0 = vpop.f32.mrf.mxu1  ;;  %12797 = vst [vmem:[#allocation31_spill] sm:$0xff] %v10452_v33 }
 0x291   : > { %v7527_v55 = vpop.f32.mrf.mxu1 }
 0x292   : > { %v10405_v20 = vadd.f32 %v7527_v55, %v7526_v0  ;;  %v3120_v55 = vadd.s32 4294967287, %v2729_v43  ;;  %v12556_v43 = vand.u32 7, %v10509_v32 }
 0x294   : > { %v7529_v46 = vpop.f32.mrf.mxu1  ;;  %vm3136_vm8 = vcmp.ge.s32.totalorder %v3120_v55, 0  ;;  %vm10588_vm13 = vcmp.ge.s32.totalorder %v12556_v43, 1  ;;  %v4624_v43 = vld [vmem:[%s8973_s29 + $0x30] sm:$0xff] }
 0x295   : > { %vm10487_vm9 = vmand %vm3136_vm8, %vm10457_vm3  ;;  %vm12927_vm3 = vcmp.lt.s32.totalorder %v9290_v7, 1 }
 0x296   : > { %v7530_v38 = vpop.f32.mrf.mxu1  ;;  %v12809_v60 = vsel %vm10487_vm9, 4294967295, %v12808_v60 }
 0x297   : > { %v10407_v53 = vadd.f32 %v7530_v38, %v7529_v46  ;;  %v12800_v46 = vmov 0  ;;  %v12802_v38 = vmov 0  ;;  %12810 = vst [vmem:[#allocation28_spill] sm:$0xff] %v12809_v60  ;;  %v10836_v60 = vadd.s32 112, %v9290_v7 }
 0x298   : > { %v7532_v24 = vpop.f32.mrf.mxu1  ;;  %v12801_v46 = vsel %vm10466_vm4, 4294967295, %v12800_v46  ;;  %v12803_v38 = vsel %vm10470_vm5, 4294967295, %v12802_v38 }
 0x299   : > { %12804 = vst [vmem:[#allocation21_spill] sm:$0xff] %v12803_v38 }
 0x29a   : > { %v7533_v58 = vpop.f32.mrf.mxu1 }
 0x29b   : > { %v10411_v54 = vadd.f32 %v7533_v58, %v7532_v24  ;;  %v4643_v24 = vld [vmem:[%s8973_s29 + $0xc8] sm:$0xff]  ;;  %v12805_v58 = vmov 0 }
 0x29c   : > { %v7535_v37 = vpop.f32.mrf.mxu1  ;;  %v12806_v58 = vsel %vm10477_vm7, 4294967295, %v12805_v58  ;;  %7648 = vmatprep.subr.mxu0 %v4643_v24  ;;  %8351 = vmatprep.subr.mxu1 %v4643_v24 }
 0x29d   : > { %12807 = vst [vmem:[#allocation19_spill] sm:$0xff] %v12806_v58 }
 0x29e   : > { %v7536_v27 = vpop.f32.mrf.mxu1 }
 0x29f   : > { %v10413_v35 = vadd.f32 %v7536_v27, %v7535_v37 }
 0x2a0   : > { %v7538_v36 = vpop.f32.mrf.mxu1 }
 0x2a2   : > { %v7539_v19 = vpop.f32.mrf.mxu1 }
 0x2a3   : > { %v10417_v6 = vadd.f32 %v7539_v19, %v7538_v36 }
 0x2a4   : > { %v7541_v59 = vpop.f32.mrf.mxu1 }
 0x2a6   : > { %v7542_v41 = vpop.f32.mrf.mxu1 }
 0x2a7   : > { %v10419_v44 = vadd.f32 %v7542_v41, %v7541_v59  ;;  %v12811_v59 = vmov 0 }
 0x2a8   : > { %v7544_v3 = vpop.f32.mrf.mxu1  ;;  %v12812_v59 = vsel %vm10491_vm10, 4294967295, %v12811_v59 }
 0x2a9   : > { %12813 = vst [vmem:[#allocation22_spill] sm:$0xff] %v12812_v59  ;;  %v2666_v59 = vand.u32 63, %v9290_v7 }
 0x2aa   : > { %v7545_v10 = vpop.f32.mrf.mxu1 }
 0x2ab   : > { %v10423_v52 = vadd.f32 %v7545_v10, %v7544_v3  ;;  %v4627_v10 = vld [vmem:[%s8973_s29 + $0x48] sm:$0xff] }
 0x2ac   : > { %v7547_v25 = vpop.f32.mrf.mxu1  ;;  %7649 = vmatpush3.msra.mxu0 %v4627_v10  ;;  %8367 = vmatpush3.msra.mxu1 %v4627_v10 }
 0x2ad   : > { %7650 = vmatprep.subr.mxu0 %v4642_v28  ;;  %8352 = vmatprep.subr.mxu1 %v4642_v28 }
 0x2ae   : > { %v7548_v23 = vpop.f32.mrf.mxu1 }
 0x2af   : > { %v10425_v50 = vadd.f32 %v7548_v23, %v7547_v25 }
 0x2b0   : > { %v7550_v49 = vpop.f32.mrf.mxu1 }
 0x2b2   : > { %v7551_v9 = vpop.f32.mrf.mxu1 }
 0x2b3   : > { %v10429_v29 = vadd.f32 %v7551_v9, %v7550_v49  ;;  %v12554_v9 = vmov 0.0  }
 0x2b4   : > { %v7553_v61 = vpop.f32.mrf.mxu1 }
 0x2b6   : > { %v7554_v16 = vpop.f32.mrf.mxu1 }
 0x2b7   : > { %v10431_v8 = vadd.f32 %v7554_v16, %v7553_v61 }
 0x2b8   : > { %v7588_v39 = vpop.f32.mrf.mxu1 }
 0x2ba   : > { %v7589_v22 = vpop.f32.mrf.mxu1 }
 0x2bb   : > { %v7590_v63 = vadd.f32 %v7589_v22, %v7588_v39 }
 0x2bc   : > { %v7591_v15 = vpop.f32.mrf.mxu1 }
 0x2bd   : > { %v10448_v31 = vadd.f32 %v7590_v63, %v10391_v21  ;;  %v12818_v63 = vmov 0 }
 0x2be   : > { %v7592_v48 = vpop.f32.mrf.mxu1  ;;  %v12819_v63 = vsel %vm10530_vm12, 4294967295, %v12818_v63 }
 0x2bf   : > { %v7593_v0 = vadd.f32 %v7592_v48, %v7591_v15  ;;  %v12550_v57 = vrot.slane %v10448_v31, 1  ;;  %v12549_v36 = vrot.slane %v10448_v31, 7  ;;  %12820 = vst [vmem:[#allocation20_spill] sm:$0xff] %v12819_v63  ;;  %v10545_v48 = vadd.s32 40, %v9290_v7 }
 0x2c0   : > { %v7594_v40 = vpop.f32.mrf.mxu1 }
 0x2c1   : > { %v10462_v21 = vadd.f32 %v7593_v0, %v10393_v14  ;;  %v2879_v14 = vand.u32 7, %v10452_v33  ;;  %v4639_v33 = vld [vmem:[%s8973_s29 + $0xa8] sm:$0xff] }
 0x2c2   : > { %v7595_v4 = vpop.f32.mrf.mxu1 }
 0x2c3   : > { %v7596_v37 = vadd.f32 %v7595_v4, %v7594_v40  ;;  %v3352_v27 = vrot.slane %v10462_v21, 1  ;;  %v3079_v51 = vrot.slane %v10462_v21, 7  ;;  %vm10522_vm11 = vcmp.ge.s32.totalorder %v2879_v14, 1 }
 0x2c4   : > { %v7597_v19 = vpop.f32.mrf.mxu1  ;;  %v12816_v2 = vsel %vm10522_vm11, 4294967295, %v12815_v2  ;;  %vm10620_vm14 = vcmp.lt.s32.totalorder %v2879_v14, 7 }
 0x2c5   : > { %v10496_v41 = vadd.f32 %v7596_v37, %v10395_v34  ;;  %v3381_v3 = vsel %vm12561_vm2, %v12550_v57, %v3352_v27  ;;  %v10506_v17 = vsel %vm12560_vm6, %v12549_v36, %v3079_v51  ;;  %12817 = vst [vmem:[#allocation29_spill] sm:$0xff] %v12816_v2  ;;  %v4625_v57 = vld [vmem:[%s8973_s29 + $0x38] sm:$0xff]  ;;  %v10878_v2 = vadd.s32 4294967289, %v2666_v59 }
 0x2c6   : > { %v7598_v25 = vpop.f32.mrf.mxu1  ;;  %v3751_v34 = vsel %vm10466_vm4, %v3381_v3, 0.0  ;;  %v3624_v23 = vsel %vm10470_vm5, %v10506_v17, 0.0 }
 0x2c7   : > { %12814 = vst [vmem:[#allocation15_spill] sm:$0xff] %v10496_v41  ;;  %v7599_v13 = vadd.f32 %v7598_v25, %v7597_v19  ;;  %v8420_v61 = vpack.i.bf16 %v12554_v9, %v3751_v34  ;;  %v8425_v16 = vpack.i.bf16 %v3624_v23, %v10496_v41  ;;  %v3080_v39 = vrot.slane %v10496_v41, 7  ;;  %v4626_v23 = vld [vmem:[%s8973_s29 + $0x40] sm:$0xff] }
 0x2c8   : > { %v7600_v26 = vpop.f32.mrf.mxu1  ;;  %v3353_v22 = vrot.slane %v10496_v41, 1  ;;  %7651 = vmatpush3.msra.mxu0 %v4626_v23  ;;  %8368 = vmatpush3.msra.mxu1 %v4626_v23 }
 0x2c9   : > { %v10535_v15 = vadd.f32 %v7599_v13, %v10397_v11  ;;  %8421 = vrot.lane.b32.xlu0 %v8420_v61, %s8930_s11  ;;  %8426 = vrot.lane.b32.xlu1 %v8425_v16, %s8931_s4  ;;  %v10541_v45 = vsel %vm12560_vm6, %v3079_v51, %v3080_v39  ;;  %v3496_v11 = vsel %vm10491_vm10, %v3381_v3, 0.0  ;;  %v10564_v51 = vadd.s32 48, %v9290_v7 }
 0x2ca   : > { %12822 = vst [vmem:[#allocation27_spill] sm:$0xff] %v10541_v45  ;;  %v7601_v62 = vpop.f32.mrf.mxu1  ;;  %v3880_v0 = vsel %vm10470_vm5, %v10541_v45, 0.0  ;;  %v10555_v40 = vsel %vm12561_vm2, %v3352_v27, %v3353_v22  ;;  %v3625_v3 = vsel %vm10477_vm7, %v10541_v45, 0.0  ;;  %v2956_v45 = vand.u32 7, %v10836_v60 }
 0x2cb   : > { %12821 = vst [vmem:[#allocation16_spill] sm:$0xff] %v10535_v15  ;;  %12823 = vst [vmem:[#allocation25_spill] sm:$0xff] %v10555_v40  ;;  %v7602_v24 = vadd.f32 %v7601_v62, %v7600_v26  ;;  %v8435_v4 = vpack.i.bf16 %v3496_v11, %v3880_v0  ;;  %v3752_v37 = vsel %vm10491_vm10, %v10555_v40, 0.0  ;;  %v3081_v10 = vrot.slane %v10535_v15, 7 }
 0x2cc   : > { %v7603_v19 = vpop.f32.mrf.mxu1  ;;  %v8430_v27 = vpack.i.bf16 %v10448_v31, %v3752_v37  ;;  %v3354_v25 = vrot.slane %v10535_v15, 1  ;;  %v12553_v26 = vand.u32 7, %v10545_v48  ;;  %v8440_v11 = vpack.i.bf16 %v3625_v3, %v10535_v15 }
 0x2cd   : > { %v10573_v34 = vadd.f32 %v7602_v24, %v10399_v12  ;;  %8436 = vrot.lane.b32.xlu0 %v8435_v4, %s8932_s15  ;;  %v10580_v61 = vsel %vm12560_vm6, %v3080_v39, %v3081_v10  ;;  %v3497_v39 = vsel %vm10530_vm12, %v10555_v40, 0.0  ;;  %v2900_v37 = vand.u32 7, %v10564_v51 }
 0x2ce   : > { %8431 = vrot.lane.b32.xlu1 %v8430_v27, %s8930_s11  ;;  %v7604_v13 = vpop.f32.mrf.mxu1  ;;  %12825 = vst [vmem:[#allocation23_spill] sm:$0xff] %v10580_v61  ;;  %v10584_v16 = vsel %vm12561_vm2, %v3353_v22, %v3354_v25  ;;  %v3881_v22 = vsel %vm10477_vm7, %v10580_v61, 0.0  ;;  %v3626_v3 = vsel %vm10522_vm11, %v10580_v61, 0.0  ;;  %vm10630_vm15 = vcmp.ge.s32.totalorder %v12553_v26, 1 }
 0x2cf   : > { %12824 = vst [vmem:[#allocation26_spill] sm:$0xff] %v10573_v34  ;;  %12826 = vst [vmem:[#allocation24_spill] sm:$0xff] %v10584_v16  ;;  %v7605_v28 = vadd.f32 %v7604_v13, %v7603_v19  ;;  %v8450_v0 = vpack.i.bf16 %v3497_v39, %v3881_v22  ;;  %v3753_v24 = vsel %vm10530_vm12, %v10584_v16, 0.0  ;;  %v3082_v4 = vrot.slane %v10573_v34, 7  ;;  %v4641_v19 = vld [vmem:[%s8973_s29 + $0xb8] sm:$0xff] }
 0x2d0   : > { %v7606_v62 = vpop.f32.mrf.mxu1  ;;  %v3355_v23 = vrot.slane %v10573_v34, 1  ;;  %7652 = vmatprep.subr.mxu0 %v4641_v19  ;;  %8353 = vmatprep.subr.mxu1 %v4641_v19  ;;  %v8445_v14 = vpack.i.bf16 %v10462_v21, %v3753_v24  ;;  %v8455_v49 = vpack.i.bf16 %v3626_v3, %v10573_v34  ;;  %vm10656_vm1 = vcmp.ge.s32.totalorder %v2900_v37, 1 }
 0x2d1   : > { %v10607_v27 = vadd.f32 %v7605_v28, %v10401_v1  ;;  %8441 = vrot.lane.b32.xlu0 %v8440_v11, %s8931_s4  ;;  %v12830_v1 = vmov 0  ;;  %v10626_v28 = vsel %vm12560_vm6, %v3081_v10, %v3082_v4  ;;  %v12837_v24 = vmov 0  ;;  %7653 = vmatpush3.msra.mxu0 %v4625_v57 }
 0x2d2   : > { %8451 = vrot.lane.b32.xlu1 %v8450_v0, %s8932_s15  ;;  %v7607_v39 = vpop.f32.mrf.mxu1  ;;  %v12831_v1 = vsel %vm10620_vm14, 4294967295, %v12830_v1  ;;  %12833 = vst [vmem:[#allocation34_spill] sm:$0xff] %v10626_v28  ;;  %v10640_v13 = vsel %vm12561_vm2, %v3354_v25, %v3355_v23  ;;  %v3882_v19 = vsel %vm10522_vm11, %v10626_v28, 0.0  ;;  %v12838_v24 = vsel %vm10656_vm1, 4294967295, %v12837_v24  ;;  %8369 = vmatpush3.msra.mxu1 %v4625_v57  ;;  %v4640_v57 = vld [vmem:[%s8973_s29 + $0xb0] sm:$0xff] }
 0x2d3   : > { %12829 = vst [vmem:[#allocation32_spill] sm:$0xff] %v10607_v27  ;;  %12832 = vst [vmem:[#allocation33_spill] sm:$0xff] %v12831_v1  ;;  %v7608_v0 = vadd.f32 %v7607_v39, %v7606_v62  ;;  %v3083_v10 = vrot.slane %v10607_v27, 7  ;;  %v3356_v36 = vrot.slane %v10607_v27, 1  ;;  %v3754_v25 = vsel %vm10620_vm14, %v10640_v13, 0.0  ;;  %7654 = vmatprep.subr.mxu0 %v4640_v57  ;;  %8354 = vmatprep.subr.mxu1 %v4640_v57 }
 0x2d4   : > { %12836 = vst [vmem:[#allocation35_spill] sm:$0xff] %v10640_v13  ;;  %v7609_v55 = vpop.f32.mrf.mxu1  ;;  %12839 = vst [vmem:[#allocation36_spill] sm:$0xff] %v12838_v24  ;;  %v3498_v39 = vsel %vm10620_vm14, %v10584_v16, 0.0  ;;  %v8460_v26 = vpack.i.bf16 %v10496_v41, %v3754_v25  ;;  %v4623_v25 = vld [vmem:[%s8973_s29 + $0x28] sm:$0xff]  ;;  %vm10702_vm8 = vcmp.lt.s32.totalorder %v2900_v37, 7  ;;  %7655 = vmatpush3.msra.mxu0 %v4624_v43  ;;  %8370 = vmatpush3.msra.mxu1 %v4624_v43  ;;  %vm12851_vm14 = vcmp.lt.s32.totalorder %v9290_v7, 7 }
 0x2d5   : > { %v10650_v62 = vadd.f32 %v7608_v0, %v10405_v20  ;;  %8446 = vrot.lane.b32.xlu0 %v8445_v14, %s8930_s11  ;;  %v10662_v3 = vsel %vm12560_vm6, %v3082_v4, %v3083_v10  ;;  %v2708_v14 = vand.u32 63, %v10564_v51  ;;  %v8465_v4 = vpack.i.bf16 %v3498_v39, %v3882_v19  ;;  %7656 = vmatprep.subr.mxu0 %v4639_v33 }
 0x2d6   : > { %8456 = vrot.lane.b32.xlu1 %v8455_v49, %s8931_s4  ;;  %v7610_v20 = vpop.f32.mrf.mxu1  ;;  %v10677_v9 = vsel %vm12561_vm2, %v3355_v23, %v3356_v36  ;;  %v12844_v39 = vmov 0  ;;  %7657 = vmatpush3.msra.mxu0 %v4623_v25  ;;  %vm12891_vm11 = vcmp.lt.s32.totalorder %v9290_v7, 1  ;;  %vm10934_vm5 = vcmp.ge.s32.totalorder %v2956_v45, 1 }
 0x2d7   : > { %v7611_v22 = vadd.f32 %v7610_v20, %v7609_v55  ;;  %v3084_v5 = vrot.slane %v10650_v62, 7  ;;  %v3357_v42 = vrot.slane %v10650_v62, 1  ;;  %v12846_v20 = vmov 0.0   ;;  %8355 = vmatprep.subr.mxu1 %v4639_v33 }
 0x2d8   : > { %v7612_v49 = vpop.f32.mrf.mxu1  ;;  %v8470_v55 = vpack.i.bf16 %v12846_v20, %v10650_v62  ;;  %8371 = vmatpush3.msra.mxu1 %v4623_v25 }
 0x2d9   : > { %v10686_v51 = vadd.f32 %v7611_v22, %v10407_v53  ;;  %8466 = vrot.lane.b32.xlu0 %v8465_v4, %s8932_s15  ;;  %v10691_v19 = vsel %vm12560_vm6, %v3083_v10, %v3084_v5  ;;  %v10695_v23 = vsel %vm12561_vm2, %v3356_v36, %v3357_v42  ;;  %v12843_v10 = vand.u32 7, %v10509_v32 }
 0x2da   : > { %8461 = vrot.lane.b32.xlu1 %v8460_v26, %s8930_s11  ;;  %v7613_v53 = vpop.f32.mrf.mxu1  ;;  %v4013_v36 = vadd.s32 9, %v2708_v14  ;;  %v3629_v32 = vsel %vm10656_vm1, %v10691_v19, 0.0  ;;  %v12858_v22 = vmov 0 }
 0x2db   : > { %12840 = vst [vmem:[#allocation37_spill] sm:$0xff] %v10686_v51  ;;  %vm10708_vm0 = vcmp.lt.s32.totalorder %v12843_v10, 7  ;;  %v3358_v4 = vrot.slane %v10686_v51, 1  ;;  %v7614_v0 = vadd.f32 %v7613_v53, %v7612_v49  ;;  %v3085_v26 = vrot.slane %v10686_v51, 7 }
 0x2dc   : > { %v12845_v39 = vsel %vm10708_vm0, 4294967295, %v12844_v39  ;;  %v7615_v37 = vpop.f32.mrf.mxu1  ;;  %v10738_v10 = vadd.s32 80, %v9290_v7  ;;  %v8475_v49 = vpack.i.bf16 %v3629_v32, %v10686_v51  ;;  %vm12853_vm12 = vcmp.lt.s32.totalorder %v4013_v36, 64 }
 0x2dd   : > { %v10726_v53 = vadd.f32 %v7614_v0, %v10411_v54  ;;  %8471 = vrot.lane.b32.xlu0 %v8470_v55, %s8931_s4  ;;  %v10731_v57 = vsel %vm12560_vm6, %v3084_v5, %v3085_v26  ;;  %v10735_v43 = vsel %vm12561_vm2, %v3357_v42, %v3358_v4  ;;  %v3501_v54 = vsel %vm10702_vm8, %v10695_v23, 0.0  ;;  %vm10783_vm10 = vmand %vm12853_vm12, %vm10702_vm8 }
 0x2de   : > { %v7616_v14 = vpop.f32.mrf.mxu1  ;;  %v3885_v0 = vsel %vm10656_vm1, %v10731_v57, 0.0  ;;  %v12847_v5 = vand.u32 7, %v10545_v48  ;;  %v3757_v63 = vsel %vm10702_vm8, %v10735_v43, 0.0  ;;  %vm12850_vm2 = vcmp.lt.s32.totalorder %v9290_v7, 1 }
 0x2df   : > { %v3086_v42 = vrot.slane %v10726_v53, 7  ;;  %v7617_v33 = vadd.f32 %v7616_v14, %v7615_v37  ;;  %v8485_v30 = vpack.i.bf16 %v3501_v54, %v3885_v0  ;;  %v12570_v16 = vrot.slane %v10726_v53, 1 }
 0x2e0   : > { %vm10748_vm6 = vcmp.lt.s32.totalorder %v12847_v5, 7  ;;  %v7618_v1 = vpop.f32.mrf.mxu1  ;;  %v2928_v32 = vand.u32 7, %v10738_v10  ;;  %v10772_v14 = vadd.s32 88, %v9290_v7  ;;  %v8480_v10 = vpack.i.bf16 %v10607_v27, %v3757_v63 }
 0x2e1   : > { %v10762_v25 = vadd.f32 %v7617_v33, %v10413_v35  ;;  %8476 = vrot.lane.b32.xlu0 %v8475_v49, %s8931_s4  ;;  %8486 = vrot.lane.b32.xlu1 %v8485_v30, %s8932_s15  ;;  %v10768_v37 = vsel %vm12850_vm2, %v3085_v26, %v3086_v42  ;;  %v10778_v35 = vsel %vm12851_vm14, %v3358_v4, %v12570_v16  ;;  %v12854_v30 = vmov 0  ;;  %v4638_v16 = vld [vmem:[%s8973_s29 + $0xa0] sm:$0xff] }
 0x2e2   : > { %v7619_v54 = vpop.f32.mrf.mxu1  ;;  %12852 = vst [vmem:[#allocation38_spill] sm:$0xff] %v10778_v35  ;;  %v12855_v30 = vsel %vm10783_vm10, 4294967295, %v12854_v30  ;;  %vm10796_vm2 = vcmp.ge.s32.totalorder %v2928_v32, 1  ;;  %v12572_v36 = vand.u32 7, %v10772_v14  ;;  %vm12861_vm12 = vcmp.lt.s32.totalorder %v9290_v7, 1  ;;  %7658 = vmatprep.subr.mxu0 %v4638_v16  ;;  %8356 = vmatprep.subr.mxu1 %v4638_v16 }
 0x2e3   : > { %12856 = vst [vmem:[#allocation39_spill] sm:$0xff] %v12855_v30  ;;  %v7620_v49 = vadd.f32 %v7619_v54, %v7618_v1  ;;  %v3087_v5 = vrot.slane %v10762_v25, 7  ;;  %v12859_v22 = vsel %vm10796_vm2, 4294967295, %v12858_v22  ;;  %v10825_v1 = vadd.s32 104, %v9290_v7  ;;  %vm12867_vm8 = vmmov %vm12861_vm12 }
 0x2e4   : > { %v7621_v0 = vpop.f32.mrf.mxu1  ;;  %12860 = vst [vmem:[#allocation41_spill] sm:$0xff] %v12859_v22  ;;  %vm10820_vm14 = vcmp.ge.s32.totalorder %v12572_v36, 1  ;;  %v12871_v16 = vmov 0  ;;  %vm12876_vm10 = vcmp.lt.s32.totalorder %v9290_v7, 1 }
 0x2e5   : > { %v10793_v4 = vadd.f32 %v7620_v49, %v10417_v6  ;;  %8481 = vrot.lane.b32.xlu0 %v8480_v10, %s8930_s11  ;;  %v10806_v33 = vsel %vm12861_vm12, %v3086_v42, %v3087_v5  ;;  %v10809_v6 = vadd.s32 96, %v9290_v7  ;;  %v12864_v42 = vmov 0 }
 0x2e6   : > { %v7622_v63 = vpop.f32.mrf.mxu1  ;;  %12862 = vst [vmem:[#allocation42_spill] sm:$0xff] %v10806_v33  ;;  %v12865_v42 = vsel %vm10820_vm14, 4294967295, %v12864_v42 }
 0x2e7   : > { %12857 = vst [vmem:[#allocation40_spill] sm:$0xff] %v10793_v4  ;;  %v7623_v54 = vadd.f32 %v7622_v63, %v7621_v0  ;;  %v3088_v10 = vrot.slane %v10793_v4, 7  ;;  %12866 = vst [vmem:[#allocation44_spill] sm:$0xff] %v12865_v42 }
 0x2e8   : > { %v7624_v49 = vpop.f32.mrf.mxu1 }
 0x2e9   : > { %v10816_v26 = vadd.f32 %v7623_v54, %v10419_v44  ;;  %v10829_v63 = vsel %vm12867_vm8, %v3087_v5, %v3088_v10  ;;  %v12580_v54 = vrot.slane %v10793_v4, 1  ;;  %v4622_v5 = vld [vmem:[%s8973_s29 + $0x20] sm:$0xff]  ;;  %vm12874_vm8 = vcmp.lt.s32.totalorder %v9290_v7, 7 }
 0x2ea   : > { %v7625_v0 = vpop.f32.mrf.mxu1  ;;  %12868 = vst [vmem:[#allocation45_spill] sm:$0xff] %v10829_v63  ;;  %7659 = vmatpush3.msra.mxu0 %v4622_v5  ;;  %8372 = vmatpush3.msra.mxu1 %v4622_v5 }
 0x2eb   : > { %12863 = vst [vmem:[#allocation43_spill] sm:$0xff] %v10816_v26  ;;  %v7626_v44 = vadd.f32 %v7625_v0, %v7624_v49  ;;  %v3362_v30 = vrot.slane %v10816_v26, 1  ;;  %v3089_v51 = vrot.slane %v10816_v26, 7  ;;  %v12870_v0 = vand.u32 7, %v10437_v56 }
 0x2ec   : > { %v7627_v36 = vpop.f32.mrf.mxu1 }
 0x2ed   : > { %v10845_v49 = vadd.f32 %v7626_v44, %v10423_v52  ;;  %vm10849_vm12 = vcmp.lt.s32.totalorder %v12870_v0, 7  ;;  %v10857_v24 = vsel %vm12874_vm8, %v12580_v54, %v3362_v30  ;;  %v10861_v52 = vadd.s32 56, %v9290_v7 }
 0x2ee   : > { %v12872_v16 = vsel %vm10849_vm12, 4294967295, %v12871_v16  ;;  %12875 = vst [vmem:[#allocation48_spill] sm:$0xff] %v10857_v24  ;;  %v7628_v48 = vpop.f32.mrf.mxu1  ;;  %v10865_v56 = vsel %vm12876_vm10, %v3088_v10, %v3089_v51  ;;  %v12878_v44 = vand.u32 7, %v10809_v6  ;;  %v12879_v0 = vmov 0 }
 0x2ef   : > { %12869 = vst [vmem:[#allocation46_spill] sm:$0xff] %v10845_v49  ;;  %12873 = vst [vmem:[#allocation47_spill] sm:$0xff] %v12872_v16  ;;  %v7629_v5 = vadd.f32 %v7628_v48, %v7627_v36  ;;  %v12590_v61 = vrot.slane %v10845_v49, 1  ;;  %vm10880_vm10 = vcmp.lt.s32.totalorder %v2928_v32, 7  ;;  %v12882_v10 = vmov 0 }
 0x2f0   : > { %12877 = vst [vmem:[#allocation49_spill] sm:$0xff] %v10865_v56  ;;  %vm10869_vm9 = vcmp.ge.s32.totalorder %v12878_v44, 1  ;;  %v7630_v40 = vpop.f32.mrf.mxu1  ;;  %v12883_v10 = vsel %vm10880_vm10, 4294967295, %v12882_v10  ;;  %v3090_v44 = vrot.slane %v10845_v49, 7  ;;  %v12887_v36 = vand.u32 7, %v10825_v1  ;;  %v4619_v56 = vld [vmem:[%s8973_s29 + $0x8] sm:$0xff] }
 0x2f1   : > { %v12880_v0 = vsel %vm10869_vm9, 4294967295, %v12879_v0  ;;  %12884 = vst [vmem:[#allocation51_spill] sm:$0xff] %v12883_v10  ;;  %v10886_v58 = vadd.f32 %v7629_v5, %v10425_v50  ;;  %v10892_v48 = vsel %vm12874_vm8, %v3362_v30, %v12590_v61  ;;  %v12888_v54 = vmov 0  ;;  %v4637_v30 = vld [vmem:[%s8973_s29 + $0x98] sm:$0xff] }
 0x2f2   : > { %12881 = vst [vmem:[#allocation50_spill] sm:$0xff] %v12880_v0  ;;  %12886 = vst [vmem:[#allocation53_spill] sm:$0xff] %v10892_v48  ;;  %vm10896_vm1 = vcmp.ge.s32.totalorder %v12887_v36, 1  ;;  %v7631_v41 = vpop.f32.mrf.mxu1  ;;  %v2715_v50 = vand.u32 63, %v10861_v52  ;;  %v10907_v38 = vsel %vm12891_vm11, %v3089_v51, %v3090_v44  ;;  %v12893_v32 = vand.u32 7, %v9290_v7  ;;  %7660 = vmatprep.subr.mxu0 %v4637_v30  ;;  %8357 = vmatprep.subr.mxu1 %v4637_v30 }
 0x2f3   : > { %12885 = vst [vmem:[#allocation52_spill] sm:$0xff] %v10886_v58  ;;  %v12889_v54 = vsel %vm10896_vm1, 4294967295, %v12888_v54  ;;  %12892 = vst [vmem:[#allocation55_spill] sm:$0xff] %v10907_v38  ;;  %v7632_v61 = vadd.f32 %v7631_v41, %v7630_v40  ;;  %v8490_v47 = vpack.i.bf16 %v10886_v58, %v10535_v15  ;;  %v3091_v5 = vrot.slane %v10886_v58, 7  ;;  %v4636_v38 = vld [vmem:[%s8973_s29 + $0x90] sm:$0xff] }
 0x2f4   : > { %12890 = vst [vmem:[#allocation54_spill] sm:$0xff] %v12889_v54  ;;  %vm10917_vm8 = vcmp.ge.s32.totalorder %v12893_v32, 1  ;;  %v7633_v51 = vpop.f32.mrf.mxu1  ;;  %vm10922_vm11 = vcmp.lt.s32.totalorder %v2956_v45, 7  ;;  %v3511_v41 = vadd.s32 4294967295, %v2666_v59  ;;  %vm12900_vm9 = vcmp.lt.s32.totalorder %v9290_v7, 1 }
 0x2f5   : > { %v10931_v32 = vadd.f32 %v7632_v61, %v10429_v29  ;;  %8491 = vrot.lane.b32.xlu1 %v8490_v47, %s8930_s11  ;;  %v10940_v36 = vsel %vm12900_vm9, %v3090_v44, %v3091_v5  ;;  %v2764_v59 = vand.u32 63, %v10836_v60  ;;  %v3364_v54 = vrot.slane %v10886_v58, 1  ;;  %v4621_v61 = vld [vmem:[%s8973_s29 + $0x18] sm:$0xff] }
 0x2f6   : > { %v7634_v15 = vpop.f32.mrf.mxu1  ;;  %v12901_v40 = vand.u32 7, %v10861_v52  ;;  %v3774_v47 = vadd.s32 7, %v2715_v50  ;;  %v10951_v45 = vadd.s32 64, %v9290_v7  ;;  %7661 = vmatpush3.msra.mxu0 %v4621_v61  ;;  %8373 = vmatpush3.msra.mxu1 %v4621_v61  ;;  %v3646_v22 = vadd.s32 1, %v2715_v50 }
 0x2f7   : > { %v7635_v44 = vadd.f32 %v7634_v15, %v7633_v51  ;;  %v8495_v60 = vpack.i.bf16 %v10931_v32, %v10573_v34  ;;  %v3365_v26 = vrot.slane %v10931_v32, 1  ;;  %7662 = vmatprep.subr.mxu0 %v4636_v38  ;;  %v4635_v15 = vld [vmem:[%s8973_s29 + $0x88] sm:$0xff]  ;;  %8358 = vmatprep.subr.mxu1 %v4636_v38  ;;  %vm12904_vm1 = vcmp.lt.s32.totalorder %v9290_v7, 7 }
 0x2f8   : > { %vm10946_vm7 = vcmp.ge.s32.totalorder %v12901_v40, 1  ;;  %v4620_v40 = vld [vmem:[%s8973_s29 + $0x10] sm:$0xff]  ;;  %v12906_v61 = vrot.slane %v10931_v32, 7  ;;  %v4021_v48 = vadd.s32 9, %v2764_v59 }
 0x2f9   : > { %v10966_v51 = vadd.f32 %v7635_v44, %v10431_v8  ;;  %8496 = vrot.lane.b32.xlu1 %v8495_v60, %s8930_s11  ;;  %v10971_v58 = vsel %vm12904_vm1, %v3364_v54, %v3365_v26  ;;  %v3499_v8 = vsel %vm10708_vm0, %v10640_v13, 0.0  ;;  %v12907_v44 = vrot.slane %v10845_v49, 1  ;;  %7663 = vmatpush3.msra.mxu0 %v4620_v40 }
 0x2fa   : > { %12905 = vst [vmem:[#allocation56_spill] sm:$0xff] %v10971_v58  ;;  %v10977_v50 = vsel %vm12900_vm9, %v3091_v5, %v12906_v61  ;;  %v3509_v38 = vsel %vm10922_vm11, %v10971_v58, 0.0  ;;  %8374 = vmatpush3.msra.mxu1 %v4620_v40  ;;  %vm12909_vm9 = vcmp.ge.s32.totalorder %v10878_v2, 0  ;;  %7664 = vmatprep.subr.mxu0 %v4635_v15  ;;  %v3627_v2 = vsel %vm10588_vm13, %v10626_v28, 0.0 }
 0x2fb   : > { %v10990_v60 = vsel %vm12904_vm1, %v12907_v44, %v3364_v54  ;;  %v3366_v59 = vrot.slane %v10966_v51, 1  ;;  %v8505_v61 = vpack.i.bf16 %v10966_v51, %v10607_v27  ;;  %v8500_v13 = vpack.i.bf16 %v3509_v38, %v3499_v8  ;;  %vm11000_vm14 = vmand %vm12909_vm9, %vm10466_vm4  ;;  %v4634_v54 = vld [vmem:[%s8973_s29 + $0x80] sm:$0xff]  ;;  %8359 = vmatprep.subr.mxu1 %v4635_v15  ;;  %7665 = vmatpush3.msra.mxu0 %v4619_v56 }
 0x2fc   : > { %12908 = vst [vmem:[#allocation57_spill] sm:$0xff] %v10990_v60  ;;  %v3637_v40 = vsel %vm10934_vm5, %v10977_v50, 0.0  ;;  %vm12912_vm1 = vcmp.ge.s32.totalorder %v3511_v41, 0  ;;  %v12915_v38 = vand.u32 7, %v10772_v14  ;;  %v12916_v44 = vmov 0  ;;  %v4618_v15 = vld [vmem:[%s8973_s29] sm:$0xff]  ;;  %8375 = vmatpush3.msra.mxu1 %v4619_v56  ;;  %7666 = vmatprep.subr.mxu0 %v4634_v54 }
 0x2fd   : > { %vm11011_vm2 = vmand %vm12912_vm1, %vm10917_vm8  ;;  %8506 = vrot.lane.b32.xlu0 %v8505_v61, %s8931_s4  ;;  %8501 = vrot.lane.b32.xlu1 %v8500_v13, %s8932_s15  ;;  %v12919_v41 = vrot.slane %v10448_v31, 1  ;;  %vm12920_vm1 = vcmp.lt.s32.totalorder %v9290_v7, 7  ;;  %vm12922_vm9 = vcmp.lt.s32.totalorder %v3774_v47, 64  ;;  %v12926_v56 = vrot.slane %v10966_v51, 7 }
 0x2fe   : > { %vm11018_vm4 = vcmp.lt.s32.totalorder %v12915_v38, 7  ;;  %vm11034_vm10 = vmand %vm12922_vm9, %vm10946_vm7  ;;  %v12925_v38 = vrot.slane %v10448_v31, 7  ;;  %8360 = vmatprep.subr.mxu1 %v4634_v54  ;;  %v8510_v61 = vpack.i.bf16 %v3637_v40, %v3627_v2  ;;  %v12928_v27 = vand.u32 7, %v10861_v52  ;;  %7667 = vmatpush3.msra.mxu0 %v4618_v15 }
 0x2ff   : > { %v12917_v44 = vsel %vm11018_vm4, 4294967295, %v12916_v44  ;;  %v11029_v5 = vsel %vm12920_vm1, %v3366_v59, %v12919_v41  ;;  %vm4053_vm1 = vcmp.lt.s32.totalorder %v4021_v48, 64  ;;  %v3879_v41 = vsel %vm10917_vm8, %v10506_v17, 0.0  ;;  %8376 = vmatpush3.msra.mxu1 %v4618_v15 }
 0x300   : > { %12918 = vst [vmem:[#allocation58_spill] sm:$0xff] %v12917_v44  ;;  %12921 = vst [vmem:[#allocation59_spill] sm:$0xff] %v11029_v5  ;;  %v11044_v13 = vsel %vm12927_vm3, %v12926_v56, %v12925_v38  ;;  %v3495_v47 = vsel %vm11000_vm14, %v11029_v5, 0.0  ;;  %v11059_v38 = vadd.s32 120, %v9290_v7  ;;  %vm11063_vm3 = vcmp.lt.s32.totalorder %v12928_v27, 7 }
 0x301   : > { %v8515_v56 = vpack.i.bf16 %v3495_v47, %v3879_v41  ;;  %v3886_v0 = vsel %vm11034_vm10, %v10768_v37, 0.0  ;;  %v3623_v28 = vsel %vm11011_vm2, %v11044_v13, 0.0  ;;  %vm12931_vm14 = vcmp.lt.s32.totalorder %v9290_v7, 7  ;;  %vm11081_vm8 = vmand %vm4053_vm1, %vm10922_vm11  ;;  %8511 = vrot.lane.b32.xlu1 %v8510_v61, %s8931_s4 }
 0x302   : > { %v11075_v54 = vsel %vm12931_vm14, %v3365_v26, %v3366_v59  ;;  %v2722_v52 = vand.u32 63, %v10951_v45  ;;  %v12933_v27 = vmov 0  ;;  %v12936_v40 = vand.u32 7, %v10951_v45  ;;  %vm12942_vm10 = vmmov %vm12931_vm14 }
 0x303   : > { %12932 = vst [vmem:[#allocation60_spill] sm:$0xff] %v11075_v54  ;;  %v12934_v27 = vsel %vm11081_vm8, 4294967295, %v12933_v27  ;;  %8516 = vrot.lane.b32.xlu0 %v8515_v56, %s8932_s15  ;;  %v12937_v8 = vmov 0  ;;  %v12940_v26 = vrot.slane %v10762_v25, 1  ;;  %v12941_v59 = vrot.slane %v10726_v53, 1 }
 0x304   : > { %12935 = vst [vmem:[#allocation61_spill] sm:$0xff] %v12934_v27  ;;  %vm11089_vm2 = vcmp.lt.s32.totalorder %v12936_v40, 7  ;;  %vm12943_vm9 = vcmp.lt.s32.totalorder %v3646_v22, 64  ;;  %v12946_v15 = vand.u32 7, %v10809_v6  ;;  %v12947_v14 = vmov 0  ;;  %v12983_v6 = vld [vmem:[#allocation54_spill] sm:$0xff] }
 0x305   : > { %v12938_v8 = vsel %vm11089_vm2, 4294967295, %v12937_v8  ;;  %v11099_v48 = vsel %vm12942_vm10, %v12941_v59, %v12940_v26  ;;  %vm11104_vm1 = vmand %vm12943_vm9, %vm11063_vm3  ;;  %v3502_v61 = vsel %vm11063_vm3, %v10735_v43, 0.0  ;;  %v2771_v47 = vand.u32 63, %v11059_v38 }
 0x306   : > { %12939 = vst [vmem:[#allocation62_spill] sm:$0xff] %v12938_v8  ;;  %vm11110_vm14 = vcmp.lt.s32.totalorder %v12946_v15, 7  ;;  %v12950_v41 = vand.u32 7, %v10825_v1  ;;  %v12951_v22 = vmov 0  ;;  %v8530_v56 = vpack.i.bf16 %v3502_v61, %v3886_v0 }
 0x307   : > { %v12948_v14 = vsel %vm11110_vm14, 4294967295, %v12947_v14  ;;  %v8520_v40 = vpack.i.bf16 %v3623_v28, %v10462_v21  ;;  %v3759_v1 = vsel %vm11089_vm2, %v11099_v48, 0.0  ;;  %v3758_v59 = vsel %vm11104_vm1, %v10778_v35, 0.0 }
 0x308   : > { %12949 = vst [vmem:[#allocation63_spill] sm:$0xff] %v12948_v14  ;;  %vm11120_vm10 = vcmp.lt.s32.totalorder %v12950_v41, 7  ;;  %v3391_v15 = vadd.s32 4294967289, %v2722_v52  ;;  %8531 = vrot.lane.b32.xlu0 %v8530_v56, %s8932_s15  ;;  %v3654_v28 = vadd.s32 1, %v2771_v47  ;;  %v8540_v0 = vpack.i.bf16 %v12846_v20, %v3759_v1 }
 0x309   : > { %v12952_v22 = vsel %vm11120_vm10, 4294967295, %v12951_v22  ;;  %8521 = vrot.lane.b32.xlu1 %v8520_v40, %s8931_s4  ;;  %v8525_v61 = vpack.i.bf16 %v10650_v62, %v3758_v59  ;;  %v3765_v41 = vsel %vm10922_vm11, %v11075_v54, 0.0  ;;  %v3630_v26 = vsel %vm10946_vm7, %v10731_v57, 0.0 }
 0x30a   : > { %12953 = vst [vmem:[#allocation64_spill] sm:$0xff] %v12952_v22  ;;  %vm3407_vm3 = vcmp.ge.s32.totalorder %v3391_v15, 0  ;;  %v2963_v2 = vand.u32 7, %v11059_v38  ;;  %v12954_v56 = vrot.slane %v10966_v51, 7  ;;  %v12955_v40 = vrot.slane %v10931_v32, 7 }
 0x30b   : > { %vm12956_vm9 = vcmp.lt.s32.totalorder %v9290_v7, 1  ;;  %v3755_v1 = vsel %vm10708_vm0, %v10677_v9, 0.0  ;;  %vm3686_vm1 = vcmp.lt.s32.totalorder %v3654_v28, 64  ;;  %v3782_v38 = vadd.s32 7, %v2771_v47  ;;  %v11181_v47 = vld [vmem:[%s8973_s29 + $0x118] sm:$0xff] }
 0x30c   : > { %8541 = vrot.lane.b32.xlu0 %v8540_v0, %s8930_s11  ;;  %v3095_v42 = vsel %vm12956_vm9, %v12955_v40, %v12954_v56  ;;  %vm11162_vm11 = vcmp.lt.s32.totalorder %v2963_v2, 7  ;;  %v8550_v59 = vpack.i.bf16 %v3765_v41, %v3755_v1  ;;  %v8535_v15 = vpack.i.bf16 %v3630_v26, %v12846_v20  ;;  %vm3455_vm9 = vmand %vm3407_vm3, %vm11089_vm2  ;;  %8099 = vmatprep.subr.mxu1 %v11181_v47 }
 0x30d   : > { %8526 = vrot.lane.b32.xlu1 %v8525_v61, %s8930_s11  ;;  %v12959_v0 = vand.u32 7, %v10951_v45  ;;  %v3893_v56 = vsel %vm10934_vm5, %v3095_v42, 0.0  ;;  %vm11187_vm0 = vmand %vm3686_vm1, %vm11162_vm11  ;;  %v3883_v26 = vsel %vm10588_vm13, %v10662_v3, 0.0  ;;  %v3503_v41 = vsel %vm3455_vm9, %v10778_v35, 0.0 }
 0x30e   : > { %vm3814_vm3 = vcmp.lt.s32.totalorder %v3782_v38, 64  ;;  %v3519_v40 = vadd.s32 4294967295, %v2722_v52  ;;  %v8555_v1 = vpack.i.bf16 %v3893_v56, %v3883_v26  ;;  %vm11202_vm1 = vcmp.ge.s32.totalorder %v2963_v2, 1 }
 0x30f   : > { %vm11169_vm8 = vcmp.ge.s32.totalorder %v12959_v0, 1  ;;  %v3510_v0 = vsel %vm11162_vm11, %v11075_v54, 0.0  ;;  %vm3846_vm9 = vmand %vm3814_vm3, %vm11202_vm1  ;;  %v3756_v52 = vsel %vm10748_vm6, %v10695_v23, 0.0  ;;  %v3500_v57 = vsel %vm10748_vm6, %v10677_v9, 0.0 }
 0x310   : > { %v3887_v28 = vsel %vm11169_vm8, %v10806_v33, 0.0  ;;  %8551 = vrot.lane.b32.xlu0 %v8550_v59, %s8930_s11  ;;  %v8575_v38 = vpack.i.bf16 %v3510_v0, %v3500_v57  ;;  %v3894_v56 = vsel %vm3846_vm9, %v11044_v13, 0.0  ;;  %v12966_v45 = vrot.slane %v10793_v4, 1 }
 0x311   : > { %8536 = vrot.lane.b32.xlu1 %v8535_v15, %s8931_s4  ;;  %v8545_v59 = vpack.i.bf16 %v3503_v41, %v3887_v28  ;;  %v3766_v15 = vsel %vm11187_vm0, %v11029_v5, 0.0  ;;  %vm3535_vm0 = vcmp.ge.s32.totalorder %v3519_v40, 0  ;;  %v3638_v28 = vsel %vm11202_vm1, %v3095_v42, 0.0 }
 0x312   : > { %v8560_v2 = vpack.i.bf16 %v3766_v15, %v3756_v52  ;;  %vm3583_vm11 = vmand %vm3535_vm0, %vm11169_vm8  ;;  %v12967_v26 = vrot.slane %v10762_v25, 1  ;;  %vm12968_vm3 = vcmp.lt.s32.totalorder %v9290_v7, 7  ;;  %v3884_v40 = vsel %vm10630_vm15, %v10691_v19, 0.0 }
 0x313   : > { %v3628_v42 = vsel %vm10630_vm15, %v10662_v3, 0.0  ;;  %v3631_v61 = vsel %vm3583_vm11, %v10768_v37, 0.0  ;;  %vm12970_vm8 = vnez %v12799_v18  ;;  %vm12971_vm9 = vnez %v12883_v10 }
 0x314   : > { %8556 = vrot.lane.b32.xlu0 %v8555_v1, %s8932_s15  ;;  %v11229_v41 = vsel %vm12968_vm3, %v12967_v26, %v12966_v45  ;;  %v8565_v1 = vpack.i.bf16 %v3894_v56, %v3884_v40  ;;  %v8570_v0 = vpack.i.bf16 %v3631_v61, %v10762_v25  ;;  %v3888_v57 = vsel %vm12970_vm8, %v10829_v63, 0.0  ;;  %v12972_v26 = vld [vmem:[#allocation49_spill] sm:$0xff] }
 0x315   : > { %8546 = vrot.lane.b32.xlu1 %v8545_v59, %s8932_s15  ;;  %12969 = vst [vmem:[#allocation65_spill] sm:$0xff] %v11229_v41  ;;  %v8580_v59 = vpack.i.bf16 %v3638_v28, %v3628_v42  ;;  %v3760_v15 = vsel %vm10849_vm12, %v11229_v41, 0.0  ;;  %v3761_v45 = vsel %vm12971_vm9, %v10857_v24, 0.0  ;;  %v12973_v40 = vld [vmem:[#allocation41_spill] sm:$0xff]  ;;  %v3505_v42 = vsel %vm12971_vm9, %v11229_v41, 0.0 }
 0x316   : > { %v8585_v52 = vpack.i.bf16 %v10726_v53, %v3760_v15  ;;  %vm12974_vm0 = vnez %v12973_v40  ;;  %v12975_v61 = vld [vmem:[#allocation53_spill] sm:$0xff]  ;;  %vm4553_vm9 = vcmask 785408  }
 0x317   : > { %v3889_v18 = vsel %vm12974_vm0, %v12972_v26, 0.0  ;;  %v3762_v15 = vsel %vm11018_vm4, %v12975_v61, 0.0 }
 0x318   : > { %8561 = vrot.lane.b32.xlu0 %v8560_v2, %s8930_s11  ;;  %v3632_v2 = vsel %vm12970_vm8, %v10806_v33, 0.0  ;;  %vm12984_vm8 = vnez %v12983_v6 }
 0x319   : > { %8576 = vrot.lane.b32.xlu1 %v8575_v38, %s8932_s15  ;;  %v3504_v38 = vsel %vm10849_vm12, %v11099_v48, 0.0  ;;  %v8595_v28 = vpack.i.bf16 %v3632_v2, %v10793_v4  ;;  %v8600_v48 = vpack.i.bf16 %v10762_v25, %v3761_v45  ;;  %v12977_v2 = vld [vmem:[#allocation55_spill] sm:$0xff]  ;;  %v3506_v45 = vsel %vm11018_vm4, %v10857_v24, 0.0 }
 0x31a   : > { %v8590_v56 = vpack.i.bf16 %v3504_v38, %v3888_v57  ;;  %v8615_v57 = vpack.i.bf16 %v10793_v4, %v3762_v15  ;;  %v12978_v38 = vld [vmem:[#allocation44_spill] sm:$0xff]  ;;  %v3507_v15 = vsel %vm11110_vm14, %v12975_v61, 0.0  ;;  %vm12669_vm4 = vcmask 261120  }
 0x31b   : > { %vm12979_vm11 = vnez %v12978_v38 }
 0x31c   : > { %8566 = vrot.lane.b32.xlu0 %v8565_v1, %s8932_s15  ;;  %v8605_v1 = vpack.i.bf16 %v3505_v42, %v3889_v18 }
 0x31d   : > { %8581 = vrot.lane.b32.xlu1 %v8580_v59, %s8931_s4  ;;  %v3633_v59 = vsel %vm12974_vm0, %v10829_v63, 0.0 }
 0x320   : > { %8571 = vrot.lane.b32.xlu0 %v8570_v0, %s8931_s4  ;;  %v12976_v0 = vld [vmem:[#allocation43_spill] sm:$0xff] }
 0x321   : > { %8586 = vrot.lane.b32.xlu1 %v8585_v52, %s8930_s11  ;;  %v8610_v52 = vpack.i.bf16 %v3633_v59, %v12976_v0 }
 0x324   : > { %8591 = vrot.lane.b32.xlu0 %v8590_v56, %s8932_s15  ;;  %v3890_v56 = vsel %vm12979_vm11, %v12977_v2, 0.0 }
 0x325   : > { %8596 = vrot.lane.b32.xlu1 %v8595_v28, %s8931_s4  ;;  %v3634_v28 = vsel %vm12979_vm11, %v12972_v26, 0.0  ;;  %v8620_v18 = vpack.i.bf16 %v3506_v45, %v3890_v56  ;;  %v12982_v45 = vld [vmem:[#allocation52_spill] sm:$0xff] }
 0x326   : > { %v8625_v42 = vpack.i.bf16 %v3634_v28, %v10845_v49  ;;  %v3764_v28 = vsel %vm11120_vm10, %v10971_v58, 0.0 }
 0x328   : > { %8601 = vrot.lane.b32.xlu0 %v8600_v48, %s8930_s11  ;;  %v3763_v48 = vsel %vm11110_vm14, %v10990_v60, 0.0 }
 0x329   : > { %8606 = vrot.lane.b32.xlu1 %v8605_v1, %s8932_s15  ;;  %v12980_v1 = vld [vmem:[#allocation50_spill] sm:$0xff] }
 0x32a   : > { %vm12981_vm3 = vnez %v12980_v1  ;;  %v12986_v1 = vld [vmem:[#allocation21_spill] sm:$0xff] }
 0x32b   : > { %v3891_v59 = vsel %vm12981_vm3, %v10940_v36, 0.0  ;;  %v3635_v56 = vsel %vm12981_vm3, %v12977_v2, 0.0  ;;  %vm12670_vm3 = vcmask 523264  }
 0x32c   : > { %8611 = vrot.lane.b32.xlu0 %v8610_v52, %s8931_s4  ;;  %v8630_v52 = vpack.i.bf16 %v12976_v0, %v3763_v48  ;;  %v3892_v48 = vsel %vm12984_vm8, %v10977_v50, 0.0 }
 0x32d   : > { %8616 = vrot.lane.b32.xlu1 %v8615_v57, %s8930_s11  ;;  %v8635_v57 = vpack.i.bf16 %v3507_v15, %v3891_v59  ;;  %v3636_v59 = vsel %vm12984_vm8, %v10940_v36, 0.0  ;;  %v3508_v15 = vsel %vm11120_vm10, %v10990_v60, 0.0  ;;  %vm12987_vm10 = vnez %v12986_v1 }
 0x330   : > { %8621 = vrot.lane.b32.xlu0 %v8620_v18, %s8932_s15  ;;  %v8640_v18 = vpack.i.bf16 %v3635_v56, %v12982_v45  ;;  %v12985_v45 = vld [vmem:[#allocation30_spill] sm:$0xff] }
 0x331   : > { %8626 = vrot.lane.b32.xlu1 %v8625_v42, %s8931_s4  ;;  %v8645_v42 = vpack.i.bf16 %v10845_v49, %v3764_v28  ;;  %v2673_v54 = vand.u32 63, %v12985_v45 }
 0x333   : > { %v3112_v14 = vadd.s32 4294967287, %v2673_v54 }
 0x334   : > { %8631 = vrot.lane.b32.xlu0 %v8630_v52, %s8930_s11  ;;  %v8650_v52 = vpack.i.bf16 %v3508_v15, %v3892_v48 }
 0x335   : > { %8636 = vrot.lane.b32.xlu1 %v8635_v57, %s8932_s15  ;;  %v8655_v57 = vpack.i.bf16 %v3636_v59, %v10931_v32  ;;  %vm3128_vm8 = vcmp.ge.s32.totalorder %v3112_v14, 0 }
 0x336   : > { %vm11358_vm14 = vmand %vm3128_vm8, %vm12987_vm10  ;;  %vm13000_vm8 = vnez %v12801_v46 }
 0x337   : > { %v3224_v1 = vsel %vm11358_vm14, %v11044_v13, 0.0 }
 0x338   : > { %8641 = vrot.lane.b32.xlu0 %v8640_v18, %s8931_s4 }
 0x339   : > { %8646 = vrot.lane.b32.xlu1 %v8645_v42, %s8930_s11  ;;  %s13165_s11 = sld [smem:[#allocation10_spill]] }
 0x33b   : > { %v8422_v56 = vpop.permute.xlu0 %8421  ;;  %v11327_v28 = vpop.permute.xlu1 %8426 }
 0x33c   : > { %8651 = vrot.lane.b32.xlu0 %v8650_v52, %s8932_s15  ;;  %v8424_v61 = vunpack.i.h.bf16 %v8422_v56  ;;  %v8423_v10 = vunpack.i.l.bf16 %v8422_v56 }
 0x33d   : > { %8656 = vrot.lane.b32.xlu1 %v8655_v57, %s8931_s4  ;;  %s13169_s4 = sld [smem:[#allocation14_spill]] }
 0x33e   : > { %v4520_v56 = vsel %vm12669_vm4, 0.0, %v8424_v61  ;;  %v4570_v40 = vsel %vm12669_vm4, %v10448_v31, %v8423_v10  ;;  %v8428_v61 = vunpack.i.l.bf16 %v11327_v28  ;;  %v12990_v10 = vld [vmem:[#allocation15_spill] sm:$0xff] }
 0x33f   : > { %v8437_v7 = vpop.permute.xlu0 %8436 }
 0x340   : > { %v8432_v5 = vpop.permute.xlu1 %8431  ;;  %v8438_v54 = vunpack.i.l.bf16 %v8437_v7 }
 0x341   : > { %v8433_v26 = vunpack.i.l.bf16 %v8432_v5  ;;  %v8434_v45 = vunpack.i.h.bf16 %v8432_v5  ;;  %v8439_v5 = vunpack.i.h.bf16 %v8437_v7 }
 0x343   : > { %v11329_v27 = vpop.permute.xlu0 %8441  ;;  %v4571_v14 = vsel %vm12669_vm4, %v10462_v21, %v8433_v26 }
 0x344   : > { %v11331_v18 = vpop.permute.xlu1 %8451  ;;  %v4587_v7 = vsel %vm12670_vm3, %v4571_v14, %v8438_v54 }
 0x345   : > { %v4603_v54 = vsel %vm4553_vm9, %v4587_v7, %v8428_v61  ;;  %v12999_v61 = vld [vmem:[#allocation25_spill] sm:$0xff] }
 0x347   : > { %v8447_v42 = vpop.permute.xlu0 %8446 }
 0x348   : > { %v11333_v2 = vpop.permute.xlu1 %8456  ;;  %v8448_v0 = vunpack.i.l.bf16 %v8447_v42  ;;  %v8449_v8 = vunpack.i.h.bf16 %v8447_v42  ;;  %v8453_v42 = vunpack.i.l.bf16 %v11331_v18 }
 0x34b   : > { %v11335_v6 = vpop.permute.xlu0 %8466 }
 0x34c   : > { %v11337_v48 = vpop.permute.xlu1 %8461 }
 0x34d   : > { %v8463_v41 = vunpack.i.l.bf16 %v11337_v48  ;;  %v8464_v26 = vunpack.i.h.bf16 %v11337_v48 }
 0x34f   : > { %v11339_v59 = vpop.permute.xlu0 %8471 }
 0x353   : > { %v11341_v15 = vpop.permute.xlu1 %8486  ;;  %v11343_v52 = vpop.permute.xlu0 %8476 }
 0x357   : > { %v11348_v22 = vpop.permute.xlu0 %8481 }
 0x367   : > { %v11345_v57 = vpop.permute.xlu1 %8491 }
 0x36b   : > { %v11350_v58 = vpop.permute.xlu1 %8496 }
 0x36f   : > { %v11352_v60 = vpop.permute.xlu0 %8506  ;;  %v11354_v44 = vpop.permute.xlu1 %8501 }
 0x373   : > { %v11362_v16 = vpop.permute.xlu1 %8511 }
 0x375   : > { %v8517_v24 = vpop.permute.xlu0 %8516 }
 0x376   : > { %v8519_v63 = vunpack.i.h.bf16 %v8517_v24  ;;  %v8518_v38 = vunpack.i.l.bf16 %v8517_v24  ;;  %v4521_v24 = vsel %vm12669_vm4, %v3224_v1, %v8434_v45  ;;  %v4572_v45 = vsel %vm12669_vm4, %v12990_v10, %v8448_v0  ;;  %v12994_v1 = vld [vmem:[#allocation16_spill] sm:$0xff] }
 0x377   : > { %v8444_v10 = vunpack.i.h.bf16 %v11329_v27 }
 0x378   : > { %v4537_v49 = vsel %vm12670_vm3, %v4520_v56, %v8519_v63  ;;  %v4586_v13 = vsel %vm12670_vm3, %v4570_v40, %v8518_v38  ;;  %v4538_v40 = vsel %vm12670_vm3, %v4521_v24, %v8439_v5  ;;  %v8469_v38 = vunpack.i.h.bf16 %v11335_v6  ;;  %v12997_v24 = vld [vmem:[#allocation27_spill] sm:$0xff] }
 0x379   : > { %v4573_v56 = vsel %vm12669_vm4, %v12994_v1, %v8463_v41  ;;  %v4588_v5 = vsel %vm12670_vm3, %v4572_v45, %v8453_v42  ;;  %v8458_v45 = vunpack.i.l.bf16 %v11333_v2 }
 0x37a   : > { %v11370_v20 = vpop.permute.xlu0 %8531 }
 0x37b   : > { %v8522_v33 = vpop.permute.xlu1 %8521 }
 0x37c   : > { %v8524_v35 = vunpack.i.h.bf16 %v8522_v33  ;;  %v8523_v21 = vunpack.i.l.bf16 %v8522_v33  ;;  %v8468_v33 = vunpack.i.l.bf16 %v11335_v6  ;;  %v12995_v6 = vld [vmem:[#allocation29_spill] sm:$0xff] }
 0x37d   : > { %vm12996_vm10 = vnez %v12995_v6  ;;  %v8493_v6 = vunpack.i.l.bf16 %v11345_v57 }
 0x37e   : > { %v4602_v4 = vsel %vm4553_vm9, %v4586_v13, %v8523_v21  ;;  %v4554_v31 = vsel %vm4553_vm9, %v4537_v49, %v8524_v35  ;;  %v11387_v48 = vpop.permute.xlu0 %8541  ;;  %v12991_v35 = vld [vmem:[#allocation19_spill] sm:$0xff]  ;;  %v8429_v21 = vunpack.i.h.bf16 %v11327_v28  ;;  %v12998_v49 = vsel %vm12996_vm10, %v12997_v24, 0.0 }
 0x37f   : > { %v11389_v63 = vpop.permute.xlu1 %8526  ;;  %4766 = vmatprep.mubr.f32.mxu0 %v4602_v4  ;;  %vm12992_vm14 = vnez %v12991_v35  ;;  %v8454_v4 = vunpack.i.h.bf16 %v11331_v18  ;;  %v4523_v13 = vsel %vm12669_vm4, %v12998_v49, %v8464_v26  ;;  %v4589_v18 = vsel %vm12670_vm3, %v4573_v56, %v8468_v33 }
 0x380   : > { %4767 = vmatmul.mubr.f32.vlgmr.msra.gmra.mxu0 %v4554_v31  ;;  %v12993_v0 = vsel %vm12992_vm14, %v10506_v17, 0.0  ;;  %v8443_v17 = vunpack.i.l.bf16 %v11329_v27  ;;  %v4555_v41 = vsel %vm4553_vm9, %v4538_v40, %v8429_v21  ;;  %v4119_v31 = vsel %vm13000_vm8, %v12999_v61, 0.0 }
 0x381   : > { %v4522_v14 = vsel %vm12669_vm4, %v12993_v0, %v8449_v8  ;;  %4771 = vmatprep.mubr.f32.mxu0 %v4603_v54  ;;  %v4540_v42 = vsel %vm12670_vm3, %v4523_v13, %v8469_v38  ;;  %v8459_v54 = vunpack.i.h.bf16 %v11333_v2  ;;  %v3238_v33 = vsel %vm11202_vm1, %v10977_v50, 0.0 }
 0x382   : > { %v8552_v7 = vpop.permute.xlu0 %8551  ;;  %v4539_v28 = vsel %vm12670_vm3, %v4522_v14, %v8454_v4  ;;  %v4604_v26 = vsel %vm4553_vm9, %v4588_v5, %v8443_v17  ;;  %v8474_v0 = vunpack.i.h.bf16 %v11339_v59  ;;  %v8494_v27 = vunpack.i.h.bf16 %v11345_v57 }
 0x383   : > { %v11410_v8 = vpop.permute.xlu1 %8536  ;;  %v8554_v40 = vunpack.i.h.bf16 %v8552_v7  ;;  %v8553_v35 = vunpack.i.l.bf16 %v8552_v7  ;;  %v4556_v14 = vsel %vm4553_vm9, %v4539_v28, %v8444_v10  ;;  %v4605_v1 = vsel %vm4553_vm9, %v4589_v18, %v8458_v45 }
 0x384   : > { %4772 = vmatmul.mubr.f32.gmra.mxu0 %v4555_v41  ;;  %v8484_v56 = vunpack.i.h.bf16 %v11348_v22  ;;  %v8483_v38 = vunpack.i.l.bf16 %v11348_v22  ;;  %v8504_v2 = vunpack.i.h.bf16 %v11354_v44  ;;  %v4557_v5 = vsel %vm4553_vm9, %v4540_v42, %v8459_v54  ;;  %v13001_v41 = vld [vmem:[#allocation26_spill] sm:$0xff] }
 0x385   : > { %4776 = vmatprep.mubr.f32.mxu0 %v4604_v26  ;;  %v8514_v24 = vunpack.i.h.bf16 %v11362_v16  ;;  %v8509_v17 = vunpack.i.h.bf16 %v11352_v60  ;;  %v8508_v7 = vunpack.i.l.bf16 %v11352_v60  ;;  %v4584_v22 = vsel %vm12669_vm4, %v10931_v32, %v8554_v40 }
 0x386   : > { %v8557_v21 = vpop.permute.xlu0 %8556  ;;  %v4574_v28 = vsel %vm12669_vm4, %v13001_v41, %v8553_v35  ;;  %v13002_v57 = vsel %vm10934_vm5, %v10940_v36, 0.0  ;;  %v8503_v10 = vunpack.i.l.bf16 %v11354_v44  ;;  %v8513_v32 = vunpack.i.l.bf16 %v11362_v16 }
 0x387   : > { %v11433_v4 = vpop.permute.xlu1 %8546  ;;  %v8559_v49 = vunpack.i.h.bf16 %v8557_v21  ;;  %v8558_v13 = vunpack.i.l.bf16 %v8557_v21  ;;  %v4534_v18 = vsel %vm12669_vm4, %v13002_v57, %v8494_v27  ;;  %v8473_v36 = vunpack.i.l.bf16 %v11339_v59  ;;  %v13003_v21 = vld [vmem:[#allocation23_spill] sm:$0xff] }
 0x388   : > { %4777 = vmatmul.mubr.f32.gmra.mxu0 %v4556_v14  ;;  %v4551_v26 = vsel %vm12670_vm3, %v4534_v18, %v8504_v2  ;;  %v8478_v35 = vunpack.i.l.bf16 %v11343_v52  ;;  %v8489_v44 = vunpack.i.h.bf16 %v11341_v15  ;;  %v4652_v14 = vld [vmem:[%s8973_s29 + $0x110] sm:$0xff]  ;;  %v8488_v16 = vunpack.i.l.bf16 %v11341_v15  ;;  %v4651_v15 = vld [vmem:[%s8973_s29 + $0x108] sm:$0xff] }
 0x389   : > { %4781 = vmatprep.mubr.f32.mxu0 %v4605_v1  ;;  %v4600_v45 = vsel %vm12670_vm3, %v4584_v22, %v8559_v49  ;;  %v4590_v60 = vsel %vm12670_vm3, %v4574_v28, %v8558_v13  ;;  %v4568_v27 = vsel %vm4553_vm9, %v4551_v26, %v8514_v24  ;;  %v13004_v49 = vsel %vm10588_vm13, %v13003_v21, 0.0  ;;  %v13008_v26 = vld [vmem:[#allocation32_spill] sm:$0xff] }
 0x38a   : > { %v8562_v42 = vpop.permute.xlu0 %8561  ;;  %v4616_v40 = vsel %vm4553_vm9, %v4600_v45, %v8509_v17  ;;  %v4606_v30 = vsel %vm4553_vm9, %v4590_v60, %v8508_v7  ;;  %v4524_v13 = vsel %vm12669_vm4, %v13004_v49, %v8493_v6  ;;  %v8499_v17 = vunpack.i.h.bf16 %v11350_v58  ;;  %v13005_v6 = vld [vmem:[#allocation36_spill] sm:$0xff] }
 0x38b   : > { %v8577_v54 = vpop.permute.xlu1 %8576  ;;  %4836 = vmatprep.mubr.f32.mxu1 %v4616_v40  ;;  %v8564_v1 = vunpack.i.h.bf16 %v8562_v42  ;;  %v8563_v2 = vunpack.i.l.bf16 %v8562_v42  ;;  %v4541_v7 = vsel %vm12670_vm3, %v4524_v13, %v8503_v10  ;;  %v4576_v24 = vsel %vm12669_vm4, %v10650_v62, %v8483_v38  ;;  %v4650_v62 = vld [vmem:[%s8973_s29 + $0x100] sm:$0xff]  ;;  %v13011_v13 = vld [vmem:[#allocation37_spill] sm:$0xff] }
 0x38c   : > { %4782 = vmatmul.mubr.f32.gmra.mxu0 %v4557_v5  ;;  %4837 = vmatmul.mubr.f32.vlgmr.msra.gmra.mxu1 %v4568_v27  ;;  %v8498_v5 = vunpack.i.l.bf16 %v11350_v58  ;;  %v8579_v22 = vunpack.i.h.bf16 %v8577_v54  ;;  %v8578_v41 = vunpack.i.l.bf16 %v8577_v54  ;;  %v4558_v57 = vsel %vm4553_vm9, %v4541_v7, %v8513_v32  ;;  %v13009_v40 = vld [vmem:[#allocation34_spill] sm:$0xff] }
 0x38d   : > { %4786 = vmatprep.mubr.f32.mxu0 %v4606_v30  ;;  %8100 = vmatpush3.msra.mxu1 %v11181_v47  ;;  %vm13006_vm5 = vnez %v13005_v6  ;;  %v8528_v38 = vunpack.i.l.bf16 %v11389_v63  ;;  %v4575_v42 = vsel %vm12669_vm4, %v13008_v26, %v8563_v2  ;;  %v4585_v32 = vsel %vm12669_vm4, %v10966_v51, %v8564_v1  ;;  %v13016_v6 = vld [vmem:[#allocation20_spill] sm:$0xff] }
 0x38e   : > { %v8567_v12 = vpop.permute.xlu0 %8566  ;;  %8101 = vmatprep.subr.mxu1 %v4652_v14  ;;  %v13007_v58 = vsel %vm13006_vm5, %v10662_v3, 0.0  ;;  %v4592_v3 = vsel %vm12670_vm3, %v4576_v24, %v8488_v16  ;;  %v13010_v30 = vsel %vm10630_vm15, %v13009_v40, 0.0  ;;  %v8529_v50 = vunpack.i.h.bf16 %v11389_v63 }
 0x38f   : > { %v8582_v28 = vpop.permute.xlu1 %8581  ;;  %v4526_v18 = vsel %vm12669_vm4, %v13007_v58, %v8484_v56  ;;  %v8569_v10 = vunpack.i.h.bf16 %v8567_v12  ;;  %v8568_v47 = vunpack.i.l.bf16 %v8567_v12  ;;  %8102 = vmatpush3.msra.mxu1 %v4652_v14  ;;  %v4525_v27 = vsel %vm12669_vm4, %v13010_v30, %v8498_v5  ;;  %v13012_v12 = vld [vmem:[#allocation22_spill] sm:$0xff] }
 0x390   : > { %v8584_v45 = vunpack.i.h.bf16 %v8582_v28  ;;  %v8583_v60 = vunpack.i.l.bf16 %v8582_v28  ;;  %4787 = vmatmul.mubr.f32.gmra.mxu0 %v4558_v57  ;;  %8103 = vmatprep.subr.mxu1 %v4651_v15  ;;  %v4535_v14 = vsel %vm12669_vm4, %v3238_v33, %v8499_v17  ;;  %v4542_v2 = vsel %vm12670_vm3, %v4525_v27, %v8578_v41  ;;  %v13014_v28 = vld [vmem:[#allocation24_spill] sm:$0xff] }
 0x391   : > { %v4591_v56 = vsel %vm12670_vm3, %v4575_v42, %v8568_v47  ;;  %v4601_v54 = vsel %vm12670_vm3, %v4585_v32, %v8569_v10  ;;  %8104 = vmatpush3.msra.mxu1 %v4651_v15  ;;  %v4552_v21 = vsel %vm12670_vm3, %v4535_v14, %v8579_v22  ;;  %v4543_v49 = vsel %vm12670_vm3, %v4526_v18, %v8489_v44 }
 0x392   : > { %v11499_v51 = vpop.permute.xlu0 %8571  ;;  %v4607_v1 = vsel %vm4553_vm9, %v4591_v56, %v8473_v36  ;;  %v4617_v11 = vsel %vm4553_vm9, %v4601_v54, %v8474_v0  ;;  %8105 = vmatprep.subr.mxu1 %v4650_v62  ;;  %v4559_v34 = vsel %vm4553_vm9, %v4542_v2, %v8583_v60  ;;  %v4569_v33 = vsel %vm4553_vm9, %v4552_v21, %v8584_v45 }
 0x393   : > { %v11501_v16 = vpop.permute.xlu1 %8586  ;;  %4791 = vmatprep.mubr.f32.mxu0 %v4607_v1  ;;  %4841 = vmatprep.mubr.f32.mxu1 %v4617_v11  ;;  %v8479_v36 = vunpack.i.h.bf16 %v11343_v52  ;;  %v8538_v59 = vunpack.i.l.bf16 %v11410_v8  ;;  %v4608_v0 = vsel %vm4553_vm9, %v4592_v3, %v8478_v35  ;;  %v4577_v17 = vsel %vm12669_vm4, %v13011_v13, %v8528_v38  ;;  %v13025_v1 = vld [vmem:[#allocation28_spill] sm:$0xff]  ;;  %v13032_v13 = vld [vmem:[#allocation38_spill] sm:$0xff] }
 0x394   : > { %4792 = vmatmul.mubr.f32.gmra.mxu0 %v4559_v34  ;;  %4842 = vmatmul.mubr.f32.gmra.mxu1 %v4569_v33  ;;  %v8533_v63 = vunpack.i.l.bf16 %v11370_v20  ;;  %v8543_v52 = vunpack.i.l.bf16 %v11387_v48  ;;  %v3230_v7 = vsel %vm10946_vm7, %v10691_v19, 0.0  ;;  %v8539_v15 = vunpack.i.h.bf16 %v11410_v8 }
 0x395   : > { %4796 = vmatprep.mubr.f32.mxu0 %v4608_v0  ;;  %8107 = vmatprep.mubr.msk.f32.mxu1 %vm12669_vm4, %v4119_v31  ;;  %v4560_v35 = vsel %vm4553_vm9, %v4543_v49, %v8479_v36  ;;  %v8548_v46 = vunpack.i.l.bf16 %v11433_v4  ;;  %v4527_v31 = vsel %vm12669_vm4, %v3230_v7, %v8529_v50  ;;  %v8534_v24 = vunpack.i.h.bf16 %v11370_v20  ;;  %v13018_v20 = vld [vmem:[#allocation35_spill] sm:$0xff]  ;;  %v13029_v49 = vld [vmem:[#allocation40_spill] sm:$0xff]  ;;  %v13037_v7 = vld [vmem:[#allocation42_spill] sm:$0xff] }
 0x396   : > { %v8592_v44 = vpop.permute.xlu0 %8591  ;;  %8106 = vmatpush3.msra.mxu1 %v4650_v62  ;;  %v4593_v61 = vsel %vm12670_vm3, %v4577_v17, %v8533_v63  ;;  %v8573_v22 = vunpack.i.l.bf16 %v11499_v51  ;;  %v8588_v41 = vunpack.i.l.bf16 %v11501_v16  ;;  %vm13013_vm13 = vnez %v13012_v12  ;;  %v13030_v0 = vld [vmem:[#allocation39_spill] sm:$0xff] }
 0x397   : > { %v11525_v5 = vpop.permute.xlu1 %8596  ;;  %v13015_v29 = vsel %vm13013_vm13, %v13014_v28, 0.0  ;;  %v4609_v19 = vsel %vm4553_vm9, %v4593_v61, %v8538_v59  ;;  %v8544_v8 = vunpack.i.h.bf16 %v11387_v48  ;;  %v8593_v57 = vunpack.i.l.bf16 %v8592_v44 }
 0x398   : > { %4797 = vmatmul.mubr.f32.gmra.mxu0 %v4560_v35  ;;  %8108 = vmatmul.mubr.msk.f32.vlgmr.msra.gmra.mxu1 %vm12669_vm4, %v13015_v29  ;;  %vm13017_vm7 = vnez %v13016_v6  ;;  %v8549_v18 = vunpack.i.h.bf16 %v11433_v4  ;;  %v8589_v10 = vunpack.i.h.bf16 %v11501_v16  ;;  %v4544_v60 = vsel %vm12670_vm3, %v4527_v31, %v8534_v24  ;;  %v13020_v4 = vld [vmem:[#allocation33_spill] sm:$0xff] }
 0x399   : > { %4801 = vmatprep.mubr.f32.mxu0 %v4609_v19  ;;  %v13019_v58 = vsel %vm13017_vm7, %v13018_v20, 0.0  ;;  %v4578_v62 = vsel %vm12669_vm4, %v10726_v53, %v8543_v52  ;;  %v8574_v48 = vunpack.i.h.bf16 %v11499_v51  ;;  %v8594_v38 = vunpack.i.h.bf16 %v8592_v44  ;;  %v13034_v44 = vld [vmem:[#allocation65_spill] sm:$0xff]  ;;  %v13040_v19 = vld [vmem:[#allocation43_spill] sm:$0xff] }
 0x39a   : > { %8110 = vmatprep.mubr.msk.f32.mxu1 %vm12669_vm4, %v13019_v58  ;;  %v8602_v47 = vpop.permute.xlu0 %8601  ;;  %v4561_v26 = vsel %vm4553_vm9, %v4544_v60, %v8539_v15  ;;  %v4594_v42 = vsel %vm12670_vm3, %v4578_v62, %v8548_v46  ;;  %v8598_v32 = vunpack.i.l.bf16 %v11525_v5  ;;  %vm13021_vm15 = vnez %v13020_v4  ;;  %v13042_v62 = vld [vmem:[#allocation45_spill] sm:$0xff] }
 0x39b   : > { %v8607_v45 = vpop.permute.xlu1 %8606  ;;  %v8603_v3 = vunpack.i.l.bf16 %v8602_v47  ;;  %v13022_v56 = vsel %vm13021_vm15, %v10677_v9, 0.0  ;;  %v4610_v54 = vsel %vm4553_vm9, %v4594_v42, %v8573_v22  ;;  %v4579_v53 = vsel %vm12669_vm4, %v10762_v25, %v8588_v41 }
 0x39c   : > { %4802 = vmatmul.mubr.f32.gmra.mxu0 %v4561_v26  ;;  %8111 = vmatmul.mubr.msk.f32.gmra.mxu1 %vm12669_vm4, %v13022_v56  ;;  %v4528_v40 = vsel %vm12669_vm4, 0.0, %v8544_v8  ;;  %vm13023_vm1 = vnez %v12845_v39  ;;  %v4595_v27 = vsel %vm12670_vm3, %v4579_v53, %v8593_v57  ;;  %v8604_v14 = vunpack.i.h.bf16 %v8602_v47  ;;  %v13047_v53 = vld [vmem:[#allocation51_spill] sm:$0xff] }
 0x39d   : > { %4806 = vmatprep.mubr.f32.mxu0 %v4610_v54  ;;  %v13024_v30 = vsel %vm13023_vm1, %v10695_v23, 0.0  ;;  %v4545_v16 = vsel %vm12670_vm3, %v4528_v40, %v8549_v18  ;;  %vm13026_vm14 = vnez %v13025_v1  ;;  %v8599_v2 = vunpack.i.h.bf16 %v11525_v5  ;;  %v13049_v40 = vld [vmem:[#allocation53_spill] sm:$0xff] }
 0x39e   : > { %8113 = vmatprep.mubr.msk.f32.mxu1 %vm12669_vm4, %v13024_v30  ;;  %v8612_v9 = vpop.permute.xlu0 %8611  ;;  %v13027_v25 = vsel %vm13026_vm14, %v10768_v37, 0.0  ;;  %v8608_v39 = vunpack.i.l.bf16 %v8607_v45  ;;  %v4562_v23 = vsel %vm4553_vm9, %v4545_v16, %v8574_v48  ;;  %v13028_v33 = vsel %vm10748_vm6, %v10735_v43, 0.0  ;;  %v13052_v16 = vld [vmem:[#allocation50_spill] sm:$0xff]  ;;  %v13054_v1 = vld [vmem:[#allocation49_spill] sm:$0xff] }
 0x39f   : > { %v8617_v51 = vpop.permute.xlu1 %8616  ;;  %v4529_v11 = vsel %vm12669_vm4, %v13027_v25, %v8589_v10  ;;  %v8613_v50 = vunpack.i.l.bf16 %v8612_v9  ;;  %v4611_v37 = vsel %vm4553_vm9, %v4595_v27, %v8598_v32  ;;  %v4580_v36 = vsel %vm12669_vm4, %v13029_v49, %v8603_v3  ;;  %v13045_v32 = vld [vmem:[#allocation48_spill] sm:$0xff]  ;;  %v13051_v27 = vld [vmem:[#allocation46_spill] sm:$0xff] }
 0x3a0   : > { %v4546_v21 = vsel %vm12670_vm3, %v4529_v11, %v8594_v38  ;;  %v8618_v34 = vunpack.i.l.bf16 %v8617_v51  ;;  %4807 = vmatmul.mubr.f32.gmra.mxu0 %v4562_v23  ;;  %8114 = vmatmul.mubr.msk.f32.gmra.mxu1 %vm12669_vm4, %v13028_v33  ;;  %v8609_v59 = vunpack.i.h.bf16 %v8607_v45  ;;  %vm13031_vm10 = vnez %v13030_v0  ;;  %v13058_v33 = vld [vmem:[#allocation57_spill] sm:$0xff] }
 0x3a1   : > { %4811 = vmatprep.mubr.f32.mxu0 %v4611_v37  ;;  %v13033_v17 = vsel %vm13031_vm10, %v13032_v13, 0.0  ;;  %v8614_v63 = vunpack.i.h.bf16 %v8612_v9  ;;  %v4127_v5 = vsel %vm11089_vm2, %v13034_v44, 0.0  ;;  %v13038_v15 = vsel %vm12974_vm0, %v13037_v7, 0.0  ;;  %v13064_v7 = vld [vmem:[#allocation64_spill] sm:$0xff] }
 0x3a2   : > { %8116 = vmatprep.mubr.msk.f32.mxu1 %vm12669_vm4, %v13033_v17  ;;  %v8622_v52 = vpop.permute.xlu0 %8621  ;;  %v4530_v46 = vsel %vm12669_vm4, %v13038_v15, %v8604_v14  ;;  %v8619_v61 = vunpack.i.h.bf16 %v8617_v51  ;;  %v4563_v24 = vsel %vm4553_vm9, %v4546_v21, %v8599_v2  ;;  %v4596_v22 = vsel %vm12670_vm3, %v4580_v36, %v8608_v39  ;;  %v13060_v36 = vld [vmem:[#allocation63_spill] sm:$0xff]  ;;  %v13066_v15 = vld [vmem:[#allocation60_spill] sm:$0xff] }
 0x3a3   : > { %v8627_v55 = vpop.permute.xlu1 %8626  ;;  %v8623_v31 = vunpack.i.l.bf16 %v8622_v52  ;;  %v8624_v41 = vunpack.i.h.bf16 %v8622_v52  ;;  %v13039_v28 = vmov 0.0   ;;  %v4612_v29 = vsel %vm4553_vm9, %v4596_v22, %v8613_v50  ;;  %v13071_v22 = vld [vmem:[#allocation55_spill] sm:$0xff] }
 0x3a4   : > { %v8628_v12 = vunpack.i.l.bf16 %v8627_v55  ;;  %4812 = vmatmul.mubr.f32.gmra.mxu0 %v4563_v24  ;;  %8117 = vmatmul.mubr.f32.gmra.mxu1 %v13039_v28  ;;  %v4581_v8 = vsel %vm12669_vm4, %v13040_v19, %v8618_v34  ;;  %v4547_v57 = vsel %vm12670_vm3, %v4530_v46, %v8609_v59  ;;  %v8629_v10 = vunpack.i.h.bf16 %v8627_v55  ;;  %v13056_v34 = vld [vmem:[#allocation58_spill] sm:$0xff]  ;;  %v13062_v59 = vld [vmem:[#allocation56_spill] sm:$0xff]  ;;  %v13075_v19 = vld [vmem:[#allocation59_spill] sm:$0xff] }
 0x3a5   : > { %4816 = vmatprep.mubr.f32.mxu0 %v4612_v29  ;;  %8119 = vmatprep.mubr.msk.f32.mxu1 %vm12669_vm4, %v4127_v5  ;;  %v4597_v6 = vsel %vm12670_vm3, %v4581_v8, %v8623_v31  ;;  %v4564_v18 = vsel %vm4553_vm9, %v4547_v57, %v8614_v63  ;;  %v13043_v48 = vsel %vm12979_vm11, %v13042_v62, 0.0  ;;  %v13046_v3 = vsel %vm10849_vm12, %v13045_v32, 0.0  ;;  %v13069_v24 = vld [vmem:[#allocation54_spill] sm:$0xff]  ;;  %v13073_v29 = vld [vmem:[#allocation61_spill] sm:$0xff] }
 0x3a6   : > { %v8632_v20 = vpop.permute.xlu0 %8631  ;;  %v4531_v38 = vsel %vm12669_vm4, %v13043_v48, %v8619_v61  ;;  %v4613_v4 = vsel %vm4553_vm9, %v4597_v6, %v8628_v12  ;;  %vm13048_vm6 = vnez %v13047_v53  ;;  %vm13053_vm12 = vnez %v13052_v16  ;;  %v13068_v61 = vld [vmem:[#allocation52_spill] sm:$0xff] }
 0x3a7   : > { %v8637_v58 = vpop.permute.xlu1 %8636  ;;  %v8634_v47 = vunpack.i.h.bf16 %v8632_v20  ;;  %v8633_v45 = vunpack.i.l.bf16 %v8632_v20  ;;  %v4548_v56 = vsel %vm12670_vm3, %v4531_v38, %v8624_v41  ;;  %v13050_v30 = vsel %vm13048_vm6, %v13049_v40, 0.0 }
 0x3a8   : > { %v8638_v26 = vunpack.i.l.bf16 %v8637_v58  ;;  %4817 = vmatmul.mubr.f32.gmra.mxu0 %v4564_v18  ;;  %8120 = vmatmul.mubr.msk.f32.gmra.mxu1 %vm12669_vm4, %v13046_v3  ;;  %v8639_v54 = vunpack.i.h.bf16 %v8637_v58  ;;  %v13055_v25 = vsel %vm13053_vm12, %v13054_v1, 0.0  ;;  %v4565_v23 = vsel %vm4553_vm9, %v4548_v56, %v8629_v10  ;;  %v5182_v18 = vld [vmem:[%s8988_s14] sm:$0xff] }
 0x3a9   : > { %4821 = vmatprep.mubr.f32.mxu0 %v4613_v4  ;;  %8122 = vmatprep.mubr.msk.f32.mxu1 %vm12669_vm4, %v13050_v30  ;;  %v4582_v14 = vsel %vm12669_vm4, %v13051_v27, %v8633_v45  ;;  %v4532_v11 = vsel %vm12669_vm4, %v13055_v25, %v8634_v47  ;;  %vm13057_vm2 = vnez %v13056_v34  ;;  %vm13061_vm0 = vnez %v13060_v36 }
 0x3aa   : > { %v8642_v9 = vpop.permute.xlu0 %8641  ;;  %v13059_v37 = vsel %vm13057_vm2, %v13058_v33, 0.0  ;;  %v4598_v49 = vsel %vm12670_vm3, %v4582_v14, %v8638_v26  ;;  %v13063_v0 = vsel %vm13061_vm0, %v13062_v59, 0.0  ;;  %v4549_v17 = vsel %vm12670_vm3, %v4532_v11, %v8639_v54  ;;  %v11689_v59 = vld [vmem:[%s8978_s3] ss:$0 sm:$0xff] }
 0x3ab   : > { %v8647_v51 = vpop.permute.xlu1 %8646  ;;  %v8644_v2 = vunpack.i.h.bf16 %v8642_v9  ;;  %v8643_v39 = vunpack.i.l.bf16 %v8642_v9  ;;  %vm13065_vm11 = vnez %v13064_v7  ;;  %vm13070_vm8 = vnez %v13069_v24 }
 0x3ac   : > { %v8649_v21 = vunpack.i.h.bf16 %v8647_v51  ;;  %v8648_v50 = vunpack.i.l.bf16 %v8647_v51  ;;  %4822 = vmatmul.mubr.f32.gmra.mxu0 %v4565_v23  ;;  %8123 = vmatmul.mubr.msk.f32.gmra.mxu1 %vm12669_vm4, %v13059_v37  ;;  %v13067_v46 = vsel %vm13065_vm11, %v13066_v15, 0.0  ;;  %v13072_v41 = vsel %vm13070_vm8, %v13071_v22, 0.0 }
 0x3ad   : > { %8125 = vmatprep.mubr.msk.f32.mxu1 %vm12669_vm4, %v13063_v0  ;;  %v4614_v13 = vsel %vm4553_vm9, %v4598_v49, %v8643_v39  ;;  %v4566_v55 = vsel %vm4553_vm9, %v4549_v17, %v8644_v2  ;;  %vm13074_vm5 = vnez %v13073_v29 }
 0x3ae   : > { %v8652_v63 = vpop.permute.xlu0 %8651  ;;  %4826 = vmatprep.mubr.f32.mxu0 %v4614_v13  ;;  %v4583_v31 = vsel %vm12669_vm4, %v13068_v61, %v8648_v50  ;;  %v4533_v12 = vsel %vm12669_vm4, %v13072_v41, %v8649_v21  ;;  %v13076_v8 = vsel %vm13074_vm5, %v13075_v19, 0.0 }
 0x3af   : > { %v8657_v52 = vpop.permute.xlu1 %8656  ;;  %v8654_v44 = vunpack.i.h.bf16 %v8652_v63  ;;  %v8653_v43 = vunpack.i.l.bf16 %v8652_v63 }
 0x3b0   : > { %v8659_v5 = vunpack.i.h.bf16 %v8657_v52  ;;  %v8658_v35 = vunpack.i.l.bf16 %v8657_v52  ;;  %4827 = vmatmul.mubr.f32.gmra.mxu0 %v4566_v55  ;;  %8126 = vmatmul.mubr.msk.f32.gmra.mxu1 %vm12669_vm4, %v13067_v46 }
 0x3b1   : > { %8128 = vmatprep.mubr.msk.f32.mxu1 %vm12669_vm4, %v13076_v8  ;;  %v4599_v57 = vsel %vm12670_vm3, %v4583_v31, %v8653_v43  ;;  %v4550_v6 = vsel %vm12670_vm3, %v4533_v12, %v8654_v44  ;;  %v11694_v43 = vld [vmem:[%s8983_s8] ss:$0 sm:$0xff] }
 0x3b2   : > { %v4615_v20 = vsel %vm4553_vm9, %v4599_v57, %v8658_v35  ;;  %v4567_v58 = vsel %vm4553_vm9, %v4550_v6, %v8659_v5 }
 0x3b3   : > { %4831 = vmatprep.mubr.f32.mxu0 %v4615_v20 }
 0x3b4   : > { %4832 = vmatmul.mubr.f32.gmra.mxu0 %v4567_v58  ;;  %8129 = vmatmul.mubr.f32.gmra.mxu1 %v13039_v28 }
 0x3b5   : > { %8163 = vmatprep.mubr.f32.mxu1 %v5182_v18 }
 0x440   : > { %v7668_v10 = vpop.f32.mrf.mxu0 }
 0x442   : > { %v7669_v47 = vpop.f32.mrf.mxu0 }
 0x443   : > { %v7670_v23 = vadd.f32 %v7669_v47, %v7668_v10 }
 0x444   : > { %v7671_v45 = vpop.f32.mrf.mxu0 }
 0x446   : > { %v7672_v60 = vpop.f32.mrf.mxu0 }
 0x447   : > { %v7673_v34 = vadd.f32 %v7672_v60, %v7671_v45 }
 0x448   : > { %v7674_v62 = vpop.f32.mrf.mxu0 }
 0x44a   : > { %v7675_v48 = vpop.f32.mrf.mxu0 }
 0x44b   : > { %v11676_v38 = vadd.f32 %v7675_v48, %v7674_v62 }
 0x44c   : > { %v7677_v26 = vpop.f32.mrf.mxu0  ;;  %v7710_v32 = vpop.f32.mrf.mxu1 }
 0x44e   : > { %v7678_v42 = vpop.f32.mrf.mxu0  ;;  %v7711_v56 = vpop.f32.mrf.mxu1 }
 0x44f   : > { %v7679_v10 = vadd.f32 %v7678_v42, %v7677_v26  ;;  %v7712_v47 = vadd.f32 %v7711_v56, %v7710_v32 }
 0x450   : > { %v11678_v3 = vpop.f32.mrf.mxu0 }
 0x452   : > { %v11680_v4 = vpop.f32.mrf.mxu0 }
 0x453   : > { %v7682_v26 = vadd.f32 %v11680_v4, %v11678_v3 }
 0x454   : > { %v7683_v54 = vpop.f32.mrf.mxu0  ;;  %v7713_v53 = vpop.f32.mrf.mxu1 }
 0x456   : > { %v7684_v40 = vpop.f32.mrf.mxu0  ;;  %v7714_v30 = vpop.f32.mrf.mxu1 }
 0x458   : > { %v7686_v27 = vpop.f32.mrf.mxu0  ;;  %v8109_v14 = vpop.f32.mrf.mxu1 }
 0x459   : > { %v4919_v36 = vadd.f32 %v8109_v14, %v7673_v34 }
 0x45a   : > { %v7687_v9 = vpop.f32.mrf.mxu0  ;;  %v4913_v51 = vpop.f32.mrf.mxu1 }
 0x45b   : > { %v4914_v33 = vadd.f32 %v7670_v23, %v4913_v51  ;;  %v5000_v44 = vmul.f32 %v11689_v59, %v4919_v36  ;;  %v7688_v60 = vadd.f32 %v7687_v9, %v7686_v27 }
 0x45c   : > { %v7689_v16 = vpop.f32.mrf.mxu0  ;;  %v11682_v1 = vpop.f32.mrf.mxu1 }
 0x45d   : > { %v4999_v17 = vmul.f32 %v11689_v59, %v4914_v33  ;;  %v11700_v31 = vadd.f32 %v11694_v43, %v5000_v44 }
 0x45e   : > { %v7690_v25 = vpop.f32.mrf.mxu0  ;;  %v11684_v11 = vpop.f32.mrf.mxu1 }
 0x45f   : > { %v11697_v15 = vadd.f32 %v11694_v43, %v4999_v17  ;;  %v7691_v8 = vadd.f32 %v7690_v25, %v7689_v16  ;;  %v5055_v45 = vmul.f32 0.70710677, %v11700_v31  ;;  %v7685_v16 = vadd.f32 %v7684_v40, %v7683_v54 }
 0x460   : > { %v7692_v2 = vpop.f32.mrf.mxu0  ;;  %v8115_v39 = vpop.f32.mrf.mxu1  ;;  %v7715_v25 = vadd.f32 %v7714_v30, %v7713_v53 }
 0x461   : > { %v5054_v19 = vmul.f32 0.70710677, %v11697_v15  ;;  %v4939_v34 = vadd.f32 %v8115_v39, %v7685_v16 }
 0x462   : > { %v7693_v21 = vpop.f32.mrf.mxu0  ;;  %v11686_v50 = vpop.f32.mrf.mxu1 }
 0x463   : > { %v7694_v24 = vadd.f32 %v7693_v21, %v7692_v2  ;;  %8830 = verf.f32 %v5054_v19 }
 0x464   : > { %v7695_v37 = vpop.f32.mrf.mxu0  ;;  %v8118_v49 = vpop.f32.mrf.mxu1  ;;  %8832 = verf.f32 %v5055_v45 }
 0x465   : > { %v4949_v62 = vadd.f32 %v8118_v49, %v7691_v8 }
 0x466   : > { %v7696_v0 = vpop.f32.mrf.mxu0  ;;  %v4943_v13 = vpop.f32.mrf.mxu1 }
 0x467   : > { %v7697_v63 = vadd.f32 %v7696_v0, %v7695_v37  ;;  %v4944_v42 = vadd.f32 %v7688_v60, %v4943_v13  ;;  %v5006_v49 = vmul.f32 %v11689_v59, %v4949_v62  ;;  %v4934_v13 = vadd.f32 %v7682_v26, %v11686_v50 }
 0x468   : > { %v7698_v52 = vpop.f32.mrf.mxu0  ;;  %v8121_v55 = vpop.f32.mrf.mxu1  ;;  %v4924_v50 = vadd.f32 %v11676_v38, %v11684_v11 }
 0x469   : > { %v4959_v5 = vadd.f32 %v8121_v55, %v7697_v63  ;;  %v5005_v17 = vmul.f32 %v11689_v59, %v4944_v42 }
 0x46a   : > { %v7699_v35 = vpop.f32.mrf.mxu0  ;;  %v4953_v7 = vpop.f32.mrf.mxu1 }
 0x46b   : > { %v5008_v22 = vmul.f32 %v11689_v59, %v4959_v5  ;;  %v7700_v41 = vadd.f32 %v7699_v35, %v7698_v52  ;;  %v4954_v57 = vadd.f32 %v7694_v24, %v4953_v7  ;;  %v4929_v7 = vadd.f32 %v11682_v1, %v7679_v10 }
 0x46c   : > { %v7701_v46 = vpop.f32.mrf.mxu0  ;;  %v8124_v61 = vpop.f32.mrf.mxu1  ;;  %v5003_v1 = vmul.f32 %v11689_v59, %v4934_v13  ;;  %v11745_v19 = vadd.f32 %v11694_v43, %v5005_v17  ;;  %v5001_v10 = vmul.f32 %v11689_v59, %v4924_v50 }
 0x46d   : > { %v11706_v48 = vadd.f32 %v11694_v43, %v5008_v22  ;;  %v5007_v32 = vmul.f32 %v11689_v59, %v4954_v57 }
 0x46e   : > { %v7702_v12 = vpop.f32.mrf.mxu0  ;;  %v4963_v29 = vpop.f32.mrf.mxu1  ;;  %v5060_v45 = vmul.f32 0.70710677, %v11745_v19 }
 0x46f   : > { %v7703_v6 = vadd.f32 %v7702_v12, %v7701_v46  ;;  %v4964_v20 = vadd.f32 %v7700_v41, %v4963_v29  ;;  %v5063_v54 = vmul.f32 0.70710677, %v11706_v48  ;;  %v11726_v63 = vadd.f32 %v11694_v43, %v5007_v32 }
 0x470   : > { %v7704_v58 = vpop.f32.mrf.mxu0  ;;  %v8127_v18 = vpop.f32.mrf.mxu1  ;;  %v5029_v46 = vadd.f32 %v11694_v43, %v5006_v49  ;;  %v5004_v41 = vmul.f32 %v11689_v59, %v4939_v34 }
 0x471   : > { %v4969_v14 = vadd.f32 %v8124_v61, %v7703_v6  ;;  %v5009_v51 = vmul.f32 %v11689_v59, %v4964_v20  ;;  %8834 = verf.f32 %v5063_v54  ;;  %v5062_v38 = vmul.f32 0.70710677, %v11726_v63  ;;  %v8831_v6 = vpop.eup %8830 }
 0x472   : > { %v7705_v2 = vpop.f32.mrf.mxu0  ;;  %v4973_v23 = vpop.f32.mrf.mxu1  ;;  %v5061_v57 = vmul.f32 0.70710677, %v5029_v46  ;;  %v5002_v20 = vmul.f32 %v11689_v59, %v4929_v7  ;;  %v5086_v62 = vadd.f32 1.0, %v8831_v6 }
 0x473   : > { %v7706_v21 = vadd.f32 %v7705_v2, %v7704_v58  ;;  %v5010_v56 = vmul.f32 %v11689_v59, %v4969_v14  ;;  %v11719_v3 = vadd.f32 %v11694_v43, %v5009_v51  ;;  %v11751_v58 = vadd.f32 %v11694_v43, %v5004_v41  ;;  %v8833_v60 = vpop.eup %8832 }
 0x474   : > { %v7707_v27 = vpop.f32.mrf.mxu0  ;;  %v8130_v9 = vpop.f32.mrf.mxu1  ;;  %v5038_v14 = vmul.f32 0.5, %v11697_v15  ;;  %v11760_v51 = vadd.f32 %v11694_v43, %v5002_v20 }
 0x475   : > { %v4974_v33 = vadd.f32 %v7706_v21, %v4973_v23  ;;  %v4989_v37 = vadd.f32 %v8130_v9, %v7715_v25  ;;  %v11716_v53 = vadd.f32 %v11694_v43, %v5010_v56  ;;  %v5064_v61 = vmul.f32 0.70710677, %v11719_v3 }
 0x476   : > { %v7708_v4 = vpop.f32.mrf.mxu0  ;;  %v4983_v40 = vpop.f32.mrf.mxu1  ;;  %v5059_v2 = vmul.f32 0.70710677, %v11751_v58  ;;  %v5087_v23 = vadd.f32 1.0, %v8833_v60  ;;  %v5039_v25 = vmul.f32 0.5, %v11700_v31  ;;  %v5102_v21 = vmul.f32 %v5086_v62, %v5038_v14 }
 0x477   : > { %v5011_v30 = vmul.f32 %v11689_v59, %v4974_v33  ;;  %v5014_v36 = vmul.f32 %v11689_v59, %v4989_v37  ;;  %v7709_v0 = vadd.f32 %v7708_v4, %v7707_v27  ;;  %v4984_v39 = vadd.f32 %v7712_v47, %v4983_v40 }
 0x478   : > { %v5065_v52 = vmul.f32 0.70710677, %v11716_v53  ;;  %v11755_v47 = vadd.f32 %v11694_v43, %v5003_v1  ;;  %v5057_v42 = vmul.f32 0.70710677, %v11760_v51  ;;  %v11769_v32 = vmul.f32 %v5087_v23, %v5039_v25 }
 0x479   : > { %v11730_v55 = vadd.f32 %v11694_v43, %v5011_v30  ;;  %v5037_v44 = vadd.f32 %v11694_v43, %v5014_v36  ;;  %v4979_v5 = vadd.f32 %v8127_v18, %v7709_v0  ;;  %v5013_v35 = vmul.f32 %v11689_v59, %v4984_v39 }
 0x47a   : > { %8836 = verf.f32 %v5065_v52  ;;  %v5058_v16 = vmul.f32 0.70710677, %v11755_v47  ;;  %v5119_v54 = vrot.slane %v11769_v32, 1  ;;  %v5045_v4 = vmul.f32 0.5, %v5029_v46 }
 0x47b   : > { %v5066_v24 = vmul.f32 0.70710677, %v11730_v55  ;;  %v5069_v22 = vmul.f32 0.70710677, %v5037_v44  ;;  %v5012_v12 = vmul.f32 %v11689_v59, %v4979_v5  ;;  %v5036_v29 = vadd.f32 %v11694_v43, %v5013_v35 }
 0x47c   : > { %v11764_v59 = vadd.f32 %v11694_v43, %v5001_v10  ;;  %v5053_v33 = vmul.f32 0.5, %v5037_v44  ;;  %v5050_v40 = vmul.f32 0.5, %v11730_v55  ;;  %v5049_v52 = vmul.f32 0.5, %v11716_v53  ;;  %v13077_v44 = vld [vmem:[#allocation17_spill] sm:$0xff] }
 0x47d   : > { %8838 = verf.f32 %v5066_v24  ;;  %v5035_v11 = vadd.f32 %v11694_v43, %v5012_v12  ;;  %v5068_v8 = vmul.f32 0.70710677, %v5036_v29  ;;  %v5118_v43 = vrot.slane %v5102_v21, 1 }
 0x47e   : > { %8840 = verf.f32 %v5069_v22  ;;  %v8835_v26 = vpop.eup %8834  ;;  %v5056_v56 = vmul.f32 0.70710677, %v11764_v59  ;;  %v5052_v36 = vmul.f32 0.5, %v5036_v29  ;;  %vm13078_vm9 = vcmp.lt.s32.totalorder %v13077_v44, 7 }
 0x47f   : > { %8842 = verf.f32 %v5064_v61  ;;  %v5067_v18 = vmul.f32 0.70710677, %v5035_v11  ;;  %v5051_v5 = vmul.f32 0.5, %v5035_v11  ;;  %v5148_v35 = vsel %vm13078_vm9, %v5118_v43, %v5119_v54  ;;  %vm13079_vm13 = vmmov %vm13078_vm9 }
 0x480   : > { %8844 = verf.f32 %v5068_v8  ;;  %v5047_v22 = vmul.f32 0.5, %v11706_v48  ;;  %v5048_v41 = vmul.f32 0.5, %v11719_v3  ;;  %v5095_v12 = vadd.f32 1.0, %v8835_v26  ;;  %vm13080_vm7 = vmmov %vm13078_vm9 }
 0x481   : > { %8846 = verf.f32 %v5062_v38  ;;  %v11784_v6 = vmax.f32 %v5102_v21, %v5148_v35  ;;  %vm13081_vm15 = vmmov %vm13080_vm7 }
 0x482   : > { %8848 = verf.f32 %v5067_v18  ;;  %vm13082_vm1 = vmmov %vm13080_vm7 }
 0x483   : > { %8850 = verf.f32 %v5061_v57  ;;  %v5046_v57 = vmul.f32 0.5, %v11726_v63  ;;  %vm13083_vm14 = vmmov %vm13082_vm1 }
 0x484   : > { %8852 = verf.f32 %v5060_v45  ;;  %vm13084_vm10 = vmmov %vm13082_vm1 }
 0x485   : > { %8854 = verf.f32 %v5059_v2  ;;  %v5111_v2 = vmul.f32 %v5095_v12, %v5047_v22  ;;  %vm13085_vm6 = vmmov %vm13082_vm1 }
 0x486   : > { %8856 = verf.f32 %v5058_v16  ;;  %vm13086_vm12 = vmmov %vm13082_vm1 }
 0x487   : > { %v8837_v15 = vpop.eup %8836  ;;  %8858 = verf.f32 %v5057_v42  ;;  %v5044_v42 = vmul.f32 0.5, %v11745_v19  ;;  %vm13087_vm2 = vmmov %vm13082_vm1 }
 0x488   : > { %8860 = verf.f32 %v5056_v56  ;;  %v5097_v13 = vadd.f32 1.0, %v8837_v15  ;;  %vm13088_vm0 = vmmov %vm13082_vm1 }
 0x489   : > { %vm13089_vm11 = vmmov %vm13088_vm0 }
 0x48a   : > { %v8839_v27 = vpop.eup %8838  ;;  %v5113_v8 = vmul.f32 %v5097_v13, %v5049_v52  ;;  %v5042_v13 = vmul.f32 0.5, %v11755_v47  ;;  %vm13090_vm8 = vmmov %vm13088_vm0 }
 0x48b   : > { %v8841_v9 = vpop.eup %8840  ;;  %v5098_v49 = vadd.f32 1.0, %v8839_v27  ;;  %vm13091_vm5 = vmmov %vm13088_vm0 }
 0x48c   : > { %v8843_v34 = vpop.eup %8842  ;;  %v5101_v37 = vadd.f32 1.0, %v8841_v9  ;;  %v5129_v21 = vrot.slane %v5113_v8, 1  ;;  %vm13092_vm9 = vmmov %vm13088_vm0 }
 0x48d   : > { %v8845_v31 = vpop.eup %8844  ;;  %v5096_v7 = vadd.f32 1.0, %v8843_v34  ;;  %v5114_v55 = vmul.f32 %v5098_v49, %v5050_v40  ;;  %v5043_v49 = vmul.f32 0.5, %v11751_v58 }
 0x48e   : > { %v8847_v30 = vpop.eup %8846  ;;  %v5117_v0 = vmul.f32 %v5101_v37, %v5053_v33  ;;  %v5100_v39 = vadd.f32 1.0, %v8845_v31 }
 0x48f   : > { %v8849_v17 = vpop.eup %8848  ;;  %v5094_v29 = vadd.f32 1.0, %v8847_v30  ;;  %v5130_v3 = vrot.slane %v5114_v55, 1  ;;  %v5112_v45 = vmul.f32 %v5096_v7, %v5048_v41  ;;  %v5041_v7 = vmul.f32 0.5, %v11760_v51 }
 0x490   : > { %v8851_v50 = vpop.eup %8850  ;;  %v5133_v61 = vrot.slane %v5117_v0, 1  ;;  %v5116_v46 = vmul.f32 %v5100_v39, %v5052_v36  ;;  %v5099_v24 = vadd.f32 1.0, %v8849_v17  ;;  %v5127_v36 = vrot.slane %v5111_v2, 1 }
 0x491   : > { %v8853_v1 = vpop.eup %8852  ;;  %v5093_v18 = vadd.f32 1.0, %v8851_v50  ;;  %v5110_v26 = vmul.f32 %v5094_v29, %v5046_v57  ;;  %v5137_v9 = vsel %vm13083_vm14, %v5129_v21, %v5130_v3  ;;  %v5040_v29 = vmul.f32 0.5, %v11764_v59 }
 0x492   : > { %v5149_v53 = vsel %vm13079_vm13, %v5133_v61, %v5118_v43  ;;  %v5132_v38 = vrot.slane %v5116_v46, 1  ;;  %v5115_v11 = vmul.f32 %v5099_v24, %v5051_v5  ;;  %v8855_v60 = vpop.eup %8854  ;;  %v5092_v23 = vadd.f32 1.0, %v8853_v1  ;;  %vm13093_vm13 = vmmov %vm13088_vm0 }
 0x493   : > { %v5165_v20 = vmax.f32 %v5117_v0, %v5149_v53  ;;  %v8857_v16 = vpop.eup %8856  ;;  %v5128_v43 = vrot.slane %v5112_v45, 1  ;;  %v5109_v34 = vmul.f32 %v5093_v18, %v5045_v4  ;;  %v5091_v33 = vadd.f32 1.0, %v8855_v60 }
 0x494   : > { %v5134_v48 = vsel %vm13080_vm7, %v5132_v38, %v5133_v61  ;;  %v5131_v10 = vrot.slane %v5115_v11, 1  ;;  %v8859_v37 = vpop.eup %8858  ;;  %v5090_v40 = vadd.f32 1.0, %v8857_v16  ;;  %v5126_v0 = vrot.slane %v5110_v26, 1 }
 0x495   : > { %v5181_v62 = vmax.f32 %v5165_v20, %v11784_v6  ;;  %v5164_v14 = vmax.f32 %v5116_v46, %v5134_v48  ;;  %v8861_v30 = vpop.eup %8860  ;;  %v5138_v19 = vsel %vm13084_vm10, %v5128_v43, %v5129_v21  ;;  %v5108_v39 = vmul.f32 %v5092_v23, %v5044_v42 }
 0x496   : > { %v5135_v63 = vsel %vm13081_vm15, %v5131_v10, %v5132_v38  ;;  %v5136_v25 = vsel %vm13082_vm1, %v5130_v3, %v5131_v10  ;;  %v5161_v4 = vmax.f32 %v5113_v8, %v5137_v9  ;;  %v5139_v58 = vsel %vm13085_vm6, %v5127_v36, %v5128_v43  ;;  %v5183_v43 = vld [vmem:[%s8988_s14 + $0x8] sm:$0xff] }
 0x497   : > { %8131 = vmatprep.subr.mxu1 %v5181_v62  ;;  %v5180_v15 = vmax.f32 %v5164_v14, %v5165_v20  ;;  %v5163_v56 = vmax.f32 %v5115_v11, %v5135_v63  ;;  %v5162_v27 = vmax.f32 %v5114_v55, %v5136_v25  ;;  %v5125_v52 = vrot.slane %v5109_v34, 1 }
 0x498   : > { %8132 = vmatpush3.msra.mxu1 %v5181_v62  ;;  %v5107_v5 = vmul.f32 %v5091_v33, %v5043_v49  ;;  %v5089_v35 = vadd.f32 1.0, %v8859_v37  ;;  %v5160_v61 = vmax.f32 %v5112_v45, %v5138_v19  ;;  %v5088_v46 = vadd.f32 1.0, %v8861_v30  ;;  %v5777_v33 = vld [vmem:[%s8993_s19 + $0xf8] sm:$0xff]  ;;  %v5776_v30 = vld [vmem:[%s8993_s19 + $0xf0] sm:$0xff]  ;;  %v5807_v19 = vld [vmem:[%s8993_s19 + $0x1e8] sm:$0xff] }
 0x499   : > { %8133 = vmatprep.subr.mxu1 %v5180_v15  ;;  %v5179_v31 = vmax.f32 %v5163_v56, %v5164_v14  ;;  %v5178_v17 = vmax.f32 %v5162_v27, %v5163_v56  ;;  %v5177_v50 = vmax.f32 %v5161_v4, %v5162_v27  ;;  %v5140_v47 = vsel %vm13086_vm12, %v5126_v0, %v5127_v36  ;;  %v5809_v37 = vld [vmem:[%s8993_s19 + $0x1f8] sm:$0xff]  ;;  %v5760_v36 = vld [vmem:[%s8993_s19 + $0x70] sm:$0xff] }
 0x49a   : > { %8134 = vmatpush3.msra.mxu1 %v5180_v15  ;;  %v5141_v24 = vsel %vm13087_vm2, %v5125_v52, %v5126_v0  ;;  %v5124_v55 = vrot.slane %v5108_v39, 1  ;;  %v5106_v22 = vmul.f32 %v5090_v40, %v5042_v13  ;;  %v5176_v41 = vmax.f32 %v5160_v61, %v5161_v4  ;;  %v5761_v49 = vld [vmem:[%s8993_s19 + $0x78] sm:$0xff]  ;;  %7756 = vmatprep.subr.mxu0 %v5777_v33  ;;  %v5792_v40 = vld [vmem:[%s8993_s19 + $0x170] sm:$0xff]  ;;  %v5791_v0 = vld [vmem:[%s8993_s19 + $0x168] sm:$0xff] }
 0x49b   : > { %8135 = vmatprep.subr.mxu1 %v5179_v31  ;;  %v5159_v12 = vmax.f32 %v5111_v2, %v5139_v58  ;;  %v5123_v51 = vrot.slane %v5107_v5, 1  ;;  %v5105_v1 = vmul.f32 %v5089_v35, %v5041_v7  ;;  %v5158_v38 = vmax.f32 %v5110_v26, %v5140_v47  ;;  %7757 = vmatpush3.msra.mxu0 %v5761_v49  ;;  %v5806_v13 = vld [vmem:[%s8993_s19 + $0x1e0] sm:$0xff]  ;;  %v5773_v35 = vld [vmem:[%s8993_s19 + $0xd8] sm:$0xff]  ;;  %v5788_v47 = vld [vmem:[%s8993_s19 + $0x150] sm:$0xff] }
 0x49c   : > { %8136 = vmatpush3.msra.mxu1 %v5179_v31  ;;  %v5157_v11 = vmax.f32 %v5109_v34, %v5141_v24  ;;  %v5142_v8 = vsel %vm13088_vm0, %v5124_v55, %v5125_v52  ;;  %v5122_v20 = vrot.slane %v5106_v22, 1  ;;  %v5104_v18 = vmul.f32 %v5088_v46, %v5040_v29  ;;  %v5185_v34 = vld [vmem:[%s8988_s14 + $0x18] sm:$0xff]  ;;  %v5808_v31 = vld [vmem:[%s8993_s19 + $0x1f0] sm:$0xff]  ;;  %7758 = vmatprep.subr.mxu0 %v5776_v30  ;;  %v5790_v4 = vld [vmem:[%s8993_s19 + $0x160] sm:$0xff] }
 0x49d   : > { %8137 = vmatprep.subr.mxu1 %v5178_v17  ;;  %v5175_v53 = vmax.f32 %v5159_v12, %v5160_v61  ;;  %v5143_v57 = vsel %vm13089_vm11, %v5123_v51, %v5124_v55  ;;  %v5174_v48 = vmax.f32 %v5158_v38, %v5159_v12  ;;  %v5121_v59 = vrot.slane %v5105_v1, 1  ;;  %7759 = vmatpush3.msra.mxu0 %v5760_v36  ;;  %v5774_v58 = vld [vmem:[%s8993_s19 + $0xe0] sm:$0xff]  ;;  %v5789_v7 = vld [vmem:[%s8993_s19 + $0x158] sm:$0xff]  ;;  %v5804_v61 = vld [vmem:[%s8993_s19 + $0x1d0] sm:$0xff] }
 0x49e   : > { %8138 = vmatpush3.msra.mxu1 %v5178_v17  ;;  %v5173_v10 = vmax.f32 %v5157_v11, %v5158_v38  ;;  %v5156_v3 = vmax.f32 %v5108_v39, %v5142_v8  ;;  %v5155_v45 = vmax.f32 %v5107_v5, %v5143_v57  ;;  %v5144_v60 = vsel %vm13090_vm8, %v5122_v20, %v5123_v51  ;;  %v5775_v39 = vld [vmem:[%s8993_s19 + $0xe8] sm:$0xff]  ;;  %v5758_v52 = vld [vmem:[%s8993_s19 + $0x60] sm:$0xff]  ;;  %v5805_v5 = vld [vmem:[%s8993_s19 + $0x1d8] sm:$0xff] }
 0x49f   : > { %8139 = vmatprep.subr.mxu1 %v5177_v50  ;;  %v5145_v62 = vsel %vm13091_vm5, %v5121_v59, %v5122_v20  ;;  %v5120_v14 = vrot.slane %v5104_v18, 1  ;;  %v5154_v16 = vmax.f32 %v5106_v22, %v5144_v60  ;;  %v5759_v17 = vld [vmem:[%s8993_s19 + $0x68] sm:$0xff]  ;;  %7760 = vmatprep.subr.mxu0 %v5775_v39  ;;  %v5772_v46 = vld [vmem:[%s8993_s19 + $0xd0] sm:$0xff]  ;;  %v5802_v29 = vld [vmem:[%s8993_s19 + $0x1c0] sm:$0xff]  ;;  %vm5420_vm15 = vcmp.lt.s32.totalorder %v13077_v44, 4 }
 0x4a0   : > { %8140 = vmatpush3.msra.mxu1 %v5177_v50  ;;  %v5172_v2 = vmax.f32 %v5156_v3, %v5157_v11  ;;  %v5171_v23 = vmax.f32 %v5155_v45, %v5156_v3  ;;  %v5153_v63 = vmax.f32 %v5105_v1, %v5145_v62  ;;  %7761 = vmatpush3.msra.mxu0 %v5759_v17  ;;  %v5757_v50 = vld [vmem:[%s8993_s19 + $0x58] sm:$0xff]  ;;  %v5756_v24 = vld [vmem:[%s8993_s19 + $0x50] sm:$0xff]  ;;  %v5803_v55 = vld [vmem:[%s8993_s19 + $0x1c8] sm:$0xff] }
 0x4a1   : > { %8141 = vmatprep.subr.mxu1 %v5176_v41  ;;  %v5146_v25 = vsel %vm13092_vm9, %v5120_v14, %v5121_v59  ;;  %v5147_v21 = vsel %vm13093_vm13, %v5119_v54, %v5120_v14  ;;  %v5170_v26 = vmax.f32 %v5154_v16, %v5155_v45  ;;  %7762 = vmatprep.subr.mxu0 %v5774_v58  ;;  %v5771_v22 = vld [vmem:[%s8993_s19 + $0xc8] sm:$0xff]  ;;  %v5770_v51 = vld [vmem:[%s8993_s19 + $0xc0] sm:$0xff]  ;;  %v5801_v38 = vld [vmem:[%s8993_s19 + $0x1b8] sm:$0xff] }
 0x4a2   : > { %8142 = vmatpush3.msra.mxu1 %v5176_v41  ;;  %v5169_v42 = vmax.f32 %v5153_v63, %v5154_v16  ;;  %v5152_v15 = vmax.f32 %v5104_v18, %v5146_v25  ;;  %v5151_v56 = vmax.f32 %v11769_v32, %v5147_v21  ;;  %v5184_v32 = vld [vmem:[%s8988_s14 + $0x10] sm:$0xff]  ;;  %7763 = vmatpush3.msra.mxu0 %v5758_v52  ;;  %v5787_v41 = vld [vmem:[%s8993_s19 + $0x148] sm:$0xff]  ;;  %v5786_v1 = vld [vmem:[%s8993_s19 + $0x140] sm:$0xff] }
 0x4a3   : > { %8143 = vmatprep.subr.mxu1 %v5175_v53  ;;  %7764 = vmatprep.subr.mxu0 %v5773_v35  ;;  %v5755_v12 = vld [vmem:[%s8993_s19 + $0x48] sm:$0xff]  ;;  %v5769_v11 = vld [vmem:[%s8993_s19 + $0xb8] sm:$0xff]  ;;  %v5800_v20 = vld [vmem:[%s8993_s19 + $0x1b0] sm:$0xff] }
 0x4a4   : > { %8144 = vmatpush3.msra.mxu1 %v5175_v53  ;;  %v5168_v27 = vmax.f32 %v5152_v15, %v5153_v63  ;;  %v5167_v54 = vmax.f32 %v5151_v56, %v5152_v15  ;;  %v5166_v9 = vmax.f32 %v11784_v6, %v5151_v56  ;;  %v5793_v6 = vld [vmem:[%s8993_s19 + $0x178] sm:$0xff]  ;;  %7765 = vmatpush3.msra.mxu0 %v5757_v50  ;;  %v5754_v53 = vld [vmem:[%s8993_s19 + $0x40] sm:$0xff]  ;;  %v5768_v18 = vld [vmem:[%s8993_s19 + $0xb0] sm:$0xff]  ;;  %v11882_v15 = vand.u32 15, %v13077_v44 }
 0x4a5   : > { %8145 = vmatprep.subr.mxu1 %v5174_v48  ;;  %7766 = vmatprep.subr.mxu0 %v5772_v46  ;;  %v5785_v8 = vld [vmem:[%s8993_s19 + $0x138] sm:$0xff]  ;;  %v5752_v59 = vld [vmem:[%s8993_s19 + $0x30] sm:$0xff]  ;;  %v5767_v3 = vld [vmem:[%s8993_s19 + $0xa8] sm:$0xff] }
 0x4a6   : > { %8146 = vmatpush3.msra.mxu1 %v5174_v48  ;;  %7767 = vmatpush3.msra.mxu0 %v5756_v24  ;;  %v5753_v57 = vld [vmem:[%s8993_s19 + $0x38] sm:$0xff]  ;;  %v5784_v48 = vld [vmem:[%s8993_s19 + $0x130] sm:$0xff]  ;;  %v5783_v45 = vld [vmem:[%s8993_s19 + $0x128] sm:$0xff]  ;;  %v5502_v49 = vadd.s32 4294967295, %v11882_v15 }
 0x4a7   : > { %8147 = vmatprep.subr.mxu1 %v5173_v10  ;;  %7768 = vmatprep.subr.mxu0 %v5771_v22  ;;  %v5751_v60 = vld [vmem:[%s8993_s19 + $0x28] sm:$0xff]  ;;  %v5798_v62 = vld [vmem:[%s8993_s19 + $0x1a0] sm:$0xff]  ;;  %v5797_v16 = vld [vmem:[%s8993_s19 + $0x198] sm:$0xff] }
 0x4a8   : > { %8148 = vmatpush3.msra.mxu1 %v5173_v10  ;;  %7769 = vmatpush3.msra.mxu0 %v5755_v12  ;;  %v5799_v10 = vld [vmem:[%s8993_s19 + $0x1a8] sm:$0xff]  ;;  %v5766_v14 = vld [vmem:[%s8993_s19 + $0xa0] sm:$0xff]  ;;  %v5765_v63 = vld [vmem:[%s8993_s19 + $0x98] sm:$0xff]  ;;  %vm5506_vm10 = vcmp.ge.s32.totalorder %v5502_v49, 0 }
 0x4a9   : > { %8149 = vmatprep.subr.mxu1 %v5172_v2  ;;  %7770 = vmatprep.subr.mxu0 %v5770_v51  ;;  %v5781_v25 = vld [vmem:[%s8993_s19 + $0x118] sm:$0xff]  ;;  %v5795_v33 = vld [vmem:[%s8993_s19 + $0x188] sm:$0xff]  ;;  %v5778_v35 = vld [vmem:[%s8993_s19 + $0x100] sm:$0xff] }
 0x4aa   : > { %8150 = vmatpush3.msra.mxu1 %v5172_v2  ;;  %7771 = vmatpush3.msra.mxu0 %v5754_v53  ;;  %v5782_v2 = vld [vmem:[%s8993_s19 + $0x120] sm:$0xff]  ;;  %v5749_v21 = vld [vmem:[%s8993_s19 + $0x18] sm:$0xff]  ;;  %v5763_v39 = vld [vmem:[%s8993_s19 + $0x88] sm:$0xff] }
 0x4ab   : > { %8151 = vmatprep.subr.mxu1 %v5171_v23  ;;  %7772 = vmatprep.subr.mxu0 %v5769_v11  ;;  %v13094_v56 = vld [vmem:[#allocation30_spill] sm:$0xff]  ;;  %v5747_v17 = vld [vmem:[%s8993_s19 + $0x8] sm:$0xff] }
 0x4ac   : > { %8152 = vmatpush3.msra.mxu1 %v5171_v23  ;;  %7773 = vmatpush3.msra.mxu0 %v5753_v57  ;;  %v5750_v23 = vld [vmem:[%s8993_s19 + $0x20] sm:$0xff] }
 0x4ad   : > { %8153 = vmatprep.subr.mxu1 %v5170_v26  ;;  %7774 = vmatprep.subr.mxu0 %v5768_v18  ;;  %v13100_v52 = vld [vmem:[#allocation31_spill] sm:$0xff] }
 0x4ae   : > { %8154 = vmatpush3.msra.mxu1 %v5170_v26  ;;  %7775 = vmatpush3.msra.mxu0 %v5752_v59  ;;  %v5796_v26 = vld [vmem:[%s8993_s19 + $0x190] sm:$0xff]  ;;  %v5746_v50 = vld [vmem:[%s8993_s19] sm:$0xff] }
 0x4af   : > { %8155 = vmatprep.subr.mxu1 %v5169_v42  ;;  %7776 = vmatprep.subr.mxu0 %v5767_v3 }
 0x4b0   : > { %8156 = vmatpush3.msra.mxu1 %v5169_v42  ;;  %7777 = vmatpush3.msra.mxu0 %v5751_v60  ;;  %v5780_v42 = vld [vmem:[%s8993_s19 + $0x110] sm:$0xff] }
 0x4b1   : > { %8157 = vmatprep.subr.mxu1 %v5168_v27  ;;  %7778 = vmatprep.subr.mxu0 %v5766_v14 }
 0x4b2   : > { %8158 = vmatpush3.msra.mxu1 %v5168_v27  ;;  %7779 = vmatpush3.msra.mxu0 %v5750_v23  ;;  %v11885_v27 = vand.u32 15, %v13094_v56 }
 0x4b3   : > { %8159 = vmatprep.subr.mxu1 %v5167_v54  ;;  %7780 = vmatprep.subr.mxu0 %v5765_v63 }
 0x4b4   : > { %8160 = vmatpush3.msra.mxu1 %v5167_v54  ;;  %7781 = vmatpush3.msra.mxu0 %v5749_v21  ;;  %v5323_v54 = vand.u32 3, %v13077_v44  ;;  %v11902_v30 = vadd.s32 4, %v11885_v27 }
 0x4b5   : > { %8161 = vmatprep.subr.mxu1 %v5166_v9 }
 0x4b6   : > { %8162 = vmatpush3.msra.mxu1 %v5166_v9  ;;  %v11889_v9 = vadd.s32 4294967292, %v11882_v15  ;;  %vm11905_vm7 = vcmp.lt.s32.totalorder %v5323_v54, 3  ;;  %vm11910_vm1 = vcmp.ge.s32.totalorder %v5323_v54, 1  ;;  %vm5615_vm0 = vcmp.lt.s32.totalorder %v11902_v30, 16 }
 0x4b7   : > { %8164 = vmatmul.mubr.f32.vlgmr.msra.gmra.mxu1 %v5183_v43  ;;  %7800 = vmatprep.subr.mxu1 %v5809_v37  ;;  %v13095_v43 = vld [vmem:[#allocation18_spill] sm:$0xff]  ;;  %v5748_v37 = vld [vmem:[%s8993_s19 + $0x10] sm:$0xff]  ;;  %vm11983_vm4 = vmand %vm5506_vm10, %vm11910_vm1  ;;  %vm13113_vm10 = vcmp.lt.s32.totalorder %v13077_v44, 1 }
 0x4b8   : > { %8166 = vmatprep.mubr.f32.mxu1 %v5184_v32  ;;  %7801 = vmatpush3.msra.mxu1 %v5793_v6  ;;  %v11892_v32 = vand.u32 15, %v13095_v43  ;;  %v5330_v6 = vand.u32 3, %v13094_v56  ;;  %vm5429_vm14 = vcmp.ge.s32.totalorder %v11889_v9, 0  ;;  %vm13114_vm3 = vmmov %vm13113_vm10 }
 0x4b9   : > { %7802 = vmatprep.subr.mxu1 %v5808_v31  ;;  %v5779_v31 = vld [vmem:[%s8993_s19 + $0x108] sm:$0xff] }
 0x4ba   : > { %7803 = vmatpush3.msra.mxu1 %v5792_v40  ;;  %v5543_v40 = vadd.s32 1, %v11885_v27  ;;  %v11921_v58 = vadd.s32 4294967295, %v11892_v32  ;;  %vm11927_vm6 = vcmp.lt.s32.totalorder %v5330_v6, 3  ;;  %vm11931_vm12 = vcmp.ge.s32.totalorder %v5330_v6, 1 }
 0x4bb   : > { %8167 = vmatmul.mubr.f32.gmra.mxu1 %v5185_v34  ;;  %7804 = vmatprep.subr.mxu1 %v5807_v19  ;;  %v5764_v34 = vld [vmem:[%s8993_s19 + $0x90] sm:$0xff]  ;;  %v5337_v19 = vand.u32 3, %v13095_v43  ;;  %v5427_v11 = vadd.s32 4294967292, %v11892_v32 }
 0x4bc   : > { %7805 = vmatpush3.msra.mxu1 %v5791_v0  ;;  %7782 = vmatprep.subr.mxu0 %v5764_v34  ;;  %vm5551_vm2 = vcmp.lt.s32.totalorder %v5543_v40, 16  ;;  %vm5508_vm5 = vcmp.ge.s32.totalorder %v11921_v58, 0 }
 0x4bd   : > { %7806 = vmatprep.subr.mxu1 %v5806_v13  ;;  %7783 = vmatpush3.msra.mxu0 %v5748_v37  ;;  %v5794_v13 = vld [vmem:[%s8993_s19 + $0x180] sm:$0xff]  ;;  %vm11941_vm11 = vcmp.lt.s32.totalorder %v5337_v19, 3  ;;  %vm11945_vm8 = vcmp.ge.s32.totalorder %v5337_v19, 1 }
 0x4be   : > { %7807 = vmatpush3.msra.mxu1 %v5790_v4  ;;  %7784 = vmatprep.subr.mxu0 %v5763_v39 }
 0x4bf   : > { %7808 = vmatprep.subr.mxu1 %v5805_v5  ;;  %v5344_v5 = vand.u32 3, %v13100_v52  ;;  %7785 = vmatpush3.msra.mxu0 %v5747_v17 }
 0x4c0   : > { %7809 = vmatpush3.msra.mxu1 %v5789_v7  ;;  %v5762_v7 = vld [vmem:[%s8993_s19 + $0x80] sm:$0xff] }
 0x4c1   : > { %7810 = vmatprep.subr.mxu1 %v5804_v61  ;;  %7786 = vmatprep.subr.mxu0 %v5762_v7  ;;  %vm11964_vm9 = vcmp.lt.s32.totalorder %v5344_v5, 3 }
 0x4c2   : > { %7811 = vmatpush3.msra.mxu1 %v5788_v47  ;;  %v11936_v47 = vand.u32 15, %v13100_v52  ;;  %7787 = vmatpush3.msra.mxu0 %v5746_v50  ;;  %v5462_v52 = vadd.s32 4294967293, %v11882_v15 }
 0x4c3   : > { %7812 = vmatprep.subr.mxu1 %v5803_v55 }
 0x4c4   : > { %7813 = vmatpush3.msra.mxu1 %v5787_v41 }
 0x4c5   : > { %7814 = vmatprep.subr.mxu1 %v5802_v29 }
 0x4c6   : > { %7815 = vmatpush3.msra.mxu1 %v5786_v1  ;;  %v11955_v1 = vld [vmem:[%s8993_s19 + $0x238] sm:$0xff] }
 0x4c7   : > { %7816 = vmatprep.subr.mxu1 %v5801_v38  ;;  %8169 = vmatprep.subr.mxu0 %v11955_v1 }
 0x4c8   : > { %7817 = vmatpush3.msra.mxu1 %v5785_v8 }
 0x4c9   : > { %7818 = vmatprep.subr.mxu1 %v5800_v20 }
 0x4ca   : > { %7819 = vmatpush3.msra.mxu1 %v5784_v48  ;;  %v5545_v48 = vadd.s32 1, %v11936_v47 }
 0x4cb   : > { %7820 = vmatprep.subr.mxu1 %v5799_v10 }
 0x4cc   : > { %7821 = vmatpush3.msra.mxu1 %v5783_v45 }
 0x4cd   : > { %7822 = vmatprep.subr.mxu1 %v5798_v62  ;;  %v5609_v62 = vadd.s32 4, %v11936_v47 }
 0x4ce   : > { %7823 = vmatpush3.msra.mxu1 %v5782_v2 }
 0x4cf   : > { %7824 = vmatprep.subr.mxu1 %v5797_v16 }
 0x4d0   : > { %7825 = vmatpush3.msra.mxu1 %v5781_v25 }
 0x4d1   : > { %7826 = vmatprep.subr.mxu1 %v5796_v26 }
 0x4d2   : > { %7827 = vmatpush3.msra.mxu1 %v5780_v42 }
 0x4d3   : > { %7828 = vmatprep.subr.mxu1 %v5795_v33 }
 0x4d4   : > { %7829 = vmatpush3.msra.mxu1 %v5779_v31 }
 0x4d5   : > { %7830 = vmatprep.subr.mxu1 %v5794_v13 }
 0x4d6   : > { %7831 = vmatpush3.msra.mxu1 %v5778_v35 }
 0x4d7   : > { %8237 = vmatprep.subr.mxu1 %v13039_v28 }
 0x577   : > { %v11917_v4 = vpop.f32.mrf.mxu1 }
 0x578   : > { %v5417_v12 = vrot.slane %v11917_v4, 4  ;;  %v5535_v51 = vrot.slane %v11917_v4, 1  ;;  %v5495_v60 = vrot.slane %v11917_v4, 7 }
 0x579   : > { %v11938_v24 = vpop.f32.mrf.mxu1 }
 0x57a   : > { %v5416_v41 = vrot.slane %v11938_v24, 4  ;;  %v5534_v29 = vrot.slane %v11938_v24, 1  ;;  %v5494_v38 = vrot.slane %v11938_v24, 7 }
 0x57b   : > { %v11957_v53 = vpop.f32.mrf.mxu1 }
 0x57c   : > { %v5423_v57 = vsel %vm5420_vm15, %v5416_v41, %v5417_v12  ;;  %v5540_v20 = vsel %vm13093_vm13, %v5534_v29, %v5535_v51  ;;  %v5419_v18 = vrot.slane %v11957_v53, 4  ;;  %v5497_v3 = vrot.slane %v11957_v53, 7  ;;  %vm5559_vm13 = vmand %vm5551_vm2, %vm11927_vm6 }
 0x57d   : > { %v11975_v59 = vpop.f32.mrf.mxu1  ;;  %v5570_v10 = vsel %vm11905_vm7, %v5540_v20, 0.0  ;;  %v5500_v21 = vsel %vm13114_vm3, %v5494_v38, %v5495_v60  ;;  %vm13115_vm2 = vcmp.lt.s32.totalorder %v13077_v44, 7  ;;  %v5537_v9 = vrot.slane %v11957_v53, 1 }
 0x57e   : > { %v8660_v14 = vpack.i.bf16 %v5570_v10, %v5423_v57  ;;  %v5424_v2 = vsel %vm5420_vm15, %v5419_v18, %v5416_v41  ;;  %v5418_v23 = vrot.slane %v11975_v59, 4  ;;  %v5536_v16 = vrot.slane %v11975_v59, 1 }
 0x57f   : > { %v5449_v63 = vsel %vm5429_vm14, %v5424_v2, 0.0  ;;  %v5501_v25 = vsel %vm13113_vm10, %v5497_v3, %v5494_v38  ;;  %v5496_v26 = vrot.slane %v11975_v59, 7  ;;  %vm5553_vm3 = vcmp.lt.s32.totalorder %v5545_v48, 16 }
 0x580   : > { %8661 = vrot.lane.b32.xlu1 %v8660_v14, %s8932_s15  ;;  %v5530_v42 = vsel %vm11983_vm4, %v5501_v25, 0.0  ;;  %v5422_v56 = vsel %vm5420_vm15, %v5417_v12, %v5418_v23  ;;  %v5539_v54 = vsel %vm13115_vm2, %v5535_v51, %v5536_v16  ;;  %v5531_v49 = vsel %vm11931_vm12, %v5500_v21, 0.0  ;;  %vm13116_vm4 = vmmov %vm13115_vm2 }
 0x581   : > { %v8665_v43 = vpack.i.bf16 %v5449_v63, %v5530_v42  ;;  %v5571_v34 = vsel %vm5559_vm13, %v5539_v54, 0.0  ;;  %v5631_v33 = vsel %vm5615_vm0, %v5422_v56, 0.0  ;;  %v5538_v6 = vsel %vm13116_vm4, %v5536_v16, %v5537_v9  ;;  %vm13117_vm13 = vmmov %vm13113_vm10 }
 0x582   : > { %v8675_v37 = vpack.i.bf16 %v5571_v34, %v5631_v33  ;;  %v5421_v31 = vsel %vm5420_vm15, %v5418_v23, %v5419_v18  ;;  %v5572_v40 = vsel %vm11941_vm11, %v5538_v6, 0.0  ;;  %vm5431_vm14 = vcmp.ge.s32.totalorder %v5427_v11, 0  ;;  %vm5520_vm0 = vmand %vm5508_vm5, %vm11945_vm8 }
 0x583   : > { %8666 = vrot.lane.b32.xlu0 %v8665_v43, %s8932_s15  ;;  %v5499_v30 = vsel %vm13117_vm13, %v5495_v60, %v5496_v26  ;;  %vm13118_vm10 = vmmov %vm13115_vm2  ;;  %vm5617_vm4 = vcmp.lt.s32.totalorder %v5609_v62, 16  ;;  %v8670_v39 = vpack.i.bf16 %v5423_v57, %v5531_v49  ;;  %v8685_v13 = vpack.i.bf16 %v5572_v40, %v5421_v31 }
 0x584   : > { %8676 = vrot.lane.b32.xlu1 %v8675_v37, %s8932_s15  ;;  %v5541_v19 = vsel %vm13118_vm10, %v5537_v9, %v5534_v29  ;;  %vm5561_vm2 = vmand %vm5553_vm3, %vm11964_vm9  ;;  %v5451_v17 = vsel %vm5431_vm14, %v5422_v56, 0.0  ;;  %v5532_v35 = vsel %vm5520_vm0, %v5499_v30, 0.0  ;;  %v5633_v50 = vsel %vm5617_vm4, %v5424_v2, 0.0 }
 0x585   : > { %v5573_v7 = vsel %vm5561_vm2, %v5541_v19, 0.0  ;;  %v5498_v58 = vsel %vm13117_vm13, %v5496_v26, %v5497_v3  ;;  %v8680_v41 = vpack.i.bf16 %v5451_v17, %v5532_v35  ;;  %vm12039_vm5 = vcmp.ge.s32.totalorder %v5344_v5, 1 }
 0x586   : > { %v8695_v29 = vpack.i.bf16 %v5573_v7, %v5633_v50  ;;  %v5533_v51 = vsel %vm12039_vm5, %v5498_v58, 0.0  ;;  %v5384_v11 = vadd.s32 4294967291, %v11882_v15  ;;  %v5375_v57 = vrot.slane %v11938_v24, 3  ;;  %v5816_v7 = vld [vmem:[%s8993_s19 + $0x230] sm:$0xff] }
 0x587   : > { %8671 = vrot.lane.b32.xlu0 %v8670_v39, %s8932_s15  ;;  %v8690_v38 = vpack.i.bf16 %v5421_v31, %v5533_v51  ;;  %vm5379_vm3 = vcmp.lt.s32.totalorder %v13077_v44, 5  ;;  %v5575_v5 = vadd.s32 3, %v11885_v27  ;;  %v5378_v20 = vrot.slane %v11957_v53, 3 }
 0x588   : > { %8686 = vrot.lane.b32.xlu1 %v8685_v13, %s8932_s15  ;;  %v5376_v18 = vrot.slane %v11917_v4, 3  ;;  %v5456_v48 = vrot.slane %v11957_v53, 5  ;;  %vm5388_vm14 = vcmp.ge.s32.totalorder %v5384_v11, 0  ;;  %vm5466_vm0 = vcmp.ge.s32.totalorder %v5462_v52, 0 }
 0x589   : > { %v5377_v3 = vrot.slane %v11975_v59, 3  ;;  %v5453_v15 = vrot.slane %v11938_v24, 5  ;;  %vm5583_vm10 = vcmp.lt.s32.totalorder %v5575_v5, 16  ;;  %v5464_v60 = vadd.s32 4294967293, %v11892_v32  ;;  %vm12070_vm4 = vmand %vm5388_vm14, %vm11910_vm1 }
 0x58a   : > { %v12058_v10 = vsel %vm5379_vm3, %v5375_v57, %v5376_v18  ;;  %vm5457_vm2 = vcmp.lt.s32.totalorder %v13077_v44, 3  ;;  %v12066_v2 = vsel %vm5379_vm3, %v5378_v20, %v5375_v57  ;;  %vm12085_vm13 = vmand %vm5466_vm0, %vm11905_vm7  ;;  %v5386_v21 = vadd.s32 4294967291, %v11892_v32  ;;  %v5815_v57 = vld [vmem:[%s8993_s19 + $0x228] sm:$0xff] }
 0x58b   : > { %8681 = vrot.lane.b32.xlu0 %v8680_v41, %s8932_s15  ;;  %v5602_v16 = vsel %vm11910_vm1, %v12058_v10, 0.0  ;;  %v12081_v63 = vsel %vm5457_vm2, %v5456_v48, %v5453_v15  ;;  %v5577_v26 = vadd.s32 3, %v11936_v47  ;;  %vm13125_vm14 = vcmask 523264   ;;  %vm12101_vm0 = vmand %vm5583_vm10, %vm11931_vm12 }
 0x58c   : > { %8696 = vrot.lane.b32.xlu1 %v8695_v29, %s8932_s15  ;;  %vm13126_vm1 = vmmov %vm13125_vm14  ;;  %v12096_v54 = vsel %vm5379_vm3, %v5376_v18, %v5377_v3  ;;  %v5454_v32 = vrot.slane %v11917_v4, 5  ;;  %v5490_v6 = vsel %vm12085_vm13, %v12081_v63, 0.0  ;;  %v5455_v39 = vrot.slane %v11975_v59, 5 }
 0x58d   : > { %vm13129_vm10 = vmmov %vm13126_vm1  ;;  %v5603_v19 = vsel %vm12101_vm0, %v12096_v54, 0.0  ;;  %v12128_v50 = vsel %vm5379_vm3, %v5377_v3, %v5378_v20  ;;  %vm5585_vm0 = vcmp.lt.s32.totalorder %v5577_v26, 16  ;;  %v5413_v11 = vsel %vm11931_vm12, %v12058_v10, 0.0  ;;  %v5813_v26 = vld [vmem:[%s8993_s19 + $0x218] sm:$0xff] }
 0x58e   : > { %v12114_v31 = vsel %vm5457_vm2, %v5453_v15, %v5454_v32  ;;  %vm13131_vm13 = vmmov %vm13126_vm1  ;;  %v5604_v20 = vsel %vm11945_vm8, %v12128_v50, 0.0  ;;  %v12152_v46 = vsel %vm5457_vm2, %v5454_v32, %v5455_v39  ;;  %v5814_v15 = vld [vmem:[%s8993_s19 + $0x220] sm:$0xff]  ;;  %v5635_v23 = vadd.s32 5, %v11885_v27 }
 0x58f   : > { %8691 = vrot.lane.b32.xlu0 %v8690_v38, %s8932_s15  ;;  %v5662_v12 = vsel %vm11905_vm7, %v12114_v31, 0.0  ;;  %s13170_s15 = sld [smem:[#allocation11_spill]] }
 0x5f2   : > { %v8662_v45 = vpop.permute.xlu1 %8661 }
 0x5f3   : > { %v8664_v62 = vunpack.i.h.bf16 %v8662_v45  ;;  %v8663_v14 = vunpack.i.l.bf16 %v8662_v45 }
 0x5f5   : > { %v8667_v42 = vpop.permute.xlu0 %8666  ;;  %v5742_v0 = vsel %vm13125_vm14, %v5602_v16, %v8663_v14  ;;  %v5738_v56 = vsel %vm13126_vm1, %v11938_v24, %v8664_v62  ;;  %v5412_v24 = vsel %vm12070_vm4, %v12066_v2, 0.0  ;;  %vm5468_vm14 = vcmp.ge.s32.totalorder %v5464_v60, 0  ;;  %vm13130_vm4 = vmmov %vm13126_vm1 }
 0x5f6   : > { %v8669_v43 = vunpack.i.h.bf16 %v8667_v42  ;;  %v8668_v34 = vunpack.i.l.bf16 %v8667_v42  ;;  %5979 = vmatprep.mubr.f32.mxu1 %v5742_v0  ;;  %v8677_v33 = vpop.permute.xlu1 %8676  ;;  %vm12141_vm3 = vmand %vm5468_vm14, %vm11941_vm11 }
 0x5f7   : > { %v8679_v37 = vunpack.i.h.bf16 %v8677_v33  ;;  %v8678_v49 = vunpack.i.l.bf16 %v8677_v33  ;;  %5980 = vmatmul.mubr.f32.vlgmr.msra.gmra.mxu1 %v5738_v56  ;;  %vm13137_vm14 = vmmov %vm13126_vm1  ;;  %v5458_v56 = vsel %vm5457_vm2, %v5455_v39, %v5456_v48 }
 0x5f8   : > { %v5734_v40 = vsel %vm13129_vm10, %v5490_v6, %v8668_v34  ;;  %v5730_v30 = vsel %vm13126_vm1, %v5412_v24, %v8669_v43  ;;  %vm5390_vm10 = vcmp.ge.s32.totalorder %v5386_v21, 0  ;;  %v5812_v43 = vld [vmem:[%s8993_s19 + $0x210] sm:$0xff]  ;;  %v5493_v48 = vsel %vm11964_vm9, %v5458_v56, 0.0  ;;  %v5811_v24 = vld [vmem:[%s8993_s19 + $0x208] sm:$0xff]  ;;  %v5810_v6 = vld [vmem:[%s8993_s19 + $0x200] sm:$0xff] }
 0x5f9   : > { %v8672_v13 = vpop.permute.xlu0 %8671  ;;  %5894 = vmatprep.mubr.f32.mxu0 %v5734_v40  ;;  %v5743_v17 = vsel %vm13130_vm4, %v5603_v19, %v8678_v49  ;;  %v5739_v35 = vsel %vm13131_vm13, %v11917_v4, %v8679_v37  ;;  %v5491_v4 = vsel %vm11927_vm6, %v12114_v31, 0.0  ;;  %vm13134_vm4 = vmmov %vm13126_vm1  ;;  %v5637_v37 = vadd.s32 5, %v11936_v47 }
 0x5fa   : > { %v8674_v58 = vunpack.i.h.bf16 %v8672_v13  ;;  %v8673_v41 = vunpack.i.l.bf16 %v8672_v13  ;;  %5895 = vmatmul.mubr.f32.vlgmr.msra.gmra.mxu0 %v5730_v30  ;;  %v8687_v29 = vpop.permute.xlu1 %8686  ;;  %5984 = vmatprep.mubr.f32.mxu1 %v5743_v17  ;;  %vm12157_vm12 = vmand %vm5390_vm10, %vm11945_vm8  ;;  %v5664_v61 = vsel %vm11941_vm11, %v5458_v56, 0.0  ;;  %vm13151_vm11 = vcmp.lt.s32.totalorder %v13077_v44, 7 }
 0x5fb   : > { %8170 = vmatpush3.msra.mxu0 %v11955_v1  ;;  %v8689_v51 = vunpack.i.h.bf16 %v8687_v29  ;;  %v8688_v38 = vunpack.i.l.bf16 %v8687_v29  ;;  %5985 = vmatmul.mubr.f32.gmra.mxu1 %v5739_v35  ;;  %vm13138_vm13 = vmmov %vm13126_vm1  ;;  %v5414_v21 = vsel %vm12157_vm12, %v12096_v54, 0.0 }
 0x5fc   : > { %8171 = vmatprep.subr.mxu0 %v5816_v7  ;;  %v5735_v1 = vsel %vm13126_vm1, %v5491_v4, %v8673_v41  ;;  %v5731_v5 = vsel %vm13134_vm4, %v5413_v11, %v8674_v58  ;;  %vm12168_vm1 = vmand %vm5585_vm0, %vm12039_vm5 }
 0x5fd   : > { %5899 = vmatprep.mubr.f32.mxu0 %v5735_v1  ;;  %8172 = vmatpush3.msra.mxu0 %v5816_v7  ;;  %v8682_v10 = vpop.permute.xlu0 %8681  ;;  %v5744_v3 = vsel %vm13137_vm14, %v5604_v20, %v8688_v38  ;;  %v5740_v45 = vsel %vm13138_vm13, %v11975_v59, %v8689_v51  ;;  %v5492_v59 = vsel %vm12141_vm3, %v12152_v46, 0.0  ;;  %vm13141_vm8 = vmmov %vm13134_vm4  ;;  %v5605_v0 = vsel %vm12168_vm1, %v12066_v2, 0.0 }
 0x5fe   : > { %v8684_v60 = vunpack.i.h.bf16 %v8682_v10  ;;  %v8683_v62 = vunpack.i.l.bf16 %v8682_v10  ;;  %5900 = vmatmul.mubr.f32.gmra.mxu0 %v5731_v5  ;;  %8173 = vmatprep.subr.mxu0 %v5815_v57  ;;  %v8697_v14 = vpop.permute.xlu1 %8696  ;;  %vm13142_vm10 = vmmov %vm13134_vm4  ;;  %v5415_v2 = vsel %vm12039_vm5, %v12128_v50, 0.0  ;;  %vm5645_vm1 = vcmp.lt.s32.totalorder %v5637_v37, 16  ;;  %v7390_v5 = vld [vmem:[%s8998_s24] ss:$0 sm:$0xff] }
 0x5ff   : > { %8174 = vmatpush3.msra.mxu0 %v5815_v57  ;;  %v8699_v16 = vunpack.i.h.bf16 %v8697_v14  ;;  %v8698_v25 = vunpack.i.l.bf16 %v8697_v14  ;;  %5989 = vmatprep.mubr.f32.mxu1 %v5744_v3  ;;  %vm13143_vm0 = vmmov %vm13134_vm4  ;;  %vm5643_vm4 = vcmp.lt.s32.totalorder %v5635_v23, 16  ;;  %v7391_v3 = vld [vmem:[%s9003_s30] ss:$0 sm:$0xff] }
 0x600   : > { %5990 = vmatmul.mubr.f32.gmra.mxu1 %v5740_v45  ;;  %8175 = vmatprep.subr.mxu0 %v5814_v15  ;;  %v5736_v42 = vsel %vm13141_vm8, %v5492_v59, %v8683_v62  ;;  %v5732_v27 = vsel %vm13142_vm10, %v5414_v21, %v8684_v60  ;;  %vm13144_vm3 = vmmov %vm13143_vm0 }
 0x601   : > { %5904 = vmatprep.mubr.f32.mxu0 %v5736_v42  ;;  %8176 = vmatpush3.msra.mxu0 %v5814_v15  ;;  %v8692_v54 = vpop.permute.xlu0 %8691  ;;  %v5745_v9 = vsel %vm13143_vm0, %v5605_v0, %v8698_v25  ;;  %v5741_v32 = vsel %vm13144_vm3, %v11957_v53, %v8699_v16  ;;  %vm13145_vm12 = vmmov %vm13143_vm0 }
 0x602   : > { %v8694_v34 = vunpack.i.h.bf16 %v8692_v54  ;;  %v8693_v33 = vunpack.i.l.bf16 %v8692_v54  ;;  %5905 = vmatmul.mubr.f32.gmra.mxu0 %v5732_v27  ;;  %8177 = vmatprep.subr.mxu0 %v5813_v26  ;;  %vm13146_vm14 = vmmov %vm13143_vm0 }
 0x603   : > { %5994 = vmatprep.mubr.f32.mxu1 %v5745_v9  ;;  %8178 = vmatpush3.msra.mxu0 %v5813_v26  ;;  %vm5651_vm13 = vmand %vm5643_vm4, %vm11927_vm6 }
 0x604   : > { %5995 = vmatmul.mubr.f32.gmra.mxu1 %v5741_v32  ;;  %8179 = vmatprep.subr.mxu0 %v5812_v43  ;;  %v5737_v53 = vsel %vm13145_vm12, %v5493_v48, %v8693_v33  ;;  %v5733_v49 = vsel %vm13146_vm14, %v5415_v2, %v8694_v34  ;;  %vm13147_vm5 = vmmov %vm13143_vm0  ;;  %v5663_v47 = vsel %vm5651_vm13, %v12152_v46, 0.0  ;;  %vm6266_vm12 = vcmask 1047556  }
 0x605   : > { %5909 = vmatprep.mubr.f32.mxu0 %v5737_v53  ;;  %8180 = vmatpush3.msra.mxu0 %v5812_v43  ;;  %vm13148_vm8 = vmmov %vm13143_vm0  ;;  %vm13158_vm14 = vcmask 1040384   ;;  %vm6278_vm13 = vcmask 1041408  }
 0x606   : > { %5910 = vmatmul.mubr.f32.gmra.mxu0 %v5733_v49  ;;  %8181 = vmatprep.subr.mxu0 %v5811_v24  ;;  %vm5653_vm6 = vmand %vm5645_vm1, %vm11964_vm9  ;;  %vm6368_vm1 = vcmask 64512  }
 0x607   : > { %8182 = vmatpush3.msra.mxu0 %v5811_v24  ;;  %8185 = vmatprep.mubr.msk.f32.mxu0 %vm13147_vm5, %v5662_v12  ;;  %vm13149_vm10 = vmmov %vm13143_vm0  ;;  %v5665_v36 = vsel %vm5653_vm6, %v12081_v63, 0.0  ;;  %vm6573_vm6 = vcmask 97280  }
 0x608   : > { %8183 = vmatprep.subr.mxu0 %v5810_v6  ;;  %vm13150_vm7 = vmmov %vm13143_vm0  ;;  %vm8933_vm0 = vmmov 0  }
 0x609   : > { %8184 = vmatpush3.msra.mxu0 %v5810_v6  ;;  %8239 = vmatprep.mubr.msk.f32.mxu1 %vm8933_vm0, %v13039_v28  ;;  %vm13152_vm9 = vmmov %vm13151_vm11 }
 0x60a   : > { %8186 = vmatmul.mubr.msk.f32.vlgmr.msra.gmra.mxu0 %vm13148_vm8, %v5663_v47  ;;  %8191 = vmatprep.subr.mxu0 %v13039_v28  ;;  %vm13153_vm3 = vmmov %vm13152_vm9  ;;  %vm6477_vm8 = vcmask 130048  }
 0x60b   : > { %8188 = vmatprep.mubr.msk.f32.mxu0 %vm13149_vm10, %v5664_v61  ;;  %vm13154_vm4 = vmmov %vm13153_vm3 }
 0x60c   : > { %vm13159_vm5 = vmmov %vm13158_vm14 }
 0x60d   : > { %vm13166_vm10 = vmmov %vm13159_vm5 }
 0x60e   : > { %8189 = vmatmul.mubr.msk.f32.gmra.mxu0 %vm13150_vm7, %v5665_v36  ;;  %vm13167_vm7 = vmmov %vm13159_vm5 }
 0x60f   : > { %8199 = vmatprep.mubr.msk.f32.mxu0 %vm8933_vm0, %v13039_v28 }
 0x6b7   : > { %v7832_v55 = vpop.f32.mrf.mxu1 }
 0x6b9   : > { %v7833_v31 = vpop.f32.mrf.mxu1 }
 0x6ba   : > { %v7788_v40 = vpop.f32.mrf.mxu0  ;;  %v7834_v11 = vadd.f32 %v7833_v31, %v7832_v55 }
 0x6bb   : > { %v7835_v8 = vpop.f32.mrf.mxu1 }
 0x6bc   : > { %v7789_v30 = vpop.f32.mrf.mxu0 }
 0x6bd   : > { %v7836_v19 = vpop.f32.mrf.mxu1  ;;  %v7790_v29 = vadd.f32 %v7789_v30, %v7788_v40 }
 0x6be   : > { %v7791_v39 = vpop.f32.mrf.mxu0  ;;  %v7837_v51 = vadd.f32 %v7836_v19, %v7835_v8 }
 0x6bf   : > { %v5982_v18 = vadd.f32 %v7834_v11, %v7790_v29 }
 0x6c0   : > { %v7792_v13 = vpop.f32.mrf.mxu0  ;;  %v7838_v17 = vpop.f32.mrf.mxu1 }
 0x6c1   : > { %v7793_v58 = vadd.f32 %v7792_v13, %v7791_v39 }
 0x6c2   : > { %v7794_v63 = vpop.f32.mrf.mxu0  ;;  %v7839_v35 = vpop.f32.mrf.mxu1 }
 0x6c3   : > { %v5987_v52 = vadd.f32 %v7837_v51, %v7793_v58  ;;  %v7840_v62 = vadd.f32 %v7839_v35, %v7838_v17 }
 0x6c4   : > { %v7795_v7 = vpop.f32.mrf.mxu0  ;;  %v7841_v50 = vpop.f32.mrf.mxu1 }
 0x6c5   : > { %v7796_v10 = vadd.f32 %v7795_v7, %v7794_v63 }
 0x6c6   : > { %v7797_v41 = vpop.f32.mrf.mxu0  ;;  %v7842_v38 = vpop.f32.mrf.mxu1 }
 0x6c7   : > { %v7843_v20 = vadd.f32 %v7842_v38, %v7841_v50  ;;  %v5992_v59 = vadd.f32 %v7840_v62, %v7796_v10 }
 0x6c8   : > { %v7798_v4 = vpop.f32.mrf.mxu0 }
 0x6c9   : > { %v7799_v57 = vadd.f32 %v7798_v4, %v7797_v41 }
 0x6ca   : > { %v8187_v1 = vpop.f32.mrf.mxu0 }
 0x6cb   : > { %v6072_v46 = vadd.f32 %v8187_v1, %v5987_v52  ;;  %v5997_v60 = vadd.f32 %v7843_v20, %v7799_v57 }
 0x6cc   : > { %v6066_v45 = vpop.f32.mrf.mxu0 }
 0x6cd   : > { %v6093_v15 = vmul.f32 %v7390_v5, %v6072_v46  ;;  %v6067_v22 = vadd.f32 %v6066_v45, %v5982_v18 }
 0x6ce   : > { %v8190_v14 = vpop.f32.mrf.mxu0 }
 0x6cf   : > { %v6104_v23 = vadd.f32 %v7391_v3, %v6093_v15  ;;  %v6092_v16 = vmul.f32 %v7390_v5, %v6067_v22  ;;  %v6082_v25 = vadd.f32 %v8190_v14, %v5997_v60 }
 0x6d0   : > { %v6076_v21 = vpop.f32.mrf.mxu0 }
 0x6d1   : > { %v6112_v26 = vmul.f32 0.70710677, %v6104_v23  ;;  %v6103_v42 = vadd.f32 %v7391_v3, %v6092_v16  ;;  %v6095_v27 = vmul.f32 %v7390_v5, %v6082_v25  ;;  %v6077_v0 = vadd.f32 %v6076_v21, %v5992_v59 }
 0x6d2   : > { %v6108_v49 = vmul.f32 0.5, %v6104_v23 }
 0x6d3   : > { %8862 = verf.f32 %v6112_v26  ;;  %v6111_v56 = vmul.f32 0.70710677, %v6103_v42  ;;  %v6106_v54 = vadd.f32 %v7391_v3, %v6095_v27  ;;  %v6094_v9 = vmul.f32 %v7390_v5, %v6077_v0  ;;  %v6163_v26 = vld [vmem:[%s9008_s6] sm:$0xff]  ;;  %v6294_v27 = vld [vmem:[%s13155_s18 + $0x70] sm:$0xff]  ;;  %v6293_v0 = vld [vmem:[%s13155_s18 + $0x68] sm:$0xff] }
 0x6d4   : > { %v6107_v24 = vmul.f32 0.5, %v6103_v42  ;;  %v6295_v42 = vld [vmem:[%s13155_s18 + $0x78] sm:$0xff] }
 0x6d5   : > { %8864 = verf.f32 %v6111_v56  ;;  %v6114_v32 = vmul.f32 0.70710677, %v6106_v54  ;;  %v6105_v43 = vadd.f32 %v7391_v3, %v6094_v9  ;;  %v6110_v12 = vmul.f32 0.5, %v6106_v54  ;;  %v6292_v56 = vld [vmem:[%s13155_s18 + $0x60] sm:$0xff]  ;;  %v6291_v54 = vld [vmem:[%s13155_s18 + $0x58] sm:$0xff]  ;;  %v6290_v9 = vld [vmem:[%s13155_s18 + $0x50] sm:$0xff] }
 0x6d7   : > { %8866 = verf.f32 %v6114_v32  ;;  %v6113_v34 = vmul.f32 0.70710677, %v6105_v43  ;;  %v6109_v31 = vmul.f32 0.5, %v6105_v43  ;;  %v6289_v32 = vld [vmem:[%s13155_s18 + $0x48] sm:$0xff]  ;;  %v6288_v43 = vld [vmem:[%s13155_s18 + $0x40] sm:$0xff] }
 0x6d9   : > { %8868 = verf.f32 %v6113_v34  ;;  %v6287_v34 = vld [vmem:[%s13155_s18 + $0x38] sm:$0xff] }
 0x6e0   : > { %v8863_v33 = vpop.eup %8862 }
 0x6e1   : > { %v6120_v2 = vadd.f32 1.0, %v8863_v33  ;;  %v6286_v33 = vld [vmem:[%s13155_s18 + $0x30] sm:$0xff] }
 0x6e2   : > { %v8865_v48 = vpop.eup %8864 }
 0x6e3   : > { %v6119_v37 = vadd.f32 1.0, %v8865_v48  ;;  %v6124_v61 = vmul.f32 %v6120_v2, %v6108_v49  ;;  %v6285_v48 = vld [vmem:[%s13155_s18 + $0x28] sm:$0xff]  ;;  %v6284_v2 = vld [vmem:[%s13155_s18 + $0x20] sm:$0xff] }
 0x6e4   : > { %v8867_v53 = vpop.eup %8866  ;;  %v6280_v49 = vld [vmem:[%s13155_s18] sm:$0xff] }
 0x6e5   : > { %v6123_v6 = vmul.f32 %v6119_v37, %v6107_v24  ;;  %v6122_v47 = vadd.f32 1.0, %v8867_v53  ;;  %v6128_v35 = vrot.slane %v6124_v61, 1  ;;  %v6140_v41 = vrot.slane %v6124_v61, 4  ;;  %v6283_v24 = vld [vmem:[%s13155_s18 + $0x18] sm:$0xff]  ;;  %v6282_v37 = vld [vmem:[%s13155_s18 + $0x10] sm:$0xff]  ;;  %v6281_v53 = vld [vmem:[%s13155_s18 + $0x8] sm:$0xff] }
 0x6e6   : > { %v8869_v36 = vpop.eup %8868  ;;  %v6148_v57 = vrot.slane %v6124_v61, 5 }
 0x6e7   : > { %v6126_v55 = vmul.f32 %v6122_v47, %v6110_v12  ;;  %v6121_v40 = vadd.f32 1.0, %v8869_v36  ;;  %v6127_v8 = vrot.slane %v6123_v6, 1  ;;  %v6139_v30 = vrot.slane %v6123_v6, 4 }
 0x6e8   : > { %v6147_v13 = vrot.slane %v6123_v6, 5 }
 0x6e9   : > { %v6130_v19 = vrot.slane %v6126_v55, 1  ;;  %v6142_v39 = vrot.slane %v6126_v55, 4  ;;  %v6150_v17 = vrot.slane %v6126_v55, 5  ;;  %v6125_v63 = vmul.f32 %v6121_v40, %v6109_v31 }
 0x6ea   : > { %v6133_v52 = vsel %vm13152_vm9, %v6127_v8, %v6128_v35  ;;  %v6145_v1 = vsel %vm5420_vm15, %v6139_v30, %v6140_v41  ;;  %v6153_v15 = vsel %vm5457_vm2, %v6147_v13, %v6148_v57  ;;  %vm6748_vm9 = vcmask 517120  }
 0x6eb   : > { %v6134_v7 = vsel %vm13151_vm11, %v6130_v19, %v6127_v8  ;;  %v6146_v50 = vsel %vm5420_vm15, %v6142_v39, %v6139_v30  ;;  %v6154_v58 = vsel %vm5457_vm2, %v6150_v17, %v6147_v13  ;;  %v6129_v38 = vrot.slane %v6125_v63, 1  ;;  %vm13168_vm11 = vmmov %vm13159_vm5 }
 0x6ec   : > { %v6138_v29 = vmax.f32 %v6126_v55, %v6134_v7  ;;  %v6158_v51 = vmax.f32 %v6146_v50, %v6154_v58  ;;  %v6141_v4 = vrot.slane %v6125_v63, 4  ;;  %v6149_v11 = vrot.slane %v6125_v63, 5 }
 0x6ed   : > { %v6131_v20 = vsel %vm13153_vm3, %v6129_v38, %v6130_v19  ;;  %v6132_v18 = vsel %vm13154_vm4, %v6128_v35, %v6129_v38  ;;  %v6135_v16 = vmax.f32 %v6123_v6, %v6133_v52  ;;  %v6155_v25 = vmax.f32 %v6145_v1, %v6153_v15  ;;  %vm13173_vm4 = vmmov %vm13159_vm5 }
 0x6ee   : > { %v6162_v5 = vmax.f32 %v6138_v29, %v6158_v51  ;;  %v6143_v46 = vsel %vm5420_vm15, %v6141_v4, %v6142_v39  ;;  %v6137_v10 = vmax.f32 %v6125_v63, %v6131_v20  ;;  %v6151_v3 = vsel %vm5457_vm2, %v6149_v11, %v6150_v17 }
 0x6ef   : > { %v6144_v45 = vsel %vm5420_vm15, %v6140_v41, %v6141_v4  ;;  %v6157_v22 = vmax.f32 %v6143_v46, %v6151_v3  ;;  %v6136_v60 = vmax.f32 %v6124_v61, %v6132_v18  ;;  %v6152_v62 = vsel %vm5457_vm2, %v6148_v57, %v6149_v11 }
 0x6f0   : > { %8192 = vmatpush3.msra.mxu0 %v6162_v5  ;;  %v6156_v14 = vmax.f32 %v6144_v45, %v6152_v62  ;;  %v6159_v21 = vmax.f32 %v6135_v16, %v6155_v25  ;;  %vm13156_vm15 = vcmask 261120   ;;  %vm6237_vm2 = vcmask 1043456  }
 0x6f1   : > { %8193 = vmatprep.subr.mxu0 %v13039_v28  ;;  %v6161_v23 = vmax.f32 %v6137_v10, %v6157_v22  ;;  %vm13172_vm3 = vcmask 523264  }
 0x6f2   : > { %v6160_v59 = vmax.f32 %v6136_v60, %v6156_v14  ;;  %v6367_v60 = vld [vmem:[%s13157_s23] sm:$0xff]  ;;  %s13171_s23 = sld [smem:[#allocation12_spill]] }
 0x6f3   : > { %8194 = vmatpush3.msra.mxu0 %v6161_v23  ;;  %8238 = vmatpush3.msra.mxu1 %v6367_v60  ;;  %v6862_v60 = vld [vmem:[%s13163_s10 + $0x1e8] sm:$0xff] }
 0x6f4   : > { %8195 = vmatprep.subr.mxu0 %v13039_v28  ;;  %8242 = vmatprep.subr.mxu1 %v13039_v28 }
 0x6f5   : > { %8196 = vmatpush3.msra.mxu0 %v6160_v59 }
 0x6f6   : > { %8197 = vmatprep.subr.mxu0 %v13039_v28 }
 0x6f7   : > { %8198 = vmatpush3.msra.mxu0 %v6159_v21 }
 0x6f8   : > { %8200 = vmatmul.mubr.msk.f32.vlgmr.msra.gmra.mxu0 %vm13156_vm15, %v6163_v26  ;;  %8202 = vmatprep.subr.mxu0 %v13039_v28 }
 0x6f9   : > { %8203 = vmatpush3.msra.mxu0 %v6295_v42  ;;  %8234 = vmatprep.mubr.msk.f32.mxu0 %vm8933_vm0, %v13039_v28 }
 0x6fa   : > { %8204 = vmatprep.subr.mxu0 %v13039_v28 }
 0x6fb   : > { %8205 = vmatpush3.msra.mxu0 %v6294_v27 }
 0x6fc   : > { %8206 = vmatprep.subr.mxu0 %v13039_v28 }
 0x6fd   : > { %8207 = vmatpush3.msra.mxu0 %v6293_v0  ;;  %v6454_v0 = vsub.s32 0, %v13077_v44 }
 0x6fe   : > { %8208 = vmatprep.subr.mxu0 %v13039_v28 }
 0x6ff   : > { %8209 = vmatpush3.msra.mxu0 %v6292_v56  ;;  %v6459_v56 = vsub.s32 1, %v13077_v44 }
 0x700   : > { %8210 = vmatprep.subr.mxu0 %v13039_v28 }
 0x701   : > { %8211 = vmatpush3.msra.mxu0 %v6291_v54 }
 0x702   : > { %8212 = vmatprep.subr.mxu0 %v13039_v28 }
 0x703   : > { %8213 = vmatpush3.msra.mxu0 %v6290_v9 }
 0x704   : > { %8214 = vmatprep.subr.mxu0 %v13039_v28 }
 0x705   : > { %8215 = vmatpush3.msra.mxu0 %v6289_v32 }
 0x706   : > { %8216 = vmatprep.subr.mxu0 %v13039_v28 }
 0x707   : > { %8217 = vmatpush3.msra.mxu0 %v6288_v43 }
 0x708   : > { %8218 = vmatprep.subr.mxu0 %v13039_v28 }
 0x709   : > { %8219 = vmatpush3.msra.mxu0 %v6287_v34 }
 0x70a   : > { %8220 = vmatprep.subr.mxu0 %v13039_v28 }
 0x70b   : > { %8221 = vmatpush3.msra.mxu0 %v6286_v33 }
 0x70c   : > { %8222 = vmatprep.subr.mxu0 %v13039_v28 }
 0x70d   : > { %8223 = vmatpush3.msra.mxu0 %v6285_v48 }
 0x70e   : > { %8224 = vmatprep.subr.mxu0 %v13039_v28 }
 0x70f   : > { %8225 = vmatpush3.msra.mxu0 %v6284_v2 }
 0x710   : > { %8226 = vmatprep.subr.mxu0 %v13039_v28 }
 0x711   : > { %8227 = vmatpush3.msra.mxu0 %v6283_v24  ;;  %v6469_v24 = vld [vmem:[%s13160_s26] sm:$0xff]  ;;  %s923_s26 = scalar_lea.vmem %s9081_s28, %s7301_s2 }
 0x712   : > { %8228 = vmatprep.subr.mxu0 %v13039_v28 }
 0x713   : > { %8229 = vmatpush3.msra.mxu0 %v6282_v37  ;;  %v6565_v37 = vld [vmem:[%s13161_s12 + $0x8] sm:$0xf] }
 0x714   : > { %8230 = vmatprep.subr.mxu0 %v13039_v28 }
 0x715   : > { %8231 = vmatpush3.msra.mxu0 %v6281_v53  ;;  %v6564_v53 = vld [vmem:[%s13161_s12] sm:$0xff] }
 0x716   : > { %8232 = vmatprep.subr.mxu0 %v13039_v28 }
 0x717   : > { %8233 = vmatpush3.msra.mxu0 %v6280_v49  ;;  %v6563_v49 = vld [vmem:[%s919_s0] sm:$0x3] }
 0x718   : > { %8291 = vmatprep.subr.mxu0 %v13039_v28 }
 0x7b8   : > { %v12289_v6 = vpop.f32.mrf.mxu0 }
 0x7b9   : > { %v6238_v12 = vsel %vm6237_vm2, %v12289_v6, 0.0  ;;  %v6248_v47 = vrot.slane %v12289_v6, 4  ;;  %v6259_v61 = vsel %vm6237_vm2, %v12289_v6, -inf  ;;  %v6267_v36 = vsel %vm6266_vm12, %v12289_v6, -inf }
 0x7ba   : > { %v6239_v55 = vrot.slane %v6238_v12, 4  ;;  %v6260_v31 = vrot.slane %v6259_v61, 4  ;;  %v6268_v40 = vrot.slane %v6267_v36, 4  ;;  %v8201_v8 = vpop.f32.mrf.mxu0 }
 0x7bb   : > { %v6250_v30 = vsel %vm6237_vm2, %v6248_v47, 0.0  ;;  %v6668_v47 = vld [vmem:[%s9041_s27 + $0x68] sm:$0xff]  ;;  %v6663_v8 = vld [vmem:[%s9041_s27 + $0x40] sm:$0xff] }
 0x7bc   : > { %v6240_v19 = vadd.f32 %v6239_v55, %v6238_v12  ;;  %v6251_v39 = vrot.slane %v6250_v30, 4  ;;  %v6261_v13 = vmax.f32 %v6259_v61, %v6260_v31  ;;  %v6269_v17 = vmax.f32 %v6267_v36, %v6268_v40  ;;  %v6669_v12 = vld [vmem:[%s9041_s27 + $0x70] sm:$0xff]  ;;  %v6667_v61 = vld [vmem:[%s9041_s27 + $0x60] sm:$0xff]  ;;  %v6666_v36 = vld [vmem:[%s9041_s27 + $0x58] sm:$0xff] }
 0x7bd   : > { %v6665_v55 = vld [vmem:[%s9041_s27 + $0x50] sm:$0xff]  ;;  %v6664_v31 = vld [vmem:[%s9041_s27 + $0x48] sm:$0xff]  ;;  %v8934_v40 = vmov 0  }
 0x7be   : > { %v6262_v63 = vrot.slane %v6261_v13, 2  ;;  %v6270_v35 = vrot.slane %v6269_v17, 2  ;;  %v6241_v7 = vrot.slane %v6240_v19, 2  ;;  %v6252_v50 = vadd.f32 %v6251_v39, %v6250_v30  ;;  %8700 = vset.pattern.permute.xlu1 %v8934_v40  ;;  %8701 = vset.pattern.permute.xlu0 %v8934_v40  ;;  %v6662_v30 = vld [vmem:[%s9041_s27 + $0x38] sm:$0xff]  ;;  %v6660_v39 = vld [vmem:[%s9041_s27 + $0x28] sm:$0xff] }
 0x7c0   : > { %v6242_v58 = vadd.f32 %v6241_v7, %v6240_v19  ;;  %v6253_v41 = vrot.slane %v6252_v50, 2  ;;  %v6263_v29 = vmax.f32 %v6261_v13, %v6262_v63  ;;  %v6271_v51 = vmax.f32 %v6269_v17, %v6270_v35  ;;  %v6661_v19 = vld [vmem:[%s9041_s27 + $0x30] sm:$0xff]  ;;  %v6659_v13 = vld [vmem:[%s9041_s27 + $0x20] sm:$0xff]  ;;  %v6658_v17 = vld [vmem:[%s9041_s27 + $0x18] sm:$0xff] }
 0x7c1   : > { %v6657_v63 = vld [vmem:[%s9041_s27 + $0x10] sm:$0xff]  ;;  %v6656_v35 = vld [vmem:[%s9041_s27 + $0x8] sm:$0xff]  ;;  %v6655_v7 = vld [vmem:[%s9041_s27] sm:$0xff] }
 0x7c2   : > { %v6243_v38 = vrot.slane %v6242_v58, 1  ;;  %v6254_v4 = vadd.f32 %v6253_v41, %v6252_v50  ;;  %v6264_v11 = vrot.slane %v6263_v29, 1  ;;  %v6272_v57 = vrot.slane %v6271_v51, 1  ;;  %v6864_v50 = vld [vmem:[%s13163_s10 + $0x1f8] sm:$0xff] }
 0x7c4   : > { %v6244_v52 = vadd.f32 %v6243_v38, %v6242_v58  ;;  %v6255_v1 = vrot.slane %v6254_v4, 1  ;;  %v6265_v5 = vmax.f32 %v6263_v29, %v6264_v11  ;;  %v6273_v20 = vmax.f32 %v6271_v51, %v6272_v57  ;;  %v7395_v58 = vld [vmem:[#allocation2] ss:$0 sm:$0xff] }
 0x7c5   : > { %v7398_v38 = vld [vmem:[%s13164_s7] ss:$0 sm:$0xff] }
 0x7c6   : > { %v6256_v46 = vadd.f32 %v6255_v1, %v6254_v4  ;;  %v6274_v18 = vsel %vm13158_vm14, %v6265_v5, %v6273_v20  ;;  %v6246_v10 = vmul.f32 0.25, %v6244_v52 }
 0x7c7   : > { %v6276_v45 = vrot.slane %v6274_v18, 6 }
 0x7c8   : > { %v6257_v3 = vmul.f32 0.25, %v6256_v46 }
 0x7ca   : > { %v6258_v15 = vsel %vm13159_vm5, %v6246_v10, %v6257_v3 }
 0x7cb   : > { %v6279_v22 = vsel %vm6278_vm13, %v6258_v15, %v6276_v45  ;;  %v6848_v45 = vld [vmem:[%s13163_s10 + $0x178] sm:$0xff]  ;;  %v6863_v15 = vld [vmem:[%s13163_s10 + $0x1f0] sm:$0xff] }
 0x7cc   : > { %8235 = vmatmul.mubr.f32.vlgmr.msra.gmra.mxu0 %v6279_v22  ;;  %v6847_v22 = vld [vmem:[%s13163_s10 + $0x170] sm:$0xff] }
 0x7cd   : > { %8307 = vmatprep.mubr.msk.f32.mxu0 %vm8933_vm0, %v13039_v28 }
 0x88c   : > { %v6362_v62 = vpop.f32.mrf.mxu0 }
 0x88d   : > { %v6366_v14 = vmax.f32 %v6362_v62, 0.0  ;;  %v6846_v62 = vld [vmem:[%s13163_s10 + $0x168] sm:$0xff] }
 0x88e   : > { %v8236_v23 = vpop.f32.mrf.mxu0 }
 0x88f   : > { %8240 = vmatmul.mubr.msk.f32.vlgmr.msra.gmra.mxu1 %vm6368_vm1, %v6366_v14  ;;  %v6861_v14 = vld [vmem:[%s13163_s10 + $0x1e0] sm:$0xff] }
 0x890   : > { %8246 = vmatprep.mubr.msk.f32.mxu1 %vm8933_vm0, %v13039_v28  ;;  %v6845_v23 = vld [vmem:[%s13163_s10 + $0x160] sm:$0xff] }
 0x94f   : > { %v6438_v16 = vpop.f32.mrf.mxu1 }
 0x950   : > { %v7394_v25 = vmul.f32 -1.442695, %v6438_v16  ;;  %v6860_v16 = vld [vmem:[%s13163_s10 + $0x1d8] sm:$0xff] }
 0x951   : > { %v8241_v59 = vpop.f32.mrf.mxu1 }
 0x952   : > { %8870 = vpow2.f32 %v7394_v25  ;;  %v6844_v25 = vld [vmem:[%s13163_s10 + $0x158] sm:$0xff] }
 0x95f   : > { %v8871_v21 = vpop.eup %8870 }
 0x960   : > { %v6445_v26 = vadd.f32 1.0, %v8871_v21  ;;  %v6859_v21 = vld [vmem:[%s13163_s10 + $0x1d0] sm:$0xff] }
 0x962   : > { %8872 = vrcp.f32 %v6445_v26  ;;  %v6843_v26 = vld [vmem:[%s13163_s10 + $0x150] sm:$0xff] }
 0x96f   : > { %v8873_v42 = vpop.eup %8872 }
 0x970   : > { %v6449_v27 = vrot.slane %v8873_v42, 2 }
 0x972   : > { %v6451_v54 = vadd.f32 %v8873_v42, %v6449_v27  ;;  %v6858_v42 = vld [vmem:[%s13163_s10 + $0x1c8] sm:$0xff] }
 0x973   : > { %v6842_v27 = vld [vmem:[%s13163_s10 + $0x148] sm:$0xff] }
 0x974   : > { %v6455_v9 = vrot.slane %v6451_v54, %v6454_v0  ;;  %v6460_v32 = vrot.slane %v6451_v54, %v6459_v56  ;;  %v6857_v0 = vld [vmem:[%s13163_s10 + $0x1c0] sm:$0xff]  ;;  %v6856_v54 = vld [vmem:[%s13163_s10 + $0x1b8] sm:$0xff] }
 0x975   : > { %v6841_v56 = vld [vmem:[%s13163_s10 + $0x140] sm:$0xff] }
 0x976   : > { %v6456_v43 = vmul.f32 %v6455_v9, %v12289_v6  ;;  %v6461_v34 = vmul.f32 %v6460_v32, %v12289_v6  ;;  %v6670_v6 = vld [vmem:[%s9041_s27 + $0x78] sm:$0xff]  ;;  %v6855_v32 = vld [vmem:[%s13163_s10 + $0x1b0] sm:$0xff] }
 0x977   : > { %v6840_v9 = vld [vmem:[%s13163_s10 + $0x138] sm:$0xff] }
 0x978   : > { %v12311_v33 = vsel %vm6237_vm2, %v6456_v43, %v6461_v34  ;;  %v6839_v43 = vld [vmem:[%s13163_s10 + $0x130] sm:$0xff]  ;;  %v6854_v34 = vld [vmem:[%s13163_s10 + $0x1a8] sm:$0xff] }
 0x979   : > { %6467 = vmax.xlane.f32.xlu1 %v12311_v33  ;;  %6463 = vadd.xlane.f32.xlu0 %v12311_v33 }
 0xa02   : > { %v6468_v44 = vpop.xlane.xlu1 %6467  ;;  %v6464_v48 = vpop.xlane.xlu0 %6463 }
 0xa03   : > { %v6466_v2 = vmul.f32 0.0078125, %v6464_v48  ;;  %8243 = vmatpush3.msra.mxu1 %v6468_v44  ;;  %v6838_v44 = vld [vmem:[%s13163_s10 + $0x128] sm:$0xff]  ;;  %v6853_v48 = vld [vmem:[%s13163_s10 + $0x1a0] sm:$0xff] }
 0xa04   : > { %8244 = vmatprep.subr.mxu1 %v13039_v28 }
 0xa05   : > { %8245 = vmatpush3.msra.mxu1 %v6466_v2  ;;  %v6837_v2 = vld [vmem:[%s13163_s10 + $0x120] sm:$0xff] }
 0xa06   : > { %8247 = vmatmul.mubr.msk.f32.vlgmr.msra.gmra.mxu1 %vm6477_vm8, %v6469_v24  ;;  %8249 = vmatprep.subr.mxu1 %v13039_v28  ;;  %v6852_v24 = vld [vmem:[%s13163_s10 + $0x198] sm:$0xff] }
 0xa07   : > { %8250 = vmatpush3.msk.msra.mxu1 %vm6237_vm2, %v6565_v37  ;;  %8253 = vmatprep.mubr.msk.f32.mxu1 %vm8933_vm0, %v13039_v28  ;;  %v6836_v37 = vld [vmem:[%s13163_s10 + $0x118] sm:$0xff] }
 0xa08   : > { %8251 = vmatprep.subr.mxu1 %v13039_v28 }
 0xa09   : > { %8252 = vmatpush3.msra.mxu1 %v6564_v53  ;;  %v6851_v53 = vld [vmem:[%s13163_s10 + $0x190] sm:$0xff] }
 0xa0a   : > { %8254 = vmatmul.mubr.msk.f32.vlgmr.msra.gmra.mxu1 %vm6573_vm6, %v6563_v49  ;;  %8256 = vmatprep.subr.mxu1 %v13039_v28  ;;  %v6835_v49 = vld [vmem:[%s13163_s10 + $0x110] sm:$0xff] }
 0xa0b   : > { %8257 = vmatpush3.msra.mxu1 %v6670_v6  ;;  %8288 = vmatprep.mubr.msk.f32.mxu1 %vm8933_vm0, %v13039_v28  ;;  %v6850_v6 = vld [vmem:[%s13163_s10 + $0x188] sm:$0xff] }
 0xa0c   : > { %8258 = vmatprep.subr.mxu1 %v13039_v28 }
 0xa0d   : > { %8259 = vmatpush3.msra.mxu1 %v6669_v12  ;;  %v6834_v12 = vld [vmem:[%s13163_s10 + $0x108] sm:$0xff] }
 0xa0e   : > { %8260 = vmatprep.subr.mxu1 %v13039_v28 }
 0xa0f   : > { %8261 = vmatpush3.msra.mxu1 %v6668_v47  ;;  %v6849_v47 = vld [vmem:[%s13163_s10 + $0x180] sm:$0xff] }
 0xa10   : > { %8262 = vmatprep.subr.mxu1 %v13039_v28 }
 0xa11   : > { %8263 = vmatpush3.msra.mxu1 %v6667_v61  ;;  %v6833_v61 = vld [vmem:[%s13163_s10 + $0x100] sm:$0xff] }
 0xa12   : > { %8264 = vmatprep.subr.mxu1 %v13039_v28 }
 0xa13   : > { %8265 = vmatpush3.msra.mxu1 %v6666_v36 }
 0xa14   : > { %8266 = vmatprep.subr.mxu1 %v13039_v28 }
 0xa15   : > { %8267 = vmatpush3.msra.mxu1 %v6665_v55 }
 0xa16   : > { %8268 = vmatprep.subr.mxu1 %v13039_v28 }
 0xa17   : > { %8269 = vmatpush3.msra.mxu1 %v6664_v31 }
 0xa18   : > { %8270 = vmatprep.subr.mxu1 %v13039_v28 }
 0xa19   : > { %8271 = vmatpush3.msra.mxu1 %v6663_v8 }
 0xa1a   : > { %8272 = vmatprep.subr.mxu1 %v13039_v28 }
 0xa1b   : > { %8273 = vmatpush3.msra.mxu1 %v6662_v30 }
 0xa1c   : > { %8274 = vmatprep.subr.mxu1 %v13039_v28 }
 0xa1d   : > { %8275 = vmatpush3.msra.mxu1 %v6661_v19 }
 0xa1e   : > { %8276 = vmatprep.subr.mxu1 %v13039_v28 }
 0xa1f   : > { %8277 = vmatpush3.msra.mxu1 %v6660_v39 }
 0xa20   : > { %8278 = vmatprep.subr.mxu1 %v13039_v28 }
 0xa21   : > { %8279 = vmatpush3.msra.mxu1 %v6659_v13 }
 0xa22   : > { %8280 = vmatprep.subr.mxu1 %v13039_v28 }
 0xa23   : > { %8281 = vmatpush3.msra.mxu1 %v6658_v17 }
 0xa24   : > { %8282 = vmatprep.subr.mxu1 %v13039_v28 }
 0xa25   : > { %8283 = vmatpush3.msra.mxu1 %v6657_v63 }
 0xa26   : > { %8284 = vmatprep.subr.mxu1 %v13039_v28 }
 0xa27   : > { %8285 = vmatpush3.msra.mxu1 %v6656_v35 }
 0xa28   : > { %8286 = vmatprep.subr.mxu1 %v13039_v28 }
 0xa29   : > { %8287 = vmatpush3.msra.mxu1 %v6655_v7 }
 0xa2a   : > { %7947 = vmatprep.subr.mxu1 %v6864_v50 }
 0xac6   : > { %v6547_v41 = vpop.f32.mrf.mxu1 }
 0xac7   : > { %v6548_v29 = vadd.f32 %v7395_v58, %v6547_v41 }
 0xac8   : > { %v8248_v51 = vpop.f32.mrf.mxu1 }
 0xac9   : > { %v7397_v4 = vmul.f32 -1.442695, %v6548_v29 }
 0xaca   : > { %v6646_v11 = vpop.f32.mrf.mxu1 }
 0xacb   : > { %8874 = vpow2.f32 %v7397_v4  ;;  %v6647_v57 = vadd.f32 %v7398_v38, %v6646_v11  ;;  %v6872_v38 = vld [vmem:[%s13169_s4 + $0x38] sm:$0xff]  ;;  %v6871_v4 = vld [vmem:[%s13169_s4 + $0x30] sm:$0xff]  ;;  %v6870_v11 = vld [vmem:[%s13169_s4 + $0x28] sm:$0xff] }
 0xacc   : > { %v8255_v52 = vpop.f32.mrf.mxu1  ;;  %8292 = vmatpush3.msra.mxu0 %v6872_v38  ;;  %v7108_v38 = vld [vmem:[%s9076_s22 + $0x48] sm:$0xff] }
 0xacd   : > { %v6651_v1 = vmul.f32 0.70710677, %v6647_v57  ;;  %v6650_v18 = vmul.f32 0.5, %v6647_v57  ;;  %8293 = vmatprep.subr.mxu0 %v13039_v28  ;;  %v6869_v57 = vld [vmem:[%s13169_s4 + $0x20] sm:$0xff]  ;;  %v6868_v52 = vld [vmem:[%s13169_s4 + $0x18] sm:$0xff] }
 0xace   : > { %8294 = vmatpush3.msra.mxu0 %v6871_v4  ;;  %v7107_v4 = vld [vmem:[%s9076_s22 + $0x40] sm:$0xff] }
 0xacf   : > { %8876 = verf.f32 %v6651_v1  ;;  %8295 = vmatprep.subr.mxu0 %v13039_v28  ;;  %v6867_v1 = vld [vmem:[%s13169_s4 + $0x10] sm:$0xff] }
 0xad0   : > { %8296 = vmatpush3.msra.mxu0 %v6870_v11  ;;  %v7106_v11 = vld [vmem:[%s9076_s22 + $0x38] sm:$0xff] }
 0xad1   : > { %8297 = vmatprep.subr.mxu0 %v13039_v28 }
 0xad2   : > { %8298 = vmatpush3.msra.mxu0 %v6869_v57  ;;  %v7105_v57 = vld [vmem:[%s9076_s22 + $0x30] sm:$0xff] }
 0xad3   : > { %8299 = vmatprep.subr.mxu0 %v13039_v28 }
 0xad4   : > { %8300 = vmatpush3.msra.mxu0 %v6868_v52  ;;  %v7104_v52 = vld [vmem:[%s9076_s22 + $0x28] sm:$0xff] }
 0xad5   : > { %8301 = vmatprep.subr.mxu0 %v13039_v28 }
 0xad6   : > { %8302 = vmatpush3.msra.mxu0 %v6867_v1  ;;  %v7103_v1 = vld [vmem:[%s9076_s22 + $0x20] sm:$0xff] }
 0xad7   : > { %8303 = vmatprep.subr.mxu0 %v13039_v28 }
 0xad8   : > { %v8875_v5 = vpop.eup %8874 }
 0xad9   : > { %v6554_v20 = vadd.f32 1.0, %v8875_v5  ;;  %v6866_v5 = vld [vmem:[%s13169_s4 + $0x8] sm:$0xff] }
 0xada   : > { %8304 = vmatpush3.msra.mxu0 %v6866_v5  ;;  %v7102_v5 = vld [vmem:[%s9076_s22 + $0x18] sm:$0xff] }
 0xadb   : > { %8878 = vrcp.f32 %v6554_v20  ;;  %v6865_v20 = vld [vmem:[%s13169_s4] sm:$0xff]  ;;  %8305 = vmatprep.subr.mxu0 %v13039_v28 }
 0xadc   : > { %v8877_v46 = vpop.eup %8876  ;;  %8306 = vmatpush3.msra.mxu0 %v6865_v20  ;;  %v7101_v20 = vld [vmem:[%s9076_s22 + $0x10] sm:$0xff] }
 0xadd   : > { %v6653_v10 = vadd.f32 1.0, %v8877_v46  ;;  %v6832_v46 = vld [vmem:[%s13163_s10 + $0xf8] sm:$0xff] }
 0xade   : > { %7912 = vmatprep.subr.mxu0 %v6832_v46  ;;  %v7100_v46 = vld [vmem:[%s9076_s22 + $0x8] sm:$0xff] }
 0xadf   : > { %v6654_v3 = vmul.f32 %v6653_v10, %v6650_v18 }
 0xae1   : > { %8289 = vmatmul.mubr.f32.vlgmr.msra.gmra.mxu1 %v6654_v3 }
 0xae2   : > { %7948 = vmatpush3.msra.mxu1 %v6848_v45 }
 0xae3   : > { %7949 = vmatprep.subr.mxu1 %v6863_v15  ;;  %v7402_v15 = vld [vmem:[%s13170_s15] ss:$0 sm:$0xff] }
 0xae4   : > { %7950 = vmatpush3.msra.mxu1 %v6847_v22 }
 0xae5   : > { %7951 = vmatprep.subr.mxu1 %v6862_v60  ;;  %v7403_v60 = vld [vmem:[%s13171_s23] ss:$0 sm:$0xff] }
 0xae6   : > { %7952 = vmatpush3.msra.mxu1 %v6846_v62 }
 0xae7   : > { %7953 = vmatprep.subr.mxu1 %v6861_v14 }
 0xae8   : > { %v8879_v59 = vpop.eup %8878  ;;  %7954 = vmatpush3.msra.mxu1 %v6845_v23 }
 0xae9   : > { %6559 = vperm.xlu1 %8700, %v8879_v59   ;;  %7955 = vmatprep.subr.mxu1 %v6860_v16 }
 0xaea   : > { %7956 = vmatpush3.msra.mxu1 %v6844_v25 }
 0xaeb   : > { %7957 = vmatprep.subr.mxu1 %v6859_v21 }
 0xaec   : > { %7958 = vmatpush3.msra.mxu1 %v6843_v26 }
 0xaed   : > { %7959 = vmatprep.subr.mxu1 %v6858_v42 }
 0xaee   : > { %7960 = vmatpush3.msra.mxu1 %v6842_v27  ;;  %v6816_v27 = vld [vmem:[%s13163_s10 + $0x78] sm:$0xff] }
 0xaef   : > { %7961 = vmatprep.subr.mxu1 %v6857_v0  ;;  %v6831_v0 = vld [vmem:[%s13163_s10 + $0xf0] sm:$0xff] }
 0xaf0   : > { %7962 = vmatpush3.msra.mxu1 %v6841_v56 }
 0xaf1   : > { %7963 = vmatprep.subr.mxu1 %v6856_v54  ;;  %v6815_v54 = vld [vmem:[%s13163_s10 + $0x70] sm:$0xff] }
 0xaf2   : > { %7964 = vmatpush3.msra.mxu1 %v6840_v9  ;;  %v6830_v9 = vld [vmem:[%s13163_s10 + $0xe8] sm:$0xff] }
 0xaf3   : > { %7965 = vmatprep.subr.mxu1 %v6855_v32  ;;  %v6814_v32 = vld [vmem:[%s13163_s10 + $0x68] sm:$0xff] }
 0xaf4   : > { %7966 = vmatpush3.msra.mxu1 %v6839_v43  ;;  %v6829_v43 = vld [vmem:[%s13163_s10 + $0xe0] sm:$0xff] }
 0xaf5   : > { %7967 = vmatprep.subr.mxu1 %v6854_v34  ;;  %v6813_v34 = vld [vmem:[%s13163_s10 + $0x60] sm:$0xff] }
 0xaf6   : > { %7968 = vmatpush3.msra.mxu1 %v6838_v44  ;;  %v6828_v44 = vld [vmem:[%s13163_s10 + $0xd8] sm:$0xff] }
 0xaf7   : > { %7969 = vmatprep.subr.mxu1 %v6853_v48  ;;  %v6812_v48 = vld [vmem:[%s13163_s10 + $0x58] sm:$0xff] }
 0xaf8   : > { %7970 = vmatpush3.msra.mxu1 %v6837_v2  ;;  %v6827_v2 = vld [vmem:[%s13163_s10 + $0xd0] sm:$0xff] }
 0xaf9   : > { %7971 = vmatprep.subr.mxu1 %v6852_v24  ;;  %v6811_v24 = vld [vmem:[%s13163_s10 + $0x50] sm:$0xff] }
 0xafa   : > { %7972 = vmatpush3.msra.mxu1 %v6836_v37  ;;  %v6826_v37 = vld [vmem:[%s13163_s10 + $0xc8] sm:$0xff] }
 0xafb   : > { %7973 = vmatprep.subr.mxu1 %v6851_v53  ;;  %v6810_v53 = vld [vmem:[%s13163_s10 + $0x48] sm:$0xff] }
 0xafc   : > { %7974 = vmatpush3.msra.mxu1 %v6835_v49  ;;  %v6825_v49 = vld [vmem:[%s13163_s10 + $0xc0] sm:$0xff] }
 0xafd   : > { %7975 = vmatprep.subr.mxu1 %v6850_v6  ;;  %v6809_v6 = vld [vmem:[%s13163_s10 + $0x40] sm:$0xff] }
 0xafe   : > { %7976 = vmatpush3.msra.mxu1 %v6834_v12  ;;  %v6824_v12 = vld [vmem:[%s13163_s10 + $0xb8] sm:$0xff] }
 0xaff   : > { %7977 = vmatprep.subr.mxu1 %v6849_v47  ;;  %v6808_v47 = vld [vmem:[%s13163_s10 + $0x38] sm:$0xff] }
 0xb00   : > { %7978 = vmatpush3.msra.mxu1 %v6833_v61  ;;  %v6823_v61 = vld [vmem:[%s13163_s10 + $0xb0] sm:$0xff] }
 0xb64   : > { %v6560_v36 = vpop.permute.xlu1 %6559 }
 0xb65   : > { %v12400_v55 = vmul.f32 %v6560_v36, %v12311_v33  ;;  %v7401_v33 = vld [vmem:[%s13165_s11] ss:$0 sm:$0xff]  ;;  %v6807_v36 = vld [vmem:[%s13163_s10 + $0x30] sm:$0xff] }
 0xb67   : > { %v6789_v31 = vrot.slane %v12400_v55, 3  ;;  %v6787_v40 = vrot.slane %v12400_v55, 2  ;;  %v6785_v16 = vrot.slane %v12400_v55, 1 }
 0xb69   : > { %v6793_v8 = vrot.slane %v6789_v31, 3  ;;  %v6792_v30 = vrot.slane %v6787_v40, 3  ;;  %v12406_v19 = vsel %vm13166_vm10, %v12400_v55, %v6789_v31  ;;  %v6791_v26 = vrot.slane %v6785_v16, 3  ;;  %v6822_v55 = vld [vmem:[%s13163_s10 + $0xa8] sm:$0xff] }
 0xb6b   : > { %v6800_v39 = vsel %vm13167_vm7, %v6789_v31, %v6793_v8  ;;  %v6799_v13 = vsel %vm13168_vm11, %v6787_v40, %v6792_v30  ;;  %v6798_v56 = vsel %vm13173_vm4, %v6785_v16, %v6791_v26  ;;  %v6806_v31 = vld [vmem:[%s13163_s10 + $0x28] sm:$0xff]  ;;  %v6821_v40 = vld [vmem:[%s13163_s10 + $0xa0] sm:$0xff]  ;;  %v6820_v30 = vld [vmem:[%s13163_s10 + $0x98] sm:$0xff] }
 0xb6c   : > { %7080 = vmatprep.mubr.f32.mxu1 %v6800_v39  ;;  %v6805_v8 = vld [vmem:[%s13163_s10 + $0x20] sm:$0xff]  ;;  %v6804_v39 = vld [vmem:[%s13163_s10 + $0x18] sm:$0xff] }
 0xb6d   : > { %7081 = vmatmul.mubr.f32.vlgmr.msra.gmra.mxu1 %v6799_v13  ;;  %v6819_v13 = vld [vmem:[%s13163_s10 + $0x90] sm:$0xff]  ;;  %v7405_v16 = vld [vmem:[%s9071_s16] ss:$0 sm:$0xff] }
 0xba1   : > { %v6744_v17 = vpop.f32.mrf.mxu1 }
 0xba2   : > { %v6745_v63 = vadd.f32 %v7401_v33, %v6744_v17  ;;  %v6803_v33 = vld [vmem:[%s13163_s10 + $0x10] sm:$0xff]  ;;  %v6818_v17 = vld [vmem:[%s13163_s10 + $0x88] sm:$0xff] }
 0xba3   : > { %v8290_v35 = vpop.f32.mrf.mxu1 }
 0xba4   : > { %v6749_v7 = vsel %vm6748_vm9, %v6745_v63, 0.0  ;;  %v6817_v35 = vld [vmem:[%s13163_s10 + $0x80] sm:$0xff] }
 0xba5   : > { %6750 = vadd.xlane.f32.xlu0 %v6749_v7  ;;  %v6801_v7 = vld [vmem:[%s13163_s10] sm:$0xff] }
 0xc2e   : > { %v6751_v50 = vpop.xlane.xlu0 %6750 }
 0xc2f   : > { %v6753_v58 = vmul.f32 0.015625, %v6751_v50  ;;  %v7114_v50 = vld [vmem:[%s9076_s22 + $0x78] sm:$0xff] }
 0xc31   : > { %v6754_v41 = vsub.f32 %v6745_v63, %v6753_v58  ;;  %v6802_v63 = vld [vmem:[%s13163_s10 + $0x8] sm:$0xff]  ;;  %v7113_v58 = vld [vmem:[%s9076_s22 + $0x70] sm:$0xff] }
 0xc33   : > { %v6755_v29 = vmul.f32 %v6754_v41, %v6754_v41 }
 0xc35   : > { %v6756_v51 = vsel %vm6748_vm9, %v6755_v29, 0.0  ;;  %v7111_v29 = vld [vmem:[%s9076_s22 + $0x60] sm:$0xff] }
 0xc36   : > { %6757 = vadd.xlane.f32.xlu0 %v6756_v51  ;;  %v7109_v51 = vld [vmem:[%s9076_s22 + $0x50] sm:$0xff] }
 0xcbf   : > { %v6758_v18 = vpop.xlane.xlu0 %6757 }
 0xcc0   : > { %v6759_v10 = vmul.f32 0.015625, %v6758_v18  ;;  %v7099_v18 = vld [vmem:[%s9076_s22] sm:$0xff] }
 0xcc2   : > { %v6760_v3 = vadd.f32 1e-05, %v6759_v10 }
 0xcc4   : > { %8880 = vrsqrt.f32 %v6760_v3 }
 0xcd1   : > { %v8881_v45 = vpop.eup %8880 }
 0xcd2   : > { %v6762_v22 = vmul.f32 %v8881_v45, %v6754_v41  ;;  %v7112_v41 = vld [vmem:[%s9076_s22 + $0x68] sm:$0xff]  ;;  %v7979_v45 = vpop.f32.mrf.mxu1 }
 0xcd4   : > { %v6770_v62 = vmul.f32 %v7402_v15, %v6762_v22  ;;  %v7980_v22 = vpop.f32.mrf.mxu1 }
 0xcd6   : > { %v6778_v14 = vadd.f32 %v7403_v60, %v6770_v62 }
 0xcd8   : > { %v6780_v23 = vmul.f32 0.70710677, %v6778_v14  ;;  %v6779_v59 = vmul.f32 0.5, %v6778_v14  ;;  %v7981_v14 = vadd.f32 %v7980_v22, %v7979_v45 }
 0xcda   : > { %8882 = verf.f32 %v6780_v23 }
 0xce7   : > { %v8883_v25 = vpop.eup %8882 }
 0xce8   : > { %v6782_v21 = vadd.f32 1.0, %v8883_v25 }
 0xcea   : > { %v6783_v42 = vmul.f32 %v6782_v21, %v6779_v59 }
 0xcec   : > { %8308 = vmatmul.mubr.msk.f32.vlgmr.msra.gmra.mxu0 %vm13172_vm3, %v6783_v42 }
 0xced   : > { %7913 = vmatpush3.msra.mxu0 %v6816_v27  ;;  %7010 = vmatprep.mubr.f32.mxu0 %v6798_v56 }
 0xcee   : > { %7914 = vmatprep.subr.mxu0 %v6831_v0  ;;  %v7406_v0 = vld [vmem:[#allocation3] ss:$0 sm:$0xff] }
 0xcef   : > { %7915 = vmatpush3.msra.mxu0 %v6815_v54 }
 0xcf0   : > { %7916 = vmatprep.subr.mxu0 %v6830_v9 }
 0xcf1   : > { %7917 = vmatpush3.msra.mxu0 %v6814_v32 }
 0xcf2   : > { %7918 = vmatprep.subr.mxu0 %v6829_v43 }
 0xcf3   : > { %7919 = vmatpush3.msra.mxu0 %v6813_v34 }
 0xcf4   : > { %7920 = vmatprep.subr.mxu0 %v6828_v44 }
 0xcf5   : > { %7921 = vmatpush3.msra.mxu0 %v6812_v48 }
 0xcf6   : > { %7922 = vmatprep.subr.mxu0 %v6827_v2 }
 0xcf7   : > { %7923 = vmatpush3.msra.mxu0 %v6811_v24 }
 0xcf8   : > { %7924 = vmatprep.subr.mxu0 %v6826_v37 }
 0xcf9   : > { %7925 = vmatpush3.msra.mxu0 %v6810_v53 }
 0xcfa   : > { %7926 = vmatprep.subr.mxu0 %v6825_v49 }
 0xcfb   : > { %7927 = vmatpush3.msra.mxu0 %v6809_v6 }
 0xcfc   : > { %7928 = vmatprep.subr.mxu0 %v6824_v12 }
 0xcfd   : > { %7929 = vmatpush3.msra.mxu0 %v6808_v47 }
 0xcfe   : > { %7930 = vmatprep.subr.mxu0 %v6823_v61 }
 0xcff   : > { %7931 = vmatpush3.msra.mxu0 %v6807_v36 }
 0xd00   : > { %7932 = vmatprep.subr.mxu0 %v6822_v55 }
 0xd01   : > { %7933 = vmatpush3.msra.mxu0 %v6806_v31 }
 0xd02   : > { %7934 = vmatprep.subr.mxu0 %v6821_v40 }
 0xd03   : > { %7935 = vmatpush3.msra.mxu0 %v6805_v8 }
 0xd04   : > { %7936 = vmatprep.subr.mxu0 %v6820_v30 }
 0xd05   : > { %7937 = vmatpush3.msra.mxu0 %v6804_v39 }
 0xd06   : > { %7938 = vmatprep.subr.mxu0 %v6819_v13 }
 0xd07   : > { %7939 = vmatpush3.msra.mxu0 %v6803_v33 }
 0xd08   : > { %7940 = vmatprep.subr.mxu0 %v6818_v17 }
 0xd09   : > { %7941 = vmatpush3.msra.mxu0 %v6802_v63 }
 0xd0a   : > { %7942 = vmatprep.subr.mxu0 %v6817_v35 }
 0xd0b   : > { %7943 = vmatpush3.msra.mxu0 %v6801_v7 }
 0xd0c   : > { %7011 = vmatmul.mubr.f32.vlgmr.msra.gmra.mxu0 %v12406_v19  ;;  %8310 = vmatprep.subr.mxu0 %v13039_v28  ;;  %v7110_v19 = vld [vmem:[%s9076_s22 + $0x58] sm:$0xff] }
 0xd0d   : > { %8342 = vmatprep.mubr.msk.f32.mxu0 %vm8933_vm0, %v13039_v28  ;;  %8311 = vmatpush3.msra.mxu0 %v7114_v50  ;;  %vm7198_vm0 = vcmask 1024  }
 0xd0e   : > { %8312 = vmatprep.subr.mxu0 %v13039_v28 }
 0xd0f   : > { %8313 = vmatpush3.msra.mxu0 %v7113_v58 }
 0xd10   : > { %8314 = vmatprep.subr.mxu0 %v13039_v28 }
 0xd11   : > { %8315 = vmatpush3.msra.mxu0 %v7112_v41 }
 0xd12   : > { %8316 = vmatprep.subr.mxu0 %v13039_v28 }
 0xd13   : > { %8317 = vmatpush3.msra.mxu0 %v7111_v29 }
 0xd14   : > { %8318 = vmatprep.subr.mxu0 %v13039_v28 }
 0xd15   : > { %8319 = vmatpush3.msra.mxu0 %v7110_v19 }
 0xd16   : > { %8320 = vmatprep.subr.mxu0 %v13039_v28 }
 0xd17   : > { %8321 = vmatpush3.msra.mxu0 %v7109_v51 }
 0xd18   : > { %8322 = vmatprep.subr.mxu0 %v13039_v28 }
 0xd19   : > { %8323 = vmatpush3.msra.mxu0 %v7108_v38 }
 0xd1a   : > { %8324 = vmatprep.subr.mxu0 %v13039_v28 }
 0xd1b   : > { %8325 = vmatpush3.msra.mxu0 %v7107_v4 }
 0xd1c   : > { %8326 = vmatprep.subr.mxu0 %v13039_v28 }
 0xd1d   : > { %8327 = vmatpush3.msra.mxu0 %v7106_v11 }
 0xd1e   : > { %8328 = vmatprep.subr.mxu0 %v13039_v28 }
 0xd1f   : > { %8329 = vmatpush3.msra.mxu0 %v7105_v57 }
 0xd20   : > { %8330 = vmatprep.subr.mxu0 %v13039_v28 }
 0xd21   : > { %8331 = vmatpush3.msra.mxu0 %v7104_v52 }
 0xd22   : > { %8332 = vmatprep.subr.mxu0 %v13039_v28 }
 0xd23   : > { %8333 = vmatpush3.msra.mxu0 %v7103_v1 }
 0xd24   : > { %8334 = vmatprep.subr.mxu0 %v13039_v28 }
 0xd25   : > { %8335 = vmatpush3.msra.mxu0 %v7102_v5 }
 0xd26   : > { %8336 = vmatprep.subr.mxu0 %v13039_v28 }
 0xd27   : > { %8337 = vmatpush3.msra.mxu0 %v7101_v20 }
 0xd28   : > { %8338 = vmatprep.subr.mxu0 %v13039_v28 }
 0xd29   : > { %8339 = vmatpush3.msra.mxu0 %v7100_v46 }
 0xd2a   : > { %8340 = vmatprep.subr.mxu0 %v13039_v28 }
 0xd2b   : > { %8341 = vmatpush3.msra.mxu0 %v7099_v18 }
 0xdac   : > { %v6942_v10 = vpop.f32.mrf.mxu0 }
 0xdae   : > { %v8309_v3 = vpop.f32.mrf.mxu0 }
 0xdcc   : > { %v7944_v15 = vpop.f32.mrf.mxu0 }
 0xdce   : > { %v7945_v60 = vpop.f32.mrf.mxu0 }
 0xdcf   : > { %v7946_v62 = vadd.f32 %v7945_v60, %v7944_v15 }
 0xdd1   : > { %v7013_v23 = vadd.f32 %v7946_v62, %v6942_v10 }
 0xdd3   : > { %v7083_v25 = vadd.f32 %v7981_v14, %v7013_v23 }
 0xdd5   : > { %v7093_v59 = vadd.f32 %v7405_v16, %v7083_v25 }
 0xdd7   : > { %v7095_v21 = vmul.f32 0.70710677, %v7093_v59  ;;  %v7094_v42 = vmul.f32 0.5, %v7093_v59 }
 0xdd9   : > { %8884 = verf.f32 %v7095_v21 }
 0xde6   : > { %v8885_v26 = vpop.eup %8884 }
 0xde7   : > { %v7097_v28 = vadd.f32 1.0, %v8885_v26 }
 0xde9   : > { %v7098_v27 = vmul.f32 %v7097_v28, %v7094_v42 }
 0xdeb   : > { %8343 = vmatmul.mubr.f32.vlgmr.msra.gmra.mxu0 %v7098_v27 }
 0xeab   : > { %v7188_v56 = vpop.f32.mrf.mxu0 }
 0xeac   : > { %v7189_v54 = vadd.f32 %v7406_v0, %v7188_v56 }
 0xead   : > { %v8344_v9 = vpop.f32.mrf.mxu0 }
 0xeae   : > { %v7407_v32 = vmul.f32 -1.442695, %v7189_v54 }
 0xeb0   : > { %8886 = vpow2.f32 %v7407_v32 }
 0xebd   : > { %v8887_v43 = vpop.eup %8886 }
 0xebe   : > { %v7195_v34 = vadd.f32 1.0, %v8887_v43 }
 0xec0   : > { %8888 = vrcp.f32 %v7195_v34 }
 0xecd   : > { %v8889_v44 = vpop.eup %8888 }
 0xece   : > { %7199 = vst.msk [vmem:[%s923_s26] sm:$0x3] %vm7198_vm0, %v8889_v44 }
 0xecf PF: > { %s73_s9 = sadd.s32 1, %s8898_s9  }
 0xed0   : > { %p70_p5 = scmp.ge.s32.totalorder %s73_s9, 4  }
 0xed2   :  { %72 = sbr.rel (!%p70_p5) target bundleno = 50 (0x32), region = 198 }

</bundles_post_ra>
